<compile_context>
chip_gen: v7x
topology: tpu7x:2x2x1
jax: 0.10.0
libtpu: 0.0.40
codegen_flags: <defaults>
</compile_context>

<pallas_src>
import functools

import jax
import jax.numpy as jnp
import numpy as np
from jax import lax
from jax.experimental import pallas as pl
from jax.experimental.pallas import tpu as pltpu


def _round_up(v, m):
    return (v + m - 1) // m * m


def convt_in_relu_kernel(x_ref, w_ref, mask_ref, o_ref, xs_ref, *,
                         offsets, cin, l_out, inv_count, eps):
    # x_ref:    (nb, Cin, L_in)        bf16  zero-padded, flattened volume
    # w_ref:    (1, Cout_t, 27*Cin)    bf16  taps folded into K
    # mask_ref: (1, L_out)             bf16  1 at real voxels, 0 at phantoms
    # o_ref:    (nb, Cout_t, L_out)    f32   lane-dense output block
    # xs_ref:   (27*Cin, L_out)        bf16  stacked shifted views (staging)
    nb = o_ref.shape[0]
    w = w_ref[0]                                   # (Cout_t, 27*Cin)
    m = mask_ref[...].astype(jnp.float32)          # (1, L_out)

    for b in range(nb):
        # --- stage 27 shifted views of the padded input into the K axis ---
        for t, off in enumerate(offsets):
            xs_ref[t * cin:(t + 1) * cin, :] = x_ref[b, :, off:off + l_out]

        # --- transposed conv: one K=27*Cin bf16 MXU matmul, f32 accumulate,
        #     written straight into the output block (no extra scratch) ---
        o_ref[b] = jnp.dot(w, xs_ref[...], preferred_element_type=jnp.float32)

        # --- InstanceNorm3d (affine=False, biased var) + ReLU, in f32,
        #     two-pass variance with phantom positions masked out ---
        acc = o_ref[b]                                         # (Cout_t, L_out)
        mean = jnp.sum(acc * m, axis=1, keepdims=True) * inv_count
        cen = acc - mean
        var = jnp.sum((cen * m) * cen, axis=1, keepdims=True) * inv_count
        y = cen * lax.rsqrt(var + eps)
        o_ref[b] = jnp.maximum(y, 0.0).astype(o_ref.dtype)


def conv_t_block(x, weight, bias=None, eps=1e-5):
    """ConvTBlock forward.

    x:      (N, Cin, D, H, W) float32 (PyTorch NCDHW)
    weight: (Cin, Cout, 3, 3, 3)      (PyTorch ConvTranspose3d weight layout)
    bias:   (Cout,) — accepted but unused: a per-channel bias is exactly
            cancelled by InstanceNorm's per-channel mean subtraction.
    returns (N, Cout, D, H, W) float32
    """
    del bias  # cancels under InstanceNorm(affine=False)
    N, Cin, D, H, W = x.shape
    Cout = weight.shape[1]
    Dp, Hp, Wp = D + 2, H + 2, W + 2
    Sp = Dp * Hp * Wp
    K = 27 * Cin

    # "Overshot" flat output axis over the (D, Hp, Wp) padded plane: tap
    # (jd,jh,jw) is then a contiguous slice of the flattened padded input at
    # offset jd*Hp*Wp + jh*Wp + jw.  Phantom positions (h>=H or w>=W) are
    # masked out of the stats and sliced away afterwards.
    s_over = D * Hp * Wp
    l_out = _round_up(s_over, 128)            # lane-dense output width
    max_off = 2 * Hp * Wp + 2 * Wp + 2
    l_in = _round_up(l_out + max_off, 128)

    # --- grid decomposition -------------------------------------------------
    # Pack several samples per grid step when that still leaves >= 2 parallel
    # steps (amortizes per-step overhead; keeps both v7x TCs busy).
    nb = 1
    for cand in (4, 2):
        if N % cand == 0 and N // cand >= 2:
            nb = cand
            break
    batch_steps = N // nb
    # If only one batch step remains, split Cout across the two v7x cores
    # (per-channel stats => no cross-tile reduction needed).
    cout_tiles = 2 if (batch_steps < 2 and Cout % 16 == 0) else 1
    cout_t = Cout // cout_tiles

    # --- VMEM budget (per core): double-buffered blocks + staging scratch ---
    vmem_bytes = (2 * nb * Cin * l_in * 2          # x (bf16)
                  + 2 * cout_t * K * 2             # w (bf16)
                  + 2 * l_out * 2                  # mask (bf16)
                  + 2 * nb * cout_t * l_out * 4    # out (f32)
                  + K * l_out * 2)                 # staging scratch (bf16)
    if vmem_bytes > 48 * 1024 * 1024:
        # TODO(synk): add spatial tiling with halo DMA + cross-tile partial
        # mean/var accumulation for very large D*H*W (v7x has only 64 MiB VMEM).
        raise NotImplementedError(
            "volume too large for single-tile VMEM residency; needs halo tiling")
    vmem_limit = int(2 * vmem_bytes) if vmem_bytes > 12 * 1024 * 1024 else None

    # --- input: pad spatially, flatten, pad tail, cast to bf16 ---
    xp = jnp.pad(x, ((0, 0), (0, 0), (1, 1), (1, 1), (1, 1)))
    x_flat = xp.reshape(N, Cin, Sp)
    x_flat = jnp.pad(x_flat, ((0, 0), (0, 0), (0, l_in - Sp)))
    x_flat = x_flat.astype(jnp.bfloat16)

    # --- weights: ConvTranspose(s=1,p=1,k=3) == conv with flipped kernel;
    #     fold the 27 taps into the contraction dim: K index = t*Cin + cin ---
    w_flip = weight[:, :, ::-1, ::-1, ::-1]                         # (Cin,Cout,3,3,3)
    w_k = jnp.transpose(w_flip, (1, 2, 3, 4, 0)).reshape(Cout, K)   # (Cout, 27*Cin)
    w_k = w_k.reshape(cout_tiles, cout_t, K).astype(jnp.bfloat16)

    # --- validity mask for InstanceNorm statistics (bf16: exact 0/1) ---
    p = np.arange(l_out)
    valid = ((p // (Hp * Wp) < D) & ((p // Wp) % Hp < H) & (p % Wp < W))
    mask = jnp.asarray(valid.reshape(1, l_out).astype(np.float32),
                       dtype=jnp.bfloat16)

    offsets = tuple(jd * Hp * Wp + jh * Wp + jw
                    for jd in range(3) for jh in range(3) for jw in range(3))

    kernel = functools.partial(
        convt_in_relu_kernel, offsets=offsets, cin=Cin, l_out=l_out,
        inv_count=1.0 / float(D * H * W), eps=eps)

    out = pl.pallas_call(
        kernel,
        out_shape=jax.ShapeDtypeStruct((N, Cout, l_out), jnp.float32),
        grid_spec=pltpu.PrefetchScalarGridSpec(
            num_scalar_prefetch=0,
            grid=(batch_steps, cout_tiles),
            in_specs=[
                pl.BlockSpec((nb, Cin, l_in), lambda n, c: (n, 0, 0)),
                pl.BlockSpec((1, cout_t, K), lambda n, c: (c, 0, 0)),
                pl.BlockSpec((1, l_out), lambda n, c: (0, 0)),
            ],
            out_specs=pl.BlockSpec((nb, cout_t, l_out), lambda n, c: (n, c, 0)),
            scratch_shapes=[pltpu.VMEM((K, l_out), jnp.bfloat16)],
        ),
        compiler_params=pltpu.CompilerParams(
            dimension_semantics=("parallel", "parallel"),
            vmem_limit_bytes=vmem_limit),
    )(x_flat, w_k, mask)

    # (N, Cout, D, Hp, Wp)[..., :H, :W] is already NCDHW — no transposes.
    # (Slice/compaction fuses into the consumer under jit.)
    y = out[:, :, :s_over].reshape(N, Cout, D, Hp, Wp)[:, :, :, :H, :W]
    return y


def reference(x, weight, bias):
    """Plain-JAX reference (XLA conv, f32 accumulation on bf16-rounded operands)."""
    Cout = weight.shape[1]
    xq = x.astype(jnp.bfloat16).astype(jnp.float32)
    wq = weight.astype(jnp.bfloat16).astype(jnp.float32)
    # Transposed conv (s=1, p=1, k=3) == regular "same" conv with flipped kernel.
    w_t = jnp.transpose(wq[:, :, ::-1, ::-1, ::-1], (1, 0, 2, 3, 4))
    y = lax.conv_general_dilated(
        xq, w_t, window_strides=(1, 1, 1), padding=[(1, 1)] * 3,
        dimension_numbers=("NCDHW", "OIDHW", "NCDHW"),
        precision=lax.Precision.HIGHEST)
    y = y + bias.reshape(1, Cout, 1, 1, 1)   # cancels under InstanceNorm
    mean = jnp.mean(y, axis=(2, 3, 4), keepdims=True)
    var = jnp.mean((y - mean) ** 2, axis=(2, 3, 4), keepdims=True)
    y = (y - mean) * lax.rsqrt(var + 1e-5)
    return jnp.maximum(y, 0.0)


if __name__ == "__main__":
    N, Cin, Cout, D, H, W = 2, 4, 8, 16, 16, 16
    key = jax.random.PRNGKey(0)
    kx, kw, kb = jax.random.split(key, 3)
    x = jax.random.normal(kx, (N, Cin, D, H, W), dtype=jnp.float32)
    weight = jax.random.normal(kw, (Cin, Cout, 3, 3, 3), dtype=jnp.float32) * 0.1
    bias = jax.random.normal(kb, (Cout,), dtype=jnp.float32) * 0.1

    out = jax.block_until_ready(jax.jit(conv_t_block)(x, weight, bias))
    ref = jax.block_until_ready(reference(x, weight, bias))
    assert out.shape == (N, Cout, D, H, W)
    np.testing.assert_allclose(np.asarray(out), np.asarray(ref),
                               rtol=1e-3, atol=1e-3)
    print("KERNEL_OK")
</pallas_src>

<mosaic_0001>
module attributes {stable_mosaic.version = 11 : i64} {
  func.func @convt_in_relu_kernel(%arg0: i32, %arg1: i32, %arg2: memref<1x4x6016xbf16, #tpu.memory_space<vmem>>, %arg3: memref<1x8x108xbf16, #tpu.memory_space<vmem>>, %arg4: memref<1x5248xbf16, #tpu.memory_space<vmem>>, %arg5: memref<1x8x5248xf32, #tpu.memory_space<vmem>>, %arg6: memref<108x5248xbf16, #tpu.memory_space<vmem>>) attributes {dimension_semantics = [#tpu.dimension_semantics<parallel>, #tpu.dimension_semantics<parallel>], iteration_bounds = array<i64: 2, 1>, scalar_prefetch = 0 : i64, scratch_operands = 1 : i64, tpu.core_type = #tpu.core_type<tc>, window_params = [{transform_indices = @transform_0, window_bounds = array<i64: 1, 4, 6016>}, {transform_indices = @transform_1, window_bounds = array<i64: 1, 8, 108>}, {pipeline_mode = #tpu.pipeline_mode<synchronous>, transform_indices = @transform_2, window_bounds = array<i64: 1, 5248>}, {transform_indices = @transform_3, window_bounds = array<i64: 1, 8, 5248>}]} {
    %c0 = arith.constant 0 : index
    %c0_0 = arith.constant 0 : index
    %c0_1 = arith.constant 0 : index
    %0 = vector.load %arg3[%c0, %c0_0, %c0_1] : memref<1x8x108xbf16, #tpu.memory_space<vmem>>, vector<1x8x108xbf16>
    %1 = vector.shape_cast %0 : vector<1x8x108xbf16> to vector<8x108xbf16>
    %c0_2 = arith.constant 0 : index
    %c0_3 = arith.constant 0 : index
    %2 = vector.load %arg4[%c0_2, %c0_3] : memref<1x5248xbf16, #tpu.memory_space<vmem>>, vector<1x5248xbf16>
    %3 = arith.extf %2 : vector<1x5248xbf16> to vector<1x5248xf32>
    %c0_4 = arith.constant 0 : index
    %c0_5 = arith.constant 0 : index
    %c0_6 = arith.constant 0 : index
    %4 = vector.load %arg2[%c0_4, %c0_5, %c0_6] : memref<1x4x6016xbf16, #tpu.memory_space<vmem>>, vector<1x4x5248xbf16>
    %5 = vector.shape_cast %4 : vector<1x4x5248xbf16> to vector<4x5248xbf16>
    %c0_7 = arith.constant 0 : index
    %c0_8 = arith.constant 0 : index
    %6 = vector.load %arg6[%c0_7, %c0_8] : memref<108x5248xbf16, #tpu.memory_space<vmem>>, vector<4x5248xbf16>
    tpu.vector_store %arg6[%c0_7, %c0_8], %5 {strides = array<i32>} : memref<108x5248xbf16, #tpu.memory_space<vmem>>, vector<4x5248xbf16>,
    %c0_9 = arith.constant 0 : index
    %c0_10 = arith.constant 0 : index
    %c1 = arith.constant 1 : index
    %7 = vector.load %arg2[%c0_9, %c0_10, %c1] : memref<1x4x6016xbf16, #tpu.memory_space<vmem>>, vector<1x4x5248xbf16>
    %8 = vector.shape_cast %7 : vector<1x4x5248xbf16> to vector<4x5248xbf16>
    %c4 = arith.constant 4 : index
    %c0_11 = arith.constant 0 : index
    %9 = vector.load %arg6[%c4, %c0_11] : memref<108x5248xbf16, #tpu.memory_space<vmem>>, vector<4x5248xbf16>
    tpu.vector_store %arg6[%c4, %c0_11], %8 {strides = array<i32>} : memref<108x5248xbf16, #tpu.memory_space<vmem>>, vector<4x5248xbf16>,
    %c0_12 = arith.constant 0 : index
    %c0_13 = arith.constant 0 : index
    %c2 = arith.constant 2 : index
    %10 = vector.load %arg2[%c0_12, %c0_13, %c2] : memref<1x4x6016xbf16, #tpu.memory_space<vmem>>, vector<1x4x5248xbf16>
    %11 = vector.shape_cast %10 : vector<1x4x5248xbf16> to vector<4x5248xbf16>
    %c8 = arith.constant 8 : index
    %c0_14 = arith.constant 0 : index
    %12 = vector.load %arg6[%c8, %c0_14] : memref<108x5248xbf16, #tpu.memory_space<vmem>>, vector<4x5248xbf16>
    tpu.vector_store %arg6[%c8, %c0_14], %11 {strides = array<i32>} : memref<108x5248xbf16, #tpu.memory_space<vmem>>, vector<4x5248xbf16>,
    %c0_15 = arith.constant 0 : index
    %c0_16 = arith.constant 0 : index
    %c18 = arith.constant 18 : index
    %13 = vector.load %arg2[%c0_15, %c0_16, %c18] : memref<1x4x6016xbf16, #tpu.memory_space<vmem>>, vector<1x4x5248xbf16>
    %14 = vector.shape_cast %13 : vector<1x4x5248xbf16> to vector<4x5248xbf16>
    %c12 = arith.constant 12 : index
    %c0_17 = arith.constant 0 : index
    %15 = vector.load %arg6[%c12, %c0_17] : memref<108x5248xbf16, #tpu.memory_space<vmem>>, vector<4x5248xbf16>
    tpu.vector_store %arg6[%c12, %c0_17], %14 {strides = array<i32>} : memref<108x5248xbf16, #tpu.memory_space<vmem>>, vector<4x5248xbf16>,
    %c0_18 = arith.constant 0 : index
    %c0_19 = arith.constant 0 : index
    %c19 = arith.constant 19 : index
    %16 = vector.load %arg2[%c0_18, %c0_19, %c19] : memref<1x4x6016xbf16, #tpu.memory_space<vmem>>, vector<1x4x5248xbf16>
    %17 = vector.shape_cast %16 : vector<1x4x5248xbf16> to vector<4x5248xbf16>
    %c16 = arith.constant 16 : index
    %c0_20 = arith.constant 0 : index
    %18 = vector.load %arg6[%c16, %c0_20] : memref<108x5248xbf16, #tpu.memory_space<vmem>>, vector<4x5248xbf16>
    tpu.vector_store %arg6[%c16, %c0_20], %17 {strides = array<i32>} : memref<108x5248xbf16, #tpu.memory_space<vmem>>, vector<4x5248xbf16>,
    %c0_21 = arith.constant 0 : index
    %c0_22 = arith.constant 0 : index
    %c20 = arith.constant 20 : index
    %19 = vector.load %arg2[%c0_21, %c0_22, %c20] : memref<1x4x6016xbf16, #tpu.memory_space<vmem>>, vector<1x4x5248xbf16>
    %20 = vector.shape_cast %19 : vector<1x4x5248xbf16> to vector<4x5248xbf16>
    %c20_23 = arith.constant 20 : index
    %c0_24 = arith.constant 0 : index
    %21 = vector.load %arg6[%c20_23, %c0_24] : memref<108x5248xbf16, #tpu.memory_space<vmem>>, vector<4x5248xbf16>
    tpu.vector_store %arg6[%c20_23, %c0_24], %20 {strides = array<i32>} : memref<108x5248xbf16, #tpu.memory_space<vmem>>, vector<4x5248xbf16>,
    %c0_25 = arith.constant 0 : index
    %c0_26 = arith.constant 0 : index
    %c36 = arith.constant 36 : index
    %22 = vector.load %arg2[%c0_25, %c0_26, %c36] : memref<1x4x6016xbf16, #tpu.memory_space<vmem>>, vector<1x4x5248xbf16>
    %23 = vector.shape_cast %22 : vector<1x4x5248xbf16> to vector<4x5248xbf16>
    %c24 = arith.constant 24 : index
    %c0_27 = arith.constant 0 : index
    %24 = vector.load %arg6[%c24, %c0_27] : memref<108x5248xbf16, #tpu.memory_space<vmem>>, vector<4x5248xbf16>
    tpu.vector_store %arg6[%c24, %c0_27], %23 {strides = array<i32>} : memref<108x5248xbf16, #tpu.memory_space<vmem>>, vector<4x5248xbf16>,
    %c0_28 = arith.constant 0 : index
    %c0_29 = arith.constant 0 : index
    %c37 = arith.constant 37 : index
    %25 = vector.load %arg2[%c0_28, %c0_29, %c37] : memref<1x4x6016xbf16, #tpu.memory_space<vmem>>, vector<1x4x5248xbf16>
    %26 = vector.shape_cast %25 : vector<1x4x5248xbf16> to vector<4x5248xbf16>
    %c28 = arith.constant 28 : index
    %c0_30 = arith.constant 0 : index
    %27 = vector.load %arg6[%c28, %c0_30] : memref<108x5248xbf16, #tpu.memory_space<vmem>>, vector<4x5248xbf16>
    tpu.vector_store %arg6[%c28, %c0_30], %26 {strides = array<i32>} : memref<108x5248xbf16, #tpu.memory_space<vmem>>, vector<4x5248xbf16>,
    %c0_31 = arith.constant 0 : index
    %c0_32 = arith.constant 0 : index
    %c38 = arith.constant 38 : index
    %28 = vector.load %arg2[%c0_31, %c0_32, %c38] : memref<1x4x6016xbf16, #tpu.memory_space<vmem>>, vector<1x4x5248xbf16>
    %29 = vector.shape_cast %28 : vector<1x4x5248xbf16> to vector<4x5248xbf16>
    %c32 = arith.constant 32 : index
    %c0_33 = arith.constant 0 : index
    %30 = vector.load %arg6[%c32, %c0_33] : memref<108x5248xbf16, #tpu.memory_space<vmem>>, vector<4x5248xbf16>
    tpu.vector_store %arg6[%c32, %c0_33], %29 {strides = array<i32>} : memref<108x5248xbf16, #tpu.memory_space<vmem>>, vector<4x5248xbf16>,
    %c0_34 = arith.constant 0 : index
    %c0_35 = arith.constant 0 : index
    %c324 = arith.constant 324 : index
    %31 = vector.load %arg2[%c0_34, %c0_35, %c324] : memref<1x4x6016xbf16, #tpu.memory_space<vmem>>, vector<1x4x5248xbf16>
    %32 = vector.shape_cast %31 : vector<1x4x5248xbf16> to vector<4x5248xbf16>
    %c36_36 = arith.constant 36 : index
    %c0_37 = arith.constant 0 : index
    %33 = vector.load %arg6[%c36_36, %c0_37] : memref<108x5248xbf16, #tpu.memory_space<vmem>>, vector<4x5248xbf16>
    tpu.vector_store %arg6[%c36_36, %c0_37], %32 {strides = array<i32>} : memref<108x5248xbf16, #tpu.memory_space<vmem>>, vector<4x5248xbf16>,
    %c0_38 = arith.constant 0 : index
    %c0_39 = arith.constant 0 : index
    %c325 = arith.constant 325 : index
    %34 = vector.load %arg2[%c0_38, %c0_39, %c325] : memref<1x4x6016xbf16, #tpu.memory_space<vmem>>, vector<1x4x5248xbf16>
    %35 = vector.shape_cast %34 : vector<1x4x5248xbf16> to vector<4x5248xbf16>
    %c40 = arith.constant 40 : index
    %c0_40 = arith.constant 0 : index
    %36 = vector.load %arg6[%c40, %c0_40] : memref<108x5248xbf16, #tpu.memory_space<vmem>>, vector<4x5248xbf16>
    tpu.vector_store %arg6[%c40, %c0_40], %35 {strides = array<i32>} : memref<108x5248xbf16, #tpu.memory_space<vmem>>, vector<4x5248xbf16>,
    %c0_41 = arith.constant 0 : index
    %c0_42 = arith.constant 0 : index
    %c326 = arith.constant 326 : index
    %37 = vector.load %arg2[%c0_41, %c0_42, %c326] : memref<1x4x6016xbf16, #tpu.memory_space<vmem>>, vector<1x4x5248xbf16>
    %38 = vector.shape_cast %37 : vector<1x4x5248xbf16> to vector<4x5248xbf16>
    %c44 = arith.constant 44 : index
    %c0_43 = arith.constant 0 : index
    %39 = vector.load %arg6[%c44, %c0_43] : memref<108x5248xbf16, #tpu.memory_space<vmem>>, vector<4x5248xbf16>
    tpu.vector_store %arg6[%c44, %c0_43], %38 {strides = array<i32>} : memref<108x5248xbf16, #tpu.memory_space<vmem>>, vector<4x5248xbf16>,
    %c0_44 = arith.constant 0 : index
    %c0_45 = arith.constant 0 : index
    %c342 = arith.constant 342 : index
    %40 = vector.load %arg2[%c0_44, %c0_45, %c342] : memref<1x4x6016xbf16, #tpu.memory_space<vmem>>, vector<1x4x5248xbf16>
    %41 = vector.shape_cast %40 : vector<1x4x5248xbf16> to vector<4x5248xbf16>
    %c48 = arith.constant 48 : index
    %c0_46 = arith.constant 0 : index
    %42 = vector.load %arg6[%c48, %c0_46] : memref<108x5248xbf16, #tpu.memory_space<vmem>>, vector<4x5248xbf16>
    tpu.vector_store %arg6[%c48, %c0_46], %41 {strides = array<i32>} : memref<108x5248xbf16, #tpu.memory_space<vmem>>, vector<4x5248xbf16>,
    %c0_47 = arith.constant 0 : index
    %c0_48 = arith.constant 0 : index
    %c343 = arith.constant 343 : index
    %43 = vector.load %arg2[%c0_47, %c0_48, %c343] : memref<1x4x6016xbf16, #tpu.memory_space<vmem>>, vector<1x4x5248xbf16>
    %44 = vector.shape_cast %43 : vector<1x4x5248xbf16> to vector<4x5248xbf16>
    %c52 = arith.constant 52 : index
    %c0_49 = arith.constant 0 : index
    %45 = vector.load %arg6[%c52, %c0_49] : memref<108x5248xbf16, #tpu.memory_space<vmem>>, vector<4x5248xbf16>
    tpu.vector_store %arg6[%c52, %c0_49], %44 {strides = array<i32>} : memref<108x5248xbf16, #tpu.memory_space<vmem>>, vector<4x5248xbf16>,
    %c0_50 = arith.constant 0 : index
    %c0_51 = arith.constant 0 : index
    %c344 = arith.constant 344 : index
    %46 = vector.load %arg2[%c0_50, %c0_51, %c344] : memref<1x4x6016xbf16, #tpu.memory_space<vmem>>, vector<1x4x5248xbf16>
    %47 = vector.shape_cast %46 : vector<1x4x5248xbf16> to vector<4x5248xbf16>
    %c56 = arith.constant 56 : index
    %c0_52 = arith.constant 0 : index
    %48 = vector.load %arg6[%c56, %c0_52] : memref<108x5248xbf16, #tpu.memory_space<vmem>>, vector<4x5248xbf16>
    tpu.vector_store %arg6[%c56, %c0_52], %47 {strides = array<i32>} : memref<108x5248xbf16, #tpu.memory_space<vmem>>, vector<4x5248xbf16>,
    %c0_53 = arith.constant 0 : index
    %c0_54 = arith.constant 0 : index
    %c360 = arith.constant 360 : index
    %49 = vector.load %arg2[%c0_53, %c0_54, %c360] : memref<1x4x6016xbf16, #tpu.memory_space<vmem>>, vector<1x4x5248xbf16>
    %50 = vector.shape_cast %49 : vector<1x4x5248xbf16> to vector<4x5248xbf16>
    %c60 = arith.constant 60 : index
    %c0_55 = arith.constant 0 : index
    %51 = vector.load %arg6[%c60, %c0_55] : memref<108x5248xbf16, #tpu.memory_space<vmem>>, vector<4x5248xbf16>
    tpu.vector_store %arg6[%c60, %c0_55], %50 {strides = array<i32>} : memref<108x5248xbf16, #tpu.memory_space<vmem>>, vector<4x5248xbf16>,
    %c0_56 = arith.constant 0 : index
    %c0_57 = arith.constant 0 : index
    %c361 = arith.constant 361 : index
    %52 = vector.load %arg2[%c0_56, %c0_57, %c361] : memref<1x4x6016xbf16, #tpu.memory_space<vmem>>, vector<1x4x5248xbf16>
    %53 = vector.shape_cast %52 : vector<1x4x5248xbf16> to vector<4x5248xbf16>
    %c64 = arith.constant 64 : index
    %c0_58 = arith.constant 0 : index
    %54 = vector.load %arg6[%c64, %c0_58] : memref<108x5248xbf16, #tpu.memory_space<vmem>>, vector<4x5248xbf16>
    tpu.vector_store %arg6[%c64, %c0_58], %53 {strides = array<i32>} : memref<108x5248xbf16, #tpu.memory_space<vmem>>, vector<4x5248xbf16>,
    %c0_59 = arith.constant 0 : index
    %c0_60 = arith.constant 0 : index
    %c362 = arith.constant 362 : index
    %55 = vector.load %arg2[%c0_59, %c0_60, %c362] : memref<1x4x6016xbf16, #tpu.memory_space<vmem>>, vector<1x4x5248xbf16>
    %56 = vector.shape_cast %55 : vector<1x4x5248xbf16> to vector<4x5248xbf16>
    %c68 = arith.constant 68 : index
    %c0_61 = arith.constant 0 : index
    %57 = vector.load %arg6[%c68, %c0_61] : memref<108x5248xbf16, #tpu.memory_space<vmem>>, vector<4x5248xbf16>
    tpu.vector_store %arg6[%c68, %c0_61], %56 {strides = array<i32>} : memref<108x5248xbf16, #tpu.memory_space<vmem>>, vector<4x5248xbf16>,
    %c0_62 = arith.constant 0 : index
    %c0_63 = arith.constant 0 : index
    %c648 = arith.constant 648 : index
    %58 = vector.load %arg2[%c0_62, %c0_63, %c648] : memref<1x4x6016xbf16, #tpu.memory_space<vmem>>, vector<1x4x5248xbf16>
    %59 = vector.shape_cast %58 : vector<1x4x5248xbf16> to vector<4x5248xbf16>
    %c72 = arith.constant 72 : index
    %c0_64 = arith.constant 0 : index
    %60 = vector.load %arg6[%c72, %c0_64] : memref<108x5248xbf16, #tpu.memory_space<vmem>>, vector<4x5248xbf16>
    tpu.vector_store %arg6[%c72, %c0_64], %59 {strides = array<i32>} : memref<108x5248xbf16, #tpu.memory_space<vmem>>, vector<4x5248xbf16>,
    %c0_65 = arith.constant 0 : index
    %c0_66 = arith.constant 0 : index
    %c649 = arith.constant 649 : index
    %61 = vector.load %arg2[%c0_65, %c0_66, %c649] : memref<1x4x6016xbf16, #tpu.memory_space<vmem>>, vector<1x4x5248xbf16>
    %62 = vector.shape_cast %61 : vector<1x4x5248xbf16> to vector<4x5248xbf16>
    %c76 = arith.constant 76 : index
    %c0_67 = arith.constant 0 : index
    %63 = vector.load %arg6[%c76, %c0_67] : memref<108x5248xbf16, #tpu.memory_space<vmem>>, vector<4x5248xbf16>
    tpu.vector_store %arg6[%c76, %c0_67], %62 {strides = array<i32>} : memref<108x5248xbf16, #tpu.memory_space<vmem>>, vector<4x5248xbf16>,
    %c0_68 = arith.constant 0 : index
    %c0_69 = arith.constant 0 : index
    %c650 = arith.constant 650 : index
    %64 = vector.load %arg2[%c0_68, %c0_69, %c650] : memref<1x4x6016xbf16, #tpu.memory_space<vmem>>, vector<1x4x5248xbf16>
    %65 = vector.shape_cast %64 : vector<1x4x5248xbf16> to vector<4x5248xbf16>
    %c80 = arith.constant 80 : index
    %c0_70 = arith.constant 0 : index
    %66 = vector.load %arg6[%c80, %c0_70] : memref<108x5248xbf16, #tpu.memory_space<vmem>>, vector<4x5248xbf16>
    tpu.vector_store %arg6[%c80, %c0_70], %65 {strides = array<i32>} : memref<108x5248xbf16, #tpu.memory_space<vmem>>, vector<4x5248xbf16>,
    %c0_71 = arith.constant 0 : index
    %c0_72 = arith.constant 0 : index
    %c666 = arith.constant 666 : index
    %67 = vector.load %arg2[%c0_71, %c0_72, %c666] : memref<1x4x6016xbf16, #tpu.memory_space<vmem>>, vector<1x4x5248xbf16>
    %68 = vector.shape_cast %67 : vector<1x4x5248xbf16> to vector<4x5248xbf16>
    %c84 = arith.constant 84 : index
    %c0_73 = arith.constant 0 : index
    %69 = vector.load %arg6[%c84, %c0_73] : memref<108x5248xbf16, #tpu.memory_space<vmem>>, vector<4x5248xbf16>
    tpu.vector_store %arg6[%c84, %c0_73], %68 {strides = array<i32>} : memref<108x5248xbf16, #tpu.memory_space<vmem>>, vector<4x5248xbf16>,
    %c0_74 = arith.constant 0 : index
    %c0_75 = arith.constant 0 : index
    %c667 = arith.constant 667 : index
    %70 = vector.load %arg2[%c0_74, %c0_75, %c667] : memref<1x4x6016xbf16, #tpu.memory_space<vmem>>, vector<1x4x5248xbf16>
    %71 = vector.shape_cast %70 : vector<1x4x5248xbf16> to vector<4x5248xbf16>
    %c88 = arith.constant 88 : index
    %c0_76 = arith.constant 0 : index
    %72 = vector.load %arg6[%c88, %c0_76] : memref<108x5248xbf16, #tpu.memory_space<vmem>>, vector<4x5248xbf16>
    tpu.vector_store %arg6[%c88, %c0_76], %71 {strides = array<i32>} : memref<108x5248xbf16, #tpu.memory_space<vmem>>, vector<4x5248xbf16>,
    %c0_77 = arith.constant 0 : index
    %c0_78 = arith.constant 0 : index
    %c668 = arith.constant 668 : index
    %73 = vector.load %arg2[%c0_77, %c0_78, %c668] : memref<1x4x6016xbf16, #tpu.memory_space<vmem>>, vector<1x4x5248xbf16>
    %74 = vector.shape_cast %73 : vector<1x4x5248xbf16> to vector<4x5248xbf16>
    %c92 = arith.constant 92 : index
    %c0_79 = arith.constant 0 : index
    %75 = vector.load %arg6[%c92, %c0_79] : memref<108x5248xbf16, #tpu.memory_space<vmem>>, vector<4x5248xbf16>
    tpu.vector_store %arg6[%c92, %c0_79], %74 {strides = array<i32>} : memref<108x5248xbf16, #tpu.memory_space<vmem>>, vector<4x5248xbf16>,
    %c0_80 = arith.constant 0 : index
    %c0_81 = arith.constant 0 : index
    %c684 = arith.constant 684 : index
    %76 = vector.load %arg2[%c0_80, %c0_81, %c684] : memref<1x4x6016xbf16, #tpu.memory_space<vmem>>, vector<1x4x5248xbf16>
    %77 = vector.shape_cast %76 : vector<1x4x5248xbf16> to vector<4x5248xbf16>
    %c96 = arith.constant 96 : index
    %c0_82 = arith.constant 0 : index
    %78 = vector.load %arg6[%c96, %c0_82] : memref<108x5248xbf16, #tpu.memory_space<vmem>>, vector<4x5248xbf16>
    tpu.vector_store %arg6[%c96, %c0_82], %77 {strides = array<i32>} : memref<108x5248xbf16, #tpu.memory_space<vmem>>, vector<4x5248xbf16>,
    %c0_83 = arith.constant 0 : index
    %c0_84 = arith.constant 0 : index
    %c685 = arith.constant 685 : index
    %79 = vector.load %arg2[%c0_83, %c0_84, %c685] : memref<1x4x6016xbf16, #tpu.memory_space<vmem>>, vector<1x4x5248xbf16>
    %80 = vector.shape_cast %79 : vector<1x4x5248xbf16> to vector<4x5248xbf16>
    %c100 = arith.constant 100 : index
    %c0_85 = arith.constant 0 : index
    %81 = vector.load %arg6[%c100, %c0_85] : memref<108x5248xbf16, #tpu.memory_space<vmem>>, vector<4x5248xbf16>
    tpu.vector_store %arg6[%c100, %c0_85], %80 {strides = array<i32>} : memref<108x5248xbf16, #tpu.memory_space<vmem>>, vector<4x5248xbf16>,
    %c0_86 = arith.constant 0 : index
    %c0_87 = arith.constant 0 : index
    %c686 = arith.constant 686 : index
    %82 = vector.load %arg2[%c0_86, %c0_87, %c686] : memref<1x4x6016xbf16, #tpu.memory_space<vmem>>, vector<1x4x5248xbf16>
    %83 = vector.shape_cast %82 : vector<1x4x5248xbf16> to vector<4x5248xbf16>
    %c104 = arith.constant 104 : index
    %c0_88 = arith.constant 0 : index
    %84 = vector.load %arg6[%c104, %c0_88] : memref<108x5248xbf16, #tpu.memory_space<vmem>>, vector<4x5248xbf16>
    tpu.vector_store %arg6[%c104, %c0_88], %83 {strides = array<i32>} : memref<108x5248xbf16, #tpu.memory_space<vmem>>, vector<4x5248xbf16>,
    %c0_89 = arith.constant 0 : index
    %c0_90 = arith.constant 0 : index
    %85 = vector.load %arg6[%c0_89, %c0_90] : memref<108x5248xbf16, #tpu.memory_space<vmem>>, vector<108x5248xbf16>
    %cst = arith.constant dense<0.000000e+00> : vector<8x5248xf32>
    %86 = tpu.matmul %1, %85, %cst {dimension_numbers = #tpu.dot_dimension_numbers<[1], [0], [0], [1], [0, 0, 1, 1], [], []>} : vector<8x108xbf16>, vector<108x5248xbf16>, vector<8x5248xf32> -> vector<8x5248xf32>
    %c0_91 = arith.constant 0 : index
    %c0_92 = arith.constant 0 : index
    %c0_93 = arith.constant 0 : index
    %87 = vector.load %arg5[%c0_91, %c0_92, %c0_93] : memref<1x8x5248xf32, #tpu.memory_space<vmem>>, vector<1x8x5248xf32>
    %88 = vector.shape_cast %87 : vector<1x8x5248xf32> to vector<8x5248xf32>
    %89 = vector.shape_cast %86 : vector<8x5248xf32> to vector<1x8x5248xf32>
    tpu.vector_store %arg5[%c0_91, %c0_92, %c0_93], %89 {strides = array<i32>} : memref<1x8x5248xf32, #tpu.memory_space<vmem>>, vector<1x8x5248xf32>,
    %c0_94 = arith.constant 0 : index
    %c0_95 = arith.constant 0 : index
    %c0_96 = arith.constant 0 : index
    %90 = vector.load %arg5[%c0_94, %c0_95, %c0_96] : memref<1x8x5248xf32, #tpu.memory_space<vmem>>, vector<1x8x5248xf32>
    %91 = vector.shape_cast %90 : vector<1x8x5248xf32> to vector<8x5248xf32>
    %92 = vector.broadcast %3 : vector<1x5248xf32> to vector<8x5248xf32>
    %93 = arith.mulf %91, %92 : vector<8x5248xf32>
    %cst_97 = arith.constant dense<0.000000e+00> : vector<8xf32>
    %94 = vector.multi_reduction <add>, %93, %cst_97 [1] : vector<8x5248xf32> to vector<8xf32>
    %95 = vector.shape_cast %94 : vector<8xf32> to vector<8x1xf32>
    %cst_98 = arith.constant 2.44140625E-4 : f32
    %96 = vector.broadcast %cst_98 : f32 to vector<8x1xf32>
    %97 = arith.mulf %95, %96 : vector<8x1xf32>
    %98 = vector.broadcast %97 : vector<8x1xf32> to vector<8x5248xf32>
    %99 = arith.subf %91, %98 : vector<8x5248xf32>
    %100 = vector.broadcast %3 : vector<1x5248xf32> to vector<8x5248xf32>
    %101 = arith.mulf %99, %100 : vector<8x5248xf32>
    %102 = arith.mulf %101, %99 : vector<8x5248xf32>
    %cst_99 = arith.constant dense<0.000000e+00> : vector<8xf32>
    %103 = vector.multi_reduction <add>, %102, %cst_99 [1] : vector<8x5248xf32> to vector<8xf32>
    %104 = vector.shape_cast %103 : vector<8xf32> to vector<8x1xf32>
    %cst_100 = arith.constant 2.44140625E-4 : f32
    %105 = vector.broadcast %cst_100 : f32 to vector<8x1xf32>
    %106 = arith.mulf %104, %105 : vector<8x1xf32>
    %cst_101 = arith.constant 9.99999974E-6 : f32
    %107 = vector.broadcast %cst_101 : f32 to vector<8x1xf32>
    %108 = arith.addf %106, %107 : vector<8x1xf32>
    %109 = math.rsqrt %108 : vector<8x1xf32>
    %110 = vector.broadcast %109 : vector<8x1xf32> to vector<8x5248xf32>
    %111 = arith.mulf %99, %110 : vector<8x5248xf32>
    %cst_102 = arith.constant 0.000000e+00 : f32
    %112 = vector.broadcast %cst_102 : f32 to vector<8x5248xf32>
    %113 = arith.maximumf %111, %112 : vector<8x5248xf32>
    %c0_103 = arith.constant 0 : index
    %c0_104 = arith.constant 0 : index
    %c0_105 = arith.constant 0 : index
    %114 = vector.load %arg5[%c0_103, %c0_104, %c0_105] : memref<1x8x5248xf32, #tpu.memory_space<vmem>>, vector<1x8x5248xf32>
    %115 = vector.shape_cast %114 : vector<1x8x5248xf32> to vector<8x5248xf32>
    %116 = vector.shape_cast %113 : vector<8x5248xf32> to vector<1x8x5248xf32>
    tpu.vector_store %arg5[%c0_103, %c0_104, %c0_105], %116 {strides = array<i32>} : memref<1x8x5248xf32, #tpu.memory_space<vmem>>, vector<1x8x5248xf32>,
    return
  }
  func.func @transform_0(%arg0: i32, %arg1: i32) -> (i32, i32, i32) {
    %c0_i32 = arith.constant 0 : i32
    %c0_i32_0 = arith.constant 0 : i32
    %c0_i32_1 = arith.constant 0 : i32
    return %arg0, %c0_i32, %c0_i32_0 : i32, i32, i32
  }
  func.func @transform_1(%arg0: i32, %arg1: i32) -> (i32, i32, i32) {
    %c0_i32 = arith.constant 0 : i32
    %c0_i32_0 = arith.constant 0 : i32
    %c0_i32_1 = arith.constant 0 : i32
    return %arg1, %c0_i32, %c0_i32_0 : i32, i32, i32
  }
  func.func @transform_2(%arg0: i32, %arg1: i32) -> (i32, i32) {
    %c0_i32 = arith.constant 0 : i32
    %c0_i32_0 = arith.constant 0 : i32
    %c0_i32_1 = arith.constant 0 : i32
    return %c0_i32, %c0_i32_0 : i32, i32
  }
  func.func @transform_3(%arg0: i32, %arg1: i32) -> (i32, i32, i32) {
    %c0_i32 = arith.constant 0 : i32
    %c0_i32_0 = arith.constant 0 : i32
    return %arg0, %arg1, %c0_i32 : i32, i32, i32
  }
}

</mosaic_0001>

<bundles_post_ra>
// kernel: conv_t_block.1
= control target key start
LH: loop header
LB: loop body
LE: loop exit
PB: predicated region body
PF: predicated region fallthrough
CT: control target
= control target key end

     0   :  { %s13610_s12 = smov 0   ;;  %s13612_s13 = smov 0   ;;  %s19077_s0 = inlined_call_operand.vmem [shape: bf16[2,4,6016], index: 0, kind: input, shape index: {}]   ;;  %s19078_s1 = inlined_call_operand.vmem [shape: bf16[1,8,108], index: 1, kind: input, shape index: {}]   ;;  %s19079_s2 = inlined_call_operand.vmem [shape: bf16[1,5248], index: 2, kind: input, shape index: {}]   ;;  %s19080_s3 = inlined_call_operand.vmem [shape: f32[2,8,5248], index: 3, kind: output, shape index: {}]  }
   0x1   :  { %s13614_s14 = smov 0  }
   0x2 LB: > { %s25_s15 = sadd.s32 1, %s13554_s13  ;;  %p12564_p0 = scmp.ge.s32.totalorder %s13558_s14, 1  ;;  %s13558_s14 = sphi %s13614_s14, %s13_s14   ;;  %s13554_s13 = sphi %s13612_s13, %s19496_s13   ;;  %s13550_s12 = sphi %s13610_s12, %s19495_s12  }
   0x3   : > { %p27_p1 = scmp.ge.s32.totalorder %s25_s15, 2  ;;  %p160_p2 = scmp.lt.s32.totalorder %s13558_s14, 3 }
   0x5   : > { %s19498_s15 = smov (%p27_p1, %s25_s15), 0  ;;  %p161_p3 = pnand %p12564_p0, %p160_p2 }
   0x7   : > { %164 = sbr.rel (%p161_p3) target bundleno = 1894 (0x766), region = 32 }
   0xe   : > { %p192_p4 = scmp.lt.s32.totalorder %s13550_s12, 1  ;;  %v476_v0 = vlaneseq  ;;  %v13560_v1 = vmov 1983009808   ;;  %s13561_s20 = smov 127   ;;  %vm693_vm0 = vcmask 1043456   ;;  %vm695_vm1 = vcmask 1039360  }
   0xf   : > { %v474_v2 = vunpack.c.l.s4 %v13560_v1  ;;  %s13562_s21 = smov 126   ;;  %s13563_s22 = smov 110   ;;  %vm1021_vm2 = vcmask 1031168   ;;  %vm1348_vm3 = vcmask 900096   ;;  %vm1674_vm4 = vcmask 891904  }
  0x10   : > { %s19500_s12 = smov (!%p192_p4, %s13550_s12), 1  ;;  %v13630_v3 = vshrl.u32 %v476_v0, 7  ;;  %s13564_s23 = smov 109   ;;  %vm2001_vm5 = vcmask 883712   ;;  %vm2327_vm6 = vcmask 752640   ;;  %vm19081_vm7 = vcmask 744448  }
  0x11   : > { %v475_v4 = vunpack.c.0.s8 %v474_v2  ;;  %s12957_s16 = smul.u32 94, %s19500_s12  ;;  %s13565_s24 = smov 108   ;;  %vm2980_vm8 = vcmask 736256   ;;  %vm3307_vm9 = vcmask 490496   ;;  %vm3633_vm10 = vcmask 482304  }
  0x12   : > { %s13566_s25 = smov 92   ;;  %s13567_s26 = smov 91   ;;  %vm3960_vm11 = vcmask 474112   ;;  %vm4286_vm12 = vcmask 343040   ;;  %vm4613_vm13 = vcmask 334848   ;;  %vm4939_vm14 = vcmask 326656  }
  0x13   : > { %v13634_v5 = vsub.s32 %v475_v4, %v13630_v3  ;;  %s13639_s19 = scalar_lea.vmem %s19077_s0, %s12957_s16  ;;  %s13568_s27 = smov 90   ;;  %vm5266_vm15 = vcmask 195584  }
  0x14   : > { %v13642_v6 = vld [vmem:[%s13639_s19 + $0x8] sm:$0xff]  ;;  %v13645_v7 = vld [vmem:[%s13639_s19] sm:$0xff]  ;;  %v13648_v8 = vld [vmem:[%s13639_s19 + $0x10] sm:$0xff]  ;;  %s13569_s28 = smov 60   ;;  %s13570_s29 = smov 59  }
  0x15   : > { %v13652_v9 = vrot.slane %v13642_v6, %v13634_v5  ;;  %v13656_v10 = vrot.slane %v13645_v7, %v13634_v5  ;;  %v472_v11 = vcombine.low %v13645_v7, %v13645_v7  ;;  %v13666_v12 = vrot.slane %v13648_v8, %v13634_v5  ;;  %v13674_v15 = vld [vmem:[%s13639_s19 + $0x18] sm:$0xff]  ;;  %v13677_v16 = vld [vmem:[%s13639_s19] sm:$0xff]  ;;  %v230_v19 = vld [vmem:[%s13639_s19 + $0x8] sm:$0xff]  ;;  %s13571_s30 = smov 58   ;;  %s13572_s4 = smov 42  }
  0x16   : > { %v502_v14 = vcombine.low %v13648_v8, %v13648_v8  ;;  %v487_v17 = vcombine.low %v13642_v6, %v13642_v6  ;;  %v13682_v18 = vld [vmem:[%s13639_s19 + $0x20] sm:$0xff]  ;;  %12568 = vst.sshfl [vmem:[#allocation2] sm:$0xf pattern:$0x76325410] %v13677_v16  ;;  %v231_v20 = vld [vmem:[%s13639_s19 + $0x10] sm:$0xff]  ;;  %v13693_v21 = vrot.slane %v13674_v15, %v13634_v5  ;;  %v517_v23 = vcombine.low %v13674_v15, %v13674_v15 }
  0x17   : > { %636 = vrot.lane.b32.xlu1 %v13652_v9, %s13561_s20  ;;  %632 = vrot.lane.b32.xlu0 %v13656_v10, %s13561_s20  ;;  %v13669_v13 = vrot.slane %v472_v11, %v13634_v5  ;;  %12570 = vst.sshfl [vmem:[#allocation2 + $0x10] sm:$0xf pattern:$0x76325410] %v230_v19  ;;  %v232_v24 = vld [vmem:[%s13639_s19 + $0x18] sm:$0xff]  ;;  %v532_v27 = vcombine.low %v13682_v18, %v13682_v18  ;;  %v233_v28 = vld [vmem:[%s13639_s19 + $0x20] sm:$0xff] }
  0x18   : > { %v13696_v22 = vrot.slane %v502_v14, %v13634_v5  ;;  %12572 = vst.sshfl [vmem:[#allocation2 + $0x20] sm:$0xf pattern:$0x76325410] %v231_v20  ;;  %v13706_v25 = vrot.slane %v487_v17, %v13634_v5  ;;  %v13709_v26 = vrot.slane %v517_v23, %v13634_v5  ;;  %v13715_v29 = vld [vmem:[%s13639_s19 + $0x28] sm:$0xff]  ;;  %v13719_v30 = vcombine.high %v13677_v16, %v13677_v16  ;;  %v13736_v38 = vld [vmem:[%s13639_s19 + $0x30] sm:$0xff] }
  0x19   : > { %12574 = vst.sshfl [vmem:[#allocation2 + $0x30] sm:$0xf pattern:$0x76325410] %v232_v24  ;;  %v266_v31 = vcombine.high %v230_v19, %v230_v19  ;;  %v281_v32 = vcombine.high %v231_v20, %v231_v20  ;;  %v296_v33 = vcombine.high %v232_v24, %v232_v24  ;;  %v13727_v34 = vrot.slane %v13682_v18, %v13634_v5  ;;  %v234_v37 = vld [vmem:[%s13639_s19 + $0x28] sm:$0xff]  ;;  %v235_v44 = vld [vmem:[%s13639_s19 + $0x30] sm:$0xff] }
  0x1a   : > { %12576 = vst.sshfl [vmem:[#allocation2 + $0x40] sm:$0xf pattern:$0x76325410] %v233_v28  ;;  %v13730_v35 = vrot.slane %v532_v27, %v13634_v5  ;;  %v547_v36 = vcombine.low %v13715_v29, %v13715_v29  ;;  %v311_v39 = vcombine.high %v233_v28, %v233_v28  ;;  %v326_v40 = vcombine.high %v234_v37, %v234_v37  ;;  %v13754_v45 = vld [vmem:[%s13639_s19 + $0x38] sm:$0xff]  ;;  %v13771_v51 = vld [vmem:[%s13639_s19 + $0x40] sm:$0xff] }
  0x1b   : > { %640 = vrot.lane.b32.xlu1 %v13666_v12, %s13561_s20  ;;  %630 = vrot.lane.b32.xlu0 %v13669_v13, %s13561_s20  ;;  %12569 = vst.sshfl [vmem:[#allocation2 + $0x8] sm:$0xf pattern:$0x76325410] %v13719_v30  ;;  %v13745_v41 = vrot.slane %v13715_v29, %v13634_v5  ;;  %v562_v43 = vcombine.low %v13736_v38, %v13736_v38  ;;  %v236_v50 = vld [vmem:[%s13639_s19 + $0x38] sm:$0xff]  ;;  %v237_v56 = vld [vmem:[%s13639_s19 + $0x40] sm:$0xff] }
  0x1c   : > { %12571 = vst.sshfl [vmem:[#allocation2 + $0x18] sm:$0xf pattern:$0x76325410] %v266_v31  ;;  %v13748_v42 = vrot.slane %v547_v36, %v13634_v5  ;;  %v341_v46 = vcombine.high %v235_v44, %v235_v44  ;;  %v13762_v47 = vrot.slane %v13736_v38, %v13634_v5  ;;  %v577_v49 = vcombine.low %v13754_v45, %v13754_v45  ;;  %v13788_v57 = vld [vmem:[%s13639_s19 + $0x48] sm:$0xff]  ;;  %s13573_s5 = smov 41  }
  0x1d   : > { %12573 = vst.sshfl [vmem:[#allocation2 + $0x28] sm:$0xf pattern:$0x76325410] %v281_v32  ;;  %v13765_v48 = vrot.slane %v562_v43, %v13634_v5  ;;  %v356_v52 = vcombine.high %v236_v50, %v236_v50  ;;  %v13779_v53 = vrot.slane %v13754_v45, %v13634_v5  ;;  %v592_v55 = vcombine.low %v13771_v51, %v13771_v51  ;;  %v238_v62 = vld [vmem:[%s13639_s19 + $0x48] sm:$0xff]  ;;  %s13574_s6 = smov 40  }
  0x1e   : > { %12575 = vst.sshfl [vmem:[#allocation2 + $0x38] sm:$0xf pattern:$0x76325410] %v296_v33  ;;  %v13782_v54 = vrot.slane %v577_v49, %v13634_v5  ;;  %v371_v58 = vcombine.high %v237_v56, %v237_v56  ;;  %v13796_v59 = vrot.slane %v13771_v51, %v13634_v5  ;;  %v607_v61 = vcombine.low %v13788_v57, %v13788_v57  ;;  %v13023_v4 = vld [vmem:[%s13639_s19 + $0x50] ss:$0 sps:$4 sm:$0xff]  }
  0x1f   : > { %644 = vrot.lane.b32.xlu1 %v13693_v21, %s13561_s20  ;;  %638 = vrot.lane.b32.xlu0 %v13696_v22, %s13561_s20  ;;  %12578 = vst.sshfl [vmem:[#allocation2 + $0x50] sm:$0xf pattern:$0x76325410] %v234_v37  ;;  %v13799_v60 = vrot.slane %v592_v55, %v13634_v5  ;;  %v386_v63 = vcombine.high %v238_v62, %v238_v62  ;;  %s13575_s7 = smov 24   ;;  %s13576_s8 = smov 23  }
  0x20   : > { %12577 = vst.sshfl [vmem:[#allocation2 + $0x48] sm:$0xf pattern:$0x76325410] %v311_v39  ;;  %v13811_v1 = vrot.slane %v13788_v57, %v13634_v5  ;;  %v13814_v2 = vrot.slane %v607_v61, %v13634_v5  ;;  %v629_v11 = vrot.slane %v13023_v4, %v13634_v5  ;;  %v800_v14 = vcombine.high %v13645_v7, %v13645_v7  ;;  %s13577_s9 = smov 22   ;;  %s13578_s10 = smov 120  }
  0x21   : > { %12579 = vst.sshfl [vmem:[#allocation2 + $0x58] sm:$0xf pattern:$0x76325410] %v326_v40  ;;  %v815_v19 = vcombine.high %v13642_v6, %v13642_v6  ;;  %v830_v20 = vcombine.high %v13648_v8, %v13648_v8  ;;  %v845_v23 = vcombine.high %v13674_v15, %v13674_v15  ;;  %v860_v24 = vcombine.high %v13682_v18, %v13682_v18  ;;  %s13579_s11 = smov 119   ;;  %s13580_s16 = smov 118  }
  0x22   : > { %12580 = vst.sshfl [vmem:[#allocation2 + $0x60] sm:$0xf pattern:$0x76325410] %v235_v44  ;;  %v13828_v17 = vrot.slane %v800_v14, %v13634_v5  ;;  %v875_v27 = vcombine.high %v13715_v29, %v13715_v29  ;;  %v890_v28 = vcombine.high %v13736_v38, %v13736_v38  ;;  %v905_v31 = vcombine.high %v13754_v45, %v13754_v45  ;;  %v13034_v44 = vld [vmem:[%s13639_s19 + $0x50] ss:$0 sps:$4 sm:$0xff]  }
  0x23   : > { %634 = vrot.lane.b32.xlu1 %v13706_v25, %s13561_s20  ;;  %642 = vrot.lane.b32.xlu0 %v13709_v26, %s13561_s20  ;;  %12581 = vst.sshfl [vmem:[#allocation2 + $0x68] sm:$0xf pattern:$0x76325410] %v341_v46  ;;  %v13837_v7 = vrot.slane %v815_v19, %v13634_v5  ;;  %v13846_v6 = vrot.slane %v830_v20, %v13634_v5  ;;  %s13581_s17 = smov 102   ;;  %s13582_s18 = smov 101  }
  0x24   : > { %12582 = vst.sshfl [vmem:[#allocation2 + $0x70] sm:$0xf pattern:$0x76325410] %v236_v50  ;;  %v13855_v8 = vrot.slane %v845_v23, %v13634_v5  ;;  %v13864_v15 = vrot.slane %v860_v24, %v13634_v5  ;;  %v13873_v18 = vrot.slane %v875_v27, %v13634_v5  ;;  %v13882_v29 = vrot.slane %v890_v28, %v13634_v5 }
  0x25   : > { %12583 = vst.sshfl [vmem:[#allocation2 + $0x78] sm:$0xf pattern:$0x76325410] %v356_v52  ;;  %v13891_v32 = vrot.slane %v905_v31, %v13634_v5  ;;  %v920_v33 = vcombine.high %v13771_v51, %v13771_v51  ;;  %v935_v37 = vcombine.high %v13788_v57, %v13788_v57  ;;  %v1283_v51 = vrot.slane %v13034_v44, %v13634_v5 }
  0x26   : > { %12584 = vst.sshfl [vmem:[#allocation2 + $0x80] sm:$0xf pattern:$0x76325410] %v237_v56 }
  0x27   : > { %648 = vrot.lane.b32.xlu1 %v13727_v34, %s13561_s20  ;;  %646 = vrot.lane.b32.xlu0 %v13730_v35, %s13561_s20  ;;  %12585 = vst.sshfl [vmem:[#allocation2 + $0x88] sm:$0xf pattern:$0x76325410] %v371_v58  ;;  %v13900_v36 = vrot.slane %v920_v33, %v13634_v5  ;;  %v13909_v38 = vrot.slane %v935_v37, %v13634_v5 }
  0x28   : > { %12586 = vst.sshfl [vmem:[#allocation2 + $0x90] sm:$0xf pattern:$0x76325410] %v238_v62 }
  0x29   : > { %v12567_v0 = vld.sshfl [vmem:[%s13639_s19 + $0x50] sm:$0x3 pattern:$0x76325410] }
  0x2a   : > { %449 = vst [vmem:[#allocation2 + $0xa0] sm:$0x3] %v12567_v0  ;;  %12587 = vst.sshfl [vmem:[#allocation2 + $0x98] sm:$0xf pattern:$0x76325410] %v386_v63 }
  0x2b   : > { %652 = vrot.lane.b32.xlu1 %v13745_v41, %s13561_s20  ;;  %650 = vrot.lane.b32.xlu0 %v13748_v42, %s13561_s20  ;;  %v13912_v39 = vld.sshfl [vmem:[%s13639_s19 + $0x50] sm:$0x33 pattern:$0x76325410] }
  0x2f   : > { %656 = vrot.lane.b32.xlu1 %v13762_v47, %s13561_s20  ;;  %654 = vrot.lane.b32.xlu0 %v13765_v48, %s13561_s20 }
  0x33   : > { %660 = vrot.lane.b32.xlu1 %v13779_v53, %s13561_s20  ;;  %658 = vrot.lane.b32.xlu0 %v13782_v54, %s13561_s20 }
  0x37   : > { %664 = vrot.lane.b32.xlu1 %v13796_v59, %s13561_s20  ;;  %662 = vrot.lane.b32.xlu0 %v13799_v60, %s13561_s20 }
  0x3b   : > { %668 = vrot.lane.b32.xlu1 %v13811_v1, %s13561_s20  ;;  %666 = vrot.lane.b32.xlu0 %v13814_v2, %s13561_s20 }
  0x3f   : > { %957 = vrot.lane.b32.xlu1 %v13656_v10, %s13562_s21  ;;  %670 = vrot.lane.b32.xlu0 %v629_v11, %s13561_s20  ;;  %s13583_s20 = smov 100  }
  0x43   : > { %961 = vrot.lane.b32.xlu1 %v13652_v9, %s13562_s21  ;;  %959 = vrot.lane.b32.xlu0 %v13828_v17, %s13562_s21 }
  0x47   : > { %965 = vrot.lane.b32.xlu1 %v13666_v12, %s13562_s21  ;;  %963 = vrot.lane.b32.xlu0 %v13837_v7, %s13562_s21 }
  0x4b   : > { %969 = vrot.lane.b32.xlu1 %v13693_v21, %s13562_s21  ;;  %967 = vrot.lane.b32.xlu0 %v13846_v6, %s13562_s21 }
  0x4f   : > { %973 = vrot.lane.b32.xlu1 %v13727_v34, %s13562_s21  ;;  %971 = vrot.lane.b32.xlu0 %v13855_v8, %s13562_s21 }
  0x53   : > { %977 = vrot.lane.b32.xlu1 %v13745_v41, %s13562_s21  ;;  %975 = vrot.lane.b32.xlu0 %v13864_v15, %s13562_s21 }
  0x57   : > { %981 = vrot.lane.b32.xlu1 %v13762_v47, %s13562_s21  ;;  %979 = vrot.lane.b32.xlu0 %v13873_v18, %s13562_s21 }
  0x5b   : > { %985 = vrot.lane.b32.xlu1 %v13779_v53, %s13562_s21  ;;  %983 = vrot.lane.b32.xlu0 %v13882_v29, %s13562_s21 }
  0x5f   : > { %989 = vrot.lane.b32.xlu1 %v13796_v59, %s13562_s21  ;;  %987 = vrot.lane.b32.xlu0 %v13891_v32, %s13562_s21 }
  0x63   : > { %993 = vrot.lane.b32.xlu1 %v13811_v1, %s13562_s21  ;;  %991 = vrot.lane.b32.xlu0 %v13900_v36, %s13562_s21 }
  0x67   : > { %997 = vrot.lane.b32.xlu1 %v13912_v39, %s13562_s21  ;;  %995 = vrot.lane.b32.xlu0 %v13909_v38, %s13562_s21  ;;  %s13584_s21 = smov 84  }
  0x6b   : > { %1286 = vrot.lane.b32.xlu1 %v13656_v10, %s13563_s22  ;;  %1284 = vrot.lane.b32.xlu0 %v13669_v13, %s13563_s22 }
  0x6f   : > { %1290 = vrot.lane.b32.xlu1 %v13652_v9, %s13563_s22  ;;  %1288 = vrot.lane.b32.xlu0 %v13706_v25, %s13563_s22 }
  0x73   : > { %1294 = vrot.lane.b32.xlu1 %v13666_v12, %s13563_s22  ;;  %1292 = vrot.lane.b32.xlu0 %v13696_v22, %s13563_s22 }
  0x77   : > { %1298 = vrot.lane.b32.xlu1 %v13693_v21, %s13563_s22  ;;  %1296 = vrot.lane.b32.xlu0 %v13709_v26, %s13563_s22 }
  0x7b   : > { %1302 = vrot.lane.b32.xlu1 %v13727_v34, %s13563_s22  ;;  %1300 = vrot.lane.b32.xlu0 %v13730_v35, %s13563_s22 }
  0x7f   : > { %1306 = vrot.lane.b32.xlu1 %v13745_v41, %s13563_s22  ;;  %1304 = vrot.lane.b32.xlu0 %v13748_v42, %s13563_s22 }
  0x83   : > { %1310 = vrot.lane.b32.xlu1 %v13762_v47, %s13563_s22  ;;  %1308 = vrot.lane.b32.xlu0 %v13765_v48, %s13563_s22 }
  0x87   : > { %1314 = vrot.lane.b32.xlu1 %v13779_v53, %s13563_s22  ;;  %1312 = vrot.lane.b32.xlu0 %v13782_v54, %s13563_s22 }
  0x89   : > { %v637_v40 = vpop.permute.xlu1 %636  ;;  %v633_v43 = vpop.permute.xlu0 %632 }
  0x8a   : > { %v673_v49 = vrot.slane %v633_v43, 4  ;;  %v675_v58 = vrot.slane %v637_v40, 4 }
  0x8b   : > { %1318 = vrot.lane.b32.xlu1 %v13796_v59, %s13563_s22  ;;  %1316 = vrot.lane.b32.xlu0 %v13799_v60, %s13563_s22 }
  0x8d   : > { %v641_v45 = vpop.permute.xlu1 %640  ;;  %v631_v46 = vpop.permute.xlu0 %630 }
  0x8e   : > { %v672_v50 = vrot.slane %v631_v46, 4  ;;  %v677_v61 = vrot.slane %v641_v45, 4 }
  0x8f   : > { %1322 = vrot.lane.b32.xlu1 %v13811_v1, %s13563_s22  ;;  %1320 = vrot.lane.b32.xlu0 %v13814_v2, %s13563_s22 }
  0x90   : > { %v694_v52 = vsel %vm693_vm0, %v672_v50, %v673_v49 }
  0x91   : > { %v696_v55 = vsel %vm695_vm1, %v631_v46, %v694_v52  ;;  %v645_v56 = vpop.permute.xlu1 %644  ;;  %v639_v57 = vpop.permute.xlu0 %638 }
  0x92   : > { %757 = vst [vmem:[#allocation2] sm:$0xcc] %v696_v55  ;;  %v676_v62 = vrot.slane %v639_v57, 4  ;;  %v679_v20 = vrot.slane %v645_v56, 4 }
  0x93   : > { %1610 = vrot.lane.b32.xlu1 %v13656_v10, %s13564_s23  ;;  %1324 = vrot.lane.b32.xlu0 %v1283_v51, %s13563_s22  ;;  %s13585_s22 = smov 83  }
  0x94   : > { %v701_v63 = vsel %vm693_vm0, %v675_v58, %v676_v62  ;;  %v703_v0 = vsel %vm693_vm0, %v676_v62, %v677_v61 }
  0x95   : > { %v702_v4 = vsel %vm695_vm1, %v637_v40, %v701_v63  ;;  %v704_v11 = vsel %vm695_vm1, %v639_v57, %v703_v0  ;;  %v635_v14 = vpop.permute.xlu1 %634  ;;  %v643_v19 = vpop.permute.xlu0 %642 }
  0x96   : > { %760 = vst [vmem:[#allocation2 + $0x18] sm:$0xcc] %v702_v4  ;;  %761 = vst [vmem:[#allocation2 + $0x20] sm:$0xcc] %v704_v11  ;;  %v674_v23 = vrot.slane %v635_v14, 4  ;;  %v678_v24 = vrot.slane %v643_v19, 4 }
  0x97   : > { %1614 = vrot.lane.b32.xlu1 %v13652_v9, %s13564_s23  ;;  %1612 = vrot.lane.b32.xlu0 %v13828_v17, %s13564_s23 }
  0x98   : > { %v697_v27 = vsel %vm693_vm0, %v673_v49, %v674_v23  ;;  %v699_v28 = vsel %vm693_vm0, %v674_v23, %v675_v58  ;;  %v705_v31 = vsel %vm693_vm0, %v677_v61, %v678_v24  ;;  %v707_v33 = vsel %vm693_vm0, %v678_v24, %v679_v20 }
  0x99   : > { %v698_v37 = vsel %vm695_vm1, %v633_v43, %v697_v27  ;;  %v700_v40 = vsel %vm695_vm1, %v635_v14, %v699_v28  ;;  %v706_v44 = vsel %vm695_vm1, %v641_v45, %v705_v31  ;;  %v708_v46 = vsel %vm695_vm1, %v643_v19, %v707_v33  ;;  %v649_v50 = vpop.permute.xlu1 %648  ;;  %v647_v51 = vpop.permute.xlu0 %646 }
  0x9a   : > { %758 = vst [vmem:[#allocation2 + $0x8] sm:$0xcc] %v698_v37  ;;  %759 = vst [vmem:[#allocation2 + $0x10] sm:$0xcc] %v700_v40  ;;  %v681_v17 = vrot.slane %v649_v50, 4  ;;  %v680_v49 = vrot.slane %v647_v51, 4 }
  0x9b   : > { %762 = vst [vmem:[#allocation2 + $0x28] sm:$0xcc] %v706_v44  ;;  %763 = vst [vmem:[#allocation2 + $0x30] sm:$0xcc] %v708_v46  ;;  %1618 = vrot.lane.b32.xlu1 %v13666_v12, %s13564_s23  ;;  %1616 = vrot.lane.b32.xlu0 %v13837_v7, %s13564_s23 }
  0x9c   : > { %v709_v43 = vsel %vm693_vm0, %v679_v20, %v680_v49  ;;  %v711_v45 = vsel %vm693_vm0, %v680_v49, %v681_v17 }
  0x9d   : > { %v710_v52 = vsel %vm695_vm1, %v645_v56, %v709_v43  ;;  %v712_v55 = vsel %vm695_vm1, %v647_v51, %v711_v45  ;;  %v653_v57 = vpop.permute.xlu1 %652  ;;  %v651_v58 = vpop.permute.xlu0 %650 }
  0x9e   : > { %764 = vst [vmem:[#allocation2 + $0x38] sm:$0xcc] %v710_v52  ;;  %765 = vst [vmem:[#allocation2 + $0x40] sm:$0xcc] %v712_v55  ;;  %v683_v61 = vrot.slane %v653_v57, 4  ;;  %v682_v62 = vrot.slane %v651_v58, 4 }
  0x9f   : > { %1622 = vrot.lane.b32.xlu1 %v13693_v21, %s13564_s23  ;;  %1620 = vrot.lane.b32.xlu0 %v13846_v6, %s13564_s23 }
  0xa0   : > { %v713_v7 = vsel %vm693_vm0, %v681_v17, %v682_v62  ;;  %v715_v63 = vsel %vm693_vm0, %v682_v62, %v683_v61 }
  0xa1   : > { %v714_v56 = vsel %vm695_vm1, %v649_v50, %v713_v7  ;;  %v716_v0 = vsel %vm695_vm1, %v651_v58, %v715_v63  ;;  %v657_v4 = vpop.permute.xlu1 %656  ;;  %v655_v11 = vpop.permute.xlu0 %654 }
  0xa2   : > { %766 = vst [vmem:[#allocation2 + $0x48] sm:$0xcc] %v714_v56  ;;  %767 = vst [vmem:[#allocation2 + $0x50] sm:$0xcc] %v716_v0  ;;  %v685_v14 = vrot.slane %v657_v4, 4  ;;  %v684_v19 = vrot.slane %v655_v11, 4 }
  0xa3   : > { %1626 = vrot.lane.b32.xlu1 %v13727_v34, %s13564_s23  ;;  %1624 = vrot.lane.b32.xlu0 %v13855_v8, %s13564_s23 }
  0xa4   : > { %v717_v6 = vsel %vm693_vm0, %v683_v61, %v684_v19  ;;  %v719_v20 = vsel %vm693_vm0, %v684_v19, %v685_v14 }
  0xa5   : > { %v718_v23 = vsel %vm695_vm1, %v653_v57, %v717_v6  ;;  %v720_v24 = vsel %vm695_vm1, %v655_v11, %v719_v20  ;;  %v661_v27 = vpop.permute.xlu1 %660  ;;  %v659_v28 = vpop.permute.xlu0 %658 }
  0xa6   : > { %768 = vst [vmem:[#allocation2 + $0x58] sm:$0xcc] %v718_v23  ;;  %769 = vst [vmem:[#allocation2 + $0x60] sm:$0xcc] %v720_v24  ;;  %v687_v31 = vrot.slane %v661_v27, 4  ;;  %v686_v33 = vrot.slane %v659_v28, 4 }
  0xa7   : > { %1630 = vrot.lane.b32.xlu1 %v13745_v41, %s13564_s23  ;;  %1628 = vrot.lane.b32.xlu0 %v13864_v15, %s13564_s23 }
  0xa8   : > { %v721_v8 = vsel %vm693_vm0, %v685_v14, %v686_v33  ;;  %v723_v37 = vsel %vm693_vm0, %v686_v33, %v687_v31 }
  0xa9   : > { %v722_v40 = vsel %vm695_vm1, %v657_v4, %v721_v8  ;;  %v724_v44 = vsel %vm695_vm1, %v659_v28, %v723_v37  ;;  %v665_v46 = vpop.permute.xlu1 %664  ;;  %v663_v50 = vpop.permute.xlu0 %662 }
  0xaa   : > { %770 = vst [vmem:[#allocation2 + $0x68] sm:$0xcc] %v722_v40  ;;  %771 = vst [vmem:[#allocation2 + $0x70] sm:$0xcc] %v724_v44  ;;  %v689_v51 = vrot.slane %v665_v46, 4  ;;  %v688_v17 = vrot.slane %v663_v50, 4 }
  0xab   : > { %1634 = vrot.lane.b32.xlu1 %v13762_v47, %s13564_s23  ;;  %1632 = vrot.lane.b32.xlu0 %v13873_v18, %s13564_s23 }
  0xac   : > { %v725_v15 = vsel %vm693_vm0, %v687_v31, %v688_v17  ;;  %v727_v49 = vsel %vm693_vm0, %v688_v17, %v689_v51 }
  0xad   : > { %v726_v43 = vsel %vm695_vm1, %v661_v27, %v725_v15  ;;  %v728_v45 = vsel %vm695_vm1, %v663_v50, %v727_v49  ;;  %v669_v52 = vpop.permute.xlu1 %668  ;;  %v667_v55 = vpop.permute.xlu0 %666 }
  0xae   : > { %772 = vst [vmem:[#allocation2 + $0x78] sm:$0xcc] %v726_v43  ;;  %773 = vst [vmem:[#allocation2 + $0x80] sm:$0xcc] %v728_v45  ;;  %v691_v57 = vrot.slane %v669_v52, 4  ;;  %v690_v58 = vrot.slane %v667_v55, 4 }
  0xaf   : > { %1638 = vrot.lane.b32.xlu1 %v13779_v53, %s13564_s23  ;;  %1636 = vrot.lane.b32.xlu0 %v13882_v29, %s13564_s23 }
  0xb0   : > { %v729_v18 = vsel %vm693_vm0, %v689_v51, %v690_v58  ;;  %v731_v61 = vsel %vm693_vm0, %v690_v58, %v691_v57 }
  0xb1   : > { %v730_v62 = vsel %vm695_vm1, %v665_v46, %v729_v18  ;;  %v732_v7 = vsel %vm695_vm1, %v667_v55, %v731_v61  ;;  %v958_v63 = vpop.permute.xlu1 %957  ;;  %v671_v56 = vpop.permute.xlu0 %670 }
  0xb2   : > { %774 = vst [vmem:[#allocation2 + $0x88] sm:$0xcc] %v730_v62  ;;  %775 = vst [vmem:[#allocation2 + $0x90] sm:$0xcc] %v732_v7  ;;  %v692_v0 = vrot.slane %v671_v56, 4  ;;  %v999_v6 = vrot.slane %v958_v63, 4 }
  0xb3   : > { %1642 = vrot.lane.b32.xlu1 %v13796_v59, %s13564_s23  ;;  %1640 = vrot.lane.b32.xlu0 %v13891_v32, %s13564_s23 }
  0xb4   : > { %v733_v29 = vsel %vm693_vm0, %v691_v57, %v692_v0  ;;  %v735_v4 = vsel %vm695_vm1, %v671_v56, %v692_v0 }
  0xb5   : > { %v734_v11 = vsel %vm695_vm1, %v669_v52, %v733_v29  ;;  %777 = vst [vmem:[#allocation2 + $0xa0] sm:$0xc] %v735_v4  ;;  %v962_v14 = vpop.permute.xlu1 %961  ;;  %v960_v19 = vpop.permute.xlu0 %959  ;;  %vm5592_vm1 = vcmask 187392  }
  0xb6   : > { %776 = vst [vmem:[#allocation2 + $0x98] sm:$0xcc] %v734_v11  ;;  %v1001_v20 = vrot.slane %v962_v14, 4  ;;  %v1000_v23 = vrot.slane %v960_v19, 4 }
  0xb7   : > { %1646 = vrot.lane.b32.xlu1 %v13811_v1, %s13564_s23  ;;  %1644 = vrot.lane.b32.xlu0 %v13900_v36, %s13564_s23 }
  0xb8   : > { %v1020_v32 = vsel %vm693_vm0, %v999_v6, %v1000_v23  ;;  %v1023_v24 = vsel %vm693_vm0, %v1000_v23, %v1001_v20 }
  0xb9   : > { %v1022_v27 = vsel %vm1021_vm2, %v958_v63, %v1020_v32  ;;  %v1024_v28 = vsel %vm1021_vm2, %v960_v19, %v1023_v24  ;;  %v966_v31 = vpop.permute.xlu1 %965  ;;  %v964_v33 = vpop.permute.xlu0 %963 }
  0xba   : > { %1083 = vst [vmem:[#allocation2 + $0xa4] sm:$0x33] %v1022_v27  ;;  %1084 = vst [vmem:[#allocation2 + $0xac] sm:$0x33] %v1024_v28  ;;  %v1003_v8 = vrot.slane %v966_v31, 4  ;;  %v1002_v37 = vrot.slane %v964_v33, 4 }
  0xbb   : > { %1650 = vrot.lane.b32.xlu1 %v13912_v39, %s13564_s23  ;;  %1648 = vrot.lane.b32.xlu0 %v13909_v38, %s13564_s23  ;;  %s13586_s23 = smov 82  }
  0xbc   : > { %v1025_v36 = vsel %vm693_vm0, %v1001_v20, %v1002_v37  ;;  %v1027_v40 = vsel %vm693_vm0, %v1002_v37, %v1003_v8 }
  0xbd   : > { %v1026_v44 = vsel %vm1021_vm2, %v962_v14, %v1025_v36  ;;  %v1028_v46 = vsel %vm1021_vm2, %v964_v33, %v1027_v40  ;;  %v970_v50 = vpop.permute.xlu1 %969  ;;  %v968_v51 = vpop.permute.xlu0 %967 }
  0xbe   : > { %1085 = vst [vmem:[#allocation2 + $0xb4] sm:$0x33] %v1026_v44  ;;  %1086 = vst [vmem:[#allocation2 + $0xbc] sm:$0x33] %v1028_v46  ;;  %v1005_v17 = vrot.slane %v970_v50, 4  ;;  %v1004_v15 = vrot.slane %v968_v51, 4 }
  0xbf   : > { %1939 = vrot.lane.b32.xlu1 %v13656_v10, %s13565_s24  ;;  %1937 = vrot.lane.b32.xlu0 %v13669_v13, %s13565_s24 }
  0xc0   : > { %v1029_v38 = vsel %vm693_vm0, %v1003_v8, %v1004_v15  ;;  %v1031_v39 = vsel %vm693_vm0, %v1004_v15, %v1005_v17 }
  0xc1   : > { %v1030_v49 = vsel %vm1021_vm2, %v966_v31, %v1029_v38  ;;  %v1032_v43 = vsel %vm1021_vm2, %v968_v51, %v1031_v39  ;;  %v974_v45 = vpop.permute.xlu1 %973  ;;  %v972_v52 = vpop.permute.xlu0 %971 }
  0xc2   : > { %1087 = vst [vmem:[#allocation2 + $0xc4] sm:$0x33] %v1030_v49  ;;  %1088 = vst [vmem:[#allocation2 + $0xcc] sm:$0x33] %v1032_v43  ;;  %v1007_v55 = vrot.slane %v974_v45, 4  ;;  %v1006_v57 = vrot.slane %v972_v52, 4 }
  0xc3   : > { %1943 = vrot.lane.b32.xlu1 %v13652_v9, %s13565_s24  ;;  %1941 = vrot.lane.b32.xlu0 %v13706_v25, %s13565_s24 }
  0xc4   : > { %v1033_v10 = vsel %vm693_vm0, %v1005_v17, %v1006_v57  ;;  %v1035_v13 = vsel %vm693_vm0, %v1006_v57, %v1007_v55 }
  0xc5   : > { %v1034_v58 = vsel %vm1021_vm2, %v970_v50, %v1033_v10  ;;  %v1036_v18 = vsel %vm1021_vm2, %v972_v52, %v1035_v13  ;;  %v978_v61 = vpop.permute.xlu1 %977  ;;  %v976_v62 = vpop.permute.xlu0 %975 }
  0xc6   : > { %1089 = vst [vmem:[#allocation2 + $0xd4] sm:$0x33] %v1034_v58  ;;  %1090 = vst [vmem:[#allocation2 + $0xdc] sm:$0x33] %v1036_v18  ;;  %v1009_v7 = vrot.slane %v978_v61, 4  ;;  %v1008_v63 = vrot.slane %v976_v62, 4 }
  0xc7   : > { %1947 = vrot.lane.b32.xlu1 %v13666_v12, %s13565_s24  ;;  %1945 = vrot.lane.b32.xlu0 %v13696_v22, %s13565_s24 }
  0xc8   : > { %v1037_v9 = vsel %vm693_vm0, %v1007_v55, %v1008_v63  ;;  %v1039_v25 = vsel %vm693_vm0, %v1008_v63, %v1009_v7 }
  0xc9   : > { %v1038_v56 = vsel %vm1021_vm2, %v974_v45, %v1037_v9  ;;  %v1040_v0 = vsel %vm1021_vm2, %v976_v62, %v1039_v25  ;;  %v982_v29 = vpop.permute.xlu1 %981  ;;  %v980_v4 = vpop.permute.xlu0 %979 }
  0xca   : > { %1091 = vst [vmem:[#allocation2 + $0xe4] sm:$0x33] %v1038_v56  ;;  %1092 = vst [vmem:[#allocation2 + $0xec] sm:$0x33] %v1040_v0  ;;  %v1011_v11 = vrot.slane %v982_v29, 4  ;;  %v1010_v14 = vrot.slane %v980_v4, 4 }
  0xcb   : > { %1951 = vrot.lane.b32.xlu1 %v13693_v21, %s13565_s24  ;;  %1949 = vrot.lane.b32.xlu0 %v13709_v26, %s13565_s24  ;;  %v14136_v56 = vld [vmem:[%s13639_s19 + $0x8] sm:$0xff] }
  0xcc   : > { %v1041_v12 = vsel %vm693_vm0, %v1009_v7, %v1010_v14  ;;  %v1043_v22 = vsel %vm693_vm0, %v1010_v14, %v1011_v11  ;;  %v14145_v14 = vrot.slane %v14136_v56, %v13634_v5 }
  0xcd   : > { %v1042_v19 = vsel %vm1021_vm2, %v978_v61, %v1041_v12  ;;  %v1044_v6 = vsel %vm1021_vm2, %v980_v4, %v1043_v22  ;;  %v986_v20 = vpop.permute.xlu1 %985  ;;  %v984_v23 = vpop.permute.xlu0 %983  ;;  %v14149_v12 = vrot.slane %v13719_v30, %v13634_v5  ;;  %v2121_v22 = vcombine.high %v14136_v56, %v14136_v56 }
  0xce   : > { %1093 = vst [vmem:[#allocation2 + $0xf4] sm:$0x33] %v1042_v19  ;;  %1094 = vst [vmem:[#allocation2 + $0xfc] sm:$0x33] %v1044_v6  ;;  %v1013_v32 = vrot.slane %v986_v20, 4  ;;  %v1012_v24 = vrot.slane %v984_v23, 4 }
  0xcf   : > { %1955 = vrot.lane.b32.xlu1 %v13727_v34, %s13565_s24  ;;  %1953 = vrot.lane.b32.xlu0 %v13730_v35, %s13565_s24 }
  0xd0   : > { %v1045_v21 = vsel %vm693_vm0, %v1011_v11, %v1012_v24  ;;  %v1047_v26 = vsel %vm693_vm0, %v1012_v24, %v1013_v32 }
  0xd1   : > { %v1046_v27 = vsel %vm1021_vm2, %v982_v29, %v1045_v21  ;;  %v1048_v28 = vsel %vm1021_vm2, %v984_v23, %v1047_v26  ;;  %v990_v31 = vpop.permute.xlu1 %989  ;;  %v988_v33 = vpop.permute.xlu0 %987 }
  0xd2   : > { %1095 = vst [vmem:[#allocation2 + $0x104] sm:$0x33] %v1046_v27  ;;  %1096 = vst [vmem:[#allocation2 + $0x10c] sm:$0x33] %v1048_v28  ;;  %v1015_v8 = vrot.slane %v990_v31, 4  ;;  %v1014_v37 = vrot.slane %v988_v33, 4 }
  0xd3   : > { %1959 = vrot.lane.b32.xlu1 %v13745_v41, %s13565_s24  ;;  %1957 = vrot.lane.b32.xlu0 %v13748_v42, %s13565_s24 }
  0xd4   : > { %v1049_v34 = vsel %vm693_vm0, %v1013_v32, %v1014_v37  ;;  %v1051_v35 = vsel %vm693_vm0, %v1014_v37, %v1015_v8 }
  0xd5   : > { %v1050_v36 = vsel %vm1021_vm2, %v986_v20, %v1049_v34  ;;  %v1052_v40 = vsel %vm1021_vm2, %v988_v33, %v1051_v35  ;;  %v994_v44 = vpop.permute.xlu1 %993  ;;  %v992_v46 = vpop.permute.xlu0 %991  ;;  %v14156_v20 = vld [vmem:[%s13639_s19 + $0x10] sm:$0xff]  ;;  %v2135_v33 = vrot.slane %v2121_v22, %v13634_v5  ;;  %v2087_v35 = vld [vmem:[%s13639_s19 + $0x18] sm:$0xff] }
  0xd6   : > { %1097 = vst [vmem:[#allocation2 + $0x114] sm:$0x33] %v1050_v36  ;;  %1098 = vst [vmem:[#allocation2 + $0x11c] sm:$0x33] %v1052_v40  ;;  %v1017_v50 = vrot.slane %v994_v44, 4  ;;  %v1016_v51 = vrot.slane %v992_v46, 4 }
  0xd7   : > { %1963 = vrot.lane.b32.xlu1 %v13762_v47, %s13565_s24  ;;  %1961 = vrot.lane.b32.xlu0 %v13765_v48, %s13565_s24 }
  0xd8   : > { %v1053_v41 = vsel %vm693_vm0, %v1015_v8, %v1016_v51  ;;  %v1055_v42 = vsel %vm693_vm0, %v1016_v51, %v1017_v50  ;;  %v2136_v8 = vcombine.high %v14156_v20, %v14156_v20 }
  0xd9   : > { %v1054_v17 = vsel %vm1021_vm2, %v990_v31, %v1053_v41  ;;  %v1056_v15 = vsel %vm1021_vm2, %v992_v46, %v1055_v42  ;;  %v998_v38 = vpop.permute.xlu1 %997  ;;  %v996_v39 = vpop.permute.xlu0 %995  ;;  %v14166_v31 = vrot.slane %v14156_v20, %v13634_v5 }
  0xda   : > { %1099 = vst [vmem:[#allocation2 + $0x124] sm:$0x33] %v1054_v17  ;;  %1100 = vst [vmem:[#allocation2 + $0x12c] sm:$0x33] %v1056_v15  ;;  %v1019_v49 = vrot.slane %v998_v38, 4  ;;  %v1018_v43 = vrot.slane %v996_v39, 4  ;;  %v2158_v17 = vrot.slane %v2087_v35, %v13634_v5  ;;  %v2150_v15 = vrot.slane %v2136_v8, %v13634_v5 }
  0xdb   : > { %1967 = vrot.lane.b32.xlu1 %v13779_v53, %s13565_s24  ;;  %1965 = vrot.lane.b32.xlu0 %v13782_v54, %s13565_s24  ;;  %v13035_v54 = vld [vmem:[%s13639_s19 + $0x50] ss:$0 sps:$4 sm:$0xff]  }
  0xdc   : > { %v1061_v47 = vsel %vm1021_vm2, %v998_v38, %v1019_v49  ;;  %v1057_v48 = vsel %vm693_vm0, %v1017_v50, %v1018_v43  ;;  %v1059_v45 = vsel %vm693_vm0, %v1018_v43, %v1019_v49  ;;  %v2151_v38 = vcombine.high %v2087_v35, %v2087_v35  ;;  %v2088_v43 = vld [vmem:[%s13639_s19 + $0x20] sm:$0xff] }
  0xdd   : > { %1103 = vst [vmem:[#allocation2 + $0x144] sm:$0x3] %v1061_v47  ;;  %v1058_v52 = vsel %vm1021_vm2, %v994_v44, %v1057_v48  ;;  %v1060_v55 = vsel %vm1021_vm2, %v996_v39, %v1059_v45  ;;  %v1287_v57 = vpop.permute.xlu1 %1286  ;;  %v1285_v10 = vpop.permute.xlu0 %1284  ;;  %vm5919_vm2 = vcmask 179200  }
  0xde   : > { %1101 = vst [vmem:[#allocation2 + $0x134] sm:$0x33] %v1058_v52  ;;  %1102 = vst [vmem:[#allocation2 + $0x13c] sm:$0x33] %v1060_v55  ;;  %v1327_v53 = vrot.slane %v1287_v57, 4  ;;  %v1326_v13 = vrot.slane %v1285_v10, 4 }
  0xdf   : > { %1971 = vrot.lane.b32.xlu1 %v13796_v59, %s13565_s24  ;;  %1969 = vrot.lane.b32.xlu0 %v13799_v60, %s13565_s24  ;;  %v14130_v59 = vrot.slane %v13677_v16, %v13634_v5  ;;  %v1936_v60 = vrot.slane %v13035_v54, %v13634_v5 }
  0xe0   : > { %v1347_v58 = vsel %vm693_vm0, %v1326_v13, %v1327_v53  ;;  %v2166_v13 = vcombine.high %v2088_v43, %v2088_v43 }
  0xe1   : > { %v1349_v18 = vsel %vm1348_vm3, %v1285_v10, %v1347_v58  ;;  %v1291_v61 = vpop.permute.xlu1 %1290  ;;  %v1289_v62 = vpop.permute.xlu0 %1288  ;;  %v2173_v10 = vrot.slane %v2088_v43, %v13634_v5 }
  0xe2   : > { %1410 = vst [vmem:[#allocation2 + $0xa4] sm:$0xcc] %v1349_v18  ;;  %v1329_v7 = vrot.slane %v1291_v61, 4  ;;  %v1328_v63 = vrot.slane %v1289_v62, 4  ;;  %v2089_v18 = vld [vmem:[%s13639_s19 + $0x28] sm:$0xff] }
  0xe3   : > { %1975 = vrot.lane.b32.xlu1 %v13811_v1, %s13565_s24  ;;  %1973 = vrot.lane.b32.xlu0 %v13814_v2, %s13565_s24 }
  0xe4   : > { %v1350_v9 = vsel %vm693_vm0, %v1327_v53, %v1328_v63  ;;  %v1352_v25 = vsel %vm693_vm0, %v1328_v63, %v1329_v7  ;;  %v2165_v53 = vrot.slane %v2151_v38, %v13634_v5 }
  0xe5   : > { %v1351_v0 = vsel %vm1348_vm3, %v1287_v57, %v1350_v9  ;;  %v1353_v1 = vsel %vm1348_vm3, %v1289_v62, %v1352_v25  ;;  %v1295_v29 = vpop.permute.xlu1 %1294  ;;  %v1293_v4 = vpop.permute.xlu0 %1292  ;;  %v2188_v25 = vrot.slane %v2089_v18, %v13634_v5 }
  0xe6   : > { %1411 = vst [vmem:[#allocation2 + $0xac] sm:$0xcc] %v1351_v0  ;;  %1412 = vst [vmem:[#allocation2 + $0xb4] sm:$0xcc] %v1353_v1  ;;  %v1331_v2 = vrot.slane %v1295_v29, 4  ;;  %v1330_v11 = vrot.slane %v1293_v4, 4  ;;  %v2180_v0 = vrot.slane %v2166_v13, %v13634_v5  ;;  %v2181_v1 = vcombine.high %v2089_v18, %v2089_v18 }
  0xe7   : > { %2263 = vrot.lane.b32.xlu1 %v14130_v59, %s13566_s25  ;;  %1977 = vrot.lane.b32.xlu0 %v1936_v60, %s13565_s24 }
  0xe8   : > { %v1354_v19 = vsel %vm693_vm0, %v1329_v7, %v1330_v11  ;;  %v1356_v6 = vsel %vm693_vm0, %v1330_v11, %v1331_v2 }
  0xe9   : > { %v1355_v23 = vsel %vm1348_vm3, %v1291_v61, %v1354_v19  ;;  %v1357_v32 = vsel %vm1348_vm3, %v1293_v4, %v1356_v6  ;;  %v1299_v24 = vpop.permute.xlu1 %1298  ;;  %v1297_v21 = vpop.permute.xlu0 %1296  ;;  %v13037_v26 = vld [vmem:[#allocation2 + $0x4] ss:$164 sps:$4 sm:$0xff]  }
  0xea   : > { %v13039_v27 = vld [vmem:[#allocation2] ss:$164 sps:$4 sm:$0xff]   ;;  %1413 = vst [vmem:[#allocation2 + $0xbc] sm:$0xcc] %v1355_v23  ;;  %1414 = vst [vmem:[#allocation2 + $0xc4] sm:$0xcc] %v1357_v32  ;;  %10763 = vmatprep.subr.bf16.mxu0 %v13037_v26 }
  0xeb   : > { %v1333_v30 = vrot.slane %v1299_v24, 4  ;;  %v1332_v28 = vrot.slane %v1297_v21, 4  ;;  %2267 = vrot.lane.b32.xlu1 %v14145_v14, %s13566_s25  ;;  %2265 = vrot.lane.b32.xlu0 %v14149_v12, %s13566_s25 }
  0xec   : > { %10764 = vmatpush1.bf16.msra.mxu0 %v13039_v27 }
  0xed   : > { %v1358_v37 = vsel %vm693_vm0, %v1331_v2, %v1332_v28  ;;  %v1360_v34 = vsel %vm693_vm0, %v1332_v28, %v1333_v30  ;;  %v1303_v44 = vpop.permute.xlu1 %1302  ;;  %v1301_v46 = vpop.permute.xlu0 %1300  ;;  %v13040_v50 = vld [vmem:[#allocation2 + $0xc] ss:$164 sps:$4 sm:$0xff]   ;;  %v2091_v28 = vld [vmem:[%s13639_s19 + $0x38] sm:$0xff] }
  0xee   : > { %v1359_v36 = vsel %vm1348_vm3, %v1295_v29, %v1358_v37  ;;  %v1361_v40 = vsel %vm1348_vm3, %v1297_v21, %v1360_v34  ;;  %v13042_v51 = vld [vmem:[#allocation2 + $0x8] ss:$164 sps:$4 sm:$0xff]   ;;  %v1335_v41 = vrot.slane %v1303_v44, 4  ;;  %v1334_v42 = vrot.slane %v1301_v46, 4  ;;  %10804 = vmatprep.subr.bf16.mxu1 %v13040_v50  ;;  %v2090_v2 = vld [vmem:[%s13639_s19 + $0x30] sm:$0xff] }
  0xef   : > { %1415 = vst [vmem:[#allocation2 + $0xcc] sm:$0xcc] %v1359_v36  ;;  %1416 = vst [vmem:[#allocation2 + $0xd4] sm:$0xcc] %v1361_v40  ;;  %2271 = vrot.lane.b32.xlu1 %v14166_v31, %s13566_s25  ;;  %2269 = vrot.lane.b32.xlu0 %v2135_v33, %s13566_s25  ;;  %v2195_v21 = vrot.slane %v2181_v1, %v13634_v5  ;;  %v2196_v26 = vcombine.high %v2090_v2, %v2090_v2 }
  0xf0   : > { %v1362_v39 = vsel %vm693_vm0, %v1333_v30, %v1334_v42  ;;  %v1364_v49 = vsel %vm693_vm0, %v1334_v42, %v1335_v41  ;;  %10805 = vmatpush1.bf16.msra.mxu1 %v13042_v51  ;;  %v2218_v40 = vrot.slane %v2091_v28, %v13634_v5 }
  0xf1   : > { %v1363_v47 = vsel %vm1348_vm3, %v1299_v24, %v1362_v39  ;;  %v1365_v48 = vsel %vm1348_vm3, %v1301_v46, %v1364_v49  ;;  %v1307_v45 = vpop.permute.xlu1 %1306  ;;  %v1305_v52 = vpop.permute.xlu0 %1304  ;;  %v2203_v24 = vrot.slane %v2090_v2, %v13634_v5  ;;  %v2211_v46 = vcombine.high %v2091_v28, %v2091_v28 }
  0xf2   : > { %1417 = vst [vmem:[#allocation2 + $0xdc] sm:$0xcc] %v1363_v47  ;;  %1418 = vst [vmem:[#allocation2 + $0xe4] sm:$0xcc] %v1365_v48  ;;  %v1337_v55 = vrot.slane %v1307_v45, 4  ;;  %v1336_v57 = vrot.slane %v1305_v52, 4 }
  0xf3   : > { %2275 = vrot.lane.b32.xlu1 %v2158_v17, %s13566_s25  ;;  %2273 = vrot.lane.b32.xlu0 %v2150_v15, %s13566_s25  ;;  %v2225_v47 = vrot.slane %v2211_v46, %v13634_v5 }
  0xf4   : > { %v1366_v54 = vsel %vm693_vm0, %v1335_v41, %v1336_v57  ;;  %v1368_v58 = vsel %vm693_vm0, %v1336_v57, %v1337_v55  ;;  %v2092_v41 = vld [vmem:[%s13639_s19 + $0x40] sm:$0xff] }
  0xf5   : > { %v1367_v61 = vsel %vm1348_vm3, %v1303_v44, %v1366_v54  ;;  %v1369_v62 = vsel %vm1348_vm3, %v1305_v52, %v1368_v58  ;;  %v1311_v7 = vpop.permute.xlu1 %1310  ;;  %v1309_v63 = vpop.permute.xlu0 %1308  ;;  %v2210_v44 = vrot.slane %v2196_v26, %v13634_v5  ;;  %v2233_v43 = vrot.slane %v2092_v41, %v13634_v5 }
  0xf6   : > { %1419 = vst [vmem:[#allocation2 + $0xec] sm:$0xcc] %v1367_v61  ;;  %1420 = vst [vmem:[#allocation2 + $0xf4] sm:$0xcc] %v1369_v62  ;;  %v1339_v60 = vrot.slane %v1311_v7, 4  ;;  %v1338_v9 = vrot.slane %v1309_v63, 4  ;;  %v2226_v48 = vcombine.high %v2092_v41, %v2092_v41  ;;  %v2447_v26 = vcombine.low %v14136_v56, %v14136_v56 }
  0xf7   : > { %2279 = vrot.lane.b32.xlu1 %v2173_v10, %s13566_s25  ;;  %2277 = vrot.lane.b32.xlu0 %v2165_v53, %s13566_s25 }
  0xf8   : > { %v1370_v29 = vsel %vm693_vm0, %v1337_v55, %v1338_v9  ;;  %v1372_v4 = vsel %vm693_vm0, %v1338_v9, %v1339_v60  ;;  %v2093_v55 = vld [vmem:[%s13639_s19 + $0x48] sm:$0xff]  ;;  %v2240_v18 = vrot.slane %v2226_v48, %v13634_v5  ;;  %v2454_v56 = vrot.slane %v2447_v26, %v13634_v5 }
  0xf9   : > { %v1371_v11 = vsel %vm1348_vm3, %v1307_v45, %v1370_v29  ;;  %v1373_v22 = vsel %vm1348_vm3, %v1309_v63, %v1372_v4  ;;  %v1315_v19 = vpop.permute.xlu1 %1314  ;;  %v1313_v6 = vpop.permute.xlu0 %1312  ;;  %v2248_v58 = vrot.slane %v2093_v55, %v13634_v5  ;;  %v2241_v61 = vcombine.high %v2093_v55, %v2093_v55 }
  0xfa   : > { %1421 = vst [vmem:[#allocation2 + $0xfc] sm:$0xcc] %v1371_v11  ;;  %1422 = vst [vmem:[#allocation2 + $0x104] sm:$0xcc] %v1373_v22  ;;  %v1341_v23 = vrot.slane %v1315_v19, 4  ;;  %v1340_v32 = vrot.slane %v1313_v6, 4  ;;  %v2432_v4 = vcombine.low %v13677_v16, %v13677_v16 }
  0xfb   : > { %2283 = vrot.lane.b32.xlu1 %v2188_v25, %s13566_s25  ;;  %2281 = vrot.lane.b32.xlu0 %v2180_v0, %s13566_s25  ;;  %v2255_v29 = vrot.slane %v2241_v61, %v13634_v5  ;;  %v12590_v22 = vld.sshfl [vmem:[%s13639_s19 + $0x50] sm:$0x33 pattern:$0x76325410] }
  0xfc   : > { %v1374_v27 = vsel %vm693_vm0, %v1339_v60, %v1340_v32  ;;  %v1376_v30 = vsel %vm693_vm0, %v1340_v32, %v1341_v23  ;;  %v2439_v16 = vrot.slane %v2432_v4, %v13634_v5 }
  0xfd   : > { %v1375_v33 = vsel %vm1348_vm3, %v1311_v7, %v1374_v27  ;;  %v1377_v8 = vsel %vm1348_vm3, %v1313_v6, %v1376_v30  ;;  %v1319_v37 = vpop.permute.xlu1 %1318  ;;  %v1317_v34 = vpop.permute.xlu0 %1316 }
  0xfe   : > { %1423 = vst [vmem:[#allocation2 + $0x10c] sm:$0xcc] %v1375_v33  ;;  %1424 = vst [vmem:[#allocation2 + $0x114] sm:$0xcc] %v1377_v8  ;;  %v1343_v35 = vrot.slane %v1319_v37, 4  ;;  %v1342_v36 = vrot.slane %v1317_v34, 4 }
  0xff   : > { %2287 = vrot.lane.b32.xlu1 %v2203_v24, %s13566_s25  ;;  %2285 = vrot.lane.b32.xlu0 %v2195_v21, %s13566_s25 }
 0x100   : > { %v1378_v50 = vsel %vm693_vm0, %v1341_v23, %v1342_v36  ;;  %v1380_v51 = vsel %vm693_vm0, %v1342_v36, %v1343_v35  ;;  %v2462_v36 = vcombine.low %v14156_v20, %v14156_v20 }
 0x101   : > { %v1379_v42 = vsel %vm1348_vm3, %v1315_v19, %v1378_v50  ;;  %v1381_v17 = vsel %vm1348_vm3, %v1317_v34, %v1380_v51  ;;  %v1323_v15 = vpop.permute.xlu1 %1322  ;;  %v1321_v38 = vpop.permute.xlu0 %1320 }
 0x102   : > { %1425 = vst [vmem:[#allocation2 + $0x11c] sm:$0xcc] %v1379_v42  ;;  %1426 = vst [vmem:[#allocation2 + $0x124] sm:$0xcc] %v1381_v17  ;;  %v1345_v39 = vrot.slane %v1323_v15, 4  ;;  %v1344_v49 = vrot.slane %v1321_v38, 4  ;;  %v2469_v20 = vrot.slane %v2462_v36, %v13634_v5 }
 0x103   : > { %2291 = vrot.lane.b32.xlu1 %v2218_v40, %s13566_s25  ;;  %2289 = vrot.lane.b32.xlu0 %v2210_v44, %s13566_s25 }
 0x104   : > { %v1382_v45 = vsel %vm693_vm0, %v1343_v35, %v1344_v49  ;;  %v1384_v52 = vsel %vm693_vm0, %v1344_v49, %v1345_v39 }
 0x105   : > { %v1383_v57 = vsel %vm1348_vm3, %v1319_v37, %v1382_v45  ;;  %v1385_v10 = vsel %vm1348_vm3, %v1321_v38, %v1384_v52  ;;  %v1611_v53 = vpop.permute.xlu1 %1610  ;;  %v1325_v13 = vpop.permute.xlu0 %1324 }
 0x106   : > { %1427 = vst [vmem:[#allocation2 + $0x12c] sm:$0xcc] %v1383_v57  ;;  %1428 = vst [vmem:[#allocation2 + $0x134] sm:$0xcc] %v1385_v10  ;;  %v1346_v54 = vrot.slane %v1325_v13, 4  ;;  %v1652_v25 = vrot.slane %v1611_v53, 4 }
 0x107   : > { %2295 = vrot.lane.b32.xlu1 %v2233_v43, %s13566_s25  ;;  %2293 = vrot.lane.b32.xlu0 %v2225_v47, %s13566_s25 }
 0x108   : > { %v1386_v62 = vsel %vm693_vm0, %v1345_v39, %v1346_v54  ;;  %v1388_v7 = vsel %vm1348_vm3, %v1325_v13, %v1346_v54  ;;  %v3063_v39 = vld [vmem:[%s13639_s19 + $0x4] sm:$0xff] }
 0x109   : > { %v1387_v63 = vsel %vm1348_vm3, %v1323_v15, %v1386_v62  ;;  %1430 = vst [vmem:[#allocation2 + $0x144] sm:$0xc] %v1388_v7  ;;  %v1615_v60 = vpop.permute.xlu1 %1614  ;;  %v1613_v9 = vpop.permute.xlu0 %1612  ;;  %v3412_v62 = vcombine.high %v3063_v39, %v3063_v39  ;;  %vm19088_vm3 = vcmask 982016  }
 0x10a   : > { %1429 = vst [vmem:[#allocation2 + $0x13c] sm:$0xcc] %v1387_v63  ;;  %v1654_v0 = vrot.slane %v1615_v60, 4  ;;  %v1653_v1 = vrot.slane %v1613_v9, 4 }
 0x10b   : > { %2299 = vrot.lane.b32.xlu1 %v2248_v58, %s13566_s25  ;;  %2297 = vrot.lane.b32.xlu0 %v2240_v18, %s13566_s25 }
 0x10c   : > { %v1673_v2 = vsel %vm693_vm0, %v1652_v25, %v1653_v1  ;;  %v1676_v11 = vsel %vm693_vm0, %v1653_v1, %v1654_v0  ;;  %v14302_v1 = vrot.slane %v3412_v62, %v13634_v5 }
 0x10d   : > { %v1675_v19 = vsel %vm1674_vm4, %v1611_v53, %v1673_v2  ;;  %v1677_v6 = vsel %vm1674_vm4, %v1613_v9, %v1676_v11  ;;  %v1619_v23 = vpop.permute.xlu1 %1618  ;;  %v1617_v32 = vpop.permute.xlu0 %1616 }
 0x10e   : > { %1736 = vst [vmem:[#allocation2 + $0x148] sm:$0x33] %v1675_v19  ;;  %1737 = vst [vmem:[#allocation2 + $0x150] sm:$0x33] %v1677_v6  ;;  %v1656_v24 = vrot.slane %v1619_v23, 4  ;;  %v1655_v21 = vrot.slane %v1617_v32, 4 }
 0x10f   : > { %2303 = vrot.lane.b32.xlu1 %v12590_v22, %s13566_s25  ;;  %2301 = vrot.lane.b32.xlu0 %v2255_v29, %s13566_s25 }
 0x110   : > { %v1678_v27 = vsel %vm693_vm0, %v1654_v0, %v1655_v21  ;;  %v1680_v30 = vsel %vm693_vm0, %v1655_v21, %v1656_v24 }
 0x111   : > { %v1679_v28 = vsel %vm1674_vm4, %v1615_v60, %v1678_v27  ;;  %v1681_v33 = vsel %vm1674_vm4, %v1617_v32, %v1680_v30  ;;  %v1623_v8 = vpop.permute.xlu1 %1622  ;;  %v1621_v37 = vpop.permute.xlu0 %1620 }
 0x112   : > { %1738 = vst [vmem:[#allocation2 + $0x158] sm:$0x33] %v1679_v28  ;;  %1739 = vst [vmem:[#allocation2 + $0x160] sm:$0x33] %v1681_v33  ;;  %v1658_v34 = vrot.slane %v1623_v8, 4  ;;  %v1657_v35 = vrot.slane %v1621_v37, 4 }
 0x113   : > { %2592 = vrot.lane.b32.xlu1 %v14130_v59, %s13567_s26  ;;  %2590 = vrot.lane.b32.xlu0 %v2439_v16, %s13567_s26 }
 0x114   : > { %v1682_v40 = vsel %vm693_vm0, %v1656_v24, %v1657_v35  ;;  %v1684_v44 = vsel %vm693_vm0, %v1657_v35, %v1658_v34 }
 0x115   : > { %v1683_v46 = vsel %vm1674_vm4, %v1619_v23, %v1682_v40  ;;  %v1685_v50 = vsel %vm1674_vm4, %v1621_v37, %v1684_v44  ;;  %v1627_v51 = vpop.permute.xlu1 %1626  ;;  %v1625_v41 = vpop.permute.xlu0 %1624 }
 0x116   : > { %1740 = vst [vmem:[#allocation2 + $0x168] sm:$0x33] %v1683_v46  ;;  %1741 = vst [vmem:[#allocation2 + $0x170] sm:$0x33] %v1685_v50  ;;  %v1660_v42 = vrot.slane %v1627_v51, 4  ;;  %v1659_v17 = vrot.slane %v1625_v41, 4 }
 0x117   : > { %2596 = vrot.lane.b32.xlu1 %v14145_v14, %s13567_s26  ;;  %2594 = vrot.lane.b32.xlu0 %v2454_v56, %s13567_s26  ;;  %v3085_v14 = vcombine.low %v3063_v39, %v3063_v39 }
 0x118   : > { %v1686_v15 = vsel %vm693_vm0, %v1658_v34, %v1659_v17  ;;  %v1688_v38 = vsel %vm693_vm0, %v1659_v17, %v1660_v42 }
 0x119   : > { %v1687_v49 = vsel %vm1674_vm4, %v1623_v8, %v1686_v15  ;;  %v1689_v43 = vsel %vm1674_vm4, %v1625_v41, %v1688_v38  ;;  %v1631_v47 = vpop.permute.xlu1 %1630  ;;  %v1629_v48 = vpop.permute.xlu0 %1628  ;;  %v14291_v61 = vrot.slane %v3085_v14, %v13634_v5 }
 0x11a   : > { %1742 = vst [vmem:[#allocation2 + $0x178] sm:$0x33] %v1687_v49  ;;  %1743 = vst [vmem:[#allocation2 + $0x180] sm:$0x33] %v1689_v43  ;;  %v1662_v45 = vrot.slane %v1631_v47, 4  ;;  %v1661_v52 = vrot.slane %v1629_v48, 4 }
 0x11b   : > { %2600 = vrot.lane.b32.xlu1 %v14166_v31, %s13567_s26  ;;  %2598 = vrot.lane.b32.xlu0 %v2469_v20, %s13567_s26  ;;  %v14288_v31 = vrot.slane %v3063_v39, %v13634_v5 }
 0x11c   : > { %v1690_v55 = vsel %vm693_vm0, %v1660_v42, %v1661_v52  ;;  %v1692_v57 = vsel %vm693_vm0, %v1661_v52, %v1662_v45 }
 0x11d   : > { %v1691_v10 = vsel %vm1674_vm4, %v1627_v51, %v1690_v55  ;;  %v1693_v53 = vsel %vm1674_vm4, %v1629_v48, %v1692_v57  ;;  %v1635_v13 = vpop.permute.xlu1 %1634  ;;  %v1633_v54 = vpop.permute.xlu0 %1632 }
 0x11e   : > { %1744 = vst [vmem:[#allocation2 + $0x188] sm:$0x33] %v1691_v10  ;;  %1745 = vst [vmem:[#allocation2 + $0x190] sm:$0x33] %v1693_v53  ;;  %v1664_v58 = vrot.slane %v1635_v13, 4  ;;  %v1663_v18 = vrot.slane %v1633_v54, 4 }
 0x11f   : > { %2918 = vrot.lane.b32.xlu1 %v14149_v12, %s13568_s27  ;;  %2916 = vrot.lane.b32.xlu0 %v14130_v59, %s13568_s27 }
 0x120   : > { %v1694_v7 = vsel %vm693_vm0, %v1662_v45, %v1663_v18  ;;  %v1696_v63 = vsel %vm693_vm0, %v1663_v18, %v1664_v58  ;;  %v6002_v18 = vld [vmem:[%s13639_s19 + $0xa] sm:$0xff] }
 0x121   : > { %v1695_v60 = vsel %vm1674_vm4, %v1631_v47, %v1694_v7  ;;  %v1697_v9 = vsel %vm1674_vm4, %v1633_v54, %v1696_v63  ;;  %v1639_v25 = vpop.permute.xlu1 %1638  ;;  %v1637_v12 = vpop.permute.xlu0 %1636 }
 0x122   : > { %1746 = vst [vmem:[#allocation2 + $0x198] sm:$0x33] %v1695_v60  ;;  %1747 = vst [vmem:[#allocation2 + $0x1a0] sm:$0x33] %v1697_v9  ;;  %v1666_v59 = vrot.slane %v1639_v25, 4  ;;  %v1665_v0 = vrot.slane %v1637_v12, 4 }
 0x123   : > { %3245 = vrot.lane.b32.xlu1 %v14288_v31, %s13569_s28  ;;  %3243 = vrot.lane.b32.xlu0 %v14291_v61, %s13569_s28 }
 0x124   : > { %v1698_v29 = vsel %vm693_vm0, %v1664_v58, %v1665_v0  ;;  %v1700_v4 = vsel %vm693_vm0, %v1665_v0, %v1666_v59 }
 0x125   : > { %v1699_v2 = vsel %vm1674_vm4, %v1635_v13, %v1698_v29  ;;  %v1701_v11 = vsel %vm1674_vm4, %v1637_v12, %v1700_v4  ;;  %v1643_v22 = vpop.permute.xlu1 %1642  ;;  %v1641_v19 = vpop.permute.xlu0 %1640  ;;  %v6024_v12 = vcombine.high %v6002_v18, %v6002_v18 }
 0x126   : > { %1748 = vst [vmem:[#allocation2 + $0x1a8] sm:$0x33] %v1699_v2  ;;  %1749 = vst [vmem:[#allocation2 + $0x1b0] sm:$0x33] %v1701_v11  ;;  %v1668_v6 = vrot.slane %v1643_v22, 4  ;;  %v1667_v23 = vrot.slane %v1641_v19, 4 }
 0x127   : > { %3571 = vrot.lane.b32.xlu1 %v14302_v1, %s13570_s29  ;;  %3569 = vrot.lane.b32.xlu0 %v14288_v31, %s13570_s29 }
 0x128   : > { %v1702_v32 = vsel %vm693_vm0, %v1666_v59, %v1667_v23  ;;  %v1704_v24 = vsel %vm693_vm0, %v1667_v23, %v1668_v6  ;;  %v6350_v23 = vcombine.low %v6002_v18, %v6002_v18 }
 0x129   : > { %v1703_v21 = vsel %vm1674_vm4, %v1639_v25, %v1702_v32  ;;  %v1705_v16 = vsel %vm1674_vm4, %v1641_v19, %v1704_v24  ;;  %v1647_v26 = vpop.permute.xlu1 %1646  ;;  %v1645_v27 = vpop.permute.xlu0 %1644 }
 0x12a   : > { %1750 = vst [vmem:[#allocation2 + $0x1b8] sm:$0x33] %v1703_v21  ;;  %1751 = vst [vmem:[#allocation2 + $0x1c0] sm:$0x33] %v1705_v16  ;;  %v1670_v30 = vrot.slane %v1647_v26, 4  ;;  %v1669_v28 = vrot.slane %v1645_v27, 4 }
 0x12b   : > { %3898 = vrot.lane.b32.xlu1 %v14288_v31, %s13571_s30  ;;  %3896 = vrot.lane.b32.xlu0 %v14291_v61, %s13571_s30 }
 0x12c   : > { %v1706_v33 = vsel %vm693_vm0, %v1668_v6, %v1669_v28  ;;  %v1708_v8 = vsel %vm693_vm0, %v1669_v28, %v1670_v30  ;;  %v14372_v6 = vrot.slane %v6002_v18, %v13634_v5 }
 0x12d   : > { %v1707_v37 = vsel %vm1674_vm4, %v1643_v22, %v1706_v33  ;;  %v1709_v34 = vsel %vm1674_vm4, %v1645_v27, %v1708_v8  ;;  %v1651_v35 = vpop.permute.xlu1 %1650  ;;  %v1649_v56 = vpop.permute.xlu0 %1648 }
 0x12e   : > { %1752 = vst [vmem:[#allocation2 + $0x1c8] sm:$0x33] %v1707_v37  ;;  %1753 = vst [vmem:[#allocation2 + $0x1d0] sm:$0x33] %v1709_v34  ;;  %v1672_v36 = vrot.slane %v1651_v35, 4  ;;  %v1671_v40 = vrot.slane %v1649_v56, 4 }
 0x12f   : > { %4224 = vrot.lane.b32.xlu1 %v14302_v1, %s13572_s4  ;;  %4222 = vrot.lane.b32.xlu0 %v14288_v31, %s13572_s4 }
 0x130   : > { %v1714_v44 = vsel %vm1674_vm4, %v1651_v35, %v1672_v36  ;;  %v1710_v46 = vsel %vm693_vm0, %v1670_v30, %v1671_v40  ;;  %v1712_v50 = vsel %vm693_vm0, %v1671_v40, %v1672_v36  ;;  %v14383_v30 = vrot.slane %v6350_v23, %v13634_v5 }
 0x131   : > { %1756 = vst [vmem:[#allocation2 + $0x1e8] sm:$0x3] %v1714_v44  ;;  %v1711_v51 = vsel %vm1674_vm4, %v1647_v26, %v1710_v46  ;;  %v1713_v41 = vsel %vm1674_vm4, %v1649_v56, %v1712_v50  ;;  %v1940_v42 = vpop.permute.xlu1 %1939  ;;  %v1938_v17 = vpop.permute.xlu0 %1937  ;;  %vm19089_vm4 = vcmask 973824  }
 0x132   : > { %1754 = vst [vmem:[#allocation2 + $0x1d8] sm:$0x33] %v1711_v51  ;;  %1755 = vst [vmem:[#allocation2 + $0x1e0] sm:$0x33] %v1713_v41  ;;  %v1980_v20 = vrot.slane %v1940_v42, 4  ;;  %v1979_v15 = vrot.slane %v1938_v17, 4 }
 0x133   : > { %4551 = vrot.lane.b32.xlu1 %v14288_v31, %s13573_s5  ;;  %4549 = vrot.lane.b32.xlu0 %v14291_v61, %s13573_s5 }
 0x134   : > { %v2000_v38 = vsel %vm693_vm0, %v1979_v15, %v1980_v20 }
 0x135   : > { %v2002_v39 = vsel %vm2001_vm5, %v1938_v17, %v2000_v38  ;;  %v1944_v49 = vpop.permute.xlu1 %1943  ;;  %v1942_v43 = vpop.permute.xlu0 %1941 }
 0x136   : > { %2063 = vst [vmem:[#allocation2 + $0x148] sm:$0xcc] %v2002_v39  ;;  %v1982_v47 = vrot.slane %v1944_v49, 4  ;;  %v1981_v48 = vrot.slane %v1942_v43, 4 }
 0x137   : > { %4877 = vrot.lane.b32.xlu1 %v14302_v1, %s13574_s6  ;;  %4875 = vrot.lane.b32.xlu0 %v14288_v31, %s13574_s6 }
 0x138   : > { %v2003_v45 = vsel %vm693_vm0, %v1980_v20, %v1981_v48  ;;  %v2005_v52 = vsel %vm693_vm0, %v1981_v48, %v1982_v47 }
 0x139   : > { %v2004_v14 = vsel %vm2001_vm5, %v1940_v42, %v2003_v45  ;;  %v2006_v55 = vsel %vm2001_vm5, %v1942_v43, %v2005_v52  ;;  %v1948_v57 = vpop.permute.xlu1 %1947  ;;  %v1946_v10 = vpop.permute.xlu0 %1945 }
 0x13a   : > { %2064 = vst [vmem:[#allocation2 + $0x150] sm:$0xcc] %v2004_v14  ;;  %2065 = vst [vmem:[#allocation2 + $0x158] sm:$0xcc] %v2006_v55  ;;  %v1984_v53 = vrot.slane %v1948_v57, 4  ;;  %v1983_v13 = vrot.slane %v1946_v10, 4 }
 0x13b   : > { %5204 = vrot.lane.b32.xlu1 %v14288_v31, %s13575_s7  ;;  %5202 = vrot.lane.b32.xlu0 %v14291_v61, %s13575_s7 }
 0x13c   : > { %v2007_v54 = vsel %vm693_vm0, %v1982_v47, %v1983_v13  ;;  %v2009_v58 = vsel %vm693_vm0, %v1983_v13, %v1984_v53 }
 0x13d   : > { %v2008_v62 = vsel %vm2001_vm5, %v1944_v49, %v2007_v54  ;;  %v2010_v7 = vsel %vm2001_vm5, %v1946_v10, %v2009_v58  ;;  %v1952_v63 = vpop.permute.xlu1 %1951  ;;  %v1950_v60 = vpop.permute.xlu0 %1949 }
 0x13e   : > { %2066 = vst [vmem:[#allocation2 + $0x160] sm:$0xcc] %v2008_v62  ;;  %2067 = vst [vmem:[#allocation2 + $0x168] sm:$0xcc] %v2010_v7  ;;  %v1986_v9 = vrot.slane %v1952_v63, 4  ;;  %v1985_v25 = vrot.slane %v1950_v60, 4 }
 0x13f   : > { %5530 = vrot.lane.b32.xlu1 %v14302_v1, %s13576_s8  ;;  %5528 = vrot.lane.b32.xlu0 %v14288_v31, %s13576_s8  ;;  %v14369_v1 = vrot.slane %v6024_v12, %v13634_v5 }
 0x140   : > { %v2011_v59 = vsel %vm693_vm0, %v1984_v53, %v1985_v25  ;;  %v2013_v0 = vsel %vm693_vm0, %v1985_v25, %v1986_v9 }
 0x141   : > { %v2012_v29 = vsel %vm2001_vm5, %v1948_v57, %v2011_v59  ;;  %v2014_v4 = vsel %vm2001_vm5, %v1950_v60, %v2013_v0  ;;  %v1956_v2 = vpop.permute.xlu1 %1955  ;;  %v1954_v11 = vpop.permute.xlu0 %1953 }
 0x142   : > { %2068 = vst [vmem:[#allocation2 + $0x170] sm:$0xcc] %v2012_v29  ;;  %2069 = vst [vmem:[#allocation2 + $0x178] sm:$0xcc] %v2014_v4  ;;  %v1988_v22 = vrot.slane %v1956_v2, 4  ;;  %v1987_v19 = vrot.slane %v1954_v11, 4 }
 0x143   : > { %5857 = vrot.lane.b32.xlu1 %v14288_v31, %s13577_s9  ;;  %5855 = vrot.lane.b32.xlu0 %v14291_v61, %s13577_s9 }
 0x144   : > { %v2015_v32 = vsel %vm693_vm0, %v1986_v9, %v1987_v19  ;;  %v2017_v24 = vsel %vm693_vm0, %v1987_v19, %v1988_v22  ;;  %v14435_v19 = vld [vmem:[%s13639_s19 + $0xc] sm:$0xff] }
 0x145   : > { %v2016_v21 = vsel %vm2001_vm5, %v1952_v63, %v2015_v32  ;;  %v2018_v16 = vsel %vm2001_vm5, %v1954_v11, %v2017_v24  ;;  %v1960_v26 = vpop.permute.xlu1 %1959  ;;  %v1958_v31 = vpop.permute.xlu0 %1957 }
 0x146   : > { %2070 = vst [vmem:[#allocation2 + $0x180] sm:$0xcc] %v2016_v21  ;;  %2071 = vst [vmem:[#allocation2 + $0x188] sm:$0xcc] %v2018_v16  ;;  %v1990_v61 = vrot.slane %v1960_v26, 4  ;;  %v1989_v27 = vrot.slane %v1958_v31, 4 }
 0x147   : > { %6183 = vrot.lane.b32.xlu1 %v14369_v1, %s13578_s10  ;;  %6181 = vrot.lane.b32.xlu0 %v14372_v6, %s13578_s10 }
 0x148   : > { %v2019_v28 = vsel %vm693_vm0, %v1988_v22, %v1989_v27  ;;  %v2021_v33 = vsel %vm693_vm0, %v1989_v27, %v1990_v61 }
 0x149   : > { %v2020_v8 = vsel %vm2001_vm5, %v1956_v2, %v2019_v28  ;;  %v2022_v37 = vsel %vm2001_vm5, %v1958_v31, %v2021_v33  ;;  %v1964_v34 = vpop.permute.xlu1 %1963  ;;  %v1962_v35 = vpop.permute.xlu0 %1961  ;;  %v3100_v31 = vcombine.low %v14435_v19, %v14435_v19  ;;  %v2738_v28 = vld [vmem:[%s13639_s19 + $0x8] sm:$0xff] }
 0x14a   : > { %2072 = vst [vmem:[#allocation2 + $0x190] sm:$0xcc] %v2020_v8  ;;  %2073 = vst [vmem:[#allocation2 + $0x198] sm:$0xcc] %v2022_v37  ;;  %v1992_v56 = vrot.slane %v1964_v34, 4  ;;  %v1991_v36 = vrot.slane %v1962_v35, 4 }
 0x14b   : > { %6510 = vrot.lane.b32.xlu1 %v14372_v6, %s13579_s11  ;;  %6508 = vrot.lane.b32.xlu0 %v14383_v30, %s13579_s11 }
 0x14c   : > { %v2023_v40 = vsel %vm693_vm0, %v1990_v61, %v1991_v36  ;;  %v2025_v44 = vsel %vm693_vm0, %v1991_v36, %v1992_v56  ;;  %v2781_v36 = vrot.slane %v2738_v28, %v13634_v5 }
 0x14d   : > { %v2024_v46 = vsel %vm2001_vm5, %v1960_v26, %v2023_v40  ;;  %v2026_v50 = vsel %vm2001_vm5, %v1962_v35, %v2025_v44  ;;  %v1968_v51 = vpop.permute.xlu1 %1967  ;;  %v1966_v41 = vpop.permute.xlu0 %1965 }
 0x14e   : > { %2074 = vst [vmem:[#allocation2 + $0x1a0] sm:$0xcc] %v2024_v46  ;;  %2075 = vst [vmem:[#allocation2 + $0x1a8] sm:$0xcc] %v2026_v50  ;;  %v1994_v42 = vrot.slane %v1968_v51, 4  ;;  %v1993_v17 = vrot.slane %v1966_v41, 4 }
 0x14f   : > { %6836 = vrot.lane.b32.xlu1 %v14369_v1, %s13580_s16  ;;  %6834 = vrot.lane.b32.xlu0 %v14372_v6, %s13580_s16 }
 0x150   : > { %v2027_v20 = vsel %vm693_vm0, %v1992_v56, %v1993_v17  ;;  %v2029_v15 = vsel %vm693_vm0, %v1993_v17, %v1994_v42  ;;  %v2774_v17 = vcombine.high %v2738_v28, %v2738_v28 }
 0x151   : > { %v2028_v38 = vsel %vm2001_vm5, %v1964_v34, %v2027_v20  ;;  %v2030_v39 = vsel %vm2001_vm5, %v1966_v41, %v2029_v15  ;;  %v1972_v49 = vpop.permute.xlu1 %1971  ;;  %v1970_v43 = vpop.permute.xlu0 %1969 }
 0x152   : > { %2076 = vst [vmem:[#allocation2 + $0x1b0] sm:$0xcc] %v2028_v38  ;;  %2077 = vst [vmem:[#allocation2 + $0x1b8] sm:$0xcc] %v2030_v39  ;;  %v1996_v47 = vrot.slane %v1972_v49, 4  ;;  %v1995_v48 = vrot.slane %v1970_v43, 4 }
 0x153   : > { %7163 = vrot.lane.b32.xlu1 %v14372_v6, %s13581_s17  ;;  %7161 = vrot.lane.b32.xlu0 %v14383_v30, %s13581_s17 }
 0x154   : > { %v2031_v45 = vsel %vm693_vm0, %v1994_v42, %v1995_v48  ;;  %v2033_v52 = vsel %vm693_vm0, %v1995_v48, %v1996_v47 }
 0x155   : > { %v2032_v14 = vsel %vm2001_vm5, %v1968_v51, %v2031_v45  ;;  %v2034_v55 = vsel %vm2001_vm5, %v1970_v43, %v2033_v52  ;;  %v1976_v57 = vpop.permute.xlu1 %1975  ;;  %v1974_v10 = vpop.permute.xlu0 %1973  ;;  %v2788_v52 = vrot.slane %v2774_v17, %v13634_v5 }
 0x156   : > { %2078 = vst [vmem:[#allocation2 + $0x1c0] sm:$0xcc] %v2032_v14  ;;  %2079 = vst [vmem:[#allocation2 + $0x1c8] sm:$0xcc] %v2034_v55  ;;  %v1998_v53 = vrot.slane %v1976_v57, 4  ;;  %v1997_v13 = vrot.slane %v1974_v10, 4  ;;  %v3427_v14 = vcombine.high %v14435_v19, %v14435_v19 }
 0x157   : > { %7489 = vrot.lane.b32.xlu1 %v14369_v1, %s13582_s18  ;;  %7487 = vrot.lane.b32.xlu0 %v14372_v6, %s13582_s18 }
 0x158   : > { %v2035_v54 = vsel %vm693_vm0, %v1996_v47, %v1997_v13  ;;  %v2037_v58 = vsel %vm693_vm0, %v1997_v13, %v1998_v53  ;;  %v19092_v47 = vmov 0  }
 0x159   : > { %v2036_v18 = vsel %vm2001_vm5, %v1972_v49, %v2035_v54  ;;  %v2038_v62 = vsel %vm2001_vm5, %v1974_v10, %v2037_v58  ;;  %v2264_v7 = vpop.permute.xlu1 %2263  ;;  %v1978_v63 = vpop.permute.xlu0 %1977  ;;  %10795 = vmatprep.mubr.bf16.mxu0 %v19092_v47  ;;  %10836 = vmatprep.mubr.bf16.mxu1 %v19092_v47 }
 0x15a   : > { %2080 = vst [vmem:[#allocation2 + $0x1d0] sm:$0xcc] %v2036_v18  ;;  %2081 = vst [vmem:[#allocation2 + $0x1d8] sm:$0xcc] %v2038_v62  ;;  %v1999_v60 = vrot.slane %v1978_v63, 4  ;;  %v2305_v29 = vrot.slane %v2264_v7, 4  ;;  %v14490_v62 = vrot.slane %v3427_v14, %v13634_v5 }
 0x15b   : > { %7816 = vrot.lane.b32.xlu1 %v14372_v6, %s13583_s20  ;;  %7814 = vrot.lane.b32.xlu0 %v14383_v30, %s13583_s20 }
 0x15c   : > { %v2039_v9 = vsel %vm693_vm0, %v1998_v53, %v1999_v60  ;;  %v2041_v25 = vsel %vm2001_vm5, %v1978_v63, %v1999_v60 }
 0x15d   : > { %v2040_v12 = vsel %vm2001_vm5, %v1976_v57, %v2039_v9  ;;  %2083 = vst [vmem:[#allocation2 + $0x1e8] sm:$0xc] %v2041_v25  ;;  %v2268_v59 = vpop.permute.xlu1 %2267  ;;  %v2266_v0 = vpop.permute.xlu0 %2265 }
 0x15e   : > { %2082 = vst [vmem:[#allocation2 + $0x1e0] sm:$0xcc] %v2040_v12  ;;  %v2307_v4 = vrot.slane %v2268_v59, 4  ;;  %v2306_v2 = vrot.slane %v2266_v0, 4 }
 0x15f   : > { %8142 = vrot.lane.b32.xlu1 %v14369_v1, %s13584_s21  ;;  %8140 = vrot.lane.b32.xlu0 %v14372_v6, %s13584_s21 }
 0x160   : > { %v2326_v11 = vsel %vm693_vm0, %v2305_v29, %v2306_v2  ;;  %v2329_v22 = vsel %vm693_vm0, %v2306_v2, %v2307_v4 }
 0x161   : > { %v2328_v23 = vsel %vm2327_vm6, %v2264_v7, %v2326_v11  ;;  %v2330_v32 = vsel %vm2327_vm6, %v2266_v0, %v2329_v22  ;;  %v2272_v24 = vpop.permute.xlu1 %2271  ;;  %v2270_v21 = vpop.permute.xlu0 %2269 }
 0x162   : > { %2389 = vst [vmem:[#allocation2 + $0x1ec] sm:$0x33] %v2328_v23  ;;  %2390 = vst [vmem:[#allocation2 + $0x1f4] sm:$0x33] %v2330_v32  ;;  %v2309_v16 = vrot.slane %v2272_v24, 4  ;;  %v2308_v26 = vrot.slane %v2270_v21, 4 }
 0x163   : > { %8469 = vrot.lane.b32.xlu1 %v14372_v6, %s13585_s22  ;;  %8467 = vrot.lane.b32.xlu0 %v14383_v30, %s13585_s22  ;;  %v14455_v30 = vrot.slane %v3100_v31, %v13634_v5 }
 0x164   : > { %v2331_v61 = vsel %vm693_vm0, %v2307_v4, %v2308_v26  ;;  %v2333_v27 = vsel %vm693_vm0, %v2308_v26, %v2309_v16 }
 0x165   : > { %v2332_v33 = vsel %vm2327_vm6, %v2268_v59, %v2331_v61  ;;  %v2334_v8 = vsel %vm2327_vm6, %v2270_v21, %v2333_v27  ;;  %v2276_v37 = vpop.permute.xlu1 %2275  ;;  %v2274_v34 = vpop.permute.xlu0 %2273 }
 0x166   : > { %2391 = vst [vmem:[#allocation2 + $0x1fc] sm:$0x33] %v2332_v33  ;;  %2392 = vst [vmem:[#allocation2 + $0x204] sm:$0x33] %v2334_v8  ;;  %v2311_v35 = vrot.slane %v2276_v37, 4  ;;  %v2310_v56 = vrot.slane %v2274_v34, 4 }
 0x167   : > { %8795 = vrot.lane.b32.xlu1 %v14369_v1, %s13586_s23  ;;  %8793 = vrot.lane.b32.xlu0 %v14372_v6, %s13586_s23  ;;  %v14467_v6 = vrot.slane %v14435_v19, %v13634_v5 }
 0x168   : > { %v2335_v40 = vsel %vm693_vm0, %v2309_v16, %v2310_v56  ;;  %v2337_v44 = vsel %vm693_vm0, %v2310_v56, %v2311_v35 }
 0x169   : > { %v2336_v46 = vsel %vm2327_vm6, %v2272_v24, %v2335_v40  ;;  %v2338_v50 = vsel %vm2327_vm6, %v2274_v34, %v2337_v44  ;;  %v2280_v51 = vpop.permute.xlu1 %2279  ;;  %v2278_v41 = vpop.permute.xlu0 %2277 }
 0x16a   : > { %2393 = vst [vmem:[#allocation2 + $0x20c] sm:$0x33] %v2336_v46  ;;  %2394 = vst [vmem:[#allocation2 + $0x214] sm:$0x33] %v2338_v50  ;;  %v2313_v1 = vrot.slane %v2280_v51, 4  ;;  %v2312_v42 = vrot.slane %v2278_v41, 4 }
 0x16b   : > { %3247 = vrot.lane.b32.xlu1 %v14455_v30, %s13569_s28  ;;  %2920 = vrot.lane.b32.xlu0 %v2781_v36, %s13568_s27 }
 0x16c   : > { %v2339_v20 = vsel %vm693_vm0, %v2311_v35, %v2312_v42  ;;  %v2341_v15 = vsel %vm693_vm0, %v2312_v42, %v2313_v1 }
 0x16d   : > { %v2340_v38 = vsel %vm2327_vm6, %v2276_v37, %v2339_v20  ;;  %v2342_v39 = vsel %vm2327_vm6, %v2278_v41, %v2341_v15  ;;  %v2284_v49 = vpop.permute.xlu1 %2283  ;;  %v2282_v43 = vpop.permute.xlu0 %2281 }
 0x16e   : > { %2395 = vst [vmem:[#allocation2 + $0x21c] sm:$0x33] %v2340_v38  ;;  %2396 = vst [vmem:[#allocation2 + $0x224] sm:$0x33] %v2342_v39  ;;  %v2315_v48 = vrot.slane %v2284_v49, 4  ;;  %v2314_v45 = vrot.slane %v2282_v43, 4 }
 0x16f   : > { %3900 = vrot.lane.b32.xlu1 %v14455_v30, %s13571_s30  ;;  %3573 = vrot.lane.b32.xlu0 %v14467_v6, %s13570_s29 }
 0x170   : > { %v2343_v55 = vsel %vm693_vm0, %v2313_v1, %v2314_v45  ;;  %v2345_v57 = vsel %vm693_vm0, %v2314_v45, %v2315_v48 }
 0x171   : > { %v2344_v10 = vsel %vm2327_vm6, %v2280_v51, %v2343_v55  ;;  %v2346_v53 = vsel %vm2327_vm6, %v2282_v43, %v2345_v57  ;;  %v2288_v13 = vpop.permute.xlu1 %2287  ;;  %v2286_v54 = vpop.permute.xlu0 %2285  ;;  %v6329_v51 = vld [vmem:[%s13639_s19 + $0x12] sm:$0xff] }
 0x172   : > { %2397 = vst [vmem:[#allocation2 + $0x22c] sm:$0x33] %v2344_v10  ;;  %2398 = vst [vmem:[#allocation2 + $0x234] sm:$0x33] %v2346_v53  ;;  %v2317_v58 = vrot.slane %v2288_v13, 4  ;;  %v2316_v18 = vrot.slane %v2286_v54, 4  ;;  %v6365_v38 = vcombine.low %v6329_v51, %v6329_v51  ;;  %v14544_v55 = vrot.slane %v6329_v51, %v13634_v5 }
 0x173   : > { %3249 = vrot.lane.b32.xlu1 %v14467_v6, %s13569_s28  ;;  %2922 = vrot.lane.b32.xlu0 %v2788_v52, %s13568_s27 }
 0x174   : > { %v2347_v7 = vsel %vm693_vm0, %v2315_v48, %v2316_v18  ;;  %v2349_v63 = vsel %vm693_vm0, %v2316_v18, %v2317_v58  ;;  %v14541_v14 = vrot.slane %v6365_v38, %v13634_v5 }
 0x175   : > { %v2348_v60 = vsel %vm2327_vm6, %v2284_v49, %v2347_v7  ;;  %v2350_v9 = vsel %vm2327_vm6, %v2286_v54, %v2349_v63  ;;  %v2292_v25 = vpop.permute.xlu1 %2291  ;;  %v2290_v12 = vpop.permute.xlu0 %2289  ;;  %v6039_v7 = vcombine.high %v6329_v51, %v6329_v51 }
 0x176   : > { %2399 = vst [vmem:[#allocation2 + $0x23c] sm:$0x33] %v2348_v60  ;;  %2400 = vst [vmem:[#allocation2 + $0x244] sm:$0x33] %v2350_v9  ;;  %v2319_v59 = vrot.slane %v2292_v25, 4  ;;  %v2318_v0 = vrot.slane %v2290_v12, 4 }
 0x177   : > { %3902 = vrot.lane.b32.xlu1 %v14467_v6, %s13571_s30  ;;  %3575 = vrot.lane.b32.xlu0 %v14490_v62, %s13570_s29 }
 0x178   : > { %v2351_v29 = vsel %vm693_vm0, %v2317_v58, %v2318_v0  ;;  %v2353_v4 = vsel %vm693_vm0, %v2318_v0, %v2319_v59 }
 0x179   : > { %v2352_v2 = vsel %vm2327_vm6, %v2288_v13, %v2351_v29  ;;  %v2354_v11 = vsel %vm2327_vm6, %v2290_v12, %v2353_v4  ;;  %v2296_v22 = vpop.permute.xlu1 %2295  ;;  %v2294_v19 = vpop.permute.xlu0 %2293 }
 0x17a   : > { %2401 = vst [vmem:[#allocation2 + $0x24c] sm:$0x33] %v2352_v2  ;;  %2402 = vst [vmem:[#allocation2 + $0x254] sm:$0x33] %v2354_v11  ;;  %v2321_v23 = vrot.slane %v2296_v22, 4  ;;  %v2320_v32 = vrot.slane %v2294_v19, 4  ;;  %v14571_v11 = vrot.slane %v6039_v7, %v13634_v5 }
 0x17b   : > { %4553 = vrot.lane.b32.xlu1 %v14455_v30, %s13573_s5  ;;  %4226 = vrot.lane.b32.xlu0 %v14467_v6, %s13572_s4 }
 0x17c   : > { %v2355_v24 = vsel %vm693_vm0, %v2319_v59, %v2320_v32  ;;  %v2357_v21 = vsel %vm693_vm0, %v2320_v32, %v2321_v23 }
 0x17d   : > { %v2356_v16 = vsel %vm2327_vm6, %v2292_v25, %v2355_v24  ;;  %v2358_v26 = vsel %vm2327_vm6, %v2294_v19, %v2357_v21  ;;  %v2300_v31 = vpop.permute.xlu1 %2299  ;;  %v2298_v61 = vpop.permute.xlu0 %2297 }
 0x17e   : > { %2403 = vst [vmem:[#allocation2 + $0x25c] sm:$0x33] %v2356_v16  ;;  %2404 = vst [vmem:[#allocation2 + $0x264] sm:$0x33] %v2358_v26  ;;  %v2323_v27 = vrot.slane %v2300_v31, 4  ;;  %v2322_v28 = vrot.slane %v2298_v61, 4 }
 0x17f   : > { %5206 = vrot.lane.b32.xlu1 %v14455_v30, %s13575_s7  ;;  %4879 = vrot.lane.b32.xlu0 %v14467_v6, %s13574_s6 }
 0x180   : > { %v2359_v33 = vsel %vm693_vm0, %v2321_v23, %v2322_v28  ;;  %v2361_v8 = vsel %vm693_vm0, %v2322_v28, %v2323_v27 }
 0x181   : > { %v2360_v37 = vsel %vm2327_vm6, %v2296_v22, %v2359_v33  ;;  %v2362_v34 = vsel %vm2327_vm6, %v2298_v61, %v2361_v8  ;;  %v2304_v35 = vpop.permute.xlu1 %2303  ;;  %v2302_v56 = vpop.permute.xlu0 %2301 }
 0x182   : > { %2405 = vst [vmem:[#allocation2 + $0x26c] sm:$0x33] %v2360_v37  ;;  %2406 = vst [vmem:[#allocation2 + $0x274] sm:$0x33] %v2362_v34  ;;  %v2325_v36 = vrot.slane %v2304_v35, 4  ;;  %v2324_v40 = vrot.slane %v2302_v56, 4 }
 0x183   : > { %4555 = vrot.lane.b32.xlu1 %v14467_v6, %s13573_s5  ;;  %4228 = vrot.lane.b32.xlu0 %v14490_v62, %s13572_s4 }
 0x184   : > { %v2367_v44 = vsel %vm2327_vm6, %v2304_v35, %v2325_v36  ;;  %v2363_v46 = vsel %vm693_vm0, %v2323_v27, %v2324_v40  ;;  %v2365_v50 = vsel %vm693_vm0, %v2324_v40, %v2325_v36 }
 0x185   : > { %2409 = vst [vmem:[#allocation2 + $0x28c] sm:$0x3] %v2367_v44  ;;  %v2364_v41 = vsel %vm2327_vm6, %v2300_v31, %v2363_v46  ;;  %v2366_v1 = vsel %vm2327_vm6, %v2302_v56, %v2365_v50  ;;  %v2593_v42 = vpop.permute.xlu1 %2592  ;;  %v2591_v17 = vpop.permute.xlu0 %2590  ;;  %vm19082_vm6 = vcmask 965632  }
 0x186   : > { %2407 = vst [vmem:[#allocation2 + $0x27c] sm:$0x33] %v2364_v41  ;;  %2408 = vst [vmem:[#allocation2 + $0x284] sm:$0x33] %v2366_v1  ;;  %v2633_v20 = vrot.slane %v2593_v42, 4  ;;  %v2632_v15 = vrot.slane %v2591_v17, 4 }
 0x187   : > { %5208 = vrot.lane.b32.xlu1 %v14467_v6, %s13575_s7  ;;  %4881 = vrot.lane.b32.xlu0 %v14490_v62, %s13574_s6 }
 0x188   : > { %v2653_v39 = vsel %vm693_vm0, %v2632_v15, %v2633_v20 }
 0x189   : > { %v2655_v49 = vsel %vm19081_vm7, %v2591_v17, %v2653_v39  ;;  %v2597_v43 = vpop.permute.xlu1 %2596  ;;  %v2595_v48 = vpop.permute.xlu0 %2594 }
 0x18a   : > { %2716 = vst [vmem:[#allocation2 + $0x1ec] sm:$0xcc] %v2655_v49  ;;  %v2635_v45 = vrot.slane %v2597_v43, 4  ;;  %v2634_v52 = vrot.slane %v2595_v48, 4 }
 0x18b   : > { %5859 = vrot.lane.b32.xlu1 %v14455_v30, %s13577_s9  ;;  %5532 = vrot.lane.b32.xlu0 %v14467_v6, %s13576_s8 }
 0x18c   : > { %v2656_v57 = vsel %vm693_vm0, %v2633_v20, %v2634_v52  ;;  %v2658_v10 = vsel %vm693_vm0, %v2634_v52, %v2635_v45 }
 0x18d   : > { %v2657_v53 = vsel %vm19081_vm7, %v2593_v42, %v2656_v57  ;;  %v2659_v13 = vsel %vm19081_vm7, %v2595_v48, %v2658_v10  ;;  %v14550_v54 = vpop.permute.xlu1 %2600  ;;  %v2599_v30 = vpop.permute.xlu0 %2598 }
 0x18e   : > { %2717 = vst [vmem:[#allocation2 + $0x1f4] sm:$0xcc] %v2657_v53  ;;  %2718 = vst [vmem:[#allocation2 + $0x1fc] sm:$0xcc] %v2659_v13  ;;  %v2637_v58 = vrot.slane %v14550_v54, 4  ;;  %v2636_v18 = vrot.slane %v2599_v30, 4 }
 0x18f   : > { %6512 = vrot.lane.b32.xlu1 %v14541_v14, %s13579_s11  ;;  %6185 = vrot.lane.b32.xlu0 %v14544_v55, %s13578_s10  ;;  %v14643_v53 = vld [vmem:[%s13639_s19 + $0x14] sm:$0xff] }
 0x190   : > { %v2660_v63 = vsel %vm693_vm0, %v2635_v45, %v2636_v18  ;;  %v2662_v60 = vsel %vm693_vm0, %v2636_v18, %v2637_v58 }
 0x191   : > { %v2661_v9 = vsel %vm19081_vm7, %v2597_v43, %v2660_v63  ;;  %v2663_v25 = vsel %vm19081_vm7, %v2599_v30, %v2662_v60  ;;  %v14563_v12 = vpop.permute.xlu1 %2918  ;;  %v2917_v59 = vpop.permute.xlu0 %2916  ;;  %v13058_v0 = vld [vmem:[#allocation2 + $0x14c] ss:$164 sps:$4 sm:$0xff]   ;;  %v3115_v63 = vcombine.low %v14643_v53, %v14643_v53  ;;  %vm19083_vm7 = vcmask 834560  }
 0x192   : > { %v13060_v29 = vld [vmem:[#allocation2 + $0x148] ss:$164 sps:$4 sm:$0xff]   ;;  %2719 = vst [vmem:[#allocation2 + $0x204] sm:$0xcc] %v2661_v9  ;;  %2720 = vst [vmem:[#allocation2 + $0x20c] sm:$0xcc] %v2663_v25  ;;  %10765 = vmatprep.subr.bf16.mxu0 %v13058_v0 }
 0x193   : > { %v2959_v4 = vrot.slane %v14563_v12, 4  ;;  %v2958_v2 = vrot.slane %v2917_v59, 4  ;;  %5861 = vrot.lane.b32.xlu1 %v14467_v6, %s13577_s9  ;;  %5534 = vrot.lane.b32.xlu0 %v14490_v62, %s13576_s8  ;;  %v2739_v9 = vld [vmem:[%s13639_s19 + $0x10] sm:$0xff] }
 0x194   : > { %10766 = vmatpush1.bf16.msra.mxu0 %v13060_v29 }
 0x195   : > { %v2979_v22 = vsel %vm693_vm0, %v2958_v2, %v2959_v4  ;;  %v14577_v23 = vpop.permute.xlu1 %3245  ;;  %v3244_v32 = vpop.permute.xlu0 %3243  ;;  %v13062_v24 = vld [vmem:[#allocation2 + $0x154] ss:$164 sps:$4 sm:$0xff]  }
 0x196   : > { %v2981_v19 = vsel %vm2980_vm8, %v2917_v59, %v2979_v22  ;;  %v13064_v21 = vld [vmem:[#allocation2 + $0x150] ss:$164 sps:$4 sm:$0xff]   ;;  %v3286_v6 = vrot.slane %v14577_v23, 4  ;;  %v3285_v62 = vrot.slane %v3244_v32, 4  ;;  %10806 = vmatprep.subr.bf16.mxu1 %v13062_v24  ;;  %v14668_v22 = vrot.slane %v3115_v63, %v13634_v5 }
 0x197   : > { %3042 = vst [vmem:[#allocation2 + $0x290] sm:$0x33] %v2981_v19  ;;  %6514 = vrot.lane.b32.xlu1 %v14544_v55, %s13579_s11  ;;  %6187 = vrot.lane.b32.xlu0 %v14571_v11, %s13578_s10  ;;  %v2796_v19 = vrot.slane %v2739_v9, %v13634_v5 }
 0x198   : > { %v3306_v16 = vsel %vm693_vm0, %v3285_v62, %v3286_v6  ;;  %10807 = vmatpush1.bf16.msra.mxu1 %v13064_v21 }
 0x199   : > { %v3308_v26 = vsel %vm3307_vm9, %v3244_v32, %v3306_v16  ;;  %v14588_v31 = vpop.permute.xlu1 %3571  ;;  %v3570_v61 = vpop.permute.xlu0 %3569 }
 0x19a   : > { %3369 = vst [vmem:[#allocation2 + $0x290] sm:$0xcc] %v3308_v26  ;;  %v3612_v27 = vrot.slane %v14588_v31, 4  ;;  %v3611_v28 = vrot.slane %v3570_v61, 4  ;;  %v2789_v26 = vcombine.high %v2739_v9, %v2739_v9 }
 0x19b   : > { %7165 = vrot.lane.b32.xlu1 %v14541_v14, %s13581_s17  ;;  %6838 = vrot.lane.b32.xlu0 %v14544_v55, %s13580_s16 }
 0x19c   : > { %v3632_v33 = vsel %vm693_vm0, %v3611_v28, %v3612_v27 }
 0x19d   : > { %v3634_v8 = vsel %vm3633_vm10, %v3570_v61, %v3632_v33  ;;  %v14599_v37 = vpop.permute.xlu1 %3898  ;;  %v3897_v34 = vpop.permute.xlu0 %3896 }
 0x19e   : > { %3695 = vst [vmem:[#allocation2 + $0x334] sm:$0x33] %v3634_v8  ;;  %v3939_v35 = vrot.slane %v14599_v37, 4  ;;  %v3938_v56 = vrot.slane %v3897_v34, 4 }
 0x19f   : > { %7818 = vrot.lane.b32.xlu1 %v14541_v14, %s13583_s20  ;;  %7491 = vrot.lane.b32.xlu0 %v14544_v55, %s13582_s18 }
 0x1a0   : > { %v3959_v36 = vsel %vm693_vm0, %v3938_v56, %v3939_v35 }
 0x1a1   : > { %v3961_v40 = vsel %vm3960_vm11, %v3897_v34, %v3959_v36  ;;  %v14610_v44 = vpop.permute.xlu1 %4224  ;;  %v4223_v46 = vpop.permute.xlu0 %4222 }
 0x1a2   : > { %4022 = vst [vmem:[#allocation2 + $0x334] sm:$0xcc] %v3961_v40  ;;  %v4265_v50 = vrot.slane %v14610_v44, 4  ;;  %v4264_v51 = vrot.slane %v4223_v46, 4 }
 0x1a3   : > { %7167 = vrot.lane.b32.xlu1 %v14544_v55, %s13581_s17  ;;  %6840 = vrot.lane.b32.xlu0 %v14571_v11, %s13580_s16 }
 0x1a4   : > { %v4285_v41 = vsel %vm693_vm0, %v4264_v51, %v4265_v50  ;;  %v3442_v51 = vcombine.high %v14643_v53, %v14643_v53 }
 0x1a5   : > { %v4287_v1 = vsel %vm4286_vm12, %v4223_v46, %v4285_v41  ;;  %v14621_v42 = vpop.permute.xlu1 %4551  ;;  %v4550_v17 = vpop.permute.xlu0 %4549  ;;  %v2803_v46 = vrot.slane %v2789_v26, %v13634_v5 }
 0x1a6   : > { %4348 = vst [vmem:[#allocation2 + $0x3d8] sm:$0x33] %v4287_v1  ;;  %v4592_v20 = vrot.slane %v14621_v42, 4  ;;  %v4591_v15 = vrot.slane %v4550_v17, 4 }
 0x1a7   : > { %7820 = vrot.lane.b32.xlu1 %v14544_v55, %s13583_s20  ;;  %7493 = vrot.lane.b32.xlu0 %v14571_v11, %s13582_s18 }
 0x1a8   : > { %v4612_v38 = vsel %vm693_vm0, %v4591_v15, %v4592_v20 }
 0x1a9   : > { %v4614_v39 = vsel %vm4613_vm13, %v4550_v17, %v4612_v38  ;;  %v14632_v49 = vpop.permute.xlu1 %4877  ;;  %v4876_v43 = vpop.permute.xlu0 %4875  ;;  %v13065_v48 = vld [vmem:[#allocation2 + $0x294] ss:$164 sps:$4 sm:$0xff]  }
 0x1aa   : > { %v13067_v45 = vld [vmem:[#allocation2 + $0x290] ss:$164 sps:$4 sm:$0xff]   ;;  %4675 = vst [vmem:[#allocation2 + $0x3d8] sm:$0xcc] %v4614_v39  ;;  %v4918_v52 = vrot.slane %v14632_v49, 4  ;;  %v4917_v57 = vrot.slane %v4876_v43, 4  ;;  %10767 = vmatprep.subr.bf16.mxu0 %v13065_v48 }
 0x1ab   : > { %8471 = vrot.lane.b32.xlu1 %v14541_v14, %s13585_s22  ;;  %8144 = vrot.lane.b32.xlu0 %v14544_v55, %s13584_s21 }
 0x1ac   : > { %v4938_v10 = vsel %vm693_vm0, %v4917_v57, %v4918_v52  ;;  %10768 = vmatpush1.bf16.msra.mxu0 %v13067_v45 }
 0x1ad   : > { %v4940_v13 = vsel %vm4939_vm14, %v4876_v43, %v4938_v10  ;;  %v14646_v30 = vpop.permute.xlu1 %5204  ;;  %v5203_v18 = vpop.permute.xlu0 %5202  ;;  %v14710_v43 = vrot.slane %v3442_v51, %v13634_v5  ;;  %v6330_v51 = vld [vmem:[%s13639_s19 + $0x1a] sm:$0xff] }
 0x1ae   : > { %5001 = vst [vmem:[#allocation2 + $0x47c] sm:$0x33] %v4940_v13  ;;  %v5245_v14 = vrot.slane %v14646_v30, 4  ;;  %v5244_v7 = vrot.slane %v5203_v18, 4 }
 0x1af   : > { %8146 = vrot.lane.b32.xlu1 %v14571_v11, %s13584_s21  ;;  %8797 = vrot.lane.b32.xlu0 %v14544_v55, %s13586_s23 }
 0x1b0   : > { %v5265_v60 = vsel %vm693_vm0, %v5244_v7, %v5245_v14 }
 0x1b1   : > { %v5267_v25 = vsel %vm5266_vm15, %v5203_v18, %v5265_v60  ;;  %v14660_v59 = vpop.permute.xlu1 %5530  ;;  %v5529_v0 = vpop.permute.xlu0 %5528 }
 0x1b2   : > { %5328 = vst [vmem:[#allocation2 + $0x47c] sm:$0xcc] %v5267_v25  ;;  %v5571_v29 = vrot.slane %v14660_v59, 4  ;;  %v5570_v2 = vrot.slane %v5529_v0, 4 }
 0x1b3   : > { %8799 = vrot.lane.b32.xlu1 %v14571_v11, %s13586_s23  ;;  %8473 = vrot.lane.b32.xlu0 %v14544_v55, %s13585_s22  ;;  %v14683_v55 = vrot.slane %v14643_v53, %v13634_v5 }
 0x1b4   : > { %v5591_v32 = vsel %vm693_vm0, %v5570_v2, %v5571_v29 }
 0x1b5   : > { %v5593_v24 = vsel %vm5592_vm1, %v5529_v0, %v5591_v32  ;;  %v14675_v21 = vpop.permute.xlu1 %5857  ;;  %v5856_v62 = vpop.permute.xlu0 %5855 }
 0x1b6   : > { %5654 = vst [vmem:[#allocation2 + $0x520] sm:$0x33] %v5593_v24  ;;  %v5898_v11 = vrot.slane %v14675_v21, 4  ;;  %v5897_v16 = vrot.slane %v5856_v62, 4 }
 0x1b7   : > { %3251 = vrot.lane.b32.xlu1 %v14668_v22, %s13569_s28  ;;  %2924 = vrot.lane.b32.xlu0 %v2796_v19, %s13568_s27 }
 0x1b8   : > { %v5918_v61 = vsel %vm693_vm0, %v5897_v16, %v5898_v11 }
 0x1b9   : > { %v5920_v28 = vsel %vm5919_vm2, %v5856_v62, %v5918_v61  ;;  %v14689_v33 = vpop.permute.xlu1 %6183  ;;  %v6182_v8 = vpop.permute.xlu0 %6181  ;;  %v13069_v34 = vld [vmem:[#allocation2 + $0x3dc] ss:$164 sps:$4 sm:$0xff]  }
 0x1ba   : > { %v13071_v56 = vld [vmem:[#allocation2 + $0x3d8] ss:$164 sps:$4 sm:$0xff]   ;;  %5981 = vst [vmem:[#allocation2 + $0x520] sm:$0xcc] %v5920_v28  ;;  %v6224_v36 = vrot.slane %v14689_v33, 4  ;;  %v6223_v40 = vrot.slane %v6182_v8, 4  ;;  %10769 = vmatprep.subr.bf16.mxu0 %v13069_v34 }
 0x1bb   : > { %3904 = vrot.lane.b32.xlu1 %v14668_v22, %s13571_s30  ;;  %3577 = vrot.lane.b32.xlu0 %v14683_v55, %s13570_s29 }
 0x1bc   : > { %v6244_v41 = vsel %vm693_vm0, %v6223_v40, %v6224_v36  ;;  %10770 = vmatpush1.bf16.msra.mxu0 %v13071_v56 }
 0x1bd   : > { %v6246_v1 = vsel %vm19088_vm3, %v6182_v8, %v6244_v41  ;;  %v14703_v17 = vpop.permute.xlu1 %6510  ;;  %v6509_v15 = vpop.permute.xlu0 %6508 }
 0x1be   : > { %6307 = vst [vmem:[#allocation2 + $0x5c4] sm:$0x33] %v6246_v1  ;;  %v6551_v38 = vrot.slane %v14703_v17, 4  ;;  %v6550_v39 = vrot.slane %v6509_v15, 4 }
 0x1bf   : > { %3253 = vrot.lane.b32.xlu1 %v14683_v55, %s13569_s28  ;;  %2926 = vrot.lane.b32.xlu0 %v2803_v46, %s13568_s27 }
 0x1c0   : > { %v6571_v48 = vsel %vm693_vm0, %v6550_v39, %v6551_v38 }
 0x1c1   : > { %v6573_v45 = vsel %vm19089_vm4, %v6509_v15, %v6571_v48  ;;  %v14716_v57 = vpop.permute.xlu1 %6836  ;;  %v6835_v10 = vpop.permute.xlu0 %6834 }
 0x1c2   : > { %6634 = vst [vmem:[#allocation2 + $0x5c4] sm:$0xcc] %v6573_v45  ;;  %v6877_v53 = vrot.slane %v14716_v57, 4  ;;  %v6876_v13 = vrot.slane %v6835_v10, 4  ;;  %v6380_v45 = vcombine.low %v6330_v51, %v6330_v51 }
 0x1c3   : > { %3906 = vrot.lane.b32.xlu1 %v14683_v55, %s13571_s30  ;;  %3579 = vrot.lane.b32.xlu0 %v14710_v43, %s13570_s29 }
 0x1c4   : > { %v6897_v18 = vsel %vm693_vm0, %v6876_v13, %v6877_v53 }
 0x1c5   : > { %v6899_v7 = vsel %vm19082_vm6, %v6835_v10, %v6897_v18  ;;  %v14727_v63 = vpop.permute.xlu1 %7163  ;;  %v7162_v60 = vpop.permute.xlu0 %7161  ;;  %vm19084_vm6 = vcmask 826368  }
 0x1c6   : > { %6960 = vst [vmem:[#allocation2 + $0x668] sm:$0x33] %v6899_v7  ;;  %v7204_v9 = vrot.slane %v14727_v63, 4  ;;  %v7203_v25 = vrot.slane %v7162_v60, 4 }
 0x1c7   : > { %4557 = vrot.lane.b32.xlu1 %v14668_v22, %s13573_s5  ;;  %4230 = vrot.lane.b32.xlu0 %v14683_v55, %s13572_s4 }
 0x1c8   : > { %v7224_v0 = vsel %vm693_vm0, %v7203_v25, %v7204_v9 }
 0x1c9   : > { %v7226_v2 = vsel %vm19083_vm7, %v7162_v60, %v7224_v0  ;;  %v14738_v19 = vpop.permute.xlu1 %7489  ;;  %v7488_v32 = vpop.permute.xlu0 %7487  ;;  %v13074_v24 = vld [vmem:[#allocation2 + $0x524] ss:$164 sps:$4 sm:$0xff]   ;;  %vm19085_vm7 = vcmask 818176   ;;  %v14780_v0 = vrot.slane %v6380_v45, %v13634_v5 }
 0x1ca   : > { %v13076_v62 = vld [vmem:[#allocation2 + $0x520] ss:$164 sps:$4 sm:$0xff]   ;;  %7287 = vst [vmem:[#allocation2 + $0x668] sm:$0xcc] %v7226_v2  ;;  %v7530_v16 = vrot.slane %v14738_v19, 4  ;;  %v7529_v26 = vrot.slane %v7488_v32, 4  ;;  %10771 = vmatprep.subr.bf16.mxu0 %v13074_v24  ;;  %v14783_v2 = vrot.slane %v6330_v51, %v13634_v5 }
 0x1cb   : > { %5210 = vrot.lane.b32.xlu1 %v14668_v22, %s13575_s7  ;;  %4883 = vrot.lane.b32.xlu0 %v14683_v55, %s13574_s6 }
 0x1cc   : > { %v7550_v61 = vsel %vm693_vm0, %v7529_v26, %v7530_v16  ;;  %10772 = vmatpush1.bf16.msra.mxu0 %v13076_v62 }
 0x1cd   : > { %v7552_v28 = vsel %vm19084_vm6, %v7488_v32, %v7550_v61  ;;  %v14749_v8 = vpop.permute.xlu1 %7816  ;;  %v7815_v34 = vpop.permute.xlu0 %7814  ;;  %vm19086_vm6 = vcmask 687104  }
 0x1ce   : > { %7613 = vst [vmem:[#allocation2 + $0x70c] sm:$0x33] %v7552_v28  ;;  %v7857_v56 = vrot.slane %v14749_v8, 4  ;;  %v7856_v40 = vrot.slane %v7815_v34, 4 }
 0x1cf   : > { %4559 = vrot.lane.b32.xlu1 %v14683_v55, %s13573_s5  ;;  %4232 = vrot.lane.b32.xlu0 %v14710_v43, %s13572_s4 }
 0x1d0   : > { %v7877_v46 = vsel %vm693_vm0, %v7856_v40, %v7857_v56  ;;  %v6054_v40 = vcombine.high %v6330_v51, %v6330_v51 }
 0x1d1   : > { %v7879_v41 = vsel %vm19085_vm7, %v7815_v34, %v7877_v46  ;;  %v14761_v1 = vpop.permute.xlu1 %8142  ;;  %v8141_v15 = vpop.permute.xlu0 %8140  ;;  %vm8531_vm7 = vcmask 678912  }
 0x1d2   : > { %7940 = vst [vmem:[#allocation2 + $0x70c] sm:$0xcc] %v7879_v41  ;;  %v8183_v39 = vrot.slane %v14761_v1, 4  ;;  %v8182_v48 = vrot.slane %v8141_v15, 4  ;;  %v14805_v51 = vrot.slane %v6054_v40, %v13634_v5 }
 0x1d3   : > { %5212 = vrot.lane.b32.xlu1 %v14683_v55, %s13575_s7  ;;  %4885 = vrot.lane.b32.xlu0 %v14710_v43, %s13574_s6 }
 0x1d4   : > { %v8203_v10 = vsel %vm693_vm0, %v8182_v48, %v8183_v39 }
 0x1d5   : > { %v8205_v13 = vsel %vm19086_vm6, %v8141_v15, %v8203_v10  ;;  %v14772_v18 = vpop.permute.xlu1 %8469  ;;  %v8468_v7 = vpop.permute.xlu0 %8467  ;;  %vm19087_vm6 = vcmask 670720  }
 0x1d6   : > { %8266 = vst [vmem:[#allocation2 + $0x7b0] sm:$0x33] %v8205_v13  ;;  %v8510_v60 = vrot.slane %v14772_v18, 4  ;;  %v8509_v25 = vrot.slane %v8468_v7, 4 }
 0x1d7   : > { %5863 = vrot.lane.b32.xlu1 %v14668_v22, %s13577_s9  ;;  %5536 = vrot.lane.b32.xlu0 %v14683_v55, %s13576_s8 }
 0x1d8   : > { %v8530_v32 = vsel %vm693_vm0, %v8509_v25, %v8510_v60 }
 0x1d9   : > { %v8532_v24 = vsel %vm8531_vm7, %v8468_v7, %v8530_v32  ;;  %v14789_v62 = vpop.permute.xlu1 %8795  ;;  %v8794_v26 = vpop.permute.xlu0 %8793  ;;  %v13078_v61 = vld [vmem:[#allocation2 + $0x66c] ss:$164 sps:$4 sm:$0xff]  }
 0x1da   : > { %v13080_v22 = vld [vmem:[#allocation2 + $0x668] ss:$164 sps:$4 sm:$0xff]   ;;  %8593 = vst [vmem:[#allocation2 + $0x7b0] sm:$0xcc] %v8532_v24  ;;  %v8836_v28 = vrot.slane %v14789_v62, 4  ;;  %v8835_v34 = vrot.slane %v8794_v26, 4  ;;  %10773 = vmatprep.subr.bf16.mxu0 %v13078_v61 }
 0x1db   : > { %6516 = vrot.lane.b32.xlu1 %v14780_v0, %s13579_s11  ;;  %6189 = vrot.lane.b32.xlu0 %v14783_v2, %s13578_s10 }
 0x1dc   : > { %v8856_v46 = vsel %vm693_vm0, %v8835_v34, %v8836_v28  ;;  %10774 = vmatpush1.bf16.msra.mxu0 %v13080_v22 }
 0x1dd   : > { %v8858_v41 = vsel %vm19087_vm6, %v8794_v26, %v8856_v46  ;;  %v3248_v15 = vpop.permute.xlu1 %3247  ;;  %v2921_v48 = vpop.permute.xlu0 %2920  ;;  %vm10639_vm6 = vcmask 1045504  }
 0x1de   : > { %8919 = vst [vmem:[#allocation2 + $0x854] sm:$0x33] %v8858_v41  ;;  %v3287_v45 = vrot.slane %v3248_v15, 4  ;;  %v2960_v10 = vrot.slane %v2921_v48, 4  ;;  %v13087_v41 = vld [vmem:[#allocation2 + $0x14] ss:$164 sps:$4 sm:$0xff]  }
 0x1df   : > { %5865 = vrot.lane.b32.xlu1 %v14683_v55, %s13577_s9  ;;  %5538 = vrot.lane.b32.xlu0 %v14710_v43, %s13576_s8 }
 0x1e0   : > { %v3309_v13 = vsel %vm693_vm0, %v3286_v6, %v3287_v45  ;;  %v2982_v7 = vsel %vm693_vm0, %v2959_v4, %v2960_v10 }
 0x1e1   : > { %v3310_v25 = vsel %vm3307_vm9, %v14577_v23, %v3309_v13  ;;  %v2983_v55 = vsel %vm2980_vm8, %v14563_v12, %v2982_v7  ;;  %v3901_v32 = vpop.permute.xlu1 %3900  ;;  %v3574_v24 = vpop.permute.xlu0 %3573 }
 0x1e2   : > { %3370 = vst [vmem:[#allocation2 + $0x298] sm:$0xcc] %v3310_v25  ;;  %3043 = vst [vmem:[#allocation2 + $0x298] sm:$0x33] %v2983_v55  ;;  %v3940_v43 = vrot.slane %v3901_v32, 4  ;;  %v3613_v26 = vrot.slane %v3574_v24, 4 }
 0x1e3   : > { %6518 = vrot.lane.b32.xlu1 %v14783_v2, %s13579_s11  ;;  %6191 = vrot.lane.b32.xlu0 %v14805_v51, %s13578_s10 }
 0x1e4   : > { %v3962_v4 = vsel %vm693_vm0, %v3939_v35, %v3940_v43  ;;  %v3635_v12 = vsel %vm693_vm0, %v3612_v27, %v3613_v26 }
 0x1e5   : > { %v3963_v23 = vsel %vm3960_vm11, %v14599_v37, %v3962_v4  ;;  %v3636_v6 = vsel %vm3633_vm10, %v14588_v31, %v3635_v12  ;;  %v14831_v61 = vpop.permute.xlu1 %3249  ;;  %v14833_v22 = vpop.permute.xlu0 %2922  ;;  %v13082_v34 = vld [vmem:[#allocation2 + $0x7b4] ss:$164 sps:$4 sm:$0x3f]  }
 0x1e6   : > { %4023 = vst [vmem:[#allocation2 + $0x33c] sm:$0xcc] %v3963_v23  ;;  %3696 = vst [vmem:[#allocation2 + $0x33c] sm:$0x33] %v3636_v6  ;;  %v3288_v35 = vrot.slane %v14831_v61, 4  ;;  %v2961_v40 = vrot.slane %v14833_v22, 4  ;;  %12888 = vmatprep.subr.msk.bf16.mxu0 %vm10639_vm6, %v13082_v34 }
 0x1e7   : > { %v13084_v46 = vld [vmem:[#allocation2 + $0x7b0] ss:$164 sps:$4 sm:$0x3f]   ;;  %7169 = vrot.lane.b32.xlu1 %v14780_v0, %s13581_s17  ;;  %6842 = vrot.lane.b32.xlu0 %v14783_v2, %s13580_s16  ;;  %v13090_v23 = vld [vmem:[#allocation2 + $0x15c] ss:$164 sps:$4 sm:$0xff]  }
 0x1e8   : > { %v3311_v31 = vsel %vm693_vm0, %v3287_v45, %v3288_v35  ;;  %v2984_v27 = vsel %vm693_vm0, %v2960_v10, %v2961_v40  ;;  %v10641_v37 = vsel %vm10639_vm6, %v13084_v46, 0  ;;  %v14858_v45 = vld [vmem:[%s19078_s1] sm:$0xf] }
 0x1e9   : > { %v3312_v13 = vsel %vm3307_vm9, %v3248_v15, %v3311_v31  ;;  %v2985_v7 = vsel %vm2980_vm8, %v2921_v48, %v2984_v27  ;;  %v14851_v25 = vpop.permute.xlu1 %3902  ;;  %v14853_v55 = vpop.permute.xlu0 %3575  ;;  %10776 = vmatpush1.bf16.msra.mxu0 %v10641_v37  ;;  %v13085_v15 = vld [vmem:[#allocation2 + $0x10] ss:$164 sps:$4 sm:$0xff]  }
 0x1ea   : > { %3371 = vst [vmem:[#allocation2 + $0x2a0] sm:$0xcc] %v3312_v13  ;;  %3044 = vst [vmem:[#allocation2 + $0x2a0] sm:$0x33] %v2985_v7  ;;  %v3941_v10 = vrot.slane %v14851_v25, 4  ;;  %v3614_v4 = vrot.slane %v14853_v55, 4  ;;  %10845 = vmatprep.subr.bf16.mxu0 %v13087_v41 }
 0x1eb   : > { %7822 = vrot.lane.b32.xlu1 %v14780_v0, %s13583_s20  ;;  %7495 = vrot.lane.b32.xlu0 %v14783_v2, %s13582_s18 }
 0x1ec   : > { %v3964_v48 = vsel %vm693_vm0, %v3940_v43, %v3941_v10  ;;  %v3637_v12 = vsel %vm693_vm0, %v3613_v26, %v3614_v4  ;;  %12889 = vmatmul.mubr.msk.bf16.vlgmr.msra.gmra.mrb[0].mxu0 %vm2001_vm5, %v14858_v45  ;;  %v13088_v26 = vld [vmem:[#allocation2 + $0x158] ss:$164 sps:$4 sm:$0xff]  }
 0x1ed   : > { %v3965_v6 = vsel %vm3960_vm11, %v3901_v32, %v3964_v48  ;;  %v3638_v34 = vsel %vm3633_vm10, %v3574_v24, %v3637_v12  ;;  %v4554_v46 = vpop.permute.xlu1 %4553  ;;  %v4227_v31 = vpop.permute.xlu0 %4226  ;;  %10846 = vmatpush1.bf16.msra.mxu0 %v13085_v15  ;;  %v13091_v27 = vld [vmem:[#allocation2 + $0x29c] ss:$164 sps:$4 sm:$0xff]   ;;  %10877 = vmatprep.mubr.bf16.mxu0 %v19092_v47 }
 0x1ee   : > { %v13093_v37 = vld [vmem:[#allocation2 + $0x298] ss:$164 sps:$4 sm:$0xff]   ;;  %4024 = vst [vmem:[#allocation2 + $0x344] sm:$0xcc] %v3965_v6  ;;  %3697 = vst [vmem:[#allocation2 + $0x344] sm:$0x33] %v3638_v34  ;;  %10847 = vmatprep.subr.bf16.mxu0 %v13090_v23  ;;  %10808 = vmatprep.subr.bf16.mxu1 %v13091_v27 }
 0x1ef   : > { %v4593_v43 = vrot.slane %v4554_v46, 4  ;;  %v4266_v41 = vrot.slane %v4227_v31, 4  ;;  %7171 = vrot.lane.b32.xlu1 %v14783_v2, %s13581_s17  ;;  %6844 = vrot.lane.b32.xlu0 %v14805_v51, %s13580_s16 }
 0x1f0   : > { %10809 = vmatpush1.bf16.msra.mxu1 %v13093_v37 }
 0x1f1   : > { %v4615_v32 = vsel %vm693_vm0, %v4592_v20, %v4593_v43  ;;  %v4288_v24 = vsel %vm693_vm0, %v4265_v50, %v4266_v41  ;;  %v5207_v15 = vpop.permute.xlu1 %5206  ;;  %v4880_v48 = vpop.permute.xlu0 %4879  ;;  %10848 = vmatpush1.bf16.msra.mxu0 %v13088_v26 }
 0x1f2   : > { %v4616_v13 = vsel %vm4613_vm13, %v14621_v42, %v4615_v32  ;;  %v4289_v7 = vsel %vm4286_vm12, %v14610_v44, %v4288_v24  ;;  %v5246_v12 = vrot.slane %v5207_v15, 4  ;;  %v4919_v23 = vrot.slane %v4880_v48, 4 }
 0x1f3   : > { %4676 = vst [vmem:[#allocation2 + $0x3e0] sm:$0xcc] %v4616_v13  ;;  %4349 = vst [vmem:[#allocation2 + $0x3e0] sm:$0x33] %v4289_v7  ;;  %7824 = vrot.lane.b32.xlu1 %v14783_v2, %s13583_s20  ;;  %7497 = vrot.lane.b32.xlu0 %v14805_v51, %s13582_s18 }
 0x1f4   : > { %v5268_v50 = vsel %vm693_vm0, %v5245_v14, %v5246_v12  ;;  %v4941_v44 = vsel %vm693_vm0, %v4918_v52, %v4919_v23 }
 0x1f5   : > { %v5269_v42 = vsel %vm5266_vm15, %v14646_v30, %v5268_v50  ;;  %v4942_v20 = vsel %vm4939_vm14, %v14632_v49, %v4941_v44  ;;  %v14905_v6 = vpop.permute.xlu1 %4555  ;;  %v14907_v34 = vpop.permute.xlu0 %4228  ;;  %v13094_v27 = vld [vmem:[#allocation2 + $0x2a0] ss:$164 sps:$4 sm:$0xff]   ;;  %v14922_v30 = vld [vmem:[%s13639_s19 + $0x18] sm:$0xff] }
 0x1f6   : > { %v13096_v37 = vld [vmem:[#allocation2 + $0x2a4] ss:$164 sps:$4 sm:$0xff]   ;;  %5329 = vst [vmem:[#allocation2 + $0x484] sm:$0xcc] %v5269_v42  ;;  %5002 = vst [vmem:[#allocation2 + $0x484] sm:$0x33] %v4942_v20 }
 0x1f7   : > { %v4594_v14 = vrot.slane %v14905_v6, 4  ;;  %v4267_v26 = vrot.slane %v14907_v34, 4  ;;  %8475 = vrot.lane.b32.xlu1 %v14780_v0, %s13585_s22  ;;  %8148 = vrot.lane.b32.xlu0 %v14783_v2, %s13584_s21  ;;  %v14945_v50 = vld [vmem:[%s13639_s19 + $0x1c] sm:$0xff] }
 0x1f8   : > { %10849 = vmatprep.subr.bf16.mxu0 %v13096_v37 }
 0x1f9   : > { %v4617_v49 = vsel %vm693_vm0, %v4593_v43, %v4594_v14  ;;  %v4290_v52 = vsel %vm693_vm0, %v4266_v41, %v4267_v26  ;;  %v14926_v0 = vpop.permute.xlu1 %5208  ;;  %v14928_v13 = vpop.permute.xlu0 %4881  ;;  %10850 = vmatpush1.bf16.msra.mxu0 %v13094_v27 }
 0x1fa   : > { %v4618_v32 = vsel %vm4613_vm13, %v4554_v46, %v4617_v49  ;;  %v4291_v24 = vsel %vm4286_vm12, %v4227_v31, %v4290_v52  ;;  %v5247_v43 = vrot.slane %v14926_v0, 4  ;;  %v4920_v7 = vrot.slane %v14928_v13, 4 }
 0x1fb   : > { %4677 = vst [vmem:[#allocation2 + $0x3e8] sm:$0xcc] %v4618_v32  ;;  %4350 = vst [vmem:[#allocation2 + $0x3e8] sm:$0x33] %v4291_v24  ;;  %8150 = vrot.lane.b32.xlu1 %v14805_v51, %s13584_s21  ;;  %8801 = vrot.lane.b32.xlu0 %v14783_v2, %s13586_s23  ;;  %v2477_v46 = vcombine.low %v14922_v30, %v14922_v30 }
 0x1fc   : > { %v5270_v31 = vsel %vm693_vm0, %v5246_v12, %v5247_v43  ;;  %v4943_v41 = vsel %vm693_vm0, %v4919_v23, %v4920_v7  ;;  %v2491_v12 = vrot.slane %v14922_v30, %v13634_v5 }
 0x1fd   : > { %v5271_v44 = vsel %vm5266_vm15, %v5207_v15, %v5270_v31  ;;  %v4944_v42 = vsel %vm4939_vm14, %v4880_v48, %v4943_v41  ;;  %v5860_v20 = vpop.permute.xlu1 %5859  ;;  %v5533_v27 = vpop.permute.xlu0 %5532  ;;  %v13097_v37 = vld [vmem:[#allocation2 + $0x3e4] ss:$164 sps:$4 sm:$0xff]   ;;  %v2484_v15 = vrot.slane %v2477_v46, %v13634_v5  ;;  %v3130_v48 = vcombine.low %v14945_v50, %v14945_v50 }
 0x1fe   : > { %v13099_v49 = vld [vmem:[#allocation2 + $0x3e0] ss:$164 sps:$4 sm:$0xff]   ;;  %5330 = vst [vmem:[#allocation2 + $0x48c] sm:$0xcc] %v5271_v44  ;;  %5003 = vst [vmem:[#allocation2 + $0x48c] sm:$0x33] %v4944_v42  ;;  %10810 = vmatprep.subr.bf16.mxu1 %v13097_v37 }
 0x1ff   : > { %v5899_v52 = vrot.slane %v5860_v20, 4  ;;  %v5572_v32 = vrot.slane %v5533_v27, 4  ;;  %8803 = vrot.lane.b32.xlu1 %v14805_v51, %s13586_s23  ;;  %8477 = vrot.lane.b32.xlu0 %v14783_v2, %s13585_s22 }
 0x200   : > { %10811 = vmatpush1.bf16.msra.mxu1 %v13099_v49 }
 0x201   : > { %v5921_v23 = vsel %vm693_vm0, %v5898_v11, %v5899_v52  ;;  %v5594_v24 = vsel %vm693_vm0, %v5571_v29, %v5572_v32  ;;  %v6513_v31 = vpop.permute.xlu1 %6512  ;;  %v6186_v46 = vpop.permute.xlu0 %6185  ;;  %v14971_v29 = vrot.slane %v3130_v48, %v13634_v5 }
 0x202   : > { %v5922_v2 = vsel %vm5919_vm2, %v14675_v21, %v5921_v23  ;;  %v5595_v51 = vsel %vm5592_vm1, %v14660_v59, %v5594_v24  ;;  %v6552_v41 = vrot.slane %v6513_v31, 4  ;;  %v6225_v44 = vrot.slane %v6186_v46, 4 }
 0x203   : > { %5982 = vst [vmem:[#allocation2 + $0x528] sm:$0xcc] %v5922_v2  ;;  %5655 = vst [vmem:[#allocation2 + $0x528] sm:$0x33] %v5595_v51  ;;  %2604 = vrot.lane.b32.xlu1 %v2491_v12, %s13567_s26  ;;  %2602 = vrot.lane.b32.xlu0 %v2484_v15, %s13567_s26 }
 0x204   : > { %v6574_v21 = vsel %vm693_vm0, %v6551_v38, %v6552_v41  ;;  %v6247_v59 = vsel %vm693_vm0, %v6224_v36, %v6225_v44  ;;  %v2804_v36 = vcombine.high %v14922_v30, %v14922_v30 }
 0x205   : > { %v6575_v11 = vsel %vm19089_vm4, %v14703_v17, %v6574_v21  ;;  %v6248_v42 = vsel %vm19088_vm3, %v14689_v33, %v6247_v59  ;;  %v14983_v37 = vpop.permute.xlu1 %5861  ;;  %v14985_v49 = vpop.permute.xlu0 %5534  ;;  %v13102_v15 = vld [vmem:[#allocation2 + $0x3e8] ss:$164 sps:$4 sm:$0xff]   ;;  %v14994_v33 = vrot.slane %v14945_v50, %v13634_v5 }
 0x206   : > { %v13104_v48 = vld [vmem:[#allocation2 + $0x3ec] ss:$164 sps:$4 sm:$0xff]   ;;  %6635 = vst [vmem:[#allocation2 + $0x5cc] sm:$0xcc] %v6575_v11  ;;  %6308 = vst [vmem:[#allocation2 + $0x5cc] sm:$0x33] %v6248_v42 }
 0x207   : > { %v5900_v38 = vrot.slane %v14983_v37, 4  ;;  %v5573_v23 = vrot.slane %v14985_v49, 4  ;;  %3255 = vrot.lane.b32.xlu1 %v14971_v29, %s13569_s28  ;;  %2928 = vrot.lane.b32.xlu0 %v2491_v12, %s13568_s27 }
 0x208   : > { %10851 = vmatprep.subr.bf16.mxu0 %v13104_v48 }
 0x209   : > { %v5923_v17 = vsel %vm693_vm0, %v5899_v52, %v5900_v38  ;;  %v5596_v24 = vsel %vm693_vm0, %v5572_v32, %v5573_v23  ;;  %v15006_v51 = vpop.permute.xlu1 %6514  ;;  %v15008_v21 = vpop.permute.xlu0 %6187  ;;  %10852 = vmatpush1.bf16.msra.mxu0 %v13102_v15 }
 0x20a   : > { %v5924_v2 = vsel %vm5919_vm2, %v5860_v20, %v5923_v17  ;;  %v5597_v12 = vsel %vm5592_vm1, %v5533_v27, %v5596_v24  ;;  %v6553_v30 = vrot.slane %v15006_v51, 4  ;;  %v6226_v52 = vrot.slane %v15008_v21, 4 }
 0x20b   : > { %5983 = vst [vmem:[#allocation2 + $0x530] sm:$0xcc] %v5924_v2  ;;  %5656 = vst [vmem:[#allocation2 + $0x530] sm:$0x33] %v5597_v12  ;;  %3908 = vrot.lane.b32.xlu1 %v14971_v29, %s13571_s30  ;;  %3581 = vrot.lane.b32.xlu0 %v14994_v33, %s13570_s29  ;;  %v2818_v20 = vrot.slane %v2804_v36, %v13634_v5  ;;  %v3457_v27 = vcombine.high %v14945_v50, %v14945_v50 }
 0x20c   : > { %v6576_v32 = vsel %vm693_vm0, %v6552_v41, %v6553_v30  ;;  %v6249_v59 = vsel %vm693_vm0, %v6225_v44, %v6226_v52 }
 0x20d   : > { %v6577_v11 = vsel %vm19089_vm4, %v6513_v31, %v6576_v32  ;;  %v6250_v42 = vsel %vm19088_vm3, %v6186_v46, %v6249_v59  ;;  %v7166_v15 = vpop.permute.xlu1 %7165  ;;  %v6839_v48 = vpop.permute.xlu0 %6838  ;;  %v13106_v17 = vld [vmem:[#allocation2 + $0x52c] ss:$164 sps:$4 sm:$0xff]   ;;  %v15031_v41 = vrot.slane %v3457_v27, %v13634_v5  ;;  %vm19192_vm3 = vcmask 834560  }
 0x20e   : > { %v13108_v24 = vld [vmem:[#allocation2 + $0x528] ss:$164 sps:$4 sm:$0xff]   ;;  %6636 = vst [vmem:[#allocation2 + $0x5d4] sm:$0xcc] %v6577_v11  ;;  %6309 = vst [vmem:[#allocation2 + $0x5d4] sm:$0x33] %v6250_v42  ;;  %10812 = vmatprep.subr.bf16.mxu1 %v13106_v17 }
 0x20f   : > { %v7205_v36 = vrot.slane %v7166_v15, 4  ;;  %v6878_v50 = vrot.slane %v6839_v48, 4  ;;  %3257 = vrot.lane.b32.xlu1 %v14994_v33, %s13569_s28  ;;  %2930 = vrot.lane.b32.xlu0 %v2818_v20, %s13568_s27  ;;  %vm19193_vm4 = vcmask 965632  }
 0x210   : > { %10813 = vmatpush1.bf16.msra.mxu1 %v13108_v24 }
 0x211   : > { %v7227_v31 = vsel %vm693_vm0, %v7204_v9, %v7205_v36  ;;  %v6900_v46 = vsel %vm693_vm0, %v6877_v53, %v6878_v50  ;;  %v7819_v12 = vpop.permute.xlu1 %7818  ;;  %v7492_v20 = vpop.permute.xlu0 %7491 }
 0x212   : > { %v7228_v44 = vsel %vm19192_vm3, %v14727_v63, %v7227_v31  ;;  %v6901_v2 = vsel %vm19193_vm4, %v14716_v57, %v6900_v46  ;;  %v7858_v27 = vrot.slane %v7819_v12, 4  ;;  %v7531_v32 = vrot.slane %v7492_v20, 4 }
 0x213   : > { %7288 = vst [vmem:[#allocation2 + $0x670] sm:$0xcc] %v7228_v44  ;;  %6961 = vst [vmem:[#allocation2 + $0x670] sm:$0x33] %v6901_v2  ;;  %3910 = vrot.lane.b32.xlu1 %v14994_v33, %s13571_s30  ;;  %3583 = vrot.lane.b32.xlu0 %v15031_v41, %s13570_s29  ;;  %vm19194_vm3 = vcmask 818176   ;;  %vm19195_vm4 = vcmask 826368  }
 0x214   : > { %v7880_v53 = vsel %vm693_vm0, %v7857_v56, %v7858_v27  ;;  %v7553_v57 = vsel %vm693_vm0, %v7530_v16, %v7531_v32 }
 0x215   : > { %v7881_v63 = vsel %vm19194_vm3, %v14749_v8, %v7880_v53  ;;  %v7554_v9 = vsel %vm19195_vm4, %v14738_v19, %v7553_v57  ;;  %v15057_v59 = vpop.permute.xlu1 %7167  ;;  %v15059_v11 = vpop.permute.xlu0 %6840  ;;  %v13110_v42 = vld [vmem:[#allocation2 + $0x530] ss:$164 sps:$4 sm:$0xff]   ;;  %vm19196_vm3 = vcmask 834560   ;;  %vm19197_vm4 = vcmask 965632  }
 0x216   : > { %v13112_v17 = vld [vmem:[#allocation2 + $0x534] ss:$164 sps:$4 sm:$0xff]   ;;  %7941 = vst [vmem:[#allocation2 + $0x714] sm:$0xcc] %v7881_v63  ;;  %7614 = vst [vmem:[#allocation2 + $0x714] sm:$0x33] %v7554_v9 }
 0x217   : > { %v7206_v56 = vrot.slane %v15057_v59, 4  ;;  %v6879_v24 = vrot.slane %v15059_v11, 4  ;;  %4561 = vrot.lane.b32.xlu1 %v14971_v29, %s13573_s5  ;;  %4234 = vrot.lane.b32.xlu0 %v14994_v33, %s13572_s4 }
 0x218   : > { %10853 = vmatprep.subr.bf16.mxu0 %v13112_v17 }
 0x219   : > { %v7229_v19 = vsel %vm693_vm0, %v7205_v36, %v7206_v56  ;;  %v6902_v16 = vsel %vm693_vm0, %v6878_v50, %v6879_v24  ;;  %v15075_v46 = vpop.permute.xlu1 %7820  ;;  %v15077_v44 = vpop.permute.xlu0 %7493  ;;  %10854 = vmatpush1.bf16.msra.mxu0 %v13110_v42 }
 0x21a   : > { %v7230_v8 = vsel %vm19196_vm3, %v7166_v15, %v7229_v19  ;;  %v6903_v31 = vsel %vm19197_vm4, %v6839_v48, %v6902_v16  ;;  %v7859_v2 = vrot.slane %v15075_v46, 4  ;;  %v7532_v36 = vrot.slane %v15077_v44, 4 }
 0x21b   : > { %7289 = vst [vmem:[#allocation2 + $0x678] sm:$0xcc] %v7230_v8  ;;  %6962 = vst [vmem:[#allocation2 + $0x678] sm:$0x33] %v6903_v31  ;;  %5214 = vrot.lane.b32.xlu1 %v14971_v29, %s13575_s7  ;;  %4887 = vrot.lane.b32.xlu0 %v14994_v33, %s13574_s6  ;;  %vm19198_vm3 = vcmask 818176   ;;  %vm19199_vm4 = vcmask 826368  }
 0x21c   : > { %v7882_v15 = vsel %vm693_vm0, %v7858_v27, %v7859_v2  ;;  %v7555_v48 = vsel %vm693_vm0, %v7531_v32, %v7532_v36  ;;  %v6331_v27 = vld [vmem:[%s13639_s19 + $0x22] sm:$0xff] }
 0x21d   : > { %v7883_v50 = vsel %vm19198_vm3, %v7819_v12, %v7882_v15  ;;  %v7556_v53 = vsel %vm19199_vm4, %v7492_v20, %v7555_v48  ;;  %v8472_v57 = vpop.permute.xlu1 %8471  ;;  %v8145_v63 = vpop.permute.xlu0 %8144  ;;  %v13113_v9 = vld [vmem:[#allocation2 + $0x674] ss:$164 sps:$4 sm:$0xff]   ;;  %vm19200_vm3 = vcmask 687104  }
 0x21e   : > { %v13115_v42 = vld [vmem:[#allocation2 + $0x670] ss:$164 sps:$4 sm:$0xff]   ;;  %7942 = vst [vmem:[#allocation2 + $0x71c] sm:$0xcc] %v7883_v50  ;;  %7615 = vst [vmem:[#allocation2 + $0x71c] sm:$0x33] %v7556_v53  ;;  %10814 = vmatprep.subr.bf16.mxu1 %v13113_v9 }
 0x21f   : > { %v8511_v17 = vrot.slane %v8472_v57, 4  ;;  %v8184_v19 = vrot.slane %v8145_v63, 4  ;;  %4563 = vrot.lane.b32.xlu1 %v14994_v33, %s13573_s5  ;;  %4236 = vrot.lane.b32.xlu0 %v15031_v41, %s13572_s4  ;;  %vm19201_vm4 = vmmov %vm19200_vm3 }
 0x220   : > { %10815 = vmatpush1.bf16.msra.mxu1 %v13115_v42 }
 0x221   : > { %v8533_v12 = vsel %vm693_vm0, %v8510_v60, %v8511_v17  ;;  %v8206_v20 = vsel %vm693_vm0, %v8183_v39, %v8184_v19  ;;  %v15108_v8 = vpop.permute.xlu1 %8146  ;;  %v8798_v31 = vpop.permute.xlu0 %8797  ;;  %v6395_v39 = vcombine.low %v6331_v27, %v6331_v27 }
 0x222   : > { %v8534_v32 = vsel %vm8531_vm7, %v14772_v18, %v8533_v12  ;;  %v8207_v16 = vsel %vm19200_vm3, %v14761_v1, %v8206_v20  ;;  %v8185_v60 = vrot.slane %v15108_v8, 4  ;;  %v8837_v15 = vrot.slane %v8798_v31, 4 }
 0x223   : > { %8594 = vst [vmem:[#allocation2 + $0x7b8] sm:$0xcc] %v8534_v32  ;;  %8267 = vst [vmem:[#allocation2 + $0x7b8] sm:$0x33] %v8207_v16  ;;  %5216 = vrot.lane.b32.xlu1 %v14994_v33, %s13575_s7  ;;  %4889 = vrot.lane.b32.xlu0 %v15031_v41, %s13574_s6  ;;  %vm19202_vm3 = vcmask 670720  }
 0x224   : > { %v8208_v1 = vsel %vm693_vm0, %v8184_v19, %v8185_v60  ;;  %v8859_v18 = vsel %vm693_vm0, %v8836_v28, %v8837_v15  ;;  %v15138_v28 = vrot.slane %v6331_v27, %v13634_v5 }
 0x225   : > { %v8209_v48 = vsel %vm19201_vm4, %v8145_v63, %v8208_v1  ;;  %v8860_v50 = vsel %vm19202_vm3, %v14789_v62, %v8859_v18  ;;  %v15124_v53 = vpop.permute.xlu1 %8799  ;;  %v15126_v9 = vpop.permute.xlu0 %8473  ;;  %v13116_v42 = vld [vmem:[#allocation2 + $0x678] ss:$164 sps:$4 sm:$0xff]   ;;  %v15135_v62 = vrot.slane %v6395_v39, %v13634_v5  ;;  %vm19203_vm4 = vmmov %vm19202_vm3  ;;  %vm19204_vm3 = vcmask 973824  }
 0x226   : > { %v13118_v12 = vld [vmem:[#allocation2 + $0x67c] ss:$164 sps:$4 sm:$0xff]   ;;  %8268 = vst [vmem:[#allocation2 + $0x7c0] sm:$0x33] %v8209_v48  ;;  %8920 = vst [vmem:[#allocation2 + $0x85c] sm:$0x33] %v8860_v50 }
 0x227   : > { %v8838_v20 = vrot.slane %v15124_v53, 4  ;;  %v8512_v19 = vrot.slane %v15126_v9, 4  ;;  %5867 = vrot.lane.b32.xlu1 %v14971_v29, %s13577_s9  ;;  %5540 = vrot.lane.b32.xlu0 %v14994_v33, %s13576_s8 }
 0x228   : > { %10855 = vmatprep.subr.bf16.mxu0 %v13118_v12 }
 0x229   : > { %v8861_v63 = vsel %vm693_vm0, %v8837_v15, %v8838_v20  ;;  %v8535_v32 = vsel %vm693_vm0, %v8511_v17, %v8512_v19  ;;  %v3252_v1 = vpop.permute.xlu1 %3251  ;;  %v2925_v18 = vpop.permute.xlu0 %2924  ;;  %10856 = vmatpush1.bf16.msra.mxu0 %v13116_v42  ;;  %v6069_v15 = vcombine.high %v6331_v27, %v6331_v27 }
 0x22a   : > { %v8862_v29 = vsel %vm19203_vm4, %v8798_v31, %v8861_v63  ;;  %v8536_v16 = vsel %vm8531_vm7, %v8472_v57, %v8535_v32  ;;  %v3289_v39 = vrot.slane %v3252_v1, 4  ;;  %v2962_v48 = vrot.slane %v2925_v18, 4 }
 0x22b   : > { %8921 = vst [vmem:[#allocation2 + $0x864] sm:$0x33] %v8862_v29  ;;  %8595 = vst [vmem:[#allocation2 + $0x7c0] sm:$0xcc] %v8536_v16  ;;  %6520 = vrot.lane.b32.xlu1 %v15135_v62, %s13579_s11  ;;  %6193 = vrot.lane.b32.xlu0 %v15138_v28, %s13578_s10  ;;  %v13125_v16 = vld [vmem:[#allocation2 + $0x1c] ss:$164 sps:$4 sm:$0xff]  }
 0x22c   : > { %v3313_v17 = vsel %vm693_vm0, %v3288_v35, %v3289_v39  ;;  %v2986_v57 = vsel %vm693_vm0, %v2961_v40, %v2962_v48  ;;  %v15167_v35 = vrot.slane %v6069_v15, %v13634_v5  ;;  %vm19205_vm4 = vcmask 982016  }
 0x22d   : > { %v3314_v31 = vsel %vm3307_vm9, %v14831_v61, %v3313_v17  ;;  %v2987_v50 = vsel %vm2980_vm8, %v14833_v22, %v2986_v57  ;;  %v3905_v42 = vpop.permute.xlu1 %3904  ;;  %v3578_v12 = vpop.permute.xlu0 %3577  ;;  %v13120_v63 = vld [vmem:[#allocation2 + $0x7bc] ss:$164 sps:$4 sm:$0x3f]  }
 0x22e   : > { %3372 = vst [vmem:[#allocation2 + $0x2a8] sm:$0xcc] %v3314_v31  ;;  %3045 = vst [vmem:[#allocation2 + $0x2a8] sm:$0x33] %v2987_v50  ;;  %v3942_v27 = vrot.slane %v3905_v42, 4  ;;  %v3615_v32 = vrot.slane %v3578_v12, 4  ;;  %12890 = vmatprep.subr.msk.bf16.mxu1 %vm10639_vm6, %v13120_v63 }
 0x22f   : > { %v13122_v29 = vld [vmem:[#allocation2 + $0x7b8] ss:$164 sps:$4 sm:$0x3f]   ;;  %5869 = vrot.lane.b32.xlu1 %v14994_v33, %s13577_s9  ;;  %5542 = vrot.lane.b32.xlu0 %v15031_v41, %s13576_s8 }
 0x230   : > { %v3966_v61 = vsel %vm693_vm0, %v3941_v10, %v3942_v27  ;;  %v3639_v22 = vsel %vm693_vm0, %v3614_v4, %v3615_v32  ;;  %v10647_v40 = vsel %vm10639_vm6, %v13122_v29, 0  ;;  %v13123_v50 = vld [vmem:[#allocation2 + $0x18] ss:$164 sps:$4 sm:$0xff]   ;;  %v13131_v29 = vld [vmem:[#allocation2 + $0x164] ss:$164 sps:$4 sm:$0xff]  }
 0x231   : > { %v3967_v33 = vsel %vm3960_vm11, %v14851_v25, %v3966_v61  ;;  %v3640_v41 = vsel %vm3633_vm10, %v14853_v55, %v3639_v22  ;;  %v15181_v15 = vpop.permute.xlu1 %3253  ;;  %v15183_v17 = vpop.permute.xlu0 %2926  ;;  %10817 = vmatpush1.bf16.msra.mxu1 %v10647_v40  ;;  %v13134_v61 = vld [vmem:[#allocation2 + $0x24] ss:$164 sps:$4 sm:$0xff]  }
 0x232   : > { %v13126_v10 = vld [vmem:[#allocation2 + $0x7c4] ss:$164 sps:$4 sm:$0x3f]   ;;  %4025 = vst [vmem:[#allocation2 + $0x34c] sm:$0xcc] %v3967_v33  ;;  %v3290_v4 = vrot.slane %v15181_v15, 4  ;;  %10886 = vmatprep.subr.bf16.mxu1 %v13125_v16 }
 0x233   : > { %3698 = vst [vmem:[#allocation2 + $0x34c] sm:$0x33] %v3640_v41  ;;  %v2963_v57 = vrot.slane %v15183_v17, 4  ;;  %v13128_v31 = vld [vmem:[#allocation2 + $0x7c0] ss:$164 sps:$4 sm:$0x3f]   ;;  %6522 = vrot.lane.b32.xlu1 %v15138_v28, %s13579_s11  ;;  %6195 = vrot.lane.b32.xlu0 %v15167_v35, %s13578_s10 }
 0x234   : > { %v3315_v25 = vsel %vm693_vm0, %v3289_v39, %v3290_v4  ;;  %12892 = vmatprep.subr.msk.bf16.mxu0 %vm10639_vm6, %v13126_v10  ;;  %12891 = vmatmul.mubr.msk.bf16.vlgmr.msra.gmra.mrb[0].mxu1 %vm2001_vm5, %v14858_v45  ;;  %v10653_v63 = vsel %vm10639_vm6, %v13128_v31, 0  ;;  %v13129_v41 = vld [vmem:[#allocation2 + $0x160] ss:$164 sps:$4 sm:$0xff]   ;;  %v13137_v31 = vld [vmem:[#allocation2 + $0x16c] ss:$164 sps:$4 sm:$0xff]  }
 0x235   : > { %v2988_v55 = vsel %vm693_vm0, %v2962_v48, %v2963_v57  ;;  %v3316_v22 = vsel %vm3307_vm9, %v3252_v1, %v3315_v25  ;;  %v15203_v16 = vpop.permute.xlu1 %3906  ;;  %v15205_v39 = vpop.permute.xlu0 %3579  ;;  %10858 = vmatpush1.bf16.msra.mxu0 %v10653_v63  ;;  %10887 = vmatpush1.bf16.msra.mxu1 %v13123_v50  ;;  %v13132_v10 = vld [vmem:[#allocation2 + $0x20] ss:$164 sps:$4 sm:$0xff]  }
 0x236   : > { %v2989_v40 = vsel %vm2980_vm8, %v2925_v18, %v2988_v55  ;;  %3373 = vst [vmem:[#allocation2 + $0x2b0] sm:$0xcc] %v3316_v22  ;;  %v3943_v48 = vrot.slane %v15203_v16, 4  ;;  %v3616_v33 = vrot.slane %v15205_v39, 4  ;;  %10888 = vmatprep.subr.bf16.mxu1 %v13131_v29  ;;  %10927 = vmatprep.subr.bf16.mxu0 %v13134_v61 }
 0x237   : > { %3046 = vst [vmem:[#allocation2 + $0x2b0] sm:$0x33] %v2989_v40  ;;  %7173 = vrot.lane.b32.xlu1 %v15135_v62, %s13581_s17  ;;  %6846 = vrot.lane.b32.xlu0 %v15138_v28, %s13580_s16 }
 0x238   : > { %v3968_v1 = vsel %vm693_vm0, %v3942_v27, %v3943_v48  ;;  %v3641_v18 = vsel %vm693_vm0, %v3615_v32, %v3616_v33  ;;  %12893 = vmatmul.mubr.msk.bf16.vlgmr.msra.gmra.mrb[4].mxu0 %vm2001_vm5, %v14858_v45  ;;  %10918 = vmatprep.mubr.bf16.mxu1 %v19092_v47  ;;  %v13135_v45 = vld [vmem:[#allocation2 + $0x168] ss:$164 sps:$4 sm:$0xff]  }
 0x239   : > { %v3969_v50 = vsel %vm3960_vm11, %v3905_v42, %v3968_v1  ;;  %v3642_v25 = vsel %vm3633_vm10, %v3578_v12, %v3641_v18  ;;  %v4558_v55 = vpop.permute.xlu1 %4557  ;;  %v4231_v63 = vpop.permute.xlu0 %4230  ;;  %10889 = vmatpush1.bf16.msra.mxu1 %v13129_v41  ;;  %10928 = vmatpush1.bf16.msra.mxu0 %v13132_v10 }
 0x23a   : > { %v13138_v29 = vld [vmem:[#allocation2 + $0x2a8] ss:$164 sps:$4 sm:$0xff]   ;;  %4026 = vst [vmem:[#allocation2 + $0x354] sm:$0xcc] %v3969_v50  ;;  %3699 = vst [vmem:[#allocation2 + $0x354] sm:$0x33] %v3642_v25  ;;  %10929 = vmatprep.subr.bf16.mxu0 %v13137_v31  ;;  %10959 = vmatprep.mubr.bf16.mxu0 %v19092_v47 }
 0x23b   : > { %v13140_v27 = vld [vmem:[#allocation2 + $0x2ac] ss:$164 sps:$4 sm:$0xff]   ;;  %v4595_v61 = vrot.slane %v4558_v55, 4  ;;  %v4268_v32 = vrot.slane %v4231_v63, 4  ;;  %7826 = vrot.lane.b32.xlu1 %v15135_v62, %s13583_s20  ;;  %7499 = vrot.lane.b32.xlu0 %v15138_v28, %s13582_s18 }
 0x23c   : > { %10890 = vmatprep.subr.bf16.mxu1 %v13140_v27 }
 0x23d   : > { %v4619_v42 = vsel %vm693_vm0, %v4594_v14, %v4595_v61  ;;  %v4292_v12 = vsel %vm693_vm0, %v4267_v26, %v4268_v32  ;;  %v5211_v41 = vpop.permute.xlu1 %5210  ;;  %v4884_v10 = vpop.permute.xlu0 %4883  ;;  %10891 = vmatpush1.bf16.msra.mxu1 %v13138_v29  ;;  %10930 = vmatpush1.bf16.msra.mxu0 %v13135_v45 }
 0x23e   : > { %v4620_v22 = vsel %vm4613_vm13, %v14905_v6, %v4619_v42  ;;  %v4293_v40 = vsel %vm4286_vm12, %v14907_v34, %v4292_v12  ;;  %v5248_v1 = vrot.slane %v5211_v41, 4  ;;  %v4921_v18 = vrot.slane %v4884_v10, 4 }
 0x23f   : > { %4678 = vst [vmem:[#allocation2 + $0x3f0] sm:$0xcc] %v4620_v22  ;;  %4351 = vst [vmem:[#allocation2 + $0x3f0] sm:$0x33] %v4293_v40  ;;  %7175 = vrot.lane.b32.xlu1 %v15138_v28, %s13581_s17  ;;  %6848 = vrot.lane.b32.xlu0 %v15167_v35, %s13580_s16 }
 0x240   : > { %v5272_v6 = vsel %vm693_vm0, %v5247_v43, %v5248_v1  ;;  %v4945_v34 = vsel %vm693_vm0, %v4920_v7, %v4921_v18 }
 0x241   : > { %v5273_v14 = vsel %vm5266_vm15, %v14926_v0, %v5272_v6  ;;  %v4946_v26 = vsel %vm4939_vm14, %v14928_v13, %v4945_v34  ;;  %v15253_v31 = vpop.permute.xlu1 %4559  ;;  %v15255_v50 = vpop.permute.xlu0 %4232  ;;  %v13141_v25 = vld [vmem:[#allocation2 + $0x2b0] ss:$164 sps:$4 sm:$0xff]  }
 0x242   : > { %v13143_v29 = vld [vmem:[#allocation2 + $0x2b4] ss:$164 sps:$4 sm:$0xff]   ;;  %5331 = vst [vmem:[#allocation2 + $0x494] sm:$0xcc] %v5273_v14  ;;  %5004 = vst [vmem:[#allocation2 + $0x494] sm:$0x33] %v4946_v26 }
 0x243   : > { %v4596_v43 = vrot.slane %v15253_v31, 4  ;;  %v4269_v27 = vrot.slane %v15255_v50, 4  ;;  %7828 = vrot.lane.b32.xlu1 %v15138_v28, %s13583_s20  ;;  %7501 = vrot.lane.b32.xlu0 %v15167_v35, %s13582_s18 }
 0x244   : > { %10931 = vmatprep.subr.bf16.mxu0 %v13143_v29 }
 0x245   : > { %v4621_v0 = vsel %vm693_vm0, %v4595_v61, %v4596_v43  ;;  %v4294_v13 = vsel %vm693_vm0, %v4268_v32, %v4269_v27  ;;  %v15271_v42 = vpop.permute.xlu1 %5212  ;;  %v15273_v12 = vpop.permute.xlu0 %4885  ;;  %10932 = vmatpush1.bf16.msra.mxu0 %v13141_v25  ;;  %v15288_v32 = vld [vmem:[%s13639_s19 + $0x20] sm:$0xff] }
 0x246   : > { %v4622_v7 = vsel %vm4613_vm13, %v4558_v55, %v4621_v0  ;;  %v4295_v45 = vsel %vm4286_vm12, %v4231_v63, %v4294_v13  ;;  %v5249_v22 = vrot.slane %v15271_v42, 4  ;;  %v4922_v61 = vrot.slane %v15273_v12, 4 }
 0x247   : > { %4679 = vst [vmem:[#allocation2 + $0x3f8] sm:$0xcc] %v4622_v7  ;;  %4352 = vst [vmem:[#allocation2 + $0x3f8] sm:$0x33] %v4295_v45  ;;  %8479 = vrot.lane.b32.xlu1 %v15135_v62, %s13585_s22  ;;  %8152 = vrot.lane.b32.xlu0 %v15138_v28, %s13584_s21 }
 0x248   : > { %v5274_v55 = vsel %vm693_vm0, %v5248_v1, %v5249_v22  ;;  %v4947_v63 = vsel %vm693_vm0, %v4921_v18, %v4922_v61  ;;  %v15305_v18 = vld [vmem:[%s13639_s19 + $0x24] sm:$0xff] }
 0x249   : > { %v5275_v40 = vsel %vm5266_vm15, %v5211_v41, %v5274_v55  ;;  %v4948_v6 = vsel %vm4939_vm14, %v4884_v10, %v4947_v63  ;;  %v5864_v34 = vpop.permute.xlu1 %5863  ;;  %v5537_v62 = vpop.permute.xlu0 %5536  ;;  %v13144_v14 = vld [vmem:[#allocation2 + $0x3f0] ss:$164 sps:$4 sm:$0xff]   ;;  %v2492_v41 = vcombine.low %v15288_v32, %v15288_v32 }
 0x24a   : > { %v13146_v26 = vld [vmem:[#allocation2 + $0x3f4] ss:$164 sps:$4 sm:$0xff]   ;;  %5332 = vst [vmem:[#allocation2 + $0x49c] sm:$0xcc] %v5275_v40  ;;  %5005 = vst [vmem:[#allocation2 + $0x49c] sm:$0x33] %v4948_v6 }
 0x24b   : > { %v5901_v25 = vrot.slane %v5864_v34, 4  ;;  %v5574_v29 = vrot.slane %v5537_v62, 4  ;;  %8154 = vrot.lane.b32.xlu1 %v15167_v35, %s13584_s21  ;;  %8805 = vrot.lane.b32.xlu0 %v15138_v28, %s13586_s23 }
 0x24c   : > { %10892 = vmatprep.subr.bf16.mxu1 %v13146_v26 }
 0x24d   : > { %v5925_v10 = vsel %vm693_vm0, %v5900_v38, %v5901_v25  ;;  %v5598_v1 = vsel %vm693_vm0, %v5573_v23, %v5574_v29  ;;  %v6517_v7 = vpop.permute.xlu1 %6516  ;;  %v6190_v45 = vpop.permute.xlu0 %6189  ;;  %10893 = vmatpush1.bf16.msra.mxu1 %v13144_v14  ;;  %v2506_v23 = vrot.slane %v15288_v32, %v13634_v5 }
 0x24e   : > { %v5926_v0 = vsel %vm5919_vm2, %v14983_v37, %v5925_v10  ;;  %v5599_v13 = vsel %vm5592_vm1, %v14985_v49, %v5598_v1  ;;  %v6554_v55 = vrot.slane %v6517_v7, 4  ;;  %v6227_v38 = vrot.slane %v6190_v45, 4 }
 0x24f   : > { %5984 = vst [vmem:[#allocation2 + $0x538] sm:$0xcc] %v5926_v0  ;;  %5657 = vst [vmem:[#allocation2 + $0x538] sm:$0x33] %v5599_v13  ;;  %8807 = vrot.lane.b32.xlu1 %v15167_v35, %s13586_s23  ;;  %8481 = vrot.lane.b32.xlu0 %v15138_v28, %s13585_s22  ;;  %v2499_v37 = vrot.slane %v2492_v41, %v13634_v5  ;;  %v3145_v49 = vcombine.low %v15305_v18, %v15305_v18 }
 0x250   : > { %v6578_v63 = vsel %vm693_vm0, %v6553_v30, %v6554_v55  ;;  %v6251_v40 = vsel %vm693_vm0, %v6226_v52, %v6227_v38 }
 0x251   : > { %v6579_v35 = vsel %vm19204_vm3, %v15006_v51, %v6578_v63  ;;  %v6252_v28 = vsel %vm19205_vm4, %v15008_v21, %v6251_v40  ;;  %v15330_v6 = vpop.permute.xlu1 %5865  ;;  %v15332_v14 = vpop.permute.xlu0 %5538  ;;  %v13148_v26 = vld [vmem:[#allocation2 + $0x3f8] ss:$164 sps:$4 sm:$0xff]   ;;  %v15339_v51 = vrot.slane %v3145_v49, %v13634_v5 }
 0x252   : > { %v13150_v41 = vld [vmem:[#allocation2 + $0x3fc] ss:$164 sps:$4 sm:$0xff]   ;;  %6637 = vst [vmem:[#allocation2 + $0x5dc] sm:$0xcc] %v6579_v35  ;;  %6310 = vst [vmem:[#allocation2 + $0x5dc] sm:$0x33] %v6252_v28 }
 0x253   : > { %v5902_v30 = vrot.slane %v15330_v6, 4  ;;  %v5575_v10 = vrot.slane %v15332_v14, 4  ;;  %2608 = vrot.lane.b32.xlu1 %v2506_v23, %s13567_s26  ;;  %2606 = vrot.lane.b32.xlu0 %v2499_v37, %s13567_s26 }
 0x254   : > { %10933 = vmatprep.subr.bf16.mxu0 %v13150_v41 }
 0x255   : > { %v5927_v21 = vsel %vm693_vm0, %v5901_v25, %v5902_v30  ;;  %v5600_v52 = vsel %vm693_vm0, %v5574_v29, %v5575_v10  ;;  %v15349_v13 = vpop.permute.xlu1 %6518  ;;  %v15351_v63 = vpop.permute.xlu0 %6191  ;;  %10934 = vmatpush1.bf16.msra.mxu0 %v13148_v26 }
 0x256   : > { %v5928_v1 = vsel %vm5919_vm2, %v5864_v34, %v5927_v21  ;;  %v5601_v0 = vsel %vm5592_vm1, %v5537_v62, %v5600_v52  ;;  %v6555_v37 = vrot.slane %v15349_v13, 4  ;;  %v6228_v25 = vrot.slane %v15351_v63, 4 }
 0x257   : > { %5985 = vst [vmem:[#allocation2 + $0x540] sm:$0xcc] %v5928_v1  ;;  %5658 = vst [vmem:[#allocation2 + $0x540] sm:$0x33] %v5601_v0  ;;  %3259 = vrot.lane.b32.xlu1 %v15339_v51, %s13569_s28  ;;  %2932 = vrot.lane.b32.xlu0 %v2506_v23, %s13568_s27  ;;  %v15360_v34 = vrot.slane %v15305_v18, %v13634_v5  ;;  %v2819_v62 = vcombine.high %v15288_v32, %v15288_v32 }
 0x258   : > { %v6580_v29 = vsel %vm693_vm0, %v6554_v55, %v6555_v37  ;;  %v6253_v49 = vsel %vm693_vm0, %v6227_v38, %v6228_v25 }
 0x259   : > { %v6581_v40 = vsel %vm19204_vm3, %v6517_v7, %v6580_v29  ;;  %v6254_v35 = vsel %vm19205_vm4, %v6190_v45, %v6253_v49  ;;  %v7170_v23 = vpop.permute.xlu1 %7169  ;;  %v6843_v28 = vpop.permute.xlu0 %6842  ;;  %v13152_v26 = vld [vmem:[#allocation2 + $0x538] ss:$164 sps:$4 sm:$0xff]   ;;  %v2833_v55 = vrot.slane %v2819_v62, %v13634_v5  ;;  %v3472_v7 = vcombine.high %v15305_v18, %v15305_v18 }
 0x25a   : > { %v13154_v41 = vld [vmem:[#allocation2 + $0x53c] ss:$164 sps:$4 sm:$0xff]   ;;  %6638 = vst [vmem:[#allocation2 + $0x5e4] sm:$0xcc] %v6581_v40  ;;  %6311 = vst [vmem:[#allocation2 + $0x5e4] sm:$0x33] %v6254_v35 }
 0x25b   : > { %v7207_v21 = vrot.slane %v7170_v23, 4  ;;  %v6880_v32 = vrot.slane %v6843_v28, 4  ;;  %3912 = vrot.lane.b32.xlu1 %v15339_v51, %s13571_s30  ;;  %3585 = vrot.lane.b32.xlu0 %v15360_v34, %s13570_s29  ;;  %vm19206_vm3 = vcmask 834560   ;;  %vm19207_vm4 = vcmask 965632  }
 0x25c   : > { %10894 = vmatprep.subr.bf16.mxu1 %v13154_v41 }
 0x25d   : > { %v7231_v45 = vsel %vm693_vm0, %v7206_v56, %v7207_v21  ;;  %v6904_v38 = vsel %vm693_vm0, %v6879_v24, %v6880_v32  ;;  %v7823_v0 = vpop.permute.xlu1 %7822  ;;  %v7496_v62 = vpop.permute.xlu0 %7495  ;;  %10895 = vmatpush1.bf16.msra.mxu1 %v13152_v26  ;;  %v15393_v56 = vrot.slane %v3472_v7, %v13634_v5 }
 0x25e   : > { %v7232_v52 = vsel %vm19206_vm3, %v15057_v59, %v7231_v45  ;;  %v6905_v1 = vsel %vm19207_vm4, %v15059_v11, %v6904_v38  ;;  %v7860_v18 = vrot.slane %v7823_v0, 4  ;;  %v7533_v29 = vrot.slane %v7496_v62, 4 }
 0x25f   : > { %7290 = vst [vmem:[#allocation2 + $0x680] sm:$0xcc] %v7232_v52  ;;  %6963 = vst [vmem:[#allocation2 + $0x680] sm:$0x33] %v6905_v1  ;;  %3261 = vrot.lane.b32.xlu1 %v15360_v34, %s13569_s28  ;;  %2934 = vrot.lane.b32.xlu0 %v2833_v55, %s13568_s27  ;;  %vm19208_vm3 = vcmask 818176   ;;  %vm19209_vm4 = vcmask 826368  }
 0x260   : > { %v7884_v59 = vsel %vm693_vm0, %v7859_v2, %v7860_v18  ;;  %v7557_v11 = vsel %vm693_vm0, %v7532_v36, %v7533_v29 }
 0x261   : > { %v7885_v24 = vsel %vm19208_vm3, %v15075_v46, %v7884_v59  ;;  %v7558_v49 = vsel %vm19209_vm4, %v15077_v44, %v7557_v11  ;;  %v15405_v40 = vpop.permute.xlu1 %7171  ;;  %v15407_v35 = vpop.permute.xlu0 %6844  ;;  %v13157_v26 = vld [vmem:[#allocation2 + $0x540] ss:$164 sps:$4 sm:$0xff]   ;;  %vm19210_vm3 = vcmask 834560   ;;  %vm19211_vm4 = vcmask 965632  }
 0x262   : > { %v13159_v41 = vld [vmem:[#allocation2 + $0x544] ss:$164 sps:$4 sm:$0xff]   ;;  %7943 = vst [vmem:[#allocation2 + $0x724] sm:$0xcc] %v7885_v24  ;;  %7616 = vst [vmem:[#allocation2 + $0x724] sm:$0x33] %v7558_v49 }
 0x263   : > { %v7208_v2 = vrot.slane %v15405_v40, 4  ;;  %v6881_v55 = vrot.slane %v15407_v35, 4  ;;  %3914 = vrot.lane.b32.xlu1 %v15360_v34, %s13571_s30  ;;  %3587 = vrot.lane.b32.xlu0 %v15393_v56, %s13570_s29 }
 0x264   : > { %10935 = vmatprep.subr.bf16.mxu0 %v13159_v41 }
 0x265   : > { %v7233_v46 = vsel %vm693_vm0, %v7207_v21, %v7208_v2  ;;  %v6906_v44 = vsel %vm693_vm0, %v6880_v32, %v6881_v55  ;;  %v15423_v45 = vpop.permute.xlu1 %7824  ;;  %v15425_v38 = vpop.permute.xlu0 %7497  ;;  %10936 = vmatpush1.bf16.msra.mxu0 %v13157_v26 }
 0x266   : > { %v7234_v36 = vsel %vm19210_vm3, %v7170_v23, %v7233_v46  ;;  %v6907_v7 = vsel %vm19211_vm4, %v6843_v28, %v6906_v44  ;;  %v7861_v52 = vrot.slane %v15423_v45, 4  ;;  %v7534_v21 = vrot.slane %v15425_v38, 4 }
 0x267   : > { %7291 = vst [vmem:[#allocation2 + $0x688] sm:$0xcc] %v7234_v36  ;;  %6964 = vst [vmem:[#allocation2 + $0x688] sm:$0x33] %v6907_v7  ;;  %4565 = vrot.lane.b32.xlu1 %v15339_v51, %s13573_s5  ;;  %4238 = vrot.lane.b32.xlu0 %v15360_v34, %s13572_s4  ;;  %vm19212_vm3 = vcmask 818176   ;;  %vm19213_vm4 = vcmask 826368  }
 0x268   : > { %v7886_v23 = vsel %vm693_vm0, %v7860_v18, %v7861_v52  ;;  %v7559_v28 = vsel %vm693_vm0, %v7533_v29, %v7534_v21 }
 0x269   : > { %v7887_v32 = vsel %vm19212_vm3, %v7823_v0, %v7886_v23  ;;  %v7560_v1 = vsel %vm19213_vm4, %v7496_v62, %v7559_v28  ;;  %v8476_v59 = vpop.permute.xlu1 %8475  ;;  %v8149_v11 = vpop.permute.xlu0 %8148  ;;  %v13160_v24 = vld [vmem:[#allocation2 + $0x680] ss:$164 sps:$4 sm:$0xff]   ;;  %vm19214_vm3 = vcmask 687104  }
 0x26a   : > { %v13162_v49 = vld [vmem:[#allocation2 + $0x684] ss:$164 sps:$4 sm:$0xff]   ;;  %7944 = vst [vmem:[#allocation2 + $0x72c] sm:$0xcc] %v7887_v32  ;;  %7617 = vst [vmem:[#allocation2 + $0x72c] sm:$0x33] %v7560_v1 }
 0x26b   : > { %v8513_v26 = vrot.slane %v8476_v59, 4  ;;  %v8186_v41 = vrot.slane %v8149_v11, 4  ;;  %5218 = vrot.lane.b32.xlu1 %v15339_v51, %s13575_s7  ;;  %4891 = vrot.lane.b32.xlu0 %v15360_v34, %s13574_s6  ;;  %vm19215_vm4 = vmmov %vm19214_vm3 }
 0x26c   : > { %10896 = vmatprep.subr.bf16.mxu1 %v13162_v49 }
 0x26d   : > { %v8537_v0 = vsel %vm693_vm0, %v8512_v19, %v8513_v26  ;;  %v8210_v62 = vsel %vm693_vm0, %v8185_v60, %v8186_v41  ;;  %v15455_v46 = vpop.permute.xlu1 %8150  ;;  %v8802_v44 = vpop.permute.xlu0 %8801  ;;  %10897 = vmatpush1.bf16.msra.mxu1 %v13160_v24 }
 0x26e   : > { %v8538_v18 = vsel %vm8531_vm7, %v15126_v9, %v8537_v0  ;;  %v8211_v29 = vsel %vm19214_vm3, %v15108_v8, %v8210_v62  ;;  %v8187_v19 = vrot.slane %v15455_v46, 4  ;;  %v8839_v36 = vrot.slane %v8802_v44, 4  ;;  %v15469_v9 = vld [vmem:[%s13639_s19 + $0x2a] sm:$0xff] }
 0x26f   : > { %8596 = vst [vmem:[#allocation2 + $0x7c8] sm:$0xcc] %v8538_v18  ;;  %8269 = vst [vmem:[#allocation2 + $0x7c8] sm:$0x33] %v8211_v29  ;;  %4567 = vrot.lane.b32.xlu1 %v15360_v34, %s13573_s5  ;;  %4240 = vrot.lane.b32.xlu0 %v15393_v56, %s13572_s4  ;;  %vm19216_vm3 = vcmask 670720  }
 0x270   : > { %v8212_v60 = vsel %vm693_vm0, %v8186_v41, %v8187_v19  ;;  %v8863_v8 = vsel %vm693_vm0, %v8838_v20, %v8839_v36 }
 0x271   : > { %v8213_v7 = vsel %vm19215_vm4, %v8149_v11, %v8212_v60  ;;  %v8864_v23 = vsel %vm19216_vm3, %v15124_v53, %v8863_v8  ;;  %v15474_v28 = vpop.permute.xlu1 %8803  ;;  %v15476_v32 = vpop.permute.xlu0 %8477  ;;  %v13163_v1 = vld [vmem:[#allocation2 + $0x688] ss:$164 sps:$4 sm:$0xff]   ;;  %v6410_v53 = vcombine.low %v15469_v9, %v15469_v9  ;;  %vm19217_vm4 = vmmov %vm19216_vm3  ;;  %vm19218_vm3 = vcmask 744448  }
 0x272   : > { %v13165_v24 = vld [vmem:[#allocation2 + $0x68c] ss:$164 sps:$4 sm:$0xff]   ;;  %8270 = vst [vmem:[#allocation2 + $0x7d0] sm:$0x33] %v8213_v7  ;;  %8922 = vst [vmem:[#allocation2 + $0x86c] sm:$0x33] %v8864_v23 }
 0x273   : > { %v8840_v49 = vrot.slane %v15474_v28, 4  ;;  %v8514_v41 = vrot.slane %v15476_v32, 4  ;;  %5220 = vrot.lane.b32.xlu1 %v15360_v34, %s13575_s7  ;;  %4893 = vrot.lane.b32.xlu0 %v15393_v56, %s13574_s6 }
 0x274   : > { %10937 = vmatprep.subr.bf16.mxu0 %v13165_v24 }
 0x275   : > { %v8865_v20 = vsel %vm693_vm0, %v8839_v36, %v8840_v49  ;;  %v8539_v11 = vsel %vm693_vm0, %v8513_v26, %v8514_v41  ;;  %v15494_v18 = vpop.permute.xlu1 %2604  ;;  %v2603_v29 = vpop.permute.xlu0 %2602  ;;  %10938 = vmatpush1.bf16.msra.mxu0 %v13163_v1  ;;  %v15502_v26 = vrot.slane %v6410_v53, %v13634_v5 }
 0x276   : > { %v8866_v0 = vsel %vm19217_vm4, %v8802_v44, %v8865_v20  ;;  %v8540_v62 = vsel %vm8531_vm7, %v8476_v59, %v8539_v11  ;;  %v2639_v60 = vrot.slane %v15494_v18, 4  ;;  %v2638_v8 = vrot.slane %v2603_v29, 4  ;;  %vm19219_vm4 = vmmov %vm19218_vm3 }
 0x277   : > { %8923 = vst [vmem:[#allocation2 + $0x874] sm:$0x33] %v8866_v0  ;;  %8597 = vst [vmem:[#allocation2 + $0x7d0] sm:$0xcc] %v8540_v62  ;;  %5871 = vrot.lane.b32.xlu1 %v15339_v51, %s13577_s9  ;;  %5544 = vrot.lane.b32.xlu0 %v15360_v34, %s13576_s8  ;;  %v15506_v59 = vrot.slane %v15469_v9, %v13634_v5 }
 0x278   : > { %v2664_v44 = vsel %vm693_vm0, %v2637_v58, %v2638_v8  ;;  %v2666_v36 = vsel %vm693_vm0, %v2638_v8, %v2639_v60  ;;  %v6084_v58 = vcombine.high %v15469_v9, %v15469_v9 }
 0x279   : > { %v2665_v51 = vsel %vm19218_vm3, %v14550_v54, %v2664_v44  ;;  %v2667_v7 = vsel %vm19219_vm4, %v2603_v29, %v2666_v36  ;;  %v3256_v23 = vpop.permute.xlu1 %3255  ;;  %v2929_v1 = vpop.permute.xlu0 %2928  ;;  %v13167_v24 = vld [vmem:[#allocation2 + $0x7cc] ss:$164 sps:$4 sm:$0x3f]   ;;  %vm19220_vm3 = vcmask 973824   ;;  %vm19221_vm4 = vcmask 982016  }
 0x27a   : > { %2721 = vst [vmem:[#allocation2 + $0x214] sm:$0xcc] %v2665_v51  ;;  %2722 = vst [vmem:[#allocation2 + $0x21c] sm:$0xcc] %v2667_v7  ;;  %v3291_v53 = vrot.slane %v3256_v23, 4  ;;  %v2964_v20 = vrot.slane %v2929_v1, 4  ;;  %12894 = vmatprep.subr.msk.bf16.mxu1 %vm10639_vm6, %v13167_v24 }
 0x27b   : > { %v13169_v11 = vld [vmem:[#allocation2 + $0x7c8] ss:$164 sps:$4 sm:$0x3f]   ;;  %6524 = vrot.lane.b32.xlu1 %v15502_v26, %s13579_s11  ;;  %6197 = vrot.lane.b32.xlu0 %v15506_v59, %s13578_s10 }
 0x27c   : > { %v3317_v54 = vsel %vm693_vm0, %v3290_v4, %v3291_v53  ;;  %v2990_v0 = vsel %vm693_vm0, %v2963_v57, %v2964_v20  ;;  %v10659_v62 = vsel %vm10639_vm6, %v13169_v11, 0  ;;  %v13172_v29 = vld [vmem:[#allocation2 + $0x2c] ss:$164 sps:$4 sm:$0xff]  }
 0x27d   : > { %v3318_v8 = vsel %vm3307_vm9, %v15181_v15, %v3317_v54  ;;  %v2991_v44 = vsel %vm2980_vm8, %v15183_v17, %v2990_v0  ;;  %v3909_v9 = vpop.permute.xlu1 %3908  ;;  %v3582_v36 = vpop.permute.xlu0 %3581  ;;  %10899 = vmatpush1.bf16.msra.mxu1 %v10659_v62  ;;  %v13170_v24 = vld [vmem:[#allocation2 + $0x28] ss:$164 sps:$4 sm:$0xff]   ;;  %v15540_v15 = vrot.slane %v6084_v58, %v13634_v5  ;;  %v13178_v58 = vld [vmem:[#allocation2 + $0x34] ss:$164 sps:$4 sm:$0xff]  }
 0x27e   : > { %v13173_v51 = vld [vmem:[#allocation2 + $0x7d4] ss:$164 sps:$4 sm:$0x3f]   ;;  %3374 = vst [vmem:[#allocation2 + $0x2b8] sm:$0xcc] %v3318_v8  ;;  %v3944_v4 = vrot.slane %v3909_v9, 4  ;;  %10968 = vmatprep.subr.bf16.mxu1 %v13172_v29 }
 0x27f   : > { %3047 = vst [vmem:[#allocation2 + $0x2b8] sm:$0x33] %v2991_v44  ;;  %v3617_v7 = vrot.slane %v3582_v36, 4  ;;  %v13175_v57 = vld [vmem:[#allocation2 + $0x7d0] ss:$164 sps:$4 sm:$0x3f]   ;;  %5873 = vrot.lane.b32.xlu1 %v15360_v34, %s13577_s9  ;;  %5546 = vrot.lane.b32.xlu0 %v15393_v56, %s13576_s8 }
 0x280   : > { %v3970_v17 = vsel %vm693_vm0, %v3943_v48, %v3944_v4  ;;  %12896 = vmatprep.subr.msk.bf16.mxu0 %vm10639_vm6, %v13173_v51  ;;  %v15552_v34 = vld [vmem:[%s19078_s1] sm:$0xf]  ;;  %v10665_v56 = vsel %vm10639_vm6, %v13175_v57, 0 }
 0x281   : > { %v3643_v11 = vsel %vm693_vm0, %v3616_v33, %v3617_v7  ;;  %12895 = vmatmul.mubr.msk.bf16.vlgmr.msra.gmra.mrb[4].mxu1 %vm2001_vm5, %v15552_v34  ;;  %v3971_v48 = vsel %vm3960_vm11, %v15203_v16, %v3970_v17  ;;  %v15561_v33 = vpop.permute.xlu1 %3257  ;;  %v15563_v0 = vpop.permute.xlu0 %2930  ;;  %10940 = vmatpush1.bf16.msra.mxu0 %v10665_v56  ;;  %v13179_v62 = vld [vmem:[#allocation2 + $0x170] ss:$164 sps:$4 sm:$0xff]   ;;  %v13184_v57 = vld [vmem:[#allocation2 + $0x17c] ss:$164 sps:$4 sm:$0xff]  }
 0x282   : > { %v3644_v54 = vsel %vm3633_vm10, %v15205_v39, %v3643_v11  ;;  %10969 = vmatpush1.bf16.msra.mxu1 %v13170_v24  ;;  %v13181_v29 = vld [vmem:[#allocation2 + $0x174] ss:$164 sps:$4 sm:$0xff]   ;;  %4027 = vst [vmem:[#allocation2 + $0x35c] sm:$0xcc] %v3971_v48  ;;  %v3292_v8 = vrot.slane %v15561_v33, 4  ;;  %v2965_v44 = vrot.slane %v15563_v0, 4  ;;  %11009 = vmatprep.subr.bf16.mxu0 %v13178_v58 }
 0x283   : > { %3700 = vst [vmem:[#allocation2 + $0x35c] sm:$0x33] %v3644_v54  ;;  %11000 = vmatprep.mubr.bf16.mxu1 %v19092_v47  ;;  %v13176_v16 = vld [vmem:[#allocation2 + $0x30] ss:$164 sps:$4 sm:$0xff]   ;;  %6526 = vrot.lane.b32.xlu1 %v15506_v59, %s13579_s11  ;;  %v13182_v58 = vld [vmem:[#allocation2 + $0x178] ss:$164 sps:$4 sm:$0xff]  }
 0x284   : > { %6199 = vrot.lane.b32.xlu0 %v15540_v15, %s13578_s10  ;;  %v3319_v39 = vsel %vm693_vm0, %v3291_v53, %v3292_v8  ;;  %v2992_v51 = vsel %vm693_vm0, %v2964_v20, %v2965_v44  ;;  %10970 = vmatprep.subr.bf16.mxu1 %v13181_v29 }
 0x285   : > { %12897 = vmatmul.mubr.msk.bf16.vlgmr.msra.gmra.mrb[8].mxu0 %vm2001_vm5, %v15552_v34  ;;  %v3320_v24 = vsel %vm3307_vm9, %v3256_v23, %v3319_v39  ;;  %v2993_v17 = vsel %vm2980_vm8, %v2929_v1, %v2992_v51  ;;  %v15582_v11 = vpop.permute.xlu1 %3910  ;;  %v15584_v56 = vpop.permute.xlu0 %3583 }
 0x286   : > { %10971 = vmatpush1.bf16.msra.mxu1 %v13179_v62  ;;  %11010 = vmatpush1.bf16.msra.mxu0 %v13176_v16  ;;  %3375 = vst [vmem:[#allocation2 + $0x2c0] sm:$0xcc] %v3320_v24  ;;  %3048 = vst [vmem:[#allocation2 + $0x2c0] sm:$0x33] %v2993_v17  ;;  %v3945_v53 = vrot.slane %v15582_v11, 4  ;;  %v3618_v20 = vrot.slane %v15584_v56, 4 }
 0x287   : > { %11011 = vmatprep.subr.bf16.mxu0 %v13184_v57  ;;  %11041 = vmatprep.mubr.bf16.mxu0 %v19092_v47 }
 0x288   : > { %7177 = vrot.lane.b32.xlu1 %v15502_v26, %s13581_s17  ;;  %6850 = vrot.lane.b32.xlu0 %v15506_v59, %s13580_s16  ;;  %v3972_v23 = vsel %vm693_vm0, %v3944_v4, %v3945_v53  ;;  %v3645_v1 = vsel %vm693_vm0, %v3617_v7, %v3618_v20 }
 0x289   : > { %v3973_v48 = vsel %vm3960_vm11, %v3909_v9, %v3972_v23  ;;  %v3646_v54 = vsel %vm3633_vm10, %v3582_v36, %v3645_v1  ;;  %v4562_v62 = vpop.permute.xlu1 %4561  ;;  %v4235_v29 = vpop.permute.xlu0 %4234 }
 0x28a   : > { %11012 = vmatpush1.bf16.msra.mxu0 %v13182_v58  ;;  %v13185_v16 = vld [vmem:[#allocation2 + $0x2b8] ss:$164 sps:$4 sm:$0xff]   ;;  %4028 = vst [vmem:[#allocation2 + $0x364] sm:$0xcc] %v3973_v48  ;;  %3701 = vst [vmem:[#allocation2 + $0x364] sm:$0x33] %v3646_v54 }
 0x28b   : > { %v13187_v39 = vld [vmem:[#allocation2 + $0x2bc] ss:$164 sps:$4 sm:$0xff]   ;;  %v4597_v51 = vrot.slane %v4562_v62, 4  ;;  %v4270_v57 = vrot.slane %v4235_v29, 4 }
 0x28c   : > { %7830 = vrot.lane.b32.xlu1 %v15502_v26, %s13583_s20  ;;  %7503 = vrot.lane.b32.xlu0 %v15506_v59, %s13582_s18 }
 0x28d   : > { %v4623_v9 = vsel %vm693_vm0, %v4596_v43, %v4597_v51  ;;  %v4296_v36 = vsel %vm693_vm0, %v4269_v27, %v4270_v57  ;;  %10972 = vmatprep.subr.bf16.mxu1 %v13187_v39  ;;  %v5215_v24 = vpop.permute.xlu1 %5214  ;;  %v4888_v17 = vpop.permute.xlu0 %4887 }
 0x28e   : > { %v4624_v4 = vsel %vm4613_vm13, %v15253_v31, %v4623_v9  ;;  %v4297_v7 = vsel %vm4286_vm12, %v15255_v50, %v4296_v36  ;;  %10973 = vmatpush1.bf16.msra.mxu1 %v13185_v16  ;;  %v5250_v58 = vrot.slane %v5215_v24, 4  ;;  %v4923_v23 = vrot.slane %v4888_v17, 4 }
 0x28f   : > { %4680 = vst [vmem:[#allocation2 + $0x400] sm:$0xcc] %v4624_v4  ;;  %4353 = vst [vmem:[#allocation2 + $0x400] sm:$0x33] %v4297_v7 }
 0x290   : > { %7179 = vrot.lane.b32.xlu1 %v15506_v59, %s13581_s17  ;;  %6852 = vrot.lane.b32.xlu0 %v15540_v15, %s13580_s16  ;;  %v5276_v31 = vsel %vm693_vm0, %v5249_v22, %v5250_v58  ;;  %v4949_v50 = vsel %vm693_vm0, %v4922_v61, %v4923_v23 }
 0x291   : > { %v5277_v43 = vsel %vm5266_vm15, %v15271_v42, %v5276_v31  ;;  %v4950_v27 = vsel %vm4939_vm14, %v15273_v12, %v4949_v50  ;;  %v15629_v1 = vpop.permute.xlu1 %4563  ;;  %v15631_v48 = vpop.permute.xlu0 %4236  ;;  %v13188_v54 = vld [vmem:[#allocation2 + $0x2c0] ss:$164 sps:$4 sm:$0xff]  }
 0x292   : > { %v13190_v16 = vld [vmem:[#allocation2 + $0x2c4] ss:$164 sps:$4 sm:$0xff]   ;;  %5333 = vst [vmem:[#allocation2 + $0x4a4] sm:$0xcc] %v5277_v43  ;;  %5006 = vst [vmem:[#allocation2 + $0x4a4] sm:$0x33] %v4950_v27 }
 0x293   : > { %v4598_v22 = vrot.slane %v15629_v1, 4  ;;  %v4271_v39 = vrot.slane %v15631_v48, 4  ;;  %11013 = vmatprep.subr.bf16.mxu0 %v13190_v16 }
 0x294   : > { %7832 = vrot.lane.b32.xlu1 %v15506_v59, %s13583_s20  ;;  %7505 = vrot.lane.b32.xlu0 %v15540_v15, %s13582_s18 }
 0x295   : > { %v4625_v42 = vsel %vm693_vm0, %v4597_v51, %v4598_v22  ;;  %v4298_v12 = vsel %vm693_vm0, %v4270_v57, %v4271_v39  ;;  %v15647_v36 = vpop.permute.xlu1 %5216  ;;  %v15649_v4 = vpop.permute.xlu0 %4889  ;;  %11014 = vmatpush1.bf16.msra.mxu0 %v13188_v54  ;;  %v15664_v57 = vld [vmem:[%s13639_s19 + $0x28] sm:$0xff] }
 0x296   : > { %v4626_v61 = vsel %vm4613_vm13, %v4562_v62, %v4625_v42  ;;  %v4299_v9 = vsel %vm4286_vm12, %v4235_v29, %v4298_v12  ;;  %v5251_v7 = vrot.slane %v15647_v36, 4  ;;  %v4924_v51 = vrot.slane %v15649_v4, 4 }
 0x297   : > { %4681 = vst [vmem:[#allocation2 + $0x408] sm:$0xcc] %v4626_v61  ;;  %4354 = vst [vmem:[#allocation2 + $0x408] sm:$0x33] %v4299_v9 }
 0x298   : > { %8483 = vrot.lane.b32.xlu1 %v15502_v26, %s13585_s22  ;;  %8156 = vrot.lane.b32.xlu0 %v15506_v59, %s13584_s21  ;;  %v5278_v62 = vsel %vm693_vm0, %v5250_v58, %v5251_v7  ;;  %v4951_v29 = vsel %vm693_vm0, %v4923_v23, %v4924_v51  ;;  %v15681_v23 = vld [vmem:[%s13639_s19 + $0x2c] sm:$0xff] }
 0x299   : > { %v5279_v31 = vsel %vm5266_vm15, %v5215_v24, %v5278_v62  ;;  %v4952_v50 = vsel %vm4939_vm14, %v4888_v17, %v4951_v29  ;;  %v5868_v43 = vpop.permute.xlu1 %5867  ;;  %v5541_v26 = vpop.permute.xlu0 %5540  ;;  %v13191_v27 = vld [vmem:[#allocation2 + $0x400] ss:$164 sps:$4 sm:$0xff]   ;;  %v2507_v24 = vcombine.low %v15664_v57, %v15664_v57 }
 0x29a   : > { %v13193_v54 = vld [vmem:[#allocation2 + $0x404] ss:$164 sps:$4 sm:$0xff]   ;;  %5334 = vst [vmem:[#allocation2 + $0x4ac] sm:$0xcc] %v5279_v31  ;;  %5007 = vst [vmem:[#allocation2 + $0x4ac] sm:$0x33] %v4952_v50 }
 0x29b   : > { %v5903_v16 = vrot.slane %v5868_v43, 4  ;;  %v5576_v42 = vrot.slane %v5541_v26, 4  ;;  %10974 = vmatprep.subr.bf16.mxu1 %v13193_v54 }
 0x29c   : > { %8158 = vrot.lane.b32.xlu1 %v15540_v15, %s13584_s21  ;;  %8809 = vrot.lane.b32.xlu0 %v15506_v59, %s13586_s23 }
 0x29d   : > { %v5929_v17 = vsel %vm693_vm0, %v5902_v30, %v5903_v16  ;;  %v5602_v58 = vsel %vm693_vm0, %v5575_v10, %v5576_v42  ;;  %v6521_v9 = vpop.permute.xlu1 %6520  ;;  %v6194_v62 = vpop.permute.xlu0 %6193  ;;  %10975 = vmatpush1.bf16.msra.mxu1 %v13191_v27  ;;  %v2521_v10 = vrot.slane %v15664_v57, %v13634_v5 }
 0x29e   : > { %v5930_v12 = vsel %vm5919_vm2, %v15330_v6, %v5929_v17  ;;  %v5603_v61 = vsel %vm5592_vm1, %v15332_v14, %v5602_v58  ;;  %v6556_v29 = vrot.slane %v6521_v9, 4  ;;  %v6229_v30 = vrot.slane %v6194_v62, 4 }
 0x29f   : > { %5986 = vst [vmem:[#allocation2 + $0x548] sm:$0xcc] %v5930_v12  ;;  %5659 = vst [vmem:[#allocation2 + $0x548] sm:$0x33] %v5603_v61  ;;  %v2514_v6 = vrot.slane %v2507_v24, %v13634_v5  ;;  %v3160_v14 = vcombine.low %v15681_v23, %v15681_v23 }
 0x2a0   : > { %8811 = vrot.lane.b32.xlu1 %v15540_v15, %s13586_s23  ;;  %8485 = vrot.lane.b32.xlu0 %v15506_v59, %s13585_s22  ;;  %v6582_v31 = vsel %vm693_vm0, %v6555_v37, %v6556_v29  ;;  %v6255_v50 = vsel %vm693_vm0, %v6228_v25, %v6229_v30 }
 0x2a1   : > { %v6583_v15 = vsel %vm19220_vm3, %v15349_v13, %v6582_v31  ;;  %v6256_v59 = vsel %vm19221_vm4, %v15351_v63, %v6255_v50  ;;  %v15706_v27 = vpop.permute.xlu1 %5869  ;;  %v15708_v54 = vpop.permute.xlu0 %5542  ;;  %v13195_v24 = vld [vmem:[#allocation2 + $0x408] ss:$164 sps:$4 sm:$0xff]   ;;  %v15715_v13 = vrot.slane %v3160_v14, %v13634_v5 }
 0x2a2   : > { %v13197_v17 = vld [vmem:[#allocation2 + $0x40c] ss:$164 sps:$4 sm:$0xff]   ;;  %6639 = vst [vmem:[#allocation2 + $0x5ec] sm:$0xcc] %v6583_v15  ;;  %6312 = vst [vmem:[#allocation2 + $0x5ec] sm:$0x33] %v6256_v59 }
 0x2a3   : > { %v5904_v37 = vrot.slane %v15706_v27, 4  ;;  %v5577_v58 = vrot.slane %v15708_v54, 4  ;;  %11015 = vmatprep.subr.bf16.mxu0 %v13197_v17 }
 0x2a4   : > { %2612 = vrot.lane.b32.xlu1 %v2521_v10, %s13567_s26  ;;  %2610 = vrot.lane.b32.xlu0 %v2514_v6, %s13567_s26 }
 0x2a5   : > { %v5931_v63 = vsel %vm693_vm0, %v5903_v16, %v5904_v37  ;;  %v5604_v25 = vsel %vm693_vm0, %v5576_v42, %v5577_v58  ;;  %v15725_v31 = vpop.permute.xlu1 %6522  ;;  %v15727_v50 = vpop.permute.xlu0 %6195  ;;  %11016 = vmatpush1.bf16.msra.mxu0 %v13195_v24 }
 0x2a6   : > { %v5932_v12 = vsel %vm5919_vm2, %v5868_v43, %v5931_v63  ;;  %v5605_v61 = vsel %vm5592_vm1, %v5541_v26, %v5604_v25  ;;  %v6557_v6 = vrot.slane %v15725_v31, 4  ;;  %v6230_v16 = vrot.slane %v15727_v50, 4 }
 0x2a7   : > { %5987 = vst [vmem:[#allocation2 + $0x550] sm:$0xcc] %v5932_v12  ;;  %5660 = vst [vmem:[#allocation2 + $0x550] sm:$0x33] %v5605_v61  ;;  %v15736_v43 = vrot.slane %v15681_v23, %v13634_v5  ;;  %v2834_v26 = vcombine.high %v15664_v57, %v15664_v57 }
 0x2a8   : > { %3263 = vrot.lane.b32.xlu1 %v15715_v13, %s13569_s28  ;;  %2936 = vrot.lane.b32.xlu0 %v2521_v10, %s13568_s27  ;;  %v6584_v42 = vsel %vm693_vm0, %v6556_v29, %v6557_v6  ;;  %v6257_v14 = vsel %vm693_vm0, %v6229_v30, %v6230_v16 }
 0x2a9   : > { %v6585_v15 = vsel %vm19220_vm3, %v6521_v9, %v6584_v42  ;;  %v6258_v59 = vsel %vm19221_vm4, %v6194_v62, %v6257_v14  ;;  %v7174_v10 = vpop.permute.xlu1 %7173  ;;  %v6847_v24 = vpop.permute.xlu0 %6846  ;;  %v13199_v17 = vld [vmem:[#allocation2 + $0x548] ss:$164 sps:$4 sm:$0xff]   ;;  %v2848_v29 = vrot.slane %v2834_v26, %v13634_v5  ;;  %v3487_v9 = vcombine.high %v15681_v23, %v15681_v23 }
 0x2aa   : > { %v13201_v63 = vld [vmem:[#allocation2 + $0x54c] ss:$164 sps:$4 sm:$0xff]   ;;  %6640 = vst [vmem:[#allocation2 + $0x5f4] sm:$0xcc] %v6585_v15  ;;  %6313 = vst [vmem:[#allocation2 + $0x5f4] sm:$0x33] %v6258_v59 }
 0x2ab   : > { %v7209_v25 = vrot.slane %v7174_v10, 4  ;;  %v6882_v57 = vrot.slane %v6847_v24, 4  ;;  %10976 = vmatprep.subr.bf16.mxu1 %v13201_v63  ;;  %vm19222_vm3 = vcmask 834560   ;;  %vm19223_vm4 = vcmask 965632  }
 0x2ac   : > { %3916 = vrot.lane.b32.xlu1 %v15715_v13, %s13571_s30  ;;  %3589 = vrot.lane.b32.xlu0 %v15736_v43, %s13570_s29 }
 0x2ad   : > { %v7235_v62 = vsel %vm693_vm0, %v7208_v2, %v7209_v25  ;;  %v6908_v30 = vsel %vm693_vm0, %v6881_v55, %v6882_v57  ;;  %v7827_v42 = vpop.permute.xlu1 %7826  ;;  %v7500_v26 = vpop.permute.xlu0 %7499  ;;  %10977 = vmatpush1.bf16.msra.mxu1 %v13199_v17  ;;  %v15769_v2 = vrot.slane %v3487_v9, %v13634_v5 }
 0x2ae   : > { %v7236_v12 = vsel %vm19222_vm3, %v15405_v40, %v7235_v62  ;;  %v6909_v61 = vsel %vm19223_vm4, %v15407_v35, %v6908_v30  ;;  %v7862_v23 = vrot.slane %v7827_v42, 4  ;;  %v7535_v14 = vrot.slane %v7500_v26, 4 }
 0x2af   : > { %7292 = vst [vmem:[#allocation2 + $0x690] sm:$0xcc] %v7236_v12  ;;  %6965 = vst [vmem:[#allocation2 + $0x690] sm:$0x33] %v6909_v61  ;;  %vm19224_vm3 = vcmask 818176   ;;  %vm19225_vm4 = vcmask 826368  }
 0x2b0   : > { %3265 = vrot.lane.b32.xlu1 %v15736_v43, %s13569_s28  ;;  %2938 = vrot.lane.b32.xlu0 %v2848_v29, %s13568_s27  ;;  %v7888_v40 = vsel %vm693_vm0, %v7861_v52, %v7862_v23  ;;  %v7561_v35 = vsel %vm693_vm0, %v7534_v21, %v7535_v14 }
 0x2b1   : > { %v7889_v55 = vsel %vm19224_vm3, %v15423_v45, %v7888_v40  ;;  %v7562_v15 = vsel %vm19225_vm4, %v15425_v38, %v7561_v35  ;;  %v15781_v59 = vpop.permute.xlu1 %7175  ;;  %v15783_v17 = vpop.permute.xlu0 %6848  ;;  %v13204_v63 = vld [vmem:[#allocation2 + $0x550] ss:$164 sps:$4 sm:$0xff]   ;;  %vm19226_vm3 = vcmask 834560   ;;  %vm19227_vm4 = vcmask 965632  }
 0x2b2   : > { %v13206_v29 = vld [vmem:[#allocation2 + $0x554] ss:$164 sps:$4 sm:$0xff]   ;;  %7945 = vst [vmem:[#allocation2 + $0x734] sm:$0xcc] %v7889_v55  ;;  %7618 = vst [vmem:[#allocation2 + $0x734] sm:$0x33] %v7562_v15 }
 0x2b3   : > { %v7210_v52 = vrot.slane %v15781_v59, 4  ;;  %v6883_v9 = vrot.slane %v15783_v17, 4  ;;  %11017 = vmatprep.subr.bf16.mxu0 %v13206_v29 }
 0x2b4   : > { %3918 = vrot.lane.b32.xlu1 %v15736_v43, %s13571_s30  ;;  %3591 = vrot.lane.b32.xlu0 %v15769_v2, %s13570_s29 }
 0x2b5   : > { %v7237_v45 = vsel %vm693_vm0, %v7209_v25, %v7210_v52  ;;  %v6910_v38 = vsel %vm693_vm0, %v6882_v57, %v6883_v9  ;;  %v15799_v30 = vpop.permute.xlu1 %7828  ;;  %v15801_v12 = vpop.permute.xlu0 %7501  ;;  %11018 = vmatpush1.bf16.msra.mxu0 %v13204_v63 }
 0x2b6   : > { %v7238_v21 = vsel %vm19226_vm3, %v7174_v10, %v7237_v45  ;;  %v6911_v62 = vsel %vm19227_vm4, %v6847_v24, %v6910_v38  ;;  %v7863_v61 = vrot.slane %v15799_v30, 4  ;;  %v7536_v25 = vrot.slane %v15801_v12, 4 }
 0x2b7   : > { %7293 = vst [vmem:[#allocation2 + $0x698] sm:$0xcc] %v7238_v21  ;;  %6966 = vst [vmem:[#allocation2 + $0x698] sm:$0x33] %v6911_v62  ;;  %vm19228_vm3 = vcmask 818176   ;;  %vm19229_vm4 = vcmask 826368  }
 0x2b8   : > { %4569 = vrot.lane.b32.xlu1 %v15715_v13, %s13573_s5  ;;  %4242 = vrot.lane.b32.xlu0 %v15736_v43, %s13572_s4  ;;  %v7890_v10 = vsel %vm693_vm0, %v7862_v23, %v7863_v61  ;;  %v7563_v24 = vsel %vm693_vm0, %v7535_v14, %v7536_v25 }
 0x2b9   : > { %v7891_v57 = vsel %vm19228_vm3, %v7827_v42, %v7890_v10  ;;  %v7564_v40 = vsel %vm19229_vm4, %v7500_v26, %v7563_v24  ;;  %v8480_v35 = vpop.permute.xlu1 %8479  ;;  %v8153_v55 = vpop.permute.xlu0 %8152  ;;  %v13207_v15 = vld [vmem:[#allocation2 + $0x690] ss:$164 sps:$4 sm:$0xff]   ;;  %vm19230_vm3 = vcmask 687104  }
 0x2ba   : > { %v13209_v63 = vld [vmem:[#allocation2 + $0x694] ss:$164 sps:$4 sm:$0xff]   ;;  %7946 = vst [vmem:[#allocation2 + $0x73c] sm:$0xcc] %v7891_v57  ;;  %7619 = vst [vmem:[#allocation2 + $0x73c] sm:$0x33] %v7564_v40 }
 0x2bb   : > { %v8515_v29 = vrot.slane %v8480_v35, 4  ;;  %v8188_v45 = vrot.slane %v8153_v55, 4  ;;  %10978 = vmatprep.subr.bf16.mxu1 %v13209_v63  ;;  %vm19231_vm4 = vmmov %vm19230_vm3 }
 0x2bc   : > { %5222 = vrot.lane.b32.xlu1 %v15715_v13, %s13575_s7  ;;  %4895 = vrot.lane.b32.xlu0 %v15736_v43, %s13574_s6 }
 0x2bd   : > { %v8541_v42 = vsel %vm693_vm0, %v8514_v41, %v8515_v29  ;;  %v8214_v26 = vsel %vm693_vm0, %v8187_v19, %v8188_v45  ;;  %v15831_v38 = vpop.permute.xlu1 %8154  ;;  %v8806_v21 = vpop.permute.xlu0 %8805  ;;  %10979 = vmatpush1.bf16.msra.mxu1 %v13207_v15 }
 0x2be   : > { %v8542_v23 = vsel %vm8531_vm7, %v15476_v32, %v8541_v42  ;;  %v8215_v14 = vsel %vm19230_vm3, %v15455_v46, %v8214_v26  ;;  %v8189_v41 = vrot.slane %v15831_v38, 4  ;;  %v8841_v62 = vrot.slane %v8806_v21, 4  ;;  %v15845_v32 = vld [vmem:[%s13639_s19 + $0x32] sm:$0xff] }
 0x2bf   : > { %8598 = vst [vmem:[#allocation2 + $0x7d8] sm:$0xcc] %v8542_v23  ;;  %8271 = vst [vmem:[#allocation2 + $0x7d8] sm:$0x33] %v8215_v14  ;;  %vm19232_vm3 = vcmask 670720  }
 0x2c0   : > { %4571 = vrot.lane.b32.xlu1 %v15736_v43, %s13573_s5  ;;  %4244 = vrot.lane.b32.xlu0 %v15769_v2, %s13572_s4  ;;  %v8216_v19 = vsel %vm693_vm0, %v8188_v45, %v8189_v41  ;;  %v8867_v46 = vsel %vm693_vm0, %v8840_v49, %v8841_v62 }
 0x2c1   : > { %v8217_v10 = vsel %vm19231_vm4, %v8153_v55, %v8216_v19  ;;  %v8868_v24 = vsel %vm19232_vm3, %v15474_v28, %v8867_v46  ;;  %v15850_v57 = vpop.permute.xlu1 %8807  ;;  %v15852_v40 = vpop.permute.xlu0 %8481  ;;  %v13210_v15 = vld [vmem:[#allocation2 + $0x698] ss:$164 sps:$4 sm:$0xff]   ;;  %v6425_v28 = vcombine.low %v15845_v32, %v15845_v32  ;;  %vm19233_vm4 = vmmov %vm19232_vm3  ;;  %vm19234_vm3 = vcmask 744448  }
 0x2c2   : > { %v13212_v63 = vld [vmem:[#allocation2 + $0x69c] ss:$164 sps:$4 sm:$0xff]   ;;  %8272 = vst [vmem:[#allocation2 + $0x7e0] sm:$0x33] %v8217_v10  ;;  %8924 = vst [vmem:[#allocation2 + $0x87c] sm:$0x33] %v8868_v24 }
 0x2c3   : > { %v8842_v45 = vrot.slane %v15850_v57, 4  ;;  %v8516_v42 = vrot.slane %v15852_v40, 4  ;;  %11019 = vmatprep.subr.bf16.mxu0 %v13212_v63 }
 0x2c4   : > { %5224 = vrot.lane.b32.xlu1 %v15736_v43, %s13575_s7  ;;  %4897 = vrot.lane.b32.xlu0 %v15769_v2, %s13574_s6 }
 0x2c5   : > { %v8869_v49 = vsel %vm693_vm0, %v8841_v62, %v8842_v45  ;;  %v8543_v55 = vsel %vm693_vm0, %v8515_v29, %v8516_v42  ;;  %v15870_v14 = vpop.permute.xlu1 %2608  ;;  %v2607_v19 = vpop.permute.xlu0 %2606  ;;  %11020 = vmatpush1.bf16.msra.mxu0 %v13210_v15  ;;  %v15878_v29 = vrot.slane %v6425_v28, %v13634_v5 }
 0x2c6   : > { %v8870_v26 = vsel %vm19233_vm4, %v8806_v21, %v8869_v49  ;;  %v8544_v23 = vsel %vm8531_vm7, %v8480_v35, %v8543_v55  ;;  %v19090_v46 = vrot.slane %v15870_v14, 4  ;;  %v2640_v10 = vrot.slane %v2607_v19, 4  ;;  %vm19235_vm4 = vmmov %vm19234_vm3 }
 0x2c7   : > { %8925 = vst [vmem:[#allocation2 + $0x884] sm:$0x33] %v8870_v26  ;;  %8599 = vst [vmem:[#allocation2 + $0x7e0] sm:$0xcc] %v8544_v23  ;;  %v15882_v35 = vrot.slane %v15845_v32, %v13634_v5 }
 0x2c8   : > { %5875 = vrot.lane.b32.xlu1 %v15715_v13, %s13577_s9  ;;  %5548 = vrot.lane.b32.xlu0 %v15736_v43, %s13576_s8  ;;  %v2668_v21 = vsel %vm693_vm0, %v2639_v60, %v2640_v10  ;;  %v2670_v62 = vsel %vm693_vm0, %v2640_v10, %v19090_v46  ;;  %v6099_v60 = vcombine.high %v15845_v32, %v15845_v32  ;;  %v13219_v10 = vld [vmem:[#allocation2 + $0x3c] ss:$164 sps:$4 sm:$0xff]  }
 0x2c9   : > { %v2669_v13 = vsel %vm19234_vm3, %v15494_v18, %v2668_v21  ;;  %v2671_v24 = vsel %vm19235_vm4, %v2607_v19, %v2670_v62  ;;  %v3260_v15 = vpop.permute.xlu1 %3259  ;;  %v2933_v63 = vpop.permute.xlu0 %2932  ;;  %v13214_v28 = vld [vmem:[#allocation2 + $0x7dc] ss:$164 sps:$4 sm:$0x3f]   ;;  %vm19236_vm3 = vcmask 973824   ;;  %vm19237_vm4 = vcmask 982016  }
 0x2ca   : > { %2723 = vst [vmem:[#allocation2 + $0x224] sm:$0xcc] %v2669_v13  ;;  %2724 = vst [vmem:[#allocation2 + $0x22c] sm:$0xcc] %v2671_v24  ;;  %v3293_v49 = vrot.slane %v3260_v15, 4  ;;  %v2966_v55 = vrot.slane %v2933_v63, 4  ;;  %12898 = vmatprep.subr.msk.bf16.mxu1 %vm10639_vm6, %v13214_v28 }
 0x2cb   : > { %v13216_v26 = vld [vmem:[#allocation2 + $0x7d8] ss:$164 sps:$4 sm:$0x3f]  }
 0x2cc   : > { %6528 = vrot.lane.b32.xlu1 %v15878_v29, %s13579_s11  ;;  %6201 = vrot.lane.b32.xlu0 %v15882_v35, %s13578_s10  ;;  %v3321_v18 = vsel %vm693_vm0, %v3292_v8, %v3293_v49  ;;  %v2994_v23 = vsel %vm693_vm0, %v2965_v44, %v2966_v55  ;;  %v10671_v19 = vsel %vm10639_vm6, %v13216_v26, 0  ;;  %v13217_v28 = vld [vmem:[#allocation2 + $0x38] ss:$164 sps:$4 sm:$0xff]  }
 0x2cd   : > { %v3322_v21 = vsel %vm3307_vm9, %v15561_v33, %v3321_v18  ;;  %v2995_v62 = vsel %vm2980_vm8, %v15563_v0, %v2994_v23  ;;  %v3913_v32 = vpop.permute.xlu1 %3912  ;;  %v3586_v13 = vpop.permute.xlu0 %3585  ;;  %10981 = vmatpush1.bf16.msra.mxu1 %v10671_v19  ;;  %v15916_v33 = vrot.slane %v6099_v60, %v13634_v5  ;;  %v13225_v18 = vld [vmem:[#allocation2 + $0x44] ss:$164 sps:$4 sm:$0xff]  }
 0x2ce   : > { %v13220_v24 = vld [vmem:[#allocation2 + $0x7e4] ss:$164 sps:$4 sm:$0x3f]   ;;  %3376 = vst [vmem:[#allocation2 + $0x2c8] sm:$0xcc] %v3322_v21  ;;  %v3946_v8 = vrot.slane %v3913_v32, 4  ;;  %11050 = vmatprep.subr.bf16.mxu1 %v13219_v10 }
 0x2cf   : > { %3049 = vst [vmem:[#allocation2 + $0x2c8] sm:$0x33] %v2995_v62  ;;  %v3619_v46 = vrot.slane %v3586_v13, 4  ;;  %v13222_v44 = vld [vmem:[#allocation2 + $0x7e0] ss:$164 sps:$4 sm:$0x3f]   ;;  %12900 = vmatprep.subr.msk.bf16.mxu0 %vm10639_vm6, %v13220_v24 }
 0x2d0   : > { %5877 = vrot.lane.b32.xlu1 %v15736_v43, %s13577_s9  ;;  %5550 = vrot.lane.b32.xlu0 %v15769_v2, %s13576_s8  ;;  %v3974_v0 = vsel %vm693_vm0, %v3945_v53, %v3946_v8  ;;  %v10677_v43 = vsel %vm10639_vm6, %v13222_v44, 0 }
 0x2d1   : > { %v3647_v26 = vsel %vm693_vm0, %v3618_v20, %v3619_v46  ;;  %12899 = vmatmul.mubr.msk.bf16.vlgmr.msra.gmra.mrb[8].mxu1 %vm2001_vm5, %v15552_v34  ;;  %v3975_v2 = vsel %vm3960_vm11, %v15582_v11, %v3974_v0  ;;  %v15932_v23 = vpop.permute.xlu1 %3261  ;;  %v15934_v53 = vpop.permute.xlu0 %2934  ;;  %11022 = vmatpush1.bf16.msra.mxu0 %v10677_v43  ;;  %v13226_v20 = vld [vmem:[#allocation2 + $0x180] ss:$164 sps:$4 sm:$0xff]   ;;  %v13231_v24 = vld [vmem:[#allocation2 + $0x18c] ss:$164 sps:$4 sm:$0xff]  }
 0x2d2   : > { %v3648_v60 = vsel %vm3633_vm10, %v15584_v56, %v3647_v26  ;;  %11051 = vmatpush1.bf16.msra.mxu1 %v13217_v28  ;;  %v13228_v19 = vld [vmem:[#allocation2 + $0x184] ss:$164 sps:$4 sm:$0xff]   ;;  %4029 = vst [vmem:[#allocation2 + $0x36c] sm:$0xcc] %v3975_v2  ;;  %v3294_v10 = vrot.slane %v15932_v23, 4  ;;  %v2967_v21 = vrot.slane %v15934_v53, 4  ;;  %11091 = vmatprep.subr.bf16.mxu0 %v13225_v18 }
 0x2d3   : > { %3702 = vst [vmem:[#allocation2 + $0x36c] sm:$0x33] %v3648_v60  ;;  %11082 = vmatprep.mubr.bf16.mxu1 %v19092_v47  ;;  %v13223_v11 = vld [vmem:[#allocation2 + $0x40] ss:$164 sps:$4 sm:$0xff]   ;;  %11052 = vmatprep.subr.bf16.mxu1 %v13228_v19 }
 0x2d4   : > { %6530 = vrot.lane.b32.xlu1 %v15882_v35, %s13579_s11  ;;  %6203 = vrot.lane.b32.xlu0 %v15916_v33, %s13578_s10  ;;  %v3323_v56 = vsel %vm693_vm0, %v3293_v49, %v3294_v10  ;;  %v2996_v62 = vsel %vm693_vm0, %v2966_v55, %v2967_v21 }
 0x2d5   : > { %12901 = vmatmul.mubr.msk.bf16.vlgmr.msra.gmra.mrb[12].mxu0 %vm2001_vm5, %v15552_v34  ;;  %v3324_v44 = vsel %vm3307_vm9, %v3260_v15, %v3323_v56  ;;  %v2997_v28 = vsel %vm2980_vm8, %v2933_v63, %v2996_v62  ;;  %v15953_v0 = vpop.permute.xlu1 %3914  ;;  %v15955_v26 = vpop.permute.xlu0 %3587  ;;  %v13229_v34 = vld [vmem:[#allocation2 + $0x188] ss:$164 sps:$4 sm:$0xff]  }
 0x2d6   : > { %11053 = vmatpush1.bf16.msra.mxu1 %v13226_v20  ;;  %11092 = vmatpush1.bf16.msra.mxu0 %v13223_v11  ;;  %3377 = vst [vmem:[#allocation2 + $0x2d0] sm:$0xcc] %v3324_v44  ;;  %3050 = vst [vmem:[#allocation2 + $0x2d0] sm:$0x33] %v2997_v28  ;;  %v3947_v49 = vrot.slane %v15953_v0, 4  ;;  %v3620_v55 = vrot.slane %v15955_v26, 4 }
 0x2d7   : > { %11093 = vmatprep.subr.bf16.mxu0 %v13231_v24  ;;  %11123 = vmatprep.mubr.bf16.mxu0 %v19092_v47 }
 0x2d8   : > { %7181 = vrot.lane.b32.xlu1 %v15878_v29, %s13581_s17  ;;  %6854 = vrot.lane.b32.xlu0 %v15882_v35, %s13580_s16  ;;  %v3976_v15 = vsel %vm693_vm0, %v3946_v8, %v3947_v49  ;;  %v3649_v63 = vsel %vm693_vm0, %v3619_v46, %v3620_v55 }
 0x2d9   : > { %v3977_v43 = vsel %vm3960_vm11, %v3913_v32, %v3976_v15  ;;  %v3650_v18 = vsel %vm3633_vm10, %v3586_v13, %v3649_v63  ;;  %v4566_v2 = vpop.permute.xlu1 %4565  ;;  %v4239_v60 = vpop.permute.xlu0 %4238 }
 0x2da   : > { %11094 = vmatpush1.bf16.msra.mxu0 %v13229_v34  ;;  %v13232_v20 = vld [vmem:[#allocation2 + $0x2c8] ss:$164 sps:$4 sm:$0xff]   ;;  %4030 = vst [vmem:[#allocation2 + $0x374] sm:$0xcc] %v3977_v43  ;;  %3703 = vst [vmem:[#allocation2 + $0x374] sm:$0x33] %v3650_v18 }
 0x2db   : > { %v13234_v19 = vld [vmem:[#allocation2 + $0x2cc] ss:$164 sps:$4 sm:$0xff]   ;;  %v4599_v11 = vrot.slane %v4566_v2, 4  ;;  %v4272_v56 = vrot.slane %v4239_v60, 4 }
 0x2dc   : > { %7834 = vrot.lane.b32.xlu1 %v15878_v29, %s13583_s20  ;;  %7507 = vrot.lane.b32.xlu0 %v15882_v35, %s13582_s18 }
 0x2dd   : > { %v4627_v46 = vsel %vm693_vm0, %v4598_v22, %v4599_v11  ;;  %v4300_v32 = vsel %vm693_vm0, %v4271_v39, %v4272_v56  ;;  %11054 = vmatprep.subr.bf16.mxu1 %v13234_v19  ;;  %v5219_v62 = vpop.permute.xlu1 %5218  ;;  %v4892_v24 = vpop.permute.xlu0 %4891 }
 0x2de   : > { %v4628_v13 = vsel %vm4613_vm13, %v15629_v1, %v4627_v46  ;;  %v4301_v8 = vsel %vm4286_vm12, %v15631_v48, %v4300_v32  ;;  %11055 = vmatpush1.bf16.msra.mxu1 %v13232_v20  ;;  %v5252_v44 = vrot.slane %v5219_v62, 4  ;;  %v4925_v28 = vrot.slane %v4892_v24, 4 }
 0x2df   : > { %4682 = vst [vmem:[#allocation2 + $0x410] sm:$0xcc] %v4628_v13  ;;  %4355 = vst [vmem:[#allocation2 + $0x410] sm:$0x33] %v4301_v8 }
 0x2e0   : > { %7183 = vrot.lane.b32.xlu1 %v15882_v35, %s13581_s17  ;;  %6856 = vrot.lane.b32.xlu0 %v15916_v33, %s13580_s16  ;;  %v5280_v1 = vsel %vm693_vm0, %v5251_v7, %v5252_v44  ;;  %v4953_v48 = vsel %vm693_vm0, %v4924_v51, %v4925_v28 }
 0x2e1   : > { %v5281_v22 = vsel %vm5266_vm15, %v15647_v36, %v5280_v1  ;;  %v4954_v39 = vsel %vm4939_vm14, %v15649_v4, %v4953_v48  ;;  %v16000_v34 = vpop.permute.xlu1 %4567  ;;  %v16002_v15 = vpop.permute.xlu0 %4240  ;;  %v13235_v63 = vld [vmem:[#allocation2 + $0x2d0] ss:$164 sps:$4 sm:$0xff]  }
 0x2e2   : > { %v13237_v43 = vld [vmem:[#allocation2 + $0x2d4] ss:$164 sps:$4 sm:$0xff]   ;;  %5335 = vst [vmem:[#allocation2 + $0x4b4] sm:$0xcc] %v5281_v22  ;;  %5008 = vst [vmem:[#allocation2 + $0x4b4] sm:$0x33] %v4954_v39 }
 0x2e3   : > { %v4600_v7 = vrot.slane %v16000_v34, 4  ;;  %v4273_v18 = vrot.slane %v16002_v15, 4  ;;  %11095 = vmatprep.subr.bf16.mxu0 %v13237_v43 }
 0x2e4   : > { %7836 = vrot.lane.b32.xlu1 %v15882_v35, %s13583_s20  ;;  %7509 = vrot.lane.b32.xlu0 %v15916_v33, %s13582_s18 }
 0x2e5   : > { %v4629_v36 = vsel %vm693_vm0, %v4599_v11, %v4600_v7  ;;  %v4302_v4 = vsel %vm693_vm0, %v4272_v56, %v4273_v18  ;;  %v16018_v19 = vpop.permute.xlu1 %5220  ;;  %v16020_v46 = vpop.permute.xlu0 %4893  ;;  %11096 = vmatpush1.bf16.msra.mxu0 %v13235_v63  ;;  %v16035_v56 = vld [vmem:[%s13639_s19 + $0x30] sm:$0xff] }
 0x2e6   : > { %v4630_v51 = vsel %vm4613_vm13, %v4566_v2, %v4629_v36  ;;  %v4303_v20 = vsel %vm4286_vm12, %v4239_v60, %v4302_v4  ;;  %v5253_v32 = vrot.slane %v16018_v19, 4  ;;  %v4926_v11 = vrot.slane %v16020_v46, 4 }
 0x2e7   : > { %4683 = vst [vmem:[#allocation2 + $0x418] sm:$0xcc] %v4630_v51  ;;  %4356 = vst [vmem:[#allocation2 + $0x418] sm:$0x33] %v4303_v20 }
 0x2e8   : > { %8487 = vrot.lane.b32.xlu1 %v15878_v29, %s13585_s22  ;;  %8160 = vrot.lane.b32.xlu0 %v15882_v35, %s13584_s21  ;;  %v5282_v2 = vsel %vm693_vm0, %v5252_v44, %v5253_v32  ;;  %v4955_v60 = vsel %vm693_vm0, %v4925_v28, %v4926_v11  ;;  %v16052_v28 = vld [vmem:[%s13639_s19 + $0x34] sm:$0xff] }
 0x2e9   : > { %v5283_v13 = vsel %vm5266_vm15, %v5219_v62, %v5282_v2  ;;  %v4956_v8 = vsel %vm4939_vm14, %v4892_v24, %v4955_v60  ;;  %v5872_v1 = vpop.permute.xlu1 %5871  ;;  %v5545_v29 = vpop.permute.xlu0 %5544  ;;  %v13238_v48 = vld [vmem:[#allocation2 + $0x410] ss:$164 sps:$4 sm:$0xff]   ;;  %v2522_v62 = vcombine.low %v16035_v56, %v16035_v56 }
 0x2ea   : > { %v13240_v22 = vld [vmem:[#allocation2 + $0x414] ss:$164 sps:$4 sm:$0xff]   ;;  %5336 = vst [vmem:[#allocation2 + $0x4bc] sm:$0xcc] %v5283_v13  ;;  %5009 = vst [vmem:[#allocation2 + $0x4bc] sm:$0x33] %v4956_v8 }
 0x2eb   : > { %v5905_v39 = vrot.slane %v5872_v1, 4  ;;  %v5578_v63 = vrot.slane %v5545_v29, 4  ;;  %11056 = vmatprep.subr.bf16.mxu1 %v13240_v22 }
 0x2ec   : > { %8162 = vrot.lane.b32.xlu1 %v15916_v33, %s13584_s21  ;;  %8813 = vrot.lane.b32.xlu0 %v15882_v35, %s13586_s23 }
 0x2ed   : > { %v5933_v24 = vsel %vm693_vm0, %v5904_v37, %v5905_v39  ;;  %v5606_v44 = vsel %vm693_vm0, %v5577_v58, %v5578_v63  ;;  %v6525_v4 = vpop.permute.xlu1 %6524  ;;  %v6198_v51 = vpop.permute.xlu0 %6197  ;;  %11057 = vmatpush1.bf16.msra.mxu1 %v13238_v48  ;;  %v2536_v58 = vrot.slane %v16035_v56, %v13634_v5 }
 0x2ee   : > { %v5934_v43 = vsel %vm5919_vm2, %v15706_v27, %v5933_v24  ;;  %v5607_v36 = vsel %vm5592_vm1, %v15708_v54, %v5606_v44  ;;  %v6558_v20 = vrot.slane %v6525_v4, 4  ;;  %v6231_v37 = vrot.slane %v6198_v51, 4 }
 0x2ef   : > { %5988 = vst [vmem:[#allocation2 + $0x558] sm:$0xcc] %v5934_v43  ;;  %5661 = vst [vmem:[#allocation2 + $0x558] sm:$0x33] %v5607_v36  ;;  %v2529_v27 = vrot.slane %v2522_v62, %v13634_v5  ;;  %v3175_v54 = vcombine.low %v16052_v28, %v16052_v28 }
 0x2f0   : > { %8815 = vrot.lane.b32.xlu1 %v15916_v33, %s13586_s23  ;;  %8489 = vrot.lane.b32.xlu0 %v15882_v35, %s13585_s22  ;;  %v6586_v2 = vsel %vm693_vm0, %v6557_v6, %v6558_v20  ;;  %v6259_v60 = vsel %vm693_vm0, %v6230_v16, %v6231_v37 }
 0x2f1   : > { %v6587_v33 = vsel %vm19236_vm3, %v15725_v31, %v6586_v2  ;;  %v6260_v35 = vsel %vm19237_vm4, %v15727_v50, %v6259_v60  ;;  %v16077_v13 = vpop.permute.xlu1 %5873  ;;  %v16079_v8 = vpop.permute.xlu0 %5546  ;;  %v13242_v48 = vld [vmem:[#allocation2 + $0x418] ss:$164 sps:$4 sm:$0xff]   ;;  %v16086_v31 = vrot.slane %v3175_v54, %v13634_v5 }
 0x2f2   : > { %v13244_v22 = vld [vmem:[#allocation2 + $0x41c] ss:$164 sps:$4 sm:$0xff]   ;;  %6641 = vst [vmem:[#allocation2 + $0x5fc] sm:$0xcc] %v6587_v33  ;;  %6314 = vst [vmem:[#allocation2 + $0x5fc] sm:$0x33] %v6260_v35 }
 0x2f3   : > { %v5906_v6 = vrot.slane %v16077_v13, 4  ;;  %v5579_v62 = vrot.slane %v16079_v8, 4  ;;  %11097 = vmatprep.subr.bf16.mxu0 %v13244_v22 }
 0x2f4   : > { %2616 = vrot.lane.b32.xlu1 %v2536_v58, %s13567_s26  ;;  %2614 = vrot.lane.b32.xlu0 %v2529_v27, %s13567_s26 }
 0x2f5   : > { %v5935_v50 = vsel %vm693_vm0, %v5905_v39, %v5906_v6  ;;  %v5608_v16 = vsel %vm693_vm0, %v5578_v63, %v5579_v62  ;;  %v16096_v43 = vpop.permute.xlu1 %6526  ;;  %11098 = vmatpush1.bf16.msra.mxu0 %v13242_v48 }
 0x2f6   : > { %v5936_v24 = vsel %vm5919_vm2, %v5872_v1, %v5935_v50  ;;  %v5609_v44 = vsel %vm5592_vm1, %v5545_v29, %v5608_v16  ;;  %v16098_v36 = vpop.permute.xlu0 %6199  ;;  %v6559_v27 = vrot.slane %v16096_v43, 4  ;;  %v16107_v1 = vrot.slane %v16052_v28, %v13634_v5 }
 0x2f7   : > { %5989 = vst [vmem:[#allocation2 + $0x560] sm:$0xcc] %v5936_v24  ;;  %5662 = vst [vmem:[#allocation2 + $0x560] sm:$0x33] %v5609_v44  ;;  %v6232_v39 = vrot.slane %v16098_v36, 4  ;;  %v2849_v29 = vcombine.high %v16035_v56, %v16035_v56 }
 0x2f8   : > { %3267 = vrot.lane.b32.xlu1 %v16086_v31, %s13569_s28  ;;  %2940 = vrot.lane.b32.xlu0 %v2536_v58, %s13568_s27  ;;  %v6588_v63 = vsel %vm693_vm0, %v6558_v20, %v6559_v27 }
 0x2f9   : > { %v6261_v54 = vsel %vm693_vm0, %v6231_v37, %v6232_v39  ;;  %v6589_v2 = vsel %vm19236_vm3, %v6525_v4, %v6588_v63  ;;  %v13246_v35 = vld [vmem:[#allocation2 + $0x558] ss:$164 sps:$4 sm:$0xff]   ;;  %v2863_v20 = vrot.slane %v2849_v29, %v13634_v5  ;;  %v3502_v4 = vcombine.high %v16052_v28, %v16052_v28 }
 0x2fa   : > { %v6262_v60 = vsel %vm19237_vm4, %v6198_v51, %v6261_v54  ;;  %v7178_v58 = vpop.permute.xlu1 %7177  ;;  %v6851_v33 = vpop.permute.xlu0 %6850  ;;  %v13248_v48 = vld [vmem:[#allocation2 + $0x55c] ss:$164 sps:$4 sm:$0xff]   ;;  %6642 = vst [vmem:[#allocation2 + $0x604] sm:$0xcc] %v6589_v2  ;;  %vm19238_vm3 = vcmask 834560   ;;  %vm19239_vm4 = vcmask 965632  }
 0x2fb   : > { %6315 = vst [vmem:[#allocation2 + $0x604] sm:$0x33] %v6262_v60  ;;  %v7211_v22 = vrot.slane %v7178_v58, 4  ;;  %v6884_v56 = vrot.slane %v6851_v33, 4  ;;  %11058 = vmatprep.subr.bf16.mxu1 %v13248_v48 }
 0x2fc   : > { %3920 = vrot.lane.b32.xlu1 %v16086_v31, %s13571_s30  ;;  %3593 = vrot.lane.b32.xlu0 %v16107_v1, %s13570_s29 }
 0x2fd   : > { %v7239_v51 = vsel %vm693_vm0, %v7210_v52, %v7211_v22  ;;  %v6912_v37 = vsel %vm693_vm0, %v6883_v9, %v6884_v56  ;;  %11059 = vmatpush1.bf16.msra.mxu1 %v13246_v35  ;;  %v16140_v52 = vrot.slane %v3502_v4, %v13634_v5 }
 0x2fe   : > { %v7240_v50 = vsel %vm19238_vm3, %v15781_v59, %v7239_v51  ;;  %v6913_v16 = vsel %vm19239_vm4, %v15783_v17, %v6912_v37  ;;  %v7831_v24 = vpop.permute.xlu1 %7830  ;;  %v7504_v44 = vpop.permute.xlu0 %7503  ;;  %vm19240_vm3 = vcmask 818176   ;;  %vm19241_vm4 = vcmask 826368  }
 0x2ff   : > { %7294 = vst [vmem:[#allocation2 + $0x6a0] sm:$0xcc] %v7240_v50  ;;  %6967 = vst [vmem:[#allocation2 + $0x6a0] sm:$0x33] %v6913_v16  ;;  %v7864_v28 = vrot.slane %v7831_v24, 4  ;;  %v7537_v29 = vrot.slane %v7504_v44, 4 }
 0x300   : > { %3269 = vrot.lane.b32.xlu1 %v16107_v1, %s13569_s28  ;;  %2942 = vrot.lane.b32.xlu0 %v2863_v20, %s13568_s27 }
 0x301   : > { %v7892_v59 = vsel %vm693_vm0, %v7863_v61, %v7864_v28  ;;  %v7565_v17 = vsel %vm693_vm0, %v7536_v25, %v7537_v29 }
 0x302   : > { %v7893_v9 = vsel %vm19240_vm3, %v15799_v30, %v7892_v59  ;;  %v7566_v63 = vsel %vm19241_vm4, %v15801_v12, %v7565_v17  ;;  %v16152_v54 = vpop.permute.xlu1 %7179  ;;  %v16154_v2 = vpop.permute.xlu0 %6852  ;;  %v13251_v60 = vld [vmem:[#allocation2 + $0x560] ss:$164 sps:$4 sm:$0xff]   ;;  %vm19242_vm3 = vcmask 834560   ;;  %vm19243_vm4 = vcmask 965632  }
 0x303   : > { %v13253_v35 = vld [vmem:[#allocation2 + $0x564] ss:$164 sps:$4 sm:$0xff]   ;;  %7947 = vst [vmem:[#allocation2 + $0x744] sm:$0xcc] %v7893_v9  ;;  %7620 = vst [vmem:[#allocation2 + $0x744] sm:$0x33] %v7566_v63 }
 0x304   : > { %v7212_v61 = vrot.slane %v16152_v54, 4  ;;  %v6885_v48 = vrot.slane %v16154_v2, 4  ;;  %3922 = vrot.lane.b32.xlu1 %v16107_v1, %s13571_s30  ;;  %3595 = vrot.lane.b32.xlu0 %v16140_v52, %s13570_s29 }
 0x305   : > { %11099 = vmatprep.subr.bf16.mxu0 %v13253_v35 }
 0x306   : > { %v7241_v30 = vsel %vm693_vm0, %v7211_v22, %v7212_v61  ;;  %v6914_v12 = vsel %vm693_vm0, %v6884_v56, %v6885_v48  ;;  %v16170_v4 = vpop.permute.xlu1 %7832  ;;  %v16172_v51 = vpop.permute.xlu0 %7505  ;;  %11100 = vmatpush1.bf16.msra.mxu0 %v13251_v60 }
 0x307   : > { %v7242_v25 = vsel %vm19242_vm3, %v7178_v58, %v7241_v30  ;;  %v6915_v20 = vsel %vm19243_vm4, %v6851_v33, %v6914_v12  ;;  %v7865_v37 = vrot.slane %v16170_v4, 4  ;;  %v7538_v22 = vrot.slane %v16172_v51, 4 }
 0x308   : > { %7295 = vst [vmem:[#allocation2 + $0x6a8] sm:$0xcc] %v7242_v25  ;;  %6968 = vst [vmem:[#allocation2 + $0x6a8] sm:$0x33] %v6915_v20  ;;  %4573 = vrot.lane.b32.xlu1 %v16086_v31, %s13573_s5  ;;  %4246 = vrot.lane.b32.xlu0 %v16107_v1, %s13572_s4  ;;  %vm19244_vm3 = vcmask 818176   ;;  %vm19245_vm4 = vcmask 826368  }
 0x309   : > { %v7894_v58 = vsel %vm693_vm0, %v7864_v28, %v7865_v37  ;;  %v7567_v33 = vsel %vm693_vm0, %v7537_v29, %v7538_v22 }
 0x30a   : > { %v7895_v56 = vsel %vm19244_vm3, %v7831_v24, %v7894_v58  ;;  %v7568_v50 = vsel %vm19245_vm4, %v7504_v44, %v7567_v33  ;;  %v8484_v16 = vpop.permute.xlu1 %8483  ;;  %v8157_v59 = vpop.permute.xlu0 %8156  ;;  %v13254_v17 = vld [vmem:[#allocation2 + $0x6a0] ss:$164 sps:$4 sm:$0xff]   ;;  %vm19246_vm3 = vcmask 687104  }
 0x30b   : > { %v13256_v9 = vld [vmem:[#allocation2 + $0x6a4] ss:$164 sps:$4 sm:$0xff]   ;;  %7948 = vst [vmem:[#allocation2 + $0x74c] sm:$0xcc] %v7895_v56  ;;  %7621 = vst [vmem:[#allocation2 + $0x74c] sm:$0x33] %v7568_v50 }
 0x30c   : > { %v8517_v63 = vrot.slane %v8484_v16, 4  ;;  %v8190_v60 = vrot.slane %v8157_v59, 4  ;;  %5226 = vrot.lane.b32.xlu1 %v16086_v31, %s13575_s7  ;;  %4899 = vrot.lane.b32.xlu0 %v16107_v1, %s13574_s6  ;;  %vm19247_vm4 = vmmov %vm19246_vm3 }
 0x30d   : > { %11060 = vmatprep.subr.bf16.mxu1 %v13256_v9 }
 0x30e   : > { %v8545_v24 = vsel %vm693_vm0, %v8516_v42, %v8517_v63  ;;  %v8218_v44 = vsel %vm693_vm0, %v8189_v41, %v8190_v60  ;;  %v16202_v35 = vpop.permute.xlu1 %8158  ;;  %v8810_v30 = vpop.permute.xlu0 %8809  ;;  %11061 = vmatpush1.bf16.msra.mxu1 %v13254_v17 }
 0x30f   : > { %v8546_v28 = vsel %vm8531_vm7, %v15852_v40, %v8545_v24  ;;  %v8219_v29 = vsel %vm19246_vm3, %v15831_v38, %v8218_v44  ;;  %v8191_v42 = vrot.slane %v16202_v35, 4  ;;  %v8843_v12 = vrot.slane %v8810_v30, 4  ;;  %v16216_v40 = vld [vmem:[%s13639_s19 + $0x3a] sm:$0xff] }
 0x310   : > { %8600 = vst [vmem:[#allocation2 + $0x7e8] sm:$0xcc] %v8546_v28  ;;  %8273 = vst [vmem:[#allocation2 + $0x7e8] sm:$0x33] %v8219_v29  ;;  %4575 = vrot.lane.b32.xlu1 %v16107_v1, %s13573_s5  ;;  %4248 = vrot.lane.b32.xlu0 %v16140_v52, %s13572_s4  ;;  %vm19248_vm3 = vcmask 670720  }
 0x311   : > { %v8220_v41 = vsel %vm693_vm0, %v8190_v60, %v8191_v42  ;;  %v8871_v38 = vsel %vm693_vm0, %v8842_v45, %v8843_v12 }
 0x312   : > { %v8221_v25 = vsel %vm19247_vm4, %v8157_v59, %v8220_v41  ;;  %v8872_v20 = vsel %vm19248_vm3, %v15850_v57, %v8871_v38  ;;  %v16221_v58 = vpop.permute.xlu1 %8811  ;;  %v16223_v33 = vpop.permute.xlu0 %8485  ;;  %v13257_v56 = vld [vmem:[#allocation2 + $0x6a8] ss:$164 sps:$4 sm:$0xff]   ;;  %v6440_v57 = vcombine.low %v16216_v40, %v16216_v40  ;;  %vm19249_vm4 = vmmov %vm19248_vm3  ;;  %vm19251_vm3 = vcmask 744448  }
 0x313   : > { %v13259_v50 = vld [vmem:[#allocation2 + $0x6ac] ss:$164 sps:$4 sm:$0xff]   ;;  %8274 = vst [vmem:[#allocation2 + $0x7f0] sm:$0x33] %v8221_v25  ;;  %8926 = vst [vmem:[#allocation2 + $0x88c] sm:$0x33] %v8872_v20 }
 0x314   : > { %v8844_v17 = vrot.slane %v16221_v58, 4  ;;  %v8518_v9 = vrot.slane %v16223_v33, 4  ;;  %5228 = vrot.lane.b32.xlu1 %v16107_v1, %s13575_s7  ;;  %4901 = vrot.lane.b32.xlu0 %v16140_v52, %s13574_s6 }
 0x315   : > { %11101 = vmatprep.subr.bf16.mxu0 %v13259_v50 }
 0x316   : > { %v8873_v45 = vsel %vm693_vm0, %v8843_v12, %v8844_v17  ;;  %v8547_v59 = vsel %vm693_vm0, %v8517_v63, %v8518_v9  ;;  %v16241_v44 = vpop.permute.xlu1 %2612  ;;  %v2611_v28 = vpop.permute.xlu0 %2610  ;;  %11102 = vmatpush1.bf16.msra.mxu0 %v13257_v56  ;;  %v16249_v63 = vrot.slane %v6440_v57, %v13634_v5 }
 0x317   : > { %v8874_v60 = vsel %vm19249_vm4, %v8810_v30, %v8873_v45  ;;  %v8548_v24 = vsel %vm8531_vm7, %v8484_v16, %v8547_v59  ;;  %v2643_v29 = vrot.slane %v16241_v44, 4  ;;  %v2642_v41 = vrot.slane %v2611_v28, 4  ;;  %vm19252_vm4 = vmmov %vm19251_vm3 }
 0x318   : > { %8927 = vst [vmem:[#allocation2 + $0x894] sm:$0x33] %v8874_v60  ;;  %8601 = vst [vmem:[#allocation2 + $0x7f0] sm:$0xcc] %v8548_v24  ;;  %5879 = vrot.lane.b32.xlu1 %v16086_v31, %s13577_s9  ;;  %5552 = vrot.lane.b32.xlu0 %v16107_v1, %s13576_s8  ;;  %v16253_v16 = vrot.slane %v16216_v40, %v13634_v5  ;;  %v19250_v30 = vrot.slane %v15870_v14, 4  ;;  %v6114_v60 = vcombine.high %v16216_v40, %v16216_v40 }
 0x319   : > { %v2674_v38 = vsel %vm693_vm0, %v2642_v41, %v2643_v29 }
 0x31a   : > { %v2672_v12 = vsel %vm693_vm0, %v19250_v30, %v2642_v41  ;;  %v2675_v25 = vsel %vm19252_vm4, %v2611_v28, %v2674_v38  ;;  %v3264_v20 = vpop.permute.xlu1 %3263  ;;  %v2937_v56 = vpop.permute.xlu0 %2936  ;;  %v13261_v50 = vld [vmem:[#allocation2 + $0x7ec] ss:$164 sps:$4 sm:$0x3f]   ;;  %vm19254_vm4 = vcmask 982016  }
 0x31b   : > { %v2673_v31 = vsel %vm19251_vm3, %v15870_v14, %v2672_v12  ;;  %2726 = vst [vmem:[#allocation2 + $0x23c] sm:$0xcc] %v2675_v25  ;;  %v3295_v57 = vrot.slane %v3264_v20, 4  ;;  %v2968_v45 = vrot.slane %v2937_v56, 4  ;;  %12902 = vmatprep.subr.msk.bf16.mxu1 %vm10639_vm6, %v13261_v50  ;;  %v13266_v41 = vld [vmem:[#allocation2 + $0x4c] ss:$164 sps:$4 sm:$0xff]  }
 0x31c   : > { %2725 = vst [vmem:[#allocation2 + $0x234] sm:$0xcc] %v2673_v31  ;;  %v13263_v59 = vld [vmem:[#allocation2 + $0x7e8] ss:$164 sps:$4 sm:$0x3f]   ;;  %6532 = vrot.lane.b32.xlu1 %v16249_v63, %s13579_s11  ;;  %6205 = vrot.lane.b32.xlu0 %v16253_v16, %s13578_s10  ;;  %vm19253_vm3 = vcmask 973824  }
 0x31d   : > { %v3325_v14 = vsel %vm693_vm0, %v3294_v10, %v3295_v57  ;;  %v2998_v24 = vsel %vm693_vm0, %v2967_v21, %v2968_v45  ;;  %v10683_v28 = vsel %vm10639_vm6, %v13263_v59, 0  ;;  %v13264_v50 = vld [vmem:[#allocation2 + $0x48] ss:$164 sps:$4 sm:$0xff]  }
 0x31e   : > { %v3326_v30 = vsel %vm3307_vm9, %v15932_v23, %v3325_v14  ;;  %v2999_v12 = vsel %vm2980_vm8, %v15934_v53, %v2998_v24  ;;  %v3917_v40 = vpop.permute.xlu1 %3916  ;;  %v3590_v38 = vpop.permute.xlu0 %3589  ;;  %11063 = vmatpush1.bf16.msra.mxu1 %v10683_v28  ;;  %v16287_v23 = vrot.slane %v6114_v60, %v13634_v5  ;;  %v13272_v60 = vld [vmem:[#allocation2 + $0x54] ss:$164 sps:$4 sm:$0xff]  }
 0x31f   : > { %v13267_v31 = vld [vmem:[#allocation2 + $0x7f4] ss:$164 sps:$4 sm:$0x3f]   ;;  %3378 = vst [vmem:[#allocation2 + $0x2d8] sm:$0xcc] %v3326_v30  ;;  %v3948_v10 = vrot.slane %v3917_v40, 4  ;;  %11132 = vmatprep.subr.bf16.mxu1 %v13266_v41 }
 0x320   : > { %3051 = vst [vmem:[#allocation2 + $0x2d8] sm:$0x33] %v2999_v12  ;;  %v3621_v25 = vrot.slane %v3590_v38, 4  ;;  %v13269_v21 = vld [vmem:[#allocation2 + $0x7f0] ss:$164 sps:$4 sm:$0x3f]   ;;  %5881 = vrot.lane.b32.xlu1 %v16107_v1, %s13577_s9  ;;  %5554 = vrot.lane.b32.xlu0 %v16140_v52, %s13576_s8 }
 0x321   : > { %v3978_v53 = vsel %vm693_vm0, %v3947_v49, %v3948_v10  ;;  %12904 = vmatprep.subr.msk.bf16.mxu0 %vm10639_vm6, %v13267_v31  ;;  %v16299_v1 = vld [vmem:[%s19078_s1] sm:$0xf]  ;;  %v10689_v52 = vsel %vm10639_vm6, %v13269_v21, 0 }
 0x322   : > { %v3651_v59 = vsel %vm693_vm0, %v3620_v55, %v3621_v25  ;;  %12903 = vmatmul.mubr.msk.bf16.vlgmr.msra.gmra.mrb[12].mxu1 %vm2001_vm5, %v16299_v1  ;;  %v3979_v49 = vsel %vm3960_vm11, %v15953_v0, %v3978_v53  ;;  %v16308_v55 = vpop.permute.xlu1 %3265  ;;  %v16310_v24 = vpop.permute.xlu0 %2938  ;;  %11104 = vmatpush1.bf16.msra.mxu0 %v10689_v52  ;;  %v13270_v0 = vld [vmem:[#allocation2 + $0x50] ss:$164 sps:$4 sm:$0xff]   ;;  %v13278_v21 = vld [vmem:[#allocation2 + $0x19c] ss:$164 sps:$4 sm:$0xff]  }
 0x323   : > { %v3652_v14 = vsel %vm3633_vm10, %v15955_v26, %v3651_v59  ;;  %11133 = vmatpush1.bf16.msra.mxu1 %v13264_v50  ;;  %v13273_v28 = vld [vmem:[#allocation2 + $0x190] ss:$164 sps:$4 sm:$0xff]   ;;  %4031 = vst [vmem:[#allocation2 + $0x37c] sm:$0xcc] %v3979_v49  ;;  %v3296_v30 = vrot.slane %v16308_v55, 4  ;;  %v2969_v12 = vrot.slane %v16310_v24, 4  ;;  %11173 = vmatprep.subr.bf16.mxu0 %v13272_v60 }
 0x324   : > { %v13275_v41 = vld [vmem:[#allocation2 + $0x194] ss:$164 sps:$4 sm:$0xff]   ;;  %3704 = vst [vmem:[#allocation2 + $0x37c] sm:$0x33] %v3652_v14  ;;  %11164 = vmatprep.mubr.bf16.mxu1 %v19092_v47  ;;  %6534 = vrot.lane.b32.xlu1 %v16253_v16, %s13579_s11 }
 0x325   : > { %6207 = vrot.lane.b32.xlu0 %v16287_v23, %s13578_s10  ;;  %v3327_v26 = vsel %vm693_vm0, %v3295_v57, %v3296_v30  ;;  %v3000_v31 = vsel %vm693_vm0, %v2968_v45, %v2969_v12  ;;  %11134 = vmatprep.subr.bf16.mxu1 %v13275_v41  ;;  %v13276_v60 = vld [vmem:[#allocation2 + $0x198] ss:$164 sps:$4 sm:$0xff]  }
 0x326   : > { %12905 = vmatmul.mubr.msk.bf16.vlgmr.msra.gmra.mrb[16].mxu0 %vm2001_vm5, %v16299_v1  ;;  %v3328_v50 = vsel %vm3307_vm9, %v3264_v20, %v3327_v26  ;;  %v3001_v53 = vsel %vm2980_vm8, %v2937_v56, %v3000_v31  ;;  %v16329_v59 = vpop.permute.xlu1 %3918  ;;  %v16331_v52 = vpop.permute.xlu0 %3591 }
 0x327   : > { %11135 = vmatpush1.bf16.msra.mxu1 %v13273_v28  ;;  %11174 = vmatpush1.bf16.msra.mxu0 %v13270_v0  ;;  %3379 = vst [vmem:[#allocation2 + $0x2e0] sm:$0xcc] %v3328_v50  ;;  %3052 = vst [vmem:[#allocation2 + $0x2e0] sm:$0x33] %v3001_v53  ;;  %v3949_v57 = vrot.slane %v16329_v59, 4  ;;  %v3622_v45 = vrot.slane %v16331_v52, 4 }
 0x328   : > { %11175 = vmatprep.subr.bf16.mxu0 %v13278_v21  ;;  %11205 = vmatprep.mubr.bf16.mxu0 %v19092_v47 }
 0x329   : > { %7185 = vrot.lane.b32.xlu1 %v16249_v63, %s13581_s17  ;;  %6858 = vrot.lane.b32.xlu0 %v16253_v16, %s13580_s16  ;;  %v3980_v20 = vsel %vm693_vm0, %v3948_v10, %v3949_v57  ;;  %v3653_v56 = vsel %vm693_vm0, %v3621_v25, %v3622_v45 }
 0x32a   : > { %v3981_v49 = vsel %vm3960_vm11, %v3917_v40, %v3980_v20  ;;  %v3654_v14 = vsel %vm3633_vm10, %v3590_v38, %v3653_v56  ;;  %v4570_v28 = vpop.permute.xlu1 %4569  ;;  %v4243_v41 = vpop.permute.xlu0 %4242 }
 0x32b   : > { %11176 = vmatpush1.bf16.msra.mxu0 %v13276_v60  ;;  %v13279_v0 = vld [vmem:[#allocation2 + $0x2d8] ss:$164 sps:$4 sm:$0xff]   ;;  %4032 = vst [vmem:[#allocation2 + $0x384] sm:$0xcc] %v3981_v49  ;;  %3705 = vst [vmem:[#allocation2 + $0x384] sm:$0x33] %v3654_v14 }
 0x32c   : > { %v13281_v26 = vld [vmem:[#allocation2 + $0x2dc] ss:$164 sps:$4 sm:$0xff]   ;;  %v4601_v31 = vrot.slane %v4570_v28, 4  ;;  %v4274_v21 = vrot.slane %v4243_v41, 4 }
 0x32d   : > { %7838 = vrot.lane.b32.xlu1 %v16249_v63, %s13583_s20  ;;  %7511 = vrot.lane.b32.xlu0 %v16253_v16, %s13582_s18 }
 0x32e   : > { %v4631_v40 = vsel %vm693_vm0, %v4600_v7, %v4601_v31  ;;  %v4304_v38 = vsel %vm693_vm0, %v4273_v18, %v4274_v21  ;;  %11136 = vmatprep.subr.bf16.mxu1 %v13281_v26  ;;  %v5223_v50 = vpop.permute.xlu1 %5222  ;;  %v4896_v53 = vpop.permute.xlu0 %4895 }
 0x32f   : > { %v4632_v10 = vsel %vm4613_vm13, %v16000_v34, %v4631_v40  ;;  %v4305_v25 = vsel %vm4286_vm12, %v16002_v15, %v4304_v38  ;;  %11137 = vmatpush1.bf16.msra.mxu1 %v13279_v0  ;;  %v5254_v60 = vrot.slane %v5223_v50, 4  ;;  %v4927_v20 = vrot.slane %v4896_v53, 4 }
 0x330   : > { %4684 = vst [vmem:[#allocation2 + $0x420] sm:$0xcc] %v4632_v10  ;;  %4357 = vst [vmem:[#allocation2 + $0x420] sm:$0x33] %v4305_v25 }
 0x331   : > { %7187 = vrot.lane.b32.xlu1 %v16253_v16, %s13581_s17  ;;  %6860 = vrot.lane.b32.xlu0 %v16287_v23, %s13580_s16  ;;  %v5284_v34 = vsel %vm693_vm0, %v5253_v32, %v5254_v60  ;;  %v4957_v15 = vsel %vm693_vm0, %v4926_v11, %v4927_v20 }
 0x332   : > { %v5285_v7 = vsel %vm5266_vm15, %v16018_v19, %v5284_v34  ;;  %v4958_v18 = vsel %vm4939_vm14, %v16020_v46, %v4957_v15  ;;  %v16376_v56 = vpop.permute.xlu1 %4571  ;;  %v16378_v49 = vpop.permute.xlu0 %4244  ;;  %v13282_v14 = vld [vmem:[#allocation2 + $0x2e0] ss:$164 sps:$4 sm:$0xff]  }
 0x333   : > { %v13284_v0 = vld [vmem:[#allocation2 + $0x2e4] ss:$164 sps:$4 sm:$0xff]   ;;  %5337 = vst [vmem:[#allocation2 + $0x4c4] sm:$0xcc] %v5285_v7  ;;  %5010 = vst [vmem:[#allocation2 + $0x4c4] sm:$0x33] %v4958_v18 }
 0x334   : > { %v4602_v32 = vrot.slane %v16376_v56, 4  ;;  %v4275_v26 = vrot.slane %v16378_v49, 4  ;;  %11177 = vmatprep.subr.bf16.mxu0 %v13284_v0 }
 0x335   : > { %7840 = vrot.lane.b32.xlu1 %v16253_v16, %s13583_s20  ;;  %7513 = vrot.lane.b32.xlu0 %v16287_v23, %s13582_s18 }
 0x336   : > { %v4633_v19 = vsel %vm693_vm0, %v4601_v31, %v4602_v32  ;;  %v4306_v46 = vsel %vm693_vm0, %v4274_v21, %v4275_v26  ;;  %v16394_v38 = vpop.permute.xlu1 %5224  ;;  %v16396_v10 = vpop.permute.xlu0 %4897  ;;  %11178 = vmatpush1.bf16.msra.mxu0 %v13282_v14  ;;  %v16411_v21 = vld [vmem:[%s13639_s19 + $0x38] sm:$0xff] }
 0x337   : > { %v4634_v11 = vsel %vm4613_vm13, %v4570_v28, %v4633_v19  ;;  %v4307_v40 = vsel %vm4286_vm12, %v4243_v41, %v4306_v46  ;;  %v5255_v25 = vrot.slane %v16394_v38, 4  ;;  %v4928_v31 = vrot.slane %v16396_v10, 4 }
 0x338   : > { %4685 = vst [vmem:[#allocation2 + $0x428] sm:$0xcc] %v4634_v11  ;;  %4358 = vst [vmem:[#allocation2 + $0x428] sm:$0x33] %v4307_v40 }
 0x339   : > { %8491 = vrot.lane.b32.xlu1 %v16249_v63, %s13585_s22  ;;  %8164 = vrot.lane.b32.xlu0 %v16253_v16, %s13584_s21  ;;  %v5286_v28 = vsel %vm693_vm0, %v5254_v60, %v5255_v25  ;;  %v4959_v41 = vsel %vm693_vm0, %v4927_v20, %v4928_v31  ;;  %v16428_v20 = vld [vmem:[%s13639_s19 + $0x3c] sm:$0xff] }
 0x33a   : > { %v5287_v34 = vsel %vm5266_vm15, %v5223_v50, %v5286_v28  ;;  %v4960_v15 = vsel %vm4939_vm14, %v4896_v53, %v4959_v41  ;;  %v5876_v7 = vpop.permute.xlu1 %5875  ;;  %v5549_v63 = vpop.permute.xlu0 %5548  ;;  %v13285_v18 = vld [vmem:[#allocation2 + $0x420] ss:$164 sps:$4 sm:$0xff]   ;;  %v2537_v50 = vcombine.low %v16411_v21, %v16411_v21 }
 0x33b   : > { %v13287_v14 = vld [vmem:[#allocation2 + $0x424] ss:$164 sps:$4 sm:$0xff]   ;;  %5338 = vst [vmem:[#allocation2 + $0x4cc] sm:$0xcc] %v5287_v34  ;;  %5011 = vst [vmem:[#allocation2 + $0x4cc] sm:$0x33] %v4960_v15 }
 0x33c   : > { %v5907_v0 = vrot.slane %v5876_v7, 4  ;;  %v5580_v19 = vrot.slane %v5549_v63, 4  ;;  %11138 = vmatprep.subr.bf16.mxu1 %v13287_v14 }
 0x33d   : > { %8166 = vrot.lane.b32.xlu1 %v16287_v23, %s13584_s21  ;;  %8817 = vrot.lane.b32.xlu0 %v16253_v16, %s13586_s23 }
 0x33e   : > { %v5937_v53 = vsel %vm693_vm0, %v5906_v6, %v5907_v0  ;;  %v5610_v60 = vsel %vm693_vm0, %v5579_v62, %v5580_v19  ;;  %v6529_v40 = vpop.permute.xlu1 %6528  ;;  %v6202_v28 = vpop.permute.xlu0 %6201  ;;  %11139 = vmatpush1.bf16.msra.mxu1 %v13285_v18  ;;  %v2551_v62 = vrot.slane %v16411_v21, %v13634_v5 }
 0x33f   : > { %v5938_v46 = vsel %vm5919_vm2, %v16077_v13, %v5937_v53  ;;  %v5611_v11 = vsel %vm5592_vm1, %v16079_v8, %v5610_v60  ;;  %v6560_v41 = vrot.slane %v6529_v40, 4  ;;  %v6233_v6 = vrot.slane %v6202_v28, 4 }
 0x340   : > { %5990 = vst [vmem:[#allocation2 + $0x568] sm:$0xcc] %v5938_v46  ;;  %5663 = vst [vmem:[#allocation2 + $0x568] sm:$0x33] %v5611_v11  ;;  %v2544_v13 = vrot.slane %v2537_v50, %v13634_v5  ;;  %v3190_v8 = vcombine.low %v16428_v20, %v16428_v20 }
 0x341   : > { %8819 = vrot.lane.b32.xlu1 %v16287_v23, %s13586_s23  ;;  %8493 = vrot.lane.b32.xlu0 %v16253_v16, %s13585_s22  ;;  %v6590_v34 = vsel %vm693_vm0, %v6559_v27, %v6560_v41  ;;  %v6263_v15 = vsel %vm693_vm0, %v6232_v39, %v6233_v6 }
 0x342   : > { %v6591_v23 = vsel %vm19253_vm3, %v16096_v43, %v6590_v34  ;;  %v6264_v16 = vsel %vm19254_vm4, %v16098_v36, %v6263_v15  ;;  %v16453_v18 = vpop.permute.xlu1 %5877  ;;  %v16455_v14 = vpop.permute.xlu0 %5550  ;;  %v13289_v50 = vld [vmem:[#allocation2 + $0x428] ss:$164 sps:$4 sm:$0xff]   ;;  %v16462_v43 = vrot.slane %v3190_v8, %v13634_v5 }
 0x343   : > { %v13291_v53 = vld [vmem:[#allocation2 + $0x42c] ss:$164 sps:$4 sm:$0xff]   ;;  %6643 = vst [vmem:[#allocation2 + $0x60c] sm:$0xcc] %v6591_v23  ;;  %6316 = vst [vmem:[#allocation2 + $0x60c] sm:$0x33] %v6264_v16 }
 0x344   : > { %v5908_v27 = vrot.slane %v16453_v18, 4  ;;  %v5581_v60 = vrot.slane %v16455_v14, 4  ;;  %11179 = vmatprep.subr.bf16.mxu0 %v13291_v53 }
 0x345   : > { %2620 = vrot.lane.b32.xlu1 %v2551_v62, %s13567_s26  ;;  %2618 = vrot.lane.b32.xlu0 %v2544_v13, %s13567_s26 }
 0x346   : > { %v5939_v36 = vsel %vm693_vm0, %v5907_v0, %v5908_v27  ;;  %v5612_v39 = vsel %vm693_vm0, %v5580_v19, %v5581_v60  ;;  %v16472_v34 = vpop.permute.xlu1 %6530  ;;  %v16474_v15 = vpop.permute.xlu0 %6203  ;;  %11180 = vmatpush1.bf16.msra.mxu0 %v13289_v50 }
 0x347   : > { %v5940_v46 = vsel %vm5919_vm2, %v5876_v7, %v5939_v36  ;;  %v5613_v11 = vsel %vm5592_vm1, %v5549_v63, %v5612_v39  ;;  %v6561_v13 = vrot.slane %v16472_v34, 4  ;;  %v6234_v0 = vrot.slane %v16474_v15, 4 }
 0x348   : > { %5991 = vst [vmem:[#allocation2 + $0x570] sm:$0xcc] %v5940_v46  ;;  %5664 = vst [vmem:[#allocation2 + $0x570] sm:$0x33] %v5613_v11  ;;  %v16483_v7 = vrot.slane %v16428_v20, %v13634_v5  ;;  %v2864_v63 = vcombine.high %v16411_v21, %v16411_v21 }
 0x349   : > { %3271 = vrot.lane.b32.xlu1 %v16462_v43, %s13569_s28  ;;  %2944 = vrot.lane.b32.xlu0 %v2551_v62, %s13568_s27  ;;  %v6592_v19 = vsel %vm693_vm0, %v6560_v41, %v6561_v13  ;;  %v6265_v8 = vsel %vm693_vm0, %v6233_v6, %v6234_v0 }
 0x34a   : > { %v6593_v23 = vsel %vm19253_vm3, %v6529_v40, %v6592_v19  ;;  %v6266_v16 = vsel %vm19254_vm4, %v6202_v28, %v6265_v8  ;;  %v7182_v62 = vpop.permute.xlu1 %7181  ;;  %v6855_v50 = vpop.permute.xlu0 %6854  ;;  %v13293_v53 = vld [vmem:[#allocation2 + $0x568] ss:$164 sps:$4 sm:$0xff]   ;;  %v2878_v41 = vrot.slane %v2864_v63, %v13634_v5  ;;  %v3517_v40 = vcombine.high %v16428_v20, %v16428_v20 }
 0x34b   : > { %v13295_v36 = vld [vmem:[#allocation2 + $0x56c] ss:$164 sps:$4 sm:$0xff]   ;;  %6644 = vst [vmem:[#allocation2 + $0x614] sm:$0xcc] %v6593_v23  ;;  %6317 = vst [vmem:[#allocation2 + $0x614] sm:$0x33] %v6266_v16 }
 0x34c   : > { %v7213_v39 = vrot.slane %v7182_v62, 4  ;;  %v6886_v21 = vrot.slane %v6855_v50, 4  ;;  %11140 = vmatprep.subr.bf16.mxu1 %v13295_v36  ;;  %vm19255_vm3 = vcmask 834560   ;;  %vm19256_vm4 = vcmask 965632  }
 0x34d   : > { %3924 = vrot.lane.b32.xlu1 %v16462_v43, %s13571_s30  ;;  %3597 = vrot.lane.b32.xlu0 %v16483_v7, %s13570_s29 }
 0x34e   : > { %v7243_v28 = vsel %vm693_vm0, %v7212_v61, %v7213_v39  ;;  %v6916_v6 = vsel %vm693_vm0, %v6885_v48, %v6886_v21  ;;  %v7835_v19 = vpop.permute.xlu1 %7834  ;;  %v7508_v63 = vpop.permute.xlu0 %7507  ;;  %11141 = vmatpush1.bf16.msra.mxu1 %v13293_v53  ;;  %v16516_v61 = vrot.slane %v3517_v40, %v13634_v5 }
 0x34f   : > { %v7244_v46 = vsel %vm19255_vm3, %v16152_v54, %v7243_v28  ;;  %v6917_v11 = vsel %vm19256_vm4, %v16154_v2, %v6916_v6  ;;  %v7866_v20 = vrot.slane %v7835_v19, 4  ;;  %v7539_v8 = vrot.slane %v7508_v63, 4 }
 0x350   : > { %7296 = vst [vmem:[#allocation2 + $0x6b0] sm:$0xcc] %v7244_v46  ;;  %6969 = vst [vmem:[#allocation2 + $0x6b0] sm:$0x33] %v6917_v11  ;;  %vm19257_vm3 = vcmask 818176   ;;  %vm19258_vm4 = vcmask 826368  }
 0x351   : > { %3273 = vrot.lane.b32.xlu1 %v16483_v7, %s13569_s28  ;;  %2946 = vrot.lane.b32.xlu0 %v2878_v41, %s13568_s27  ;;  %v7896_v54 = vsel %vm693_vm0, %v7865_v37, %v7866_v20  ;;  %v7569_v2 = vsel %vm693_vm0, %v7538_v22, %v7539_v8 }
 0x352   : > { %v7897_v48 = vsel %vm19257_vm3, %v16170_v4, %v7896_v54  ;;  %v7570_v23 = vsel %vm19258_vm4, %v16172_v51, %v7569_v2  ;;  %v16528_v16 = vpop.permute.xlu1 %7183  ;;  %v16530_v53 = vpop.permute.xlu0 %6856  ;;  %v13298_v36 = vld [vmem:[#allocation2 + $0x570] ss:$164 sps:$4 sm:$0xff]   ;;  %vm19259_vm3 = vcmask 834560   ;;  %vm19260_vm4 = vcmask 965632  }
 0x353   : > { %v13300_v41 = vld [vmem:[#allocation2 + $0x574] ss:$164 sps:$4 sm:$0xff]   ;;  %7949 = vst [vmem:[#allocation2 + $0x754] sm:$0xcc] %v7897_v48  ;;  %7622 = vst [vmem:[#allocation2 + $0x754] sm:$0x33] %v7570_v23 }
 0x354   : > { %v7214_v37 = vrot.slane %v16528_v16, 4  ;;  %v6887_v40 = vrot.slane %v16530_v53, 4  ;;  %11181 = vmatprep.subr.bf16.mxu0 %v13300_v41 }
 0x355   : > { %3926 = vrot.lane.b32.xlu1 %v16483_v7, %s13571_s30  ;;  %3599 = vrot.lane.b32.xlu0 %v16516_v61, %s13570_s29 }
 0x356   : > { %v7245_v4 = vsel %vm693_vm0, %v7213_v39, %v7214_v37  ;;  %v6918_v51 = vsel %vm693_vm0, %v6886_v21, %v6887_v40  ;;  %v16546_v6 = vpop.permute.xlu1 %7836  ;;  %v16548_v46 = vpop.permute.xlu0 %7509  ;;  %11182 = vmatpush1.bf16.msra.mxu0 %v13298_v36 }
 0x357   : > { %v7246_v22 = vsel %vm19259_vm3, %v7182_v62, %v7245_v4  ;;  %v6919_v28 = vsel %vm19260_vm4, %v6855_v50, %v6918_v51  ;;  %v7867_v11 = vrot.slane %v16546_v6, 4  ;;  %v7540_v39 = vrot.slane %v16548_v46, 4 }
 0x358   : > { %7297 = vst [vmem:[#allocation2 + $0x6b8] sm:$0xcc] %v7246_v22  ;;  %6970 = vst [vmem:[#allocation2 + $0x6b8] sm:$0x33] %v6919_v28  ;;  %vm19261_vm3 = vcmask 818176   ;;  %vm19262_vm4 = vcmask 826368  }
 0x359   : > { %4577 = vrot.lane.b32.xlu1 %v16462_v43, %s13573_s5  ;;  %4250 = vrot.lane.b32.xlu0 %v16483_v7, %s13572_s4  ;;  %v7898_v62 = vsel %vm693_vm0, %v7866_v20, %v7867_v11  ;;  %v7571_v50 = vsel %vm693_vm0, %v7539_v8, %v7540_v39 }
 0x35a   : > { %v7899_v21 = vsel %vm19261_vm3, %v7835_v19, %v7898_v62  ;;  %v7572_v54 = vsel %vm19262_vm4, %v7508_v63, %v7571_v50  ;;  %v8488_v2 = vpop.permute.xlu1 %8487  ;;  %v8161_v48 = vpop.permute.xlu0 %8160  ;;  %v13301_v23 = vld [vmem:[#allocation2 + $0x6b0] ss:$164 sps:$4 sm:$0xff]   ;;  %vm19263_vm3 = vcmask 687104  }
 0x35b   : > { %v13303_v36 = vld [vmem:[#allocation2 + $0x6b4] ss:$164 sps:$4 sm:$0xff]   ;;  %7950 = vst [vmem:[#allocation2 + $0x75c] sm:$0xcc] %v7899_v21  ;;  %7623 = vst [vmem:[#allocation2 + $0x75c] sm:$0x33] %v7572_v54 }
 0x35c   : > { %v8519_v41 = vrot.slane %v8488_v2, 4  ;;  %v8192_v4 = vrot.slane %v8161_v48, 4  ;;  %11142 = vmatprep.subr.bf16.mxu1 %v13303_v36  ;;  %vm19264_vm4 = vmmov %vm19263_vm3 }
 0x35d   : > { %5230 = vrot.lane.b32.xlu1 %v16462_v43, %s13575_s7  ;;  %4903 = vrot.lane.b32.xlu0 %v16483_v7, %s13574_s6 }
 0x35e   : > { %v8549_v19 = vsel %vm693_vm0, %v8518_v9, %v8519_v41  ;;  %v8222_v63 = vsel %vm693_vm0, %v8191_v42, %v8192_v4  ;;  %v16578_v51 = vpop.permute.xlu1 %8162  ;;  %v8814_v22 = vpop.permute.xlu0 %8813  ;;  %11143 = vmatpush1.bf16.msra.mxu1 %v13301_v23 }
 0x35f   : > { %v8550_v20 = vsel %vm8531_vm7, %v16223_v33, %v8549_v19  ;;  %v8223_v8 = vsel %vm19263_vm3, %v16202_v35, %v8222_v63  ;;  %v8193_v9 = vrot.slane %v16578_v51, 4  ;;  %v8845_v28 = vrot.slane %v8814_v22, 4  ;;  %v16592_v33 = vld [vmem:[%s13639_s19 + $0x42] sm:$0xff] }
 0x360   : > { %8602 = vst [vmem:[#allocation2 + $0x7f8] sm:$0xcc] %v8550_v20  ;;  %8275 = vst [vmem:[#allocation2 + $0x7f8] sm:$0x33] %v8223_v8  ;;  %vm19265_vm3 = vcmask 670720  }
 0x361   : > { %4579 = vrot.lane.b32.xlu1 %v16483_v7, %s13573_s5  ;;  %4252 = vrot.lane.b32.xlu0 %v16516_v61, %s13572_s4  ;;  %v8224_v42 = vsel %vm693_vm0, %v8192_v4, %v8193_v9  ;;  %v8875_v35 = vsel %vm693_vm0, %v8844_v17, %v8845_v28 }
 0x362   : > { %v8225_v62 = vsel %vm19264_vm4, %v8161_v48, %v8224_v42  ;;  %v8876_v50 = vsel %vm19265_vm3, %v16221_v58, %v8875_v35  ;;  %v16597_v21 = vpop.permute.xlu1 %8815  ;;  %v16599_v54 = vpop.permute.xlu0 %8489  ;;  %v13304_v23 = vld [vmem:[#allocation2 + $0x6b8] ss:$164 sps:$4 sm:$0xff]   ;;  %v6455_v58 = vcombine.low %v16592_v33, %v16592_v33  ;;  %vm19266_vm4 = vmmov %vm19265_vm3  ;;  %vm19267_vm3 = vcmask 744448  }
 0x363   : > { %v13306_v36 = vld [vmem:[#allocation2 + $0x6bc] ss:$164 sps:$4 sm:$0xff]   ;;  %8276 = vst [vmem:[#allocation2 + $0x800] sm:$0x33] %v8225_v62  ;;  %8928 = vst [vmem:[#allocation2 + $0x89c] sm:$0x33] %v8876_v50 }
 0x364   : > { %v8846_v4 = vrot.slane %v16597_v21, 4  ;;  %v8520_v19 = vrot.slane %v16599_v54, 4  ;;  %11183 = vmatprep.subr.bf16.mxu0 %v13306_v36 }
 0x365   : > { %5232 = vrot.lane.b32.xlu1 %v16483_v7, %s13575_s7  ;;  %4905 = vrot.lane.b32.xlu0 %v16516_v61, %s13574_s6 }
 0x366   : > { %v8877_v17 = vsel %vm693_vm0, %v8845_v28, %v8846_v4  ;;  %v8551_v48 = vsel %vm693_vm0, %v8519_v41, %v8520_v19  ;;  %v16617_v8 = vpop.permute.xlu1 %2616  ;;  %v2615_v42 = vpop.permute.xlu0 %2614  ;;  %11184 = vmatpush1.bf16.msra.mxu0 %v13304_v23  ;;  %v16625_v41 = vrot.slane %v6455_v58, %v13634_v5 }
 0x367   : > { %v8878_v63 = vsel %vm19266_vm4, %v8814_v22, %v8877_v17  ;;  %v8552_v20 = vsel %vm8531_vm7, %v8488_v2, %v8551_v48  ;;  %v19091_v35 = vrot.slane %v16617_v8, 4  ;;  %v2644_v62 = vrot.slane %v2615_v42, 4  ;;  %vm19268_vm4 = vmmov %vm19267_vm3 }
 0x368   : > { %8929 = vst [vmem:[#allocation2 + $0x8a4] sm:$0x33] %v8878_v63  ;;  %8603 = vst [vmem:[#allocation2 + $0x800] sm:$0xcc] %v8552_v20  ;;  %v16629_v2 = vrot.slane %v16592_v33, %v13634_v5 }
 0x369   : > { %5883 = vrot.lane.b32.xlu1 %v16462_v43, %s13577_s9  ;;  %5556 = vrot.lane.b32.xlu0 %v16483_v7, %s13576_s8  ;;  %v2676_v22 = vsel %vm693_vm0, %v2643_v29, %v2644_v62  ;;  %v2678_v28 = vsel %vm693_vm0, %v2644_v62, %v19091_v35  ;;  %v6129_v29 = vcombine.high %v16592_v33, %v16592_v33  ;;  %v13313_v62 = vld [vmem:[#allocation2 + $0x5c] ss:$164 sps:$4 sm:$0xff]  }
 0x36a   : > { %v2677_v43 = vsel %vm19267_vm3, %v16241_v44, %v2676_v22  ;;  %v2679_v50 = vsel %vm19268_vm4, %v2615_v42, %v2678_v28  ;;  %v3268_v23 = vpop.permute.xlu1 %3267  ;;  %v2941_v36 = vpop.permute.xlu0 %2940  ;;  %v13308_v58 = vld [vmem:[#allocation2 + $0x7fc] ss:$164 sps:$4 sm:$0x3f]   ;;  %vm19269_vm3 = vcmask 973824   ;;  %vm19270_vm4 = vcmask 982016  }
 0x36b   : > { %2727 = vst [vmem:[#allocation2 + $0x244] sm:$0xcc] %v2677_v43  ;;  %2728 = vst [vmem:[#allocation2 + $0x24c] sm:$0xcc] %v2679_v50  ;;  %v3297_v17 = vrot.slane %v3268_v23, 4  ;;  %v2970_v48 = vrot.slane %v2941_v36, 4  ;;  %12906 = vmatprep.subr.msk.bf16.mxu1 %vm10639_vm6, %v13308_v58 }
 0x36c   : > { %v13310_v63 = vld [vmem:[#allocation2 + $0x7f8] ss:$164 sps:$4 sm:$0x3f]  }
 0x36d   : > { %6536 = vrot.lane.b32.xlu1 %v16625_v41, %s13579_s11  ;;  %6209 = vrot.lane.b32.xlu0 %v16629_v2, %s13578_s10  ;;  %v3329_v44 = vsel %vm693_vm0, %v3296_v30, %v3297_v17  ;;  %v3002_v20 = vsel %vm693_vm0, %v2969_v12, %v2970_v48  ;;  %v10695_v42 = vsel %vm10639_vm6, %v13310_v63, 0  ;;  %v13311_v58 = vld [vmem:[#allocation2 + $0x58] ss:$164 sps:$4 sm:$0xff]  }
 0x36e   : > { %v3330_v22 = vsel %vm3307_vm9, %v16308_v55, %v3329_v44  ;;  %v3003_v28 = vsel %vm2980_vm8, %v16310_v24, %v3002_v20  ;;  %v3921_v33 = vpop.permute.xlu1 %3920  ;;  %v3594_v43 = vpop.permute.xlu0 %3593  ;;  %11145 = vmatpush1.bf16.msra.mxu1 %v10695_v42  ;;  %v16663_v55 = vrot.slane %v6129_v29, %v13634_v5  ;;  %v13319_v44 = vld [vmem:[#allocation2 + $0x64] ss:$164 sps:$4 sm:$0xff]  }
 0x36f   : > { %v13314_v50 = vld [vmem:[#allocation2 + $0x804] ss:$164 sps:$4 sm:$0x3f]   ;;  %3380 = vst [vmem:[#allocation2 + $0x2e8] sm:$0xcc] %v3330_v22  ;;  %v3950_v30 = vrot.slane %v3921_v33, 4  ;;  %11214 = vmatprep.subr.bf16.mxu1 %v13313_v62 }
 0x370   : > { %3053 = vst [vmem:[#allocation2 + $0x2e8] sm:$0x33] %v3003_v28  ;;  %v3623_v35 = vrot.slane %v3594_v43, 4  ;;  %v13316_v12 = vld [vmem:[#allocation2 + $0x800] ss:$164 sps:$4 sm:$0x3f]   ;;  %12908 = vmatprep.subr.msk.bf16.mxu0 %vm10639_vm6, %v13314_v50 }
 0x371   : > { %5885 = vrot.lane.b32.xlu1 %v16483_v7, %s13577_s9  ;;  %5558 = vrot.lane.b32.xlu0 %v16516_v61, %s13576_s8  ;;  %v3982_v24 = vsel %vm693_vm0, %v3949_v57, %v3950_v30  ;;  %v10701_v7 = vsel %vm10639_vm6, %v13316_v12, 0 }
 0x372   : > { %v3655_v63 = vsel %vm693_vm0, %v3622_v45, %v3623_v35  ;;  %12907 = vmatmul.mubr.msk.bf16.vlgmr.msra.gmra.mrb[16].mxu1 %vm2001_vm5, %v16299_v1  ;;  %v3983_v61 = vsel %vm3960_vm11, %v16329_v59, %v3982_v24  ;;  %v16679_v20 = vpop.permute.xlu1 %3269  ;;  %v16681_v57 = vpop.permute.xlu0 %2942  ;;  %11186 = vmatpush1.bf16.msra.mxu0 %v10701_v7  ;;  %v13320_v45 = vld [vmem:[#allocation2 + $0x1a0] ss:$164 sps:$4 sm:$0xff]   ;;  %v13325_v50 = vld [vmem:[#allocation2 + $0x1ac] ss:$164 sps:$4 sm:$0xff]  }
 0x373   : > { %v3656_v29 = vsel %vm3633_vm10, %v16331_v52, %v3655_v63  ;;  %11215 = vmatpush1.bf16.msra.mxu1 %v13311_v58  ;;  %v13322_v42 = vld [vmem:[#allocation2 + $0x1a4] ss:$164 sps:$4 sm:$0xff]   ;;  %4033 = vst [vmem:[#allocation2 + $0x38c] sm:$0xcc] %v3983_v61  ;;  %v3298_v62 = vrot.slane %v16679_v20, 4  ;;  %v2971_v22 = vrot.slane %v16681_v57, 4  ;;  %11255 = vmatprep.subr.bf16.mxu0 %v13319_v44 }
 0x374   : > { %3706 = vst [vmem:[#allocation2 + $0x38c] sm:$0x33] %v3656_v29  ;;  %11246 = vmatprep.mubr.bf16.mxu1 %v19092_v47  ;;  %v13317_v59 = vld [vmem:[#allocation2 + $0x60] ss:$164 sps:$4 sm:$0xff]   ;;  %11216 = vmatprep.subr.bf16.mxu1 %v13322_v42 }
 0x375   : > { %6538 = vrot.lane.b32.xlu1 %v16629_v2, %s13579_s11  ;;  %6211 = vrot.lane.b32.xlu0 %v16663_v55, %s13578_s10  ;;  %v3331_v52 = vsel %vm693_vm0, %v3297_v17, %v3298_v62  ;;  %v3004_v28 = vsel %vm693_vm0, %v2970_v48, %v2971_v22 }
 0x376   : > { %12909 = vmatmul.mubr.msk.bf16.vlgmr.msra.gmra.mrb[20].mxu0 %vm2001_vm5, %v16299_v1  ;;  %v3332_v12 = vsel %vm3307_vm9, %v3268_v23, %v3331_v52  ;;  %v3005_v58 = vsel %vm2980_vm8, %v2941_v36, %v3004_v28  ;;  %v16700_v24 = vpop.permute.xlu1 %3922  ;;  %v16702_v63 = vpop.permute.xlu0 %3595  ;;  %v13323_v1 = vld [vmem:[#allocation2 + $0x1a8] ss:$164 sps:$4 sm:$0xff]  }
 0x377   : > { %11217 = vmatpush1.bf16.msra.mxu1 %v13320_v45  ;;  %11256 = vmatpush1.bf16.msra.mxu0 %v13317_v59  ;;  %3381 = vst [vmem:[#allocation2 + $0x2f0] sm:$0xcc] %v3332_v12  ;;  %3054 = vst [vmem:[#allocation2 + $0x2f0] sm:$0x33] %v3005_v58  ;;  %v3951_v17 = vrot.slane %v16700_v24, 4  ;;  %v3624_v48 = vrot.slane %v16702_v63, 4 }
 0x378   : > { %11257 = vmatprep.subr.bf16.mxu0 %v13325_v50  ;;  %11287 = vmatprep.mubr.bf16.mxu0 %v19092_v47 }
 0x379   : > { %7189 = vrot.lane.b32.xlu1 %v16625_v41, %s13581_s17  ;;  %6862 = vrot.lane.b32.xlu0 %v16629_v2, %s13580_s16  ;;  %v3984_v23 = vsel %vm693_vm0, %v3950_v30, %v3951_v17  ;;  %v3657_v36 = vsel %vm693_vm0, %v3623_v35, %v3624_v48 }
 0x37a   : > { %v3985_v7 = vsel %vm3960_vm11, %v3921_v33, %v3984_v23  ;;  %v3658_v44 = vsel %vm3633_vm10, %v3594_v43, %v3657_v36  ;;  %v4574_v61 = vpop.permute.xlu1 %4573  ;;  %v4247_v29 = vpop.permute.xlu0 %4246 }
 0x37b   : > { %11258 = vmatpush1.bf16.msra.mxu0 %v13323_v1  ;;  %v13326_v45 = vld [vmem:[#allocation2 + $0x2e8] ss:$164 sps:$4 sm:$0xff]   ;;  %4034 = vst [vmem:[#allocation2 + $0x394] sm:$0xcc] %v3985_v7  ;;  %3707 = vst [vmem:[#allocation2 + $0x394] sm:$0x33] %v3658_v44 }
 0x37c   : > { %v13328_v42 = vld [vmem:[#allocation2 + $0x2ec] ss:$164 sps:$4 sm:$0xff]   ;;  %v4603_v59 = vrot.slane %v4574_v61, 4  ;;  %v4276_v52 = vrot.slane %v4247_v29, 4 }
 0x37d   : > { %7842 = vrot.lane.b32.xlu1 %v16625_v41, %s13583_s20  ;;  %7515 = vrot.lane.b32.xlu0 %v16629_v2, %s13582_s18 }
 0x37e   : > { %v4635_v35 = vsel %vm693_vm0, %v4602_v32, %v4603_v59  ;;  %v4308_v33 = vsel %vm693_vm0, %v4275_v26, %v4276_v52  ;;  %11218 = vmatprep.subr.bf16.mxu1 %v13328_v42  ;;  %v5227_v28 = vpop.permute.xlu1 %5226  ;;  %v4900_v50 = vpop.permute.xlu0 %4899 }
 0x37f   : > { %v4636_v43 = vsel %vm4613_vm13, %v16376_v56, %v4635_v35  ;;  %v4309_v30 = vsel %vm4286_vm12, %v16378_v49, %v4308_v33  ;;  %11219 = vmatpush1.bf16.msra.mxu1 %v13326_v45  ;;  %v5256_v12 = vrot.slane %v5227_v28, 4  ;;  %v4929_v58 = vrot.slane %v4900_v50, 4 }
 0x380   : > { %4686 = vst [vmem:[#allocation2 + $0x430] sm:$0xcc] %v4636_v43  ;;  %4359 = vst [vmem:[#allocation2 + $0x430] sm:$0x33] %v4309_v30 }
 0x381   : > { %7191 = vrot.lane.b32.xlu1 %v16629_v2, %s13581_s17  ;;  %6864 = vrot.lane.b32.xlu0 %v16663_v55, %s13580_s16  ;;  %v5288_v56 = vsel %vm693_vm0, %v5255_v25, %v5256_v12  ;;  %v4961_v49 = vsel %vm693_vm0, %v4928_v31, %v4929_v58 }
 0x382   : > { %v5289_v32 = vsel %vm5266_vm15, %v16394_v38, %v5288_v56  ;;  %v4962_v26 = vsel %vm4939_vm14, %v16396_v10, %v4961_v49  ;;  %v16747_v1 = vpop.permute.xlu1 %4575  ;;  %v16749_v23 = vpop.permute.xlu0 %4248  ;;  %v13329_v36 = vld [vmem:[#allocation2 + $0x2f0] ss:$164 sps:$4 sm:$0xff]  }
 0x383   : > { %v13331_v7 = vld [vmem:[#allocation2 + $0x2f4] ss:$164 sps:$4 sm:$0xff]   ;;  %5339 = vst [vmem:[#allocation2 + $0x4d4] sm:$0xcc] %v5289_v32  ;;  %5012 = vst [vmem:[#allocation2 + $0x4d4] sm:$0x33] %v4962_v26 }
 0x384   : > { %v4604_v25 = vrot.slane %v16747_v1, 4  ;;  %v4277_v44 = vrot.slane %v16749_v23, 4  ;;  %11259 = vmatprep.subr.bf16.mxu0 %v13331_v7 }
 0x385   : > { %7844 = vrot.lane.b32.xlu1 %v16629_v2, %s13583_s20  ;;  %7517 = vrot.lane.b32.xlu0 %v16663_v55, %s13582_s18 }
 0x386   : > { %v4637_v38 = vsel %vm693_vm0, %v4603_v59, %v4604_v25  ;;  %v4310_v10 = vsel %vm693_vm0, %v4276_v52, %v4277_v44  ;;  %v16765_v42 = vpop.permute.xlu1 %5228  ;;  %v16767_v35 = vpop.permute.xlu0 %4901  ;;  %11260 = vmatpush1.bf16.msra.mxu0 %v13329_v36  ;;  %v16782_v52 = vld [vmem:[%s13639_s19 + $0x40] sm:$0xff] }
 0x387   : > { %v4638_v31 = vsel %vm4613_vm13, %v4574_v61, %v4637_v38  ;;  %v4311_v45 = vsel %vm4286_vm12, %v4247_v29, %v4310_v10  ;;  %v5257_v33 = vrot.slane %v16765_v42, 4  ;;  %v4930_v59 = vrot.slane %v16767_v35, 4 }
 0x388   : > { %4687 = vst [vmem:[#allocation2 + $0x438] sm:$0xcc] %v4638_v31  ;;  %4360 = vst [vmem:[#allocation2 + $0x438] sm:$0x33] %v4311_v45 }
 0x389   : > { %8495 = vrot.lane.b32.xlu1 %v16625_v41, %s13585_s22  ;;  %8168 = vrot.lane.b32.xlu0 %v16629_v2, %s13584_s21  ;;  %v5290_v61 = vsel %vm693_vm0, %v5256_v12, %v5257_v33  ;;  %v4963_v29 = vsel %vm693_vm0, %v4929_v58, %v4930_v59  ;;  %v16799_v58 = vld [vmem:[%s13639_s19 + $0x44] sm:$0xff] }
 0x38a   : > { %v5291_v43 = vsel %vm5266_vm15, %v5227_v28, %v5290_v61  ;;  %v4964_v30 = vsel %vm4939_vm14, %v4900_v50, %v4963_v29  ;;  %v5880_v56 = vpop.permute.xlu1 %5879  ;;  %v5553_v41 = vpop.permute.xlu0 %5552  ;;  %v13332_v49 = vld [vmem:[#allocation2 + $0x430] ss:$164 sps:$4 sm:$0xff]   ;;  %v2552_v28 = vcombine.low %v16782_v52, %v16782_v52 }
 0x38b   : > { %v13334_v32 = vld [vmem:[#allocation2 + $0x434] ss:$164 sps:$4 sm:$0xff]   ;;  %5340 = vst [vmem:[#allocation2 + $0x4dc] sm:$0xcc] %v5291_v43  ;;  %5013 = vst [vmem:[#allocation2 + $0x4dc] sm:$0x33] %v4964_v30 }
 0x38c   : > { %v5909_v26 = vrot.slane %v5880_v56, 4  ;;  %v5582_v36 = vrot.slane %v5553_v41, 4  ;;  %11220 = vmatprep.subr.bf16.mxu1 %v13334_v32 }
 0x38d   : > { %8170 = vrot.lane.b32.xlu1 %v16663_v55, %s13584_s21  ;;  %8821 = vrot.lane.b32.xlu0 %v16629_v2, %s13586_s23 }
 0x38e   : > { %v5941_v50 = vsel %vm693_vm0, %v5908_v27, %v5909_v26  ;;  %v5614_v12 = vsel %vm693_vm0, %v5581_v60, %v5582_v36  ;;  %v6533_v10 = vpop.permute.xlu1 %6532  ;;  %v6206_v31 = vpop.permute.xlu0 %6205  ;;  %11221 = vmatpush1.bf16.msra.mxu1 %v13332_v49  ;;  %v2566_v60 = vrot.slane %v16782_v52, %v13634_v5 }
 0x38f   : > { %v5942_v7 = vsel %vm5919_vm2, %v16453_v18, %v5941_v50  ;;  %v5615_v38 = vsel %vm5592_vm1, %v16455_v14, %v5614_v12  ;;  %v6562_v45 = vrot.slane %v6533_v10, 4  ;;  %v6235_v27 = vrot.slane %v6206_v31, 4 }
 0x390   : > { %5992 = vst [vmem:[#allocation2 + $0x578] sm:$0xcc] %v5942_v7  ;;  %5665 = vst [vmem:[#allocation2 + $0x578] sm:$0x33] %v5615_v38  ;;  %v2559_v18 = vrot.slane %v2552_v28, %v13634_v5  ;;  %v3205_v14 = vcombine.low %v16799_v58, %v16799_v58 }
 0x391   : > { %8823 = vrot.lane.b32.xlu1 %v16663_v55, %s13586_s23  ;;  %8497 = vrot.lane.b32.xlu0 %v16629_v2, %s13585_s22  ;;  %v6594_v61 = vsel %vm693_vm0, %v6561_v13, %v6562_v45  ;;  %v6267_v29 = vsel %vm693_vm0, %v6234_v0, %v6235_v27 }
 0x392   : > { %v6595_v55 = vsel %vm19269_vm3, %v16472_v34, %v6594_v61  ;;  %v6268_v2 = vsel %vm19270_vm4, %v16474_v15, %v6267_v29  ;;  %v16824_v43 = vpop.permute.xlu1 %5881  ;;  %v16826_v30 = vpop.permute.xlu0 %5554  ;;  %v13336_v49 = vld [vmem:[#allocation2 + $0x438] ss:$164 sps:$4 sm:$0xff]   ;;  %v16833_v34 = vrot.slane %v3205_v14, %v13634_v5 }
 0x393   : > { %v13338_v32 = vld [vmem:[#allocation2 + $0x43c] ss:$164 sps:$4 sm:$0xff]   ;;  %6645 = vst [vmem:[#allocation2 + $0x61c] sm:$0xcc] %v6595_v55  ;;  %6318 = vst [vmem:[#allocation2 + $0x61c] sm:$0x33] %v6268_v2 }
 0x394   : > { %v5910_v13 = vrot.slane %v16824_v43, 4  ;;  %v5583_v28 = vrot.slane %v16826_v30, 4  ;;  %11261 = vmatprep.subr.bf16.mxu0 %v13338_v32 }
 0x395   : > { %2624 = vrot.lane.b32.xlu1 %v2566_v60, %s13567_s26  ;;  %2622 = vrot.lane.b32.xlu0 %v2559_v18, %s13567_s26 }
 0x396   : > { %v5943_v15 = vsel %vm693_vm0, %v5909_v26, %v5910_v13  ;;  %v5616_v0 = vsel %vm693_vm0, %v5582_v36, %v5583_v28  ;;  %v16843_v7 = vpop.permute.xlu1 %6534  ;;  %11262 = vmatpush1.bf16.msra.mxu0 %v13336_v49 }
 0x397   : > { %v5944_v50 = vsel %vm5919_vm2, %v5880_v56, %v5943_v15  ;;  %v5617_v12 = vsel %vm5592_vm1, %v5553_v41, %v5616_v0  ;;  %v16845_v38 = vpop.permute.xlu0 %6207  ;;  %v6563_v18 = vrot.slane %v16843_v7, 4  ;;  %v16854_v56 = vrot.slane %v16799_v58, %v13634_v5 }
 0x398   : > { %5993 = vst [vmem:[#allocation2 + $0x580] sm:$0xcc] %v5944_v50  ;;  %5666 = vst [vmem:[#allocation2 + $0x580] sm:$0x33] %v5617_v12  ;;  %v6236_v26 = vrot.slane %v16845_v38, 4  ;;  %v2879_v41 = vcombine.high %v16782_v52, %v16782_v52 }
 0x399   : > { %3275 = vrot.lane.b32.xlu1 %v16833_v34, %s13569_s28  ;;  %2948 = vrot.lane.b32.xlu0 %v2566_v60, %s13568_s27  ;;  %v6596_v36 = vsel %vm693_vm0, %v6562_v45, %v6563_v18 }
 0x39a   : > { %v6269_v14 = vsel %vm693_vm0, %v6235_v27, %v6236_v26  ;;  %v6597_v61 = vsel %vm19269_vm3, %v6533_v10, %v6596_v36  ;;  %v13340_v2 = vld [vmem:[#allocation2 + $0x578] ss:$164 sps:$4 sm:$0xff]   ;;  %v2893_v45 = vrot.slane %v2879_v41, %v13634_v5  ;;  %v3532_v10 = vcombine.high %v16799_v58, %v16799_v58 }
 0x39b   : > { %v6270_v29 = vsel %vm19270_vm4, %v6206_v31, %v6269_v14  ;;  %v7186_v60 = vpop.permute.xlu1 %7185  ;;  %v6859_v55 = vpop.permute.xlu0 %6858  ;;  %v13342_v49 = vld [vmem:[#allocation2 + $0x57c] ss:$164 sps:$4 sm:$0xff]   ;;  %6646 = vst [vmem:[#allocation2 + $0x624] sm:$0xcc] %v6597_v61  ;;  %vm19271_vm3 = vcmask 834560   ;;  %vm19272_vm4 = vcmask 965632  }
 0x39c   : > { %6319 = vst [vmem:[#allocation2 + $0x624] sm:$0x33] %v6270_v29  ;;  %v7215_v32 = vrot.slane %v7186_v60, 4  ;;  %v6888_v52 = vrot.slane %v6859_v55, 4  ;;  %11222 = vmatprep.subr.bf16.mxu1 %v13342_v49 }
 0x39d   : > { %3928 = vrot.lane.b32.xlu1 %v16833_v34, %s13571_s30  ;;  %3601 = vrot.lane.b32.xlu0 %v16854_v56, %s13570_s29 }
 0x39e   : > { %v7247_v31 = vsel %vm693_vm0, %v7214_v37, %v7215_v32  ;;  %v6920_v27 = vsel %vm693_vm0, %v6887_v40, %v6888_v52  ;;  %11223 = vmatpush1.bf16.msra.mxu1 %v13340_v2  ;;  %v16887_v37 = vrot.slane %v3532_v10, %v13634_v5 }
 0x39f   : > { %v7248_v15 = vsel %vm19271_vm3, %v16528_v16, %v7247_v31  ;;  %v6921_v0 = vsel %vm19272_vm4, %v16530_v53, %v6920_v27  ;;  %v7839_v50 = vpop.permute.xlu1 %7838  ;;  %v7512_v12 = vpop.permute.xlu0 %7511  ;;  %vm19273_vm3 = vcmask 818176   ;;  %vm19274_vm4 = vcmask 826368  }
 0x3a0   : > { %7298 = vst [vmem:[#allocation2 + $0x6c0] sm:$0xcc] %v7248_v15  ;;  %6971 = vst [vmem:[#allocation2 + $0x6c0] sm:$0x33] %v6921_v0  ;;  %v7868_v58 = vrot.slane %v7839_v50, 4  ;;  %v7541_v41 = vrot.slane %v7512_v12, 4 }
 0x3a1   : > { %3277 = vrot.lane.b32.xlu1 %v16854_v56, %s13569_s28  ;;  %2950 = vrot.lane.b32.xlu0 %v2893_v45, %s13568_s27 }
 0x3a2   : > { %v7900_v16 = vsel %vm693_vm0, %v7867_v11, %v7868_v58  ;;  %v7573_v53 = vsel %vm693_vm0, %v7540_v39, %v7541_v41 }
 0x3a3   : > { %v7901_v40 = vsel %vm19273_vm3, %v16546_v6, %v7900_v16  ;;  %v7574_v36 = vsel %vm19274_vm4, %v16548_v46, %v7573_v53  ;;  %v16899_v14 = vpop.permute.xlu1 %7187  ;;  %v16901_v61 = vpop.permute.xlu0 %6860  ;;  %v13345_v29 = vld [vmem:[#allocation2 + $0x580] ss:$164 sps:$4 sm:$0xff]   ;;  %vm19275_vm3 = vcmask 834560   ;;  %vm19276_vm4 = vcmask 965632  }
 0x3a4   : > { %v13347_v2 = vld [vmem:[#allocation2 + $0x584] ss:$164 sps:$4 sm:$0xff]   ;;  %7951 = vst [vmem:[#allocation2 + $0x764] sm:$0xcc] %v7901_v40  ;;  %7624 = vst [vmem:[#allocation2 + $0x764] sm:$0x33] %v7574_v36 }
 0x3a5   : > { %v7216_v11 = vrot.slane %v16899_v14, 4  ;;  %v6889_v49 = vrot.slane %v16901_v61, 4  ;;  %3930 = vrot.lane.b32.xlu1 %v16854_v56, %s13571_s30  ;;  %3603 = vrot.lane.b32.xlu0 %v16887_v37, %s13570_s29 }
 0x3a6   : > { %11263 = vmatprep.subr.bf16.mxu0 %v13347_v2 }
 0x3a7   : > { %v7249_v6 = vsel %vm693_vm0, %v7215_v32, %v7216_v11  ;;  %v6922_v46 = vsel %vm693_vm0, %v6888_v52, %v6889_v49  ;;  %v16917_v10 = vpop.permute.xlu1 %7840  ;;  %v16919_v31 = vpop.permute.xlu0 %7513  ;;  %11264 = vmatpush1.bf16.msra.mxu0 %v13345_v29 }
 0x3a8   : > { %v7250_v39 = vsel %vm19275_vm3, %v7186_v60, %v7249_v6  ;;  %v6923_v45 = vsel %vm19276_vm4, %v6859_v55, %v6922_v46  ;;  %v7869_v27 = vrot.slane %v16917_v10, 4  ;;  %v7542_v32 = vrot.slane %v16919_v31, 4 }
 0x3a9   : > { %7299 = vst [vmem:[#allocation2 + $0x6c8] sm:$0xcc] %v7250_v39  ;;  %6972 = vst [vmem:[#allocation2 + $0x6c8] sm:$0x33] %v6923_v45  ;;  %4581 = vrot.lane.b32.xlu1 %v16833_v34, %s13573_s5  ;;  %4254 = vrot.lane.b32.xlu0 %v16854_v56, %s13572_s4  ;;  %vm19277_vm3 = vcmask 818176   ;;  %vm19278_vm4 = vcmask 826368  }
 0x3aa   : > { %v7902_v60 = vsel %vm693_vm0, %v7868_v58, %v7869_v27  ;;  %v7575_v55 = vsel %vm693_vm0, %v7541_v41, %v7542_v32 }
 0x3ab   : > { %v7903_v52 = vsel %vm19277_vm3, %v7839_v50, %v7902_v60  ;;  %v7576_v15 = vsel %vm19278_vm4, %v7512_v12, %v7575_v55  ;;  %v8492_v0 = vpop.permute.xlu1 %8491  ;;  %v8165_v16 = vpop.permute.xlu0 %8164  ;;  %v13348_v53 = vld [vmem:[#allocation2 + $0x6c0] ss:$164 sps:$4 sm:$0xff]   ;;  %vm19279_vm3 = vcmask 687104  }
 0x3ac   : > { %v13350_v40 = vld [vmem:[#allocation2 + $0x6c4] ss:$164 sps:$4 sm:$0xff]   ;;  %7952 = vst [vmem:[#allocation2 + $0x76c] sm:$0xcc] %v7903_v52  ;;  %7625 = vst [vmem:[#allocation2 + $0x76c] sm:$0x33] %v7576_v15 }
 0x3ad   : > { %v8521_v36 = vrot.slane %v8492_v0, 4  ;;  %v8194_v29 = vrot.slane %v8165_v16, 4  ;;  %5234 = vrot.lane.b32.xlu1 %v16833_v34, %s13575_s7  ;;  %4907 = vrot.lane.b32.xlu0 %v16854_v56, %s13574_s6  ;;  %vm19280_vm4 = vmmov %vm19279_vm3 }
 0x3ae   : > { %11224 = vmatprep.subr.bf16.mxu1 %v13350_v40 }
 0x3af   : > { %v8553_v50 = vsel %vm693_vm0, %v8520_v19, %v8521_v36  ;;  %v8226_v12 = vsel %vm693_vm0, %v8193_v9, %v8194_v29  ;;  %v16949_v2 = vpop.permute.xlu1 %8166  ;;  %v8818_v6 = vpop.permute.xlu0 %8817  ;;  %11225 = vmatpush1.bf16.msra.mxu1 %v13348_v53 }
 0x3b0   : > { %v8554_v58 = vsel %vm8531_vm7, %v16599_v54, %v8553_v50  ;;  %v8227_v41 = vsel %vm19279_vm3, %v16578_v51, %v8226_v12  ;;  %v8195_v19 = vrot.slane %v16949_v2, 4  ;;  %v8847_v46 = vrot.slane %v8818_v6, 4  ;;  %v16963_v54 = vld [vmem:[%s13639_s19 + $0x4a] sm:$0xff] }
 0x3b1   : > { %8604 = vst [vmem:[#allocation2 + $0x808] sm:$0xcc] %v8554_v58  ;;  %8277 = vst [vmem:[#allocation2 + $0x808] sm:$0x33] %v8227_v41  ;;  %4583 = vrot.lane.b32.xlu1 %v16854_v56, %s13573_s5  ;;  %4256 = vrot.lane.b32.xlu0 %v16887_v37, %s13572_s4  ;;  %vm19281_vm3 = vcmask 670720  }
 0x3b2   : > { %v8228_v9 = vsel %vm693_vm0, %v8194_v29, %v8195_v19  ;;  %v8879_v51 = vsel %vm693_vm0, %v8846_v4, %v8847_v46 }
 0x3b3   : > { %v8229_v39 = vsel %vm19280_vm4, %v8165_v16, %v8228_v9  ;;  %v8880_v45 = vsel %vm19281_vm3, %v16597_v21, %v8879_v51  ;;  %v16968_v60 = vpop.permute.xlu1 %8819  ;;  %v16970_v55 = vpop.permute.xlu0 %8493  ;;  %v13351_v52 = vld [vmem:[#allocation2 + $0x6c8] ss:$164 sps:$4 sm:$0xff]   ;;  %v6470_v21 = vcombine.low %v16963_v54, %v16963_v54  ;;  %vm19282_vm4 = vmmov %vm19281_vm3  ;;  %vm19284_vm3 = vcmask 744448  }
 0x3b4   : > { %v13353_v15 = vld [vmem:[#allocation2 + $0x6cc] ss:$164 sps:$4 sm:$0xff]   ;;  %8278 = vst [vmem:[#allocation2 + $0x810] sm:$0x33] %v8229_v39  ;;  %8930 = vst [vmem:[#allocation2 + $0x8ac] sm:$0x33] %v8880_v45 }
 0x3b5   : > { %v8848_v53 = vrot.slane %v16968_v60, 4  ;;  %v8522_v40 = vrot.slane %v16970_v55, 4  ;;  %5236 = vrot.lane.b32.xlu1 %v16854_v56, %s13575_s7  ;;  %4909 = vrot.lane.b32.xlu0 %v16887_v37, %s13574_s6 }
 0x3b6   : > { %11265 = vmatprep.subr.bf16.mxu0 %v13353_v15 }
 0x3b7   : > { %v8881_v4 = vsel %vm693_vm0, %v8847_v46, %v8848_v53  ;;  %v8555_v16 = vsel %vm693_vm0, %v8521_v36, %v8522_v40  ;;  %v16988_v12 = vpop.permute.xlu1 %2620  ;;  %v2619_v58 = vpop.permute.xlu0 %2618  ;;  %11266 = vmatpush1.bf16.msra.mxu0 %v13351_v52  ;;  %v16996_v36 = vrot.slane %v6470_v21, %v13634_v5 }
 0x3b8   : > { %v8882_v29 = vsel %vm19282_vm4, %v8818_v6, %v8881_v4  ;;  %v8556_v50 = vsel %vm8531_vm7, %v8492_v0, %v8555_v16  ;;  %v2647_v41 = vrot.slane %v16988_v12, 4  ;;  %v2646_v9 = vrot.slane %v2619_v58, 4  ;;  %vm19285_vm4 = vmmov %vm19284_vm3 }
 0x3b9   : > { %8931 = vst [vmem:[#allocation2 + $0x8b4] sm:$0x33] %v8882_v29  ;;  %8605 = vst [vmem:[#allocation2 + $0x810] sm:$0xcc] %v8556_v50  ;;  %5887 = vrot.lane.b32.xlu1 %v16833_v34, %s13577_s9  ;;  %5560 = vrot.lane.b32.xlu0 %v16854_v56, %s13576_s8  ;;  %v17000_v0 = vrot.slane %v16963_v54, %v13634_v5  ;;  %v19283_v6 = vrot.slane %v16617_v8, 4  ;;  %v6144_v29 = vcombine.high %v16963_v54, %v16963_v54 }
 0x3ba   : > { %v2682_v51 = vsel %vm693_vm0, %v2646_v9, %v2647_v41 }
 0x3bb   : > { %v2680_v46 = vsel %vm693_vm0, %v19283_v6, %v2646_v9  ;;  %v2683_v39 = vsel %vm19285_vm4, %v2619_v58, %v2682_v51  ;;  %v3272_v45 = vpop.permute.xlu1 %3271  ;;  %v2945_v52 = vpop.permute.xlu0 %2944  ;;  %v13355_v15 = vld [vmem:[#allocation2 + $0x80c] ss:$164 sps:$4 sm:$0x3f]   ;;  %vm19287_vm4 = vcmask 982016  }
 0x3bc   : > { %v2681_v34 = vsel %vm19284_vm3, %v16617_v8, %v2680_v46  ;;  %2730 = vst [vmem:[#allocation2 + $0x25c] sm:$0xcc] %v2683_v39  ;;  %v3299_v21 = vrot.slane %v3272_v45, 4  ;;  %v2972_v4 = vrot.slane %v2945_v52, 4  ;;  %12910 = vmatprep.subr.msk.bf16.mxu1 %vm10639_vm6, %v13355_v15  ;;  %v13360_v9 = vld [vmem:[#allocation2 + $0x6c] ss:$164 sps:$4 sm:$0xff]  }
 0x3bd   : > { %2729 = vst [vmem:[#allocation2 + $0x254] sm:$0xcc] %v2681_v34  ;;  %v13357_v16 = vld [vmem:[#allocation2 + $0x808] ss:$164 sps:$4 sm:$0x3f]   ;;  %6540 = vrot.lane.b32.xlu1 %v16996_v36, %s13579_s11  ;;  %6213 = vrot.lane.b32.xlu0 %v17000_v0, %s13578_s10  ;;  %vm19286_vm3 = vcmask 973824  }
 0x3be   : > { %v3333_v8 = vsel %vm693_vm0, %v3298_v62, %v3299_v21  ;;  %v3006_v50 = vsel %vm693_vm0, %v2971_v22, %v2972_v4  ;;  %v10707_v58 = vsel %vm10639_vm6, %v13357_v16, 0  ;;  %v13358_v15 = vld [vmem:[#allocation2 + $0x68] ss:$164 sps:$4 sm:$0xff]  }
 0x3bf   : > { %v3334_v6 = vsel %vm3307_vm9, %v16679_v20, %v3333_v8  ;;  %v3007_v46 = vsel %vm2980_vm8, %v16681_v57, %v3006_v50  ;;  %v3925_v54 = vpop.permute.xlu1 %3924  ;;  %v3598_v51 = vpop.permute.xlu0 %3597  ;;  %11227 = vmatpush1.bf16.msra.mxu1 %v10707_v58  ;;  %v17034_v20 = vrot.slane %v6144_v29, %v13634_v5  ;;  %v13366_v29 = vld [vmem:[#allocation2 + $0x74] ss:$164 sps:$4 sm:$0xff]  }
 0x3c0   : > { %v13361_v34 = vld [vmem:[#allocation2 + $0x814] ss:$164 sps:$4 sm:$0x3f]   ;;  %3382 = vst [vmem:[#allocation2 + $0x2f8] sm:$0xcc] %v3334_v6  ;;  %v3952_v62 = vrot.slane %v3925_v54, 4  ;;  %11296 = vmatprep.subr.bf16.mxu1 %v13360_v9 }
 0x3c1   : > { %3055 = vst [vmem:[#allocation2 + $0x2f8] sm:$0x33] %v3007_v46  ;;  %v3625_v39 = vrot.slane %v3598_v51, 4  ;;  %v13363_v22 = vld [vmem:[#allocation2 + $0x810] ss:$164 sps:$4 sm:$0x3f]   ;;  %5889 = vrot.lane.b32.xlu1 %v16854_v56, %s13577_s9  ;;  %5562 = vrot.lane.b32.xlu0 %v16887_v37, %s13576_s8 }
 0x3c2   : > { %v3986_v57 = vsel %vm693_vm0, %v3951_v17, %v3952_v62  ;;  %12912 = vmatprep.subr.msk.bf16.mxu0 %vm10639_vm6, %v13361_v34  ;;  %v17046_v56 = vld [vmem:[%s19078_s1] sm:$0xf]  ;;  %v10713_v37 = vsel %vm10639_vm6, %v13363_v22, 0 }
 0x3c3   : > { %v3659_v16 = vsel %vm693_vm0, %v3624_v48, %v3625_v39  ;;  %12911 = vmatmul.mubr.msk.bf16.vlgmr.msra.gmra.mrb[20].mxu1 %vm2001_vm5, %v17046_v56  ;;  %v3987_v17 = vsel %vm3960_vm11, %v16700_v24, %v3986_v57  ;;  %v17055_v48 = vpop.permute.xlu1 %3273  ;;  %v17057_v50 = vpop.permute.xlu0 %2946  ;;  %11268 = vmatpush1.bf16.msra.mxu0 %v10713_v37  ;;  %v13364_v24 = vld [vmem:[#allocation2 + $0x70] ss:$164 sps:$4 sm:$0xff]   ;;  %v13372_v22 = vld [vmem:[#allocation2 + $0x1bc] ss:$164 sps:$4 sm:$0xff]  }
 0x3c4   : > { %v3660_v8 = vsel %vm3633_vm10, %v16702_v63, %v3659_v16  ;;  %11297 = vmatpush1.bf16.msra.mxu1 %v13358_v15  ;;  %v13367_v58 = vld [vmem:[#allocation2 + $0x1b0] ss:$164 sps:$4 sm:$0xff]   ;;  %4035 = vst [vmem:[#allocation2 + $0x39c] sm:$0xcc] %v3987_v17  ;;  %v3300_v6 = vrot.slane %v17055_v48, 4  ;;  %v2973_v46 = vrot.slane %v17057_v50, 4  ;;  %11337 = vmatprep.subr.bf16.mxu0 %v13366_v29 }
 0x3c5   : > { %v13369_v9 = vld [vmem:[#allocation2 + $0x1b4] ss:$164 sps:$4 sm:$0xff]   ;;  %3708 = vst [vmem:[#allocation2 + $0x39c] sm:$0x33] %v3660_v8  ;;  %11328 = vmatprep.mubr.bf16.mxu1 %v19092_v47  ;;  %6542 = vrot.lane.b32.xlu1 %v17000_v0, %s13579_s11 }
 0x3c6   : > { %6215 = vrot.lane.b32.xlu0 %v17034_v20, %s13578_s10  ;;  %v3335_v63 = vsel %vm693_vm0, %v3299_v21, %v3300_v6  ;;  %v3008_v34 = vsel %vm693_vm0, %v2972_v4, %v2973_v46  ;;  %11298 = vmatprep.subr.bf16.mxu1 %v13369_v9  ;;  %v13370_v29 = vld [vmem:[#allocation2 + $0x1b8] ss:$164 sps:$4 sm:$0xff]  }
 0x3c7   : > { %12913 = vmatmul.mubr.msk.bf16.vlgmr.msra.gmra.mrb[24].mxu0 %vm2001_vm5, %v17046_v56  ;;  %v3336_v15 = vsel %vm3307_vm9, %v3272_v45, %v3335_v63  ;;  %v3009_v57 = vsel %vm2980_vm8, %v2945_v52, %v3008_v34  ;;  %v17076_v16 = vpop.permute.xlu1 %3926  ;;  %v17078_v37 = vpop.permute.xlu0 %3599 }
 0x3c8   : > { %11299 = vmatpush1.bf16.msra.mxu1 %v13367_v58  ;;  %11338 = vmatpush1.bf16.msra.mxu0 %v13364_v24  ;;  %3383 = vst [vmem:[#allocation2 + $0x300] sm:$0xcc] %v3336_v15  ;;  %3056 = vst [vmem:[#allocation2 + $0x300] sm:$0x33] %v3009_v57  ;;  %v3953_v21 = vrot.slane %v17076_v16, 4  ;;  %v3626_v4 = vrot.slane %v17078_v37, 4 }
 0x3c9   : > { %11339 = vmatprep.subr.bf16.mxu0 %v13372_v22  ;;  %11369 = vmatprep.mubr.bf16.mxu0 %v19092_v47 }
 0x3ca   : > { %7193 = vrot.lane.b32.xlu1 %v16996_v36, %s13581_s17  ;;  %6866 = vrot.lane.b32.xlu0 %v17000_v0, %s13580_s16  ;;  %v3988_v45 = vsel %vm693_vm0, %v3952_v62, %v3953_v21  ;;  %v3661_v52 = vsel %vm693_vm0, %v3625_v39, %v3626_v4 }
 0x3cb   : > { %v3989_v17 = vsel %vm3960_vm11, %v3925_v54, %v3988_v45  ;;  %v3662_v8 = vsel %vm3633_vm10, %v3598_v51, %v3661_v52  ;;  %v4578_v58 = vpop.permute.xlu1 %4577  ;;  %v4251_v9 = vpop.permute.xlu0 %4250 }
 0x3cc   : > { %11340 = vmatpush1.bf16.msra.mxu0 %v13370_v29  ;;  %v13373_v24 = vld [vmem:[#allocation2 + $0x2f8] ss:$164 sps:$4 sm:$0xff]   ;;  %4036 = vst [vmem:[#allocation2 + $0x3a4] sm:$0xcc] %v3989_v17  ;;  %3709 = vst [vmem:[#allocation2 + $0x3a4] sm:$0x33] %v3662_v8 }
 0x3cd   : > { %v13375_v63 = vld [vmem:[#allocation2 + $0x2fc] ss:$164 sps:$4 sm:$0xff]   ;;  %v4605_v34 = vrot.slane %v4578_v58, 4  ;;  %v4278_v22 = vrot.slane %v4251_v9, 4 }
 0x3ce   : > { %7846 = vrot.lane.b32.xlu1 %v16996_v36, %s13583_s20  ;;  %7519 = vrot.lane.b32.xlu0 %v17000_v0, %s13582_s18 }
 0x3cf   : > { %v4639_v54 = vsel %vm693_vm0, %v4604_v25, %v4605_v34  ;;  %v4312_v51 = vsel %vm693_vm0, %v4277_v44, %v4278_v22  ;;  %11300 = vmatprep.subr.bf16.mxu1 %v13375_v63  ;;  %v5231_v15 = vpop.permute.xlu1 %5230  ;;  %v4904_v57 = vpop.permute.xlu0 %4903 }
 0x3d0   : > { %v4640_v62 = vsel %vm4613_vm13, %v16747_v1, %v4639_v54  ;;  %v4313_v39 = vsel %vm4286_vm12, %v16749_v23, %v4312_v51  ;;  %11301 = vmatpush1.bf16.msra.mxu1 %v13373_v24  ;;  %v5258_v29 = vrot.slane %v5231_v15, 4  ;;  %v4931_v45 = vrot.slane %v4904_v57, 4 }
 0x3d1   : > { %4688 = vst [vmem:[#allocation2 + $0x440] sm:$0xcc] %v4640_v62  ;;  %4361 = vst [vmem:[#allocation2 + $0x440] sm:$0x33] %v4313_v39 }
 0x3d2   : > { %7195 = vrot.lane.b32.xlu1 %v17000_v0, %s13581_s17  ;;  %6868 = vrot.lane.b32.xlu0 %v17034_v20, %s13580_s16  ;;  %v5292_v1 = vsel %vm693_vm0, %v5257_v33, %v5258_v29  ;;  %v4965_v23 = vsel %vm693_vm0, %v4930_v59, %v4931_v45 }
 0x3d3   : > { %v5293_v25 = vsel %vm5266_vm15, %v16765_v42, %v5292_v1  ;;  %v4966_v44 = vsel %vm4939_vm14, %v16767_v35, %v4965_v23  ;;  %v17123_v52 = vpop.permute.xlu1 %4579  ;;  %v17125_v17 = vpop.permute.xlu0 %4252  ;;  %v13376_v8 = vld [vmem:[#allocation2 + $0x300] ss:$164 sps:$4 sm:$0xff]  }
 0x3d4   : > { %v13378_v24 = vld [vmem:[#allocation2 + $0x304] ss:$164 sps:$4 sm:$0xff]   ;;  %5341 = vst [vmem:[#allocation2 + $0x4e4] sm:$0xcc] %v5293_v25  ;;  %5014 = vst [vmem:[#allocation2 + $0x4e4] sm:$0x33] %v4966_v44 }
 0x3d5   : > { %v4606_v33 = vrot.slane %v17123_v52, 4  ;;  %v4279_v63 = vrot.slane %v17125_v17, 4  ;;  %11341 = vmatprep.subr.bf16.mxu0 %v13378_v24 }
 0x3d6   : > { %7848 = vrot.lane.b32.xlu1 %v17000_v0, %s13583_s20  ;;  %7521 = vrot.lane.b32.xlu0 %v17034_v20, %s13582_s18 }
 0x3d7   : > { %v4641_v42 = vsel %vm693_vm0, %v4605_v34, %v4606_v33  ;;  %v4314_v35 = vsel %vm693_vm0, %v4278_v22, %v4279_v63  ;;  %v17141_v51 = vpop.permute.xlu1 %5232  ;;  %v17143_v62 = vpop.permute.xlu0 %4905  ;;  %11342 = vmatpush1.bf16.msra.mxu0 %v13376_v8  ;;  %v17158_v22 = vld [vmem:[%s13639_s19 + $0x48] sm:$0xff] }
 0x3d8   : > { %v4642_v59 = vsel %vm4613_vm13, %v4578_v58, %v4641_v42  ;;  %v4315_v54 = vsel %vm4286_vm12, %v4251_v9, %v4314_v35  ;;  %v5259_v39 = vrot.slane %v17141_v51, 4  ;;  %v4932_v34 = vrot.slane %v17143_v62, 4 }
 0x3d9   : > { %4689 = vst [vmem:[#allocation2 + $0x448] sm:$0xcc] %v4642_v59  ;;  %4362 = vst [vmem:[#allocation2 + $0x448] sm:$0x33] %v4315_v54 }
 0x3da   : > { %8499 = vrot.lane.b32.xlu1 %v16996_v36, %s13585_s22  ;;  %8172 = vrot.lane.b32.xlu0 %v17000_v0, %s13584_s21  ;;  %v5294_v58 = vsel %vm693_vm0, %v5258_v29, %v5259_v39  ;;  %v4967_v9 = vsel %vm693_vm0, %v4931_v45, %v4932_v34  ;;  %v17175_v45 = vld [vmem:[%s13639_s19 + $0x4c] sm:$0xff] }
 0x3db   : > { %v5295_v1 = vsel %vm5266_vm15, %v5231_v15, %v5294_v58  ;;  %v4968_v23 = vsel %vm4939_vm14, %v4904_v57, %v4967_v9  ;;  %v5884_v25 = vpop.permute.xlu1 %5883  ;;  %v5557_v36 = vpop.permute.xlu0 %5556  ;;  %v13379_v44 = vld [vmem:[#allocation2 + $0x440] ss:$164 sps:$4 sm:$0xff]   ;;  %v2567_v15 = vcombine.low %v17158_v22, %v17158_v22 }
 0x3dc   : > { %v13381_v8 = vld [vmem:[#allocation2 + $0x444] ss:$164 sps:$4 sm:$0xff]   ;;  %5342 = vst [vmem:[#allocation2 + $0x4ec] sm:$0xcc] %v5295_v1  ;;  %5015 = vst [vmem:[#allocation2 + $0x4ec] sm:$0x33] %v4968_v23 }
 0x3dd   : > { %v5911_v24 = vrot.slane %v5884_v25, 4  ;;  %v5584_v42 = vrot.slane %v5557_v36, 4  ;;  %11302 = vmatprep.subr.bf16.mxu1 %v13381_v8 }
 0x3de   : > { %8174 = vrot.lane.b32.xlu1 %v17034_v20, %s13584_s21  ;;  %8825 = vrot.lane.b32.xlu0 %v17000_v0, %s13586_s23 }
 0x3df   : > { %v5945_v57 = vsel %vm693_vm0, %v5910_v13, %v5911_v24  ;;  %v5618_v29 = vsel %vm693_vm0, %v5583_v28, %v5584_v42  ;;  %v6537_v54 = vpop.permute.xlu1 %6536  ;;  %v6210_v58 = vpop.permute.xlu0 %6209  ;;  %11303 = vmatpush1.bf16.msra.mxu1 %v13379_v44  ;;  %v2581_v28 = vrot.slane %v17158_v22, %v13634_v5 }
 0x3e0   : > { %v5946_v35 = vsel %vm5919_vm2, %v16824_v43, %v5945_v57  ;;  %v5619_v59 = vsel %vm5592_vm1, %v16826_v30, %v5618_v29  ;;  %v6564_v9 = vrot.slane %v6537_v54, 4  ;;  %v6237_v13 = vrot.slane %v6210_v58, 4 }
 0x3e1   : > { %5994 = vst [vmem:[#allocation2 + $0x588] sm:$0xcc] %v5946_v35  ;;  %5667 = vst [vmem:[#allocation2 + $0x588] sm:$0x33] %v5619_v59  ;;  %v2574_v43 = vrot.slane %v2567_v15, %v13634_v5  ;;  %v3220_v30 = vcombine.low %v17175_v45, %v17175_v45 }
 0x3e2   : > { %8827 = vrot.lane.b32.xlu1 %v17034_v20, %s13586_s23  ;;  %8501 = vrot.lane.b32.xlu0 %v17000_v0, %s13585_s22  ;;  %v6598_v1 = vsel %vm693_vm0, %v6563_v18, %v6564_v9  ;;  %v6271_v23 = vsel %vm693_vm0, %v6236_v26, %v6237_v13 }
 0x3e3   : > { %v6599_v20 = vsel %vm19286_vm3, %v16843_v7, %v6598_v1  ;;  %v6272_v0 = vsel %vm19287_vm4, %v16845_v38, %v6271_v23  ;;  %v17200_v44 = vpop.permute.xlu1 %5885  ;;  %v17202_v8 = vpop.permute.xlu0 %5558  ;;  %v13383_v15 = vld [vmem:[#allocation2 + $0x448] ss:$164 sps:$4 sm:$0xff]   ;;  %v17209_v7 = vrot.slane %v3220_v30, %v13634_v5 }
 0x3e4   : > { %v13385_v57 = vld [vmem:[#allocation2 + $0x44c] ss:$164 sps:$4 sm:$0xff]   ;;  %6647 = vst [vmem:[#allocation2 + $0x62c] sm:$0xcc] %v6599_v20  ;;  %6320 = vst [vmem:[#allocation2 + $0x62c] sm:$0x33] %v6272_v0 }
 0x3e5   : > { %v5912_v18 = vrot.slane %v17200_v44, 4  ;;  %v5585_v29 = vrot.slane %v17202_v8, 4  ;;  %11343 = vmatprep.subr.bf16.mxu0 %v13385_v57 }
 0x3e6   : > { %2628 = vrot.lane.b32.xlu1 %v2581_v28, %s13567_s26  ;;  %2626 = vrot.lane.b32.xlu0 %v2574_v43, %s13567_s26 }
 0x3e7   : > { %v5947_v38 = vsel %vm693_vm0, %v5911_v24, %v5912_v18  ;;  %v5620_v26 = vsel %vm693_vm0, %v5584_v42, %v5585_v29  ;;  %v17219_v1 = vpop.permute.xlu1 %6538  ;;  %v17221_v23 = vpop.permute.xlu0 %6211  ;;  %11344 = vmatpush1.bf16.msra.mxu0 %v13383_v15 }
 0x3e8   : > { %v5948_v35 = vsel %vm5919_vm2, %v5884_v25, %v5947_v38  ;;  %v5621_v59 = vsel %vm5592_vm1, %v5557_v36, %v5620_v26  ;;  %v19110_v43 = vrot.slane %v17219_v1, 4  ;;  %v19108_v24 = vrot.slane %v17221_v23, 4 }
 0x3e9   : > { %5995 = vst [vmem:[#allocation2 + $0x590] sm:$0xcc] %v5948_v35  ;;  %5668 = vst [vmem:[#allocation2 + $0x590] sm:$0x33] %v5621_v59  ;;  %v17230_v25 = vrot.slane %v17175_v45, %v13634_v5  ;;  %v2894_v36 = vcombine.high %v17158_v22, %v17158_v22 }
 0x3ea   : > { %3279 = vrot.lane.b32.xlu1 %v17209_v7, %s13569_s28  ;;  %2952 = vrot.lane.b32.xlu0 %v2581_v28, %s13568_s27  ;;  %v6600_v42 = vsel %vm693_vm0, %v6564_v9, %v19110_v43  ;;  %v6273_v30 = vsel %vm693_vm0, %v6237_v13, %v19108_v24 }
 0x3eb   : > { %v6601_v20 = vsel %vm19286_vm3, %v6537_v54, %v6600_v42  ;;  %v6274_v0 = vsel %vm19287_vm4, %v6210_v58, %v6273_v30  ;;  %v7190_v28 = vpop.permute.xlu1 %7189  ;;  %v6863_v15 = vpop.permute.xlu0 %6862  ;;  %v13387_v57 = vld [vmem:[#allocation2 + $0x588] ss:$164 sps:$4 sm:$0xff]   ;;  %v2908_v9 = vrot.slane %v2894_v36, %v13634_v5  ;;  %v3547_v54 = vcombine.high %v17175_v45, %v17175_v45 }
 0x3ec   : > { %v13389_v38 = vld [vmem:[#allocation2 + $0x58c] ss:$164 sps:$4 sm:$0xff]   ;;  %6648 = vst [vmem:[#allocation2 + $0x634] sm:$0xcc] %v6601_v20  ;;  %6321 = vst [vmem:[#allocation2 + $0x634] sm:$0x33] %v6274_v0 }
 0x3ed   : > { %v7217_v26 = vrot.slane %v7190_v28, 4  ;;  %v6890_v22 = vrot.slane %v6863_v15, 4  ;;  %11304 = vmatprep.subr.bf16.mxu1 %v13389_v38  ;;  %vm19288_vm3 = vcmask 834560   ;;  %vm19289_vm4 = vcmask 965632  }
 0x3ee   : > { %3932 = vrot.lane.b32.xlu1 %v17209_v7, %s13571_s30  ;;  %3605 = vrot.lane.b32.xlu0 %v17230_v25, %s13570_s29 }
 0x3ef   : > { %v7251_v58 = vsel %vm693_vm0, %v7216_v11, %v7217_v26  ;;  %v6924_v13 = vsel %vm693_vm0, %v6889_v49, %v6890_v22  ;;  %v7843_v42 = vpop.permute.xlu1 %7842  ;;  %v7516_v36 = vpop.permute.xlu0 %7515  ;;  %11305 = vmatpush1.bf16.msra.mxu1 %v13387_v57  ;;  %v17263_v11 = vrot.slane %v3547_v54, %v13634_v5 }
 0x3f0   : > { %v7252_v35 = vsel %vm19288_vm3, %v16899_v14, %v7251_v58  ;;  %v6925_v59 = vsel %vm19289_vm4, %v16901_v61, %v6924_v13  ;;  %v7870_v45 = vrot.slane %v7843_v42, 4  ;;  %v7543_v30 = vrot.slane %v7516_v36, 4 }
 0x3f1   : > { %7300 = vst [vmem:[#allocation2 + $0x6d0] sm:$0xcc] %v7252_v35  ;;  %6973 = vst [vmem:[#allocation2 + $0x6d0] sm:$0x33] %v6925_v59  ;;  %vm19290_vm3 = vcmask 818176   ;;  %vm19291_vm4 = vcmask 826368  }
 0x3f2   : > { %3281 = vrot.lane.b32.xlu1 %v17230_v25, %s13569_s28  ;;  %2954 = vrot.lane.b32.xlu0 %v2908_v9, %s13568_s27  ;;  %v7904_v14 = vsel %vm693_vm0, %v7869_v27, %v7870_v45  ;;  %v7577_v61 = vsel %vm693_vm0, %v7542_v32, %v7543_v30 }
 0x3f3   : > { %v7905_v49 = vsel %vm19290_vm3, %v16917_v10, %v7904_v14  ;;  %v7578_v20 = vsel %vm19291_vm4, %v16919_v31, %v7577_v61  ;;  %v17275_v0 = vpop.permute.xlu1 %7191  ;;  %v17277_v57 = vpop.permute.xlu0 %6864  ;;  %v13392_v38 = vld [vmem:[#allocation2 + $0x590] ss:$164 sps:$4 sm:$0xff]   ;;  %vm19292_vm3 = vcmask 834560   ;;  %vm19293_vm4 = vcmask 965632  }
 0x3f4   : > { %v13394_v9 = vld [vmem:[#allocation2 + $0x594] ss:$164 sps:$4 sm:$0xff]   ;;  %7953 = vst [vmem:[#allocation2 + $0x774] sm:$0xcc] %v7905_v49  ;;  %7626 = vst [vmem:[#allocation2 + $0x774] sm:$0x33] %v7578_v20 }
 0x3f5   : > { %v19105_v27 = vrot.slane %v17275_v0, 4  ;;  %v19104_v54 = vrot.slane %v17277_v57, 4  ;;  %11345 = vmatprep.subr.bf16.mxu0 %v13394_v9 }
 0x3f6   : > { %3934 = vrot.lane.b32.xlu1 %v17230_v25, %s13571_s30  ;;  %3607 = vrot.lane.b32.xlu0 %v17263_v11, %s13570_s29 }
 0x3f7   : > { %v7253_v10 = vsel %vm693_vm0, %v7217_v26, %v19105_v27  ;;  %v6926_v31 = vsel %vm693_vm0, %v6890_v22, %v19104_v54  ;;  %v17293_v13 = vpop.permute.xlu1 %7844  ;;  %v17295_v35 = vpop.permute.xlu0 %7517  ;;  %11346 = vmatpush1.bf16.msra.mxu0 %v13392_v38 }
 0x3f8   : > { %v7254_v32 = vsel %vm19292_vm3, %v7190_v28, %v7253_v10  ;;  %v6927_v58 = vsel %vm19293_vm4, %v6863_v15, %v6926_v31  ;;  %v19103_v59 = vrot.slane %v17293_v13, 4  ;;  %v19102_v26 = vrot.slane %v17295_v35, 4 }
 0x3f9   : > { %7301 = vst [vmem:[#allocation2 + $0x6d8] sm:$0xcc] %v7254_v32  ;;  %6974 = vst [vmem:[#allocation2 + $0x6d8] sm:$0x33] %v6927_v58  ;;  %vm19294_vm3 = vcmask 818176   ;;  %vm19295_vm4 = vcmask 826368  }
 0x3fa   : > { %4585 = vrot.lane.b32.xlu1 %v17209_v7, %s13573_s5  ;;  %4258 = vrot.lane.b32.xlu0 %v17230_v25, %s13572_s4  ;;  %v7906_v28 = vsel %vm693_vm0, %v7870_v45, %v19103_v59  ;;  %v7579_v15 = vsel %vm693_vm0, %v7543_v30, %v19102_v26 }
 0x3fb   : > { %v7907_v22 = vsel %vm19294_vm3, %v7843_v42, %v7906_v28  ;;  %v7580_v14 = vsel %vm19295_vm4, %v7516_v36, %v7579_v15  ;;  %v8496_v61 = vpop.permute.xlu1 %8495  ;;  %v8169_v49 = vpop.permute.xlu0 %8168  ;;  %v13395_v20 = vld [vmem:[#allocation2 + $0x6d0] ss:$164 sps:$4 sm:$0xff]   ;;  %vm19296_vm3 = vcmask 687104  }
 0x3fc   : > { %v13397_v38 = vld [vmem:[#allocation2 + $0x6d4] ss:$164 sps:$4 sm:$0xff]   ;;  %7954 = vst [vmem:[#allocation2 + $0x77c] sm:$0xcc] %v7907_v22  ;;  %7627 = vst [vmem:[#allocation2 + $0x77c] sm:$0x33] %v7580_v14 }
 0x3fd   : > { %v8523_v9 = vrot.slane %v8496_v61, 4  ;;  %v8196_v10 = vrot.slane %v8169_v49, 4  ;;  %11306 = vmatprep.subr.bf16.mxu1 %v13397_v38  ;;  %vm19297_vm4 = vmmov %vm19296_vm3 }
 0x3fe   : > { %5238 = vrot.lane.b32.xlu1 %v17209_v7, %s13575_s7  ;;  %4911 = vrot.lane.b32.xlu0 %v17230_v25, %s13574_s6 }
 0x3ff   : > { %v8557_v42 = vsel %vm693_vm0, %v8522_v40, %v8523_v9  ;;  %v8230_v36 = vsel %vm693_vm0, %v8195_v19, %v8196_v10  ;;  %v17325_v31 = vpop.permute.xlu1 %8170  ;;  %v8822_v32 = vpop.permute.xlu0 %8821  ;;  %11307 = vmatpush1.bf16.msra.mxu1 %v13395_v20 }
 0x400   : > { %v8558_v45 = vsel %vm8531_vm7, %v16970_v55, %v8557_v42  ;;  %v8231_v30 = vsel %vm19296_vm3, %v16949_v2, %v8230_v36  ;;  %v19100_v40 = vrot.slane %v17325_v31, 4  ;;  %v8849_v58 = vrot.slane %v8822_v32, 4  ;;  %v17339_v55 = vld [vmem:[%s13639_s19 + $0x52] sm:$0xff] }
 0x401   : > { %8606 = vst [vmem:[#allocation2 + $0x818] sm:$0xcc] %v8558_v45  ;;  %8279 = vst [vmem:[#allocation2 + $0x818] sm:$0x33] %v8231_v30  ;;  %vm19298_vm3 = vcmask 670720  }
 0x402   : > { %4587 = vrot.lane.b32.xlu1 %v17230_v25, %s13573_s5  ;;  %4260 = vrot.lane.b32.xlu0 %v17263_v11, %s13572_s4  ;;  %v8232_v19 = vsel %vm693_vm0, %v8196_v10, %v19100_v40  ;;  %v8883_v2 = vsel %vm693_vm0, %v8848_v53, %v8849_v58 }
 0x403   : > { %v8233_v28 = vsel %vm19297_vm4, %v8169_v49, %v8232_v19  ;;  %v8884_v15 = vsel %vm19298_vm3, %v16968_v60, %v8883_v2  ;;  %v17344_v22 = vpop.permute.xlu1 %8823  ;;  %v17346_v14 = vpop.permute.xlu0 %8497  ;;  %v13398_v20 = vld [vmem:[#allocation2 + $0x6d8] ss:$164 sps:$4 sm:$0xff]   ;;  %v6485_v60 = vcombine.low %v17339_v55, %v17339_v55  ;;  %vm19299_vm4 = vmmov %vm19298_vm3  ;;  %vm19300_vm3 = vcmask 744448  }
 0x404   : > { %v13400_v38 = vld [vmem:[#allocation2 + $0x6dc] ss:$164 sps:$4 sm:$0xff]   ;;  %8280 = vst [vmem:[#allocation2 + $0x820] sm:$0x33] %v8233_v28  ;;  %8932 = vst [vmem:[#allocation2 + $0x8bc] sm:$0x33] %v8884_v15 }
 0x405   : > { %v19099_v10 = vrot.slane %v17344_v22, 4  ;;  %v19101_v42 = vrot.slane %v17346_v14, 4  ;;  %11347 = vmatprep.subr.bf16.mxu0 %v13400_v38 }
 0x406   : > { %5240 = vrot.lane.b32.xlu1 %v17230_v25, %s13575_s7  ;;  %4913 = vrot.lane.b32.xlu0 %v17263_v11, %s13574_s6 }
 0x407   : > { %v8885_v53 = vsel %vm693_vm0, %v8849_v58, %v19099_v10  ;;  %v8559_v49 = vsel %vm693_vm0, %v8523_v9, %v19101_v42  ;;  %v17364_v30 = vpop.permute.xlu1 %2624  ;;  %v2623_v19 = vpop.permute.xlu0 %2622  ;;  %11348 = vmatpush1.bf16.msra.mxu0 %v13398_v20  ;;  %v17372_v9 = vrot.slane %v6485_v60, %v13634_v5 }
 0x408   : > { %v8886_v36 = vsel %vm19299_vm4, %v8822_v32, %v8885_v53  ;;  %v8560_v45 = vsel %vm8531_vm7, %v8496_v61, %v8559_v49  ;;  %v19098_v2 = vrot.slane %v17364_v30, 4  ;;  %v2648_v28 = vrot.slane %v2623_v19, 4  ;;  %vm19301_vm4 = vmmov %vm19300_vm3 }
 0x409   : > { %8933 = vst [vmem:[#allocation2 + $0x8c4] sm:$0x33] %v8886_v36  ;;  %8607 = vst [vmem:[#allocation2 + $0x820] sm:$0xcc] %v8560_v45  ;;  %v17376_v61 = vrot.slane %v17339_v55, %v13634_v5 }
 0x40a   : > { %5891 = vrot.lane.b32.xlu1 %v17209_v7, %s13577_s9  ;;  %5564 = vrot.lane.b32.xlu0 %v17230_v25, %s13576_s8  ;;  %v2684_v32 = vsel %vm693_vm0, %v2647_v41, %v2648_v28  ;;  %v2686_v58 = vsel %vm693_vm0, %v2648_v28, %v19098_v2  ;;  %v6159_v41 = vcombine.high %v17339_v55, %v17339_v55  ;;  %v13407_v28 = vld [vmem:[#allocation2 + $0x7c] ss:$164 sps:$4 sm:$0xff]  }
 0x40b   : > { %v2685_v7 = vsel %vm19300_vm3, %v16988_v12, %v2684_v32  ;;  %v2687_v15 = vsel %vm19301_vm4, %v2623_v19, %v2686_v58  ;;  %v3276_v20 = vpop.permute.xlu1 %3275  ;;  %v2949_v38 = vpop.permute.xlu0 %2948  ;;  %v13402_v60 = vld [vmem:[#allocation2 + $0x81c] ss:$164 sps:$4 sm:$0x3f]   ;;  %vm19314_vm3 = vcmask 973824   ;;  %vm19315_vm4 = vcmask 982016  }
 0x40c   : > { %2731 = vst [vmem:[#allocation2 + $0x264] sm:$0xcc] %v2685_v7  ;;  %2732 = vst [vmem:[#allocation2 + $0x26c] sm:$0xcc] %v2687_v15  ;;  %v3301_v53 = vrot.slane %v3276_v20, 4  ;;  %v2974_v49 = vrot.slane %v2949_v38, 4  ;;  %12914 = vmatprep.subr.msk.bf16.mxu1 %vm10639_vm6, %v13402_v60 }
 0x40d   : > { %v13404_v36 = vld [vmem:[#allocation2 + $0x818] ss:$164 sps:$4 sm:$0x3f]  }
 0x40e   : > { %6544 = vrot.lane.b32.xlu1 %v17372_v9, %s13579_s11  ;;  %6217 = vrot.lane.b32.xlu0 %v17376_v61, %s13578_s10  ;;  %v3337_v12 = vsel %vm693_vm0, %v3300_v6, %v3301_v53  ;;  %v3010_v45 = vsel %vm693_vm0, %v2973_v46, %v2974_v49  ;;  %v10719_v19 = vsel %vm10639_vm6, %v13404_v36, 0  ;;  %v13405_v36 = vld [vmem:[#allocation2 + $0x78] ss:$164 sps:$4 sm:$0xff]  }
 0x40f   : > { %v3338_v32 = vsel %vm3307_vm9, %v17055_v48, %v3337_v12  ;;  %v3011_v58 = vsel %vm2980_vm8, %v17057_v50, %v3010_v45  ;;  %v17405_v55 = vpop.permute.xlu1 %3928  ;;  %v17407_v7 = vpop.permute.xlu0 %3601  ;;  %11309 = vmatpush1.bf16.msra.mxu1 %v10719_v19  ;;  %v17416_v48 = vrot.slane %v6159_v41, %v13634_v5  ;;  %v13413_v45 = vld [vmem:[#allocation2 + $0x84] ss:$164 sps:$4 sm:$0xff]  }
 0x410   : > { %v13408_v6 = vld [vmem:[#allocation2 + $0x824] ss:$164 sps:$4 sm:$0x3f]   ;;  %3384 = vst [vmem:[#allocation2 + $0x308] sm:$0xcc] %v3338_v32  ;;  %v3954_v46 = vrot.slane %v17405_v55, 4  ;;  %11378 = vmatprep.subr.bf16.mxu1 %v13407_v28 }
 0x411   : > { %3057 = vst [vmem:[#allocation2 + $0x308] sm:$0x33] %v3011_v58  ;;  %v3627_v15 = vrot.slane %v17407_v7, 4  ;;  %v13410_v60 = vld [vmem:[#allocation2 + $0x820] ss:$164 sps:$4 sm:$0x3f]   ;;  %12916 = vmatprep.subr.msk.bf16.mxu0 %vm10639_vm6, %v13408_v6 }
 0x412   : > { %5893 = vrot.lane.b32.xlu1 %v17230_v25, %s13577_s9  ;;  %5566 = vrot.lane.b32.xlu0 %v17263_v11, %s13576_s8  ;;  %v3990_v50 = vsel %vm693_vm0, %v3953_v21, %v3954_v46  ;;  %v10725_v25 = vsel %vm10639_vm6, %v13410_v60, 0 }
 0x413   : > { %v3663_v12 = vsel %vm693_vm0, %v3626_v4, %v3627_v15  ;;  %12915 = vmatmul.mubr.msk.bf16.vlgmr.msra.gmra.mrb[24].mxu1 %vm2001_vm5, %v17046_v56  ;;  %v3991_v11 = vsel %vm3960_vm11, %v17076_v16, %v3990_v50  ;;  %v17432_v19 = vpop.permute.xlu1 %3277  ;;  %v17434_v21 = vpop.permute.xlu0 %2950  ;;  %11350 = vmatpush1.bf16.msra.mxu0 %v10725_v25  ;;  %v13414_v4 = vld [vmem:[#allocation2 + $0x1c0] ss:$164 sps:$4 sm:$0xff]   ;;  %v13419_v60 = vld [vmem:[#allocation2 + $0x1cc] ss:$164 sps:$4 sm:$0xff]  }
 0x414   : > { %v3664_v41 = vsel %vm3633_vm10, %v17078_v37, %v3663_v12  ;;  %11379 = vmatpush1.bf16.msra.mxu1 %v13405_v36  ;;  %v13416_v28 = vld [vmem:[#allocation2 + $0x1c4] ss:$164 sps:$4 sm:$0xff]   ;;  %4037 = vst [vmem:[#allocation2 + $0x3ac] sm:$0xcc] %v3991_v11  ;;  %v19097_v32 = vrot.slane %v17432_v19, 4  ;;  %v19096_v58 = vrot.slane %v17434_v21, 4  ;;  %11419 = vmatprep.subr.bf16.mxu0 %v13413_v45 }
 0x415   : > { %3710 = vst [vmem:[#allocation2 + $0x3ac] sm:$0x33] %v3664_v41  ;;  %11410 = vmatprep.mubr.bf16.mxu1 %v19092_v47  ;;  %v13411_v16 = vld [vmem:[#allocation2 + $0x80] ss:$164 sps:$4 sm:$0xff]   ;;  %11380 = vmatprep.subr.bf16.mxu1 %v13416_v28  ;;  %v17474_v41 = vsub.s32 0, %v13630_v3 }
 0x416   : > { %6546 = vrot.lane.b32.xlu1 %v17376_v61, %s13579_s11  ;;  %6219 = vrot.lane.b32.xlu0 %v17416_v48, %s13578_s10  ;;  %v3339_v37 = vsel %vm693_vm0, %v3301_v53, %v19097_v32  ;;  %v3012_v6 = vsel %vm693_vm0, %v2974_v49, %v19096_v58 }
 0x417   : > { %12917 = vmatmul.mubr.msk.bf16.vlgmr.msra.gmra.mrb[28].mxu0 %vm2001_vm5, %v17046_v56  ;;  %v3340_v36 = vsel %vm3307_vm9, %v3276_v20, %v3339_v37  ;;  %v3013_v50 = vsel %vm2980_vm8, %v2949_v38, %v3012_v6  ;;  %v17453_v12 = vpop.permute.xlu1 %3930  ;;  %v17455_v25 = vpop.permute.xlu0 %3603  ;;  %v13417_v56 = vld [vmem:[#allocation2 + $0x1c8] ss:$164 sps:$4 sm:$0xff]   ;;  %v212_v20 = vld [vmem:[%s19079_s2] sm:$0xff] }
 0x418   : > { %11381 = vmatpush1.bf16.msra.mxu1 %v13414_v4  ;;  %11420 = vmatpush1.bf16.msra.mxu0 %v13411_v16  ;;  %3385 = vst [vmem:[#allocation2 + $0x310] sm:$0xcc] %v3340_v36  ;;  %3058 = vst [vmem:[#allocation2 + $0x310] sm:$0x33] %v3013_v50  ;;  %v19095_v53 = vrot.slane %v17453_v12, 4  ;;  %v19094_v49 = vrot.slane %v17455_v25, 4  ;;  %v218_v11 = vunpack.c.l.bf16 %v212_v20 }
 0x419   : > { %11421 = vmatprep.subr.bf16.mxu0 %v13419_v60  ;;  %11451 = vmatprep.mubr.bf16.mxu0 %v19092_v47  ;;  %v17485_v60 = vsub.s32 2, %v13630_v3  ;;  %v17493_v50 = vsub.s32 4, %v13630_v3 }
 0x41a   : > { %7197 = vrot.lane.b32.xlu1 %v17372_v9, %s13581_s17  ;;  %6870 = vrot.lane.b32.xlu0 %v17376_v61, %s13580_s16  ;;  %v3992_v38 = vsel %vm693_vm0, %v3954_v46, %v19095_v53  ;;  %v3665_v45 = vsel %vm693_vm0, %v3627_v15, %v19094_v49 }
 0x41b   : > { %v3993_v4 = vsel %vm3960_vm11, %v17405_v55, %v3992_v38  ;;  %v3666_v28 = vsel %vm3633_vm10, %v17407_v7, %v3665_v45  ;;  %v17480_v16 = vpop.permute.xlu1 %4581  ;;  %v17482_v37 = vpop.permute.xlu0 %4254  ;;  %v11719_v7 = vrot.slane %v218_v11, %v17474_v41  ;;  %v11723_v38 = vrot.slane %v218_v11, %v17485_v60 }
 0x41c   : > { %11422 = vmatpush1.bf16.msra.mxu0 %v13417_v56  ;;  %v13420_v46 = vld [vmem:[#allocation2 + $0x308] ss:$164 sps:$4 sm:$0xff]   ;;  %4038 = vst [vmem:[#allocation2 + $0x3b4] sm:$0xcc] %v3993_v4  ;;  %3711 = vst [vmem:[#allocation2 + $0x3b4] sm:$0x33] %v3666_v28  ;;  %v11727_v49 = vrot.slane %v218_v11, %v17493_v50 }
 0x41d   : > { %v13422_v6 = vld [vmem:[#allocation2 + $0x30c] ss:$164 sps:$4 sm:$0xff]   ;;  %v4607_v15 = vrot.slane %v17480_v16, 4  ;;  %v4280_v36 = vrot.slane %v17482_v37, 4  ;;  %v17489_v55 = vpop.f32.mrb[0].mxu0  ;;  %v17509_v28 = vrot.slane %v11719_v7, %v17474_v41 }
 0x41e   : > { %7850 = vrot.lane.b32.xlu1 %v17372_v9, %s13583_s20  ;;  %7523 = vrot.lane.b32.xlu0 %v17376_v61, %s13582_s18  ;;  %v17499_v56 = vpop.f32.mrb[1].mxu0 }
 0x41f   : > { %v4643_v45 = vsel %vm693_vm0, %v4606_v33, %v4607_v15  ;;  %v4316_v4 = vsel %vm693_vm0, %v4279_v63, %v4280_v36  ;;  %11382 = vmatprep.subr.bf16.mxu1 %v13422_v6  ;;  %v10801_v47 = vpop.f32.mrb[2].mxu0  ;;  %v17516_v32 = vpop.permute.xlu1 %5234  ;;  %v17521_v63 = vrot.slane %v11723_v38, %v17474_v41  ;;  %v17524_v6 = vsub.s32 6, %v13630_v3 }
 0x420   : > { %v4644_v53 = vsel %vm4613_vm13, %v17123_v52, %v4643_v45  ;;  %v4317_v58 = vsel %vm4286_vm12, %v17125_v17, %v4316_v4  ;;  %v17518_v33 = vpop.permute.xlu0 %4907  ;;  %11383 = vmatpush1.bf16.msra.mxu1 %v13420_v46  ;;  %v5260_v47 = vrot.slane %v17516_v32, 4  ;;  %v12085_v17 = vmul.f32 %v17509_v28, %v17489_v55  ;;  %v10802_v7 = vpop.f32.mrb[3].mxu0 }
 0x421   : > { %4690 = vst [vmem:[#allocation2 + $0x450] sm:$0xcc] %v4644_v53  ;;  %4363 = vst [vmem:[#allocation2 + $0x450] sm:$0x33] %v4317_v58  ;;  %v4933_v52 = vrot.slane %v17518_v33, 4  ;;  %v17531_v45 = vrot.slane %v11727_v49, %v17474_v41  ;;  %v12086_v3 = vmul.f32 %v17521_v63, %v17499_v56  ;;  %v17539_v58 = vpop.f32.mrb[0].mxu1  ;;  %v11731_v53 = vrot.slane %v218_v11, %v17524_v6 }
 0x422   : > { %7199 = vrot.lane.b32.xlu1 %v17376_v61, %s13581_s17  ;;  %6872 = vrot.lane.b32.xlu0 %v17416_v48, %s13580_s16  ;;  %v219_v46 = vunpack.c.h.bf16 %v212_v20  ;;  %v5296_v49 = vsel %vm693_vm0, %v5259_v39, %v5260_v47 }
 0x423   : > { %v4969_v38 = vsel %vm693_vm0, %v4932_v34, %v4933_v52  ;;  %v12087_v4 = vmul.f32 %v17531_v45, %v17539_v58  ;;  %v5297_v7 = vsel %vm5266_vm15, %v17141_v51, %v5296_v49  ;;  %v17558_v11 = vpop.permute.xlu1 %4583  ;;  %v13423_v39 = vld [vmem:[#allocation2 + $0x310] ss:$164 sps:$4 sm:$0xff]   ;;  %v12126_v40 = vadd.f32 %v12086_v3, %v12085_v17  ;;  %v17567_v51 = vpop.f32.mrb[1].mxu1 }
 0x424   : > { %v4970_v20 = vsel %vm4939_vm14, %v17143_v62, %v4969_v38  ;;  %v17560_v2 = vpop.permute.xlu0 %4256  ;;  %v13425_v10 = vld [vmem:[#allocation2 + $0x314] ss:$164 sps:$4 sm:$0xff]   ;;  %v17563_v42 = vrot.slane %v11731_v53, %v17474_v41  ;;  %5343 = vst [vmem:[#allocation2 + $0x4f4] sm:$0xcc] %v5297_v7  ;;  %v19107_v34 = vrot.slane %v17558_v11, 4  ;;  %v11735_v62 = vrot.slane %v219_v46, %v17474_v41  ;;  %v17577_v53 = vpop.f32.mrb[4].mxu0 }
 0x425   : > { %5016 = vst [vmem:[#allocation2 + $0x4f4] sm:$0x33] %v4970_v20  ;;  %v19106_v26 = vrot.slane %v17560_v2, 4  ;;  %v11739_v49 = vrot.slane %v219_v46, %v17485_v60  ;;  %v12127_v17 = vadd.f32 %v12126_v40, %v12087_v4  ;;  %v10842_v38 = vpop.f32.mrb[2].mxu1  ;;  %11423 = vmatprep.subr.bf16.mxu0 %v13425_v10  ;;  %v11743_v10 = vrot.slane %v219_v46, %v17493_v50 }
 0x426   : > { %7852 = vrot.lane.b32.xlu1 %v17376_v61, %s13583_s20  ;;  %7525 = vrot.lane.b32.xlu0 %v17416_v48, %s13582_s18  ;;  %v12088_v3 = vmul.f32 %v17563_v42, %v17567_v51  ;;  %v4645_v7 = vsel %vm693_vm0, %v4607_v15, %v19107_v34  ;;  %v17586_v59 = vrot.slane %v11735_v62, %v17474_v41  ;;  %v10843_v4 = vpop.f32.mrb[3].mxu1  ;;  %v17603_v62 = vld [vmem:[%s19079_s2 + $0x8] sm:$0xff] }
 0x427   : > { %v4318_v20 = vsel %vm693_vm0, %v4280_v36, %v19106_v26  ;;  %v17589_v40 = vrot.slane %v11739_v49, %v17474_v41  ;;  %v4646_v54 = vsel %vm4613_vm13, %v17480_v16, %v4645_v7  ;;  %v17595_v27 = vpop.permute.xlu1 %5236  ;;  %11424 = vmatpush1.bf16.msra.mxu0 %v13423_v39  ;;  %v17609_v7 = vpop.f32.mrb[5].mxu0  ;;  %v11747_v39 = vrot.slane %v219_v46, %v17524_v6 }
 0x428   : > { %v4319_v38 = vsel %vm4286_vm12, %v17482_v37, %v4318_v20  ;;  %v17597_v15 = vpop.permute.xlu0 %4909  ;;  %v12128_v36 = vadd.f32 %v12127_v17, %v12088_v3  ;;  %4691 = vst [vmem:[#allocation2 + $0x458] sm:$0xcc] %v4646_v54  ;;  %v19109_v16 = vrot.slane %v17595_v27, 4  ;;  %v12089_v37 = vmul.f32 %v17586_v59, %v17577_v53  ;;  %v17618_v17 = vpop.f32.mrb[4].mxu1 }
 0x429   : > { %19302 = vst [vmem:[#allocation3_spill] sm:$0xff] %v17589_v40  ;;  %4364 = vst [vmem:[#allocation2 + $0x458] sm:$0x33] %v4319_v38  ;;  %v19111_v49 = vrot.slane %v17597_v15, 4  ;;  %v12090_v54 = vmul.f32 %v17589_v40, %v17609_v7  ;;  %v17621_v3 = vrot.slane %v11743_v10, %v17474_v41  ;;  %v10883_v20 = vpop.f32.mrb[6].mxu0  ;;  %v17624_v4 = vunpack.c.l.bf16 %v17603_v62 }
 0x42a   : > { %8503 = vrot.lane.b32.xlu1 %v17372_v9, %s13585_s22  ;;  %8176 = vrot.lane.b32.xlu0 %v17376_v61, %s13584_s21  ;;  %v5298_v9 = vsel %vm693_vm0, %v5260_v47, %v19109_v16  ;;  %v12129_v38 = vadd.f32 %v12128_v36, %v12089_v37  ;;  %v17637_v10 = vrot.slane %v11747_v39, %v17474_v41  ;;  %v10884_v20 = vpop.f32.mrb[7].mxu0  ;;  %v17653_v39 = vpop.f32.mrb[5].mxu1 }
 0x42b   : > { %19303 = vst [vmem:[#allocation4_spill] sm:$0xff] %v17621_v3  ;;  %v4971_v46 = vsel %vm693_vm0, %v4933_v52, %v19111_v49  ;;  %v5299_v26 = vsel %vm5266_vm15, %v17516_v32, %v5298_v9  ;;  %v17643_v24 = vpop.permute.xlu1 %5887  ;;  %v12091_v52 = vmul.f32 %v17621_v3, %v17618_v17  ;;  %v11751_v36 = vrot.slane %v17624_v4, %v17474_v41 }
 0x42c   : > { %19304 = vst [vmem:[#allocation5_spill] sm:$0xff] %v17637_v10  ;;  %v4972_v34 = vsel %vm4939_vm14, %v17518_v33, %v4971_v46  ;;  %v17645_v47 = vpop.permute.xlu0 %5560  ;;  %v13426_v16 = vld [vmem:[#allocation2 + $0x450] ss:$164 sps:$4 sm:$0xff]   ;;  %5344 = vst [vmem:[#allocation2 + $0x4fc] sm:$0xcc] %v5299_v26  ;;  %v19115_v32 = vrot.slane %v17643_v24, 4  ;;  %v12130_v33 = vadd.f32 %v12129_v38, %v12090_v54  ;;  %v11755_v9 = vrot.slane %v17624_v4, %v17485_v60 }
 0x42d   : > { %v13428_v43 = vld [vmem:[#allocation2 + $0x454] ss:$164 sps:$4 sm:$0xff]   ;;  %5017 = vst [vmem:[#allocation2 + $0x4fc] sm:$0x33] %v4972_v34  ;;  %v19116_v37 = vrot.slane %v17645_v47, 4  ;;  %v12092_v26 = vmul.f32 %v17637_v10, %v17653_v39  ;;  %v17664_v34 = vpop.f32.mrb[8].mxu0  ;;  %v17667_v20 = vrot.slane %v11751_v36, %v17474_v41 }
 0x42e   : > { %8178 = vrot.lane.b32.xlu1 %v17416_v48, %s13584_s21  ;;  %8829 = vrot.lane.b32.xlu0 %v17376_v61, %s13586_s23  ;;  %v13429_v46 = vld [vmem:[%s13639_s19 + $0x50] ss:$0 sps:$4 sm:$0xff]   ;;  %19305 = vst [vmem:[#allocation6_spill] sm:$0xff] %v17664_v34  ;;  %v10924_v54 = vpop.f32.mrb[6].mxu1  ;;  %v5949_v38 = vsel %vm693_vm0, %v5912_v18, %v19115_v32  ;;  %v12131_v10 = vadd.f32 %v12130_v33, %v12091_v52  ;;  %v17697_v33 = vpop.f32.mrb[9].mxu0 }
 0x42f   : > { %19306 = vst [vmem:[#allocation7_spill] sm:$0xff] %v17667_v20  ;;  %v5622_v49 = vsel %vm693_vm0, %v5585_v29, %v19116_v37  ;;  %11384 = vmatprep.subr.bf16.mxu1 %v13428_v43  ;;  %v17680_v3 = vrot.slane %v11755_v9, %v17474_v41  ;;  %v10925_v36 = vpop.f32.mrb[7].mxu1  ;;  %v5950_v54 = vsel %vm5919_vm2, %v17200_v44, %v5949_v38  ;;  %v17686_v18 = vpop.permute.xlu1 %6540  ;;  %19308 = vst [vmem:[#allocation9_spill] sm:$0xff] %v17697_v33  ;;  %v13433_v9 = vld [vmem:[%s13639_s19 + $0x54] ss:$0 sps:$4 sm:$0xff]  }
 0x430   : > { %v5623_v40 = vsel %vm5592_vm1, %v17202_v8, %v5622_v49  ;;  %v17688_v32 = vpop.permute.xlu0 %6213  ;;  %11385 = vmatpush1.bf16.msra.mxu1 %v13426_v16  ;;  %v12093_v29 = vmul.f32 %v17667_v20, %v17664_v34  ;;  %v11759_v43 = vrot.slane %v17624_v4, %v17493_v50  ;;  %5996 = vst [vmem:[#allocation2 + $0x598] sm:$0xcc] %v5950_v54  ;;  %v19119_v52 = vrot.slane %v17686_v18, 4  ;;  %v17709_v36 = vpop.f32.mrb[8].mxu1  ;;  %v17728_v37 = vld [vmem:[%s13639_s19 + $0x54] ss:$0 sps:$4 sm:$0xff]  }
 0x431   : > { %19307 = vst [vmem:[#allocation8_spill] sm:$0xff] %v17680_v3  ;;  %5669 = vst [vmem:[#allocation2 + $0x598] sm:$0x33] %v5623_v40  ;;  %v19121_v44 = vrot.slane %v17688_v32, 4  ;;  %v12132_v49 = vadd.f32 %v12131_v10, %v12092_v26  ;;  %v11763_v16 = vrot.slane %v17624_v4, %v17524_v6  ;;  %v2589_v40 = vrot.slane %v13429_v46, %v13634_v5  ;;  %v10965_v26 = vpop.f32.mrb[10].mxu0 }
 0x432   : > { %v12591_v8 = vld.sshfl [vmem:[%s13639_s19 + $0x50] sm:$0x33 pattern:$0x76325410]  ;;  %8831 = vrot.lane.b32.xlu1 %v17416_v48, %s13586_s23  ;;  %8505 = vrot.lane.b32.xlu0 %v17376_v61, %s13585_s22  ;;  %v12094_v38 = vmul.f32 %v17680_v3, %v17697_v33  ;;  %19309 = vst [vmem:[#allocation10_spill] sm:$0xff] %v17709_v36  ;;  %v17712_v10 = vrot.slane %v11759_v43, %v17474_v41  ;;  %v17715_v4 = vunpack.c.h.bf16 %v17603_v62  ;;  %v19311_v48 = vrot.slane %v17219_v1, 4 }
 0x433   : > { %v19312_v46 = vrot.slane %v17221_v23, 4  ;;  %v12133_v43 = vadd.f32 %v12132_v49, %v12093_v29  ;;  %v17731_v26 = vrot.slane %v11763_v16, %v17474_v41  ;;  %v10966_v62 = vpop.f32.mrb[11].mxu0 }
 0x434   : > { %19310 = vst [vmem:[#allocation11_spill] sm:$0xff] %v17712_v10  ;;  %v6602_v61 = vsel %vm693_vm0, %v19311_v48, %v19119_v52  ;;  %v17737_v48 = vpop.permute.xlu1 %5889  ;;  %v17739_v52 = vpop.permute.xlu0 %5562  ;;  %v13430_v33 = vld [vmem:[#allocation2 + $0x458] ss:$164 sps:$4 sm:$0xff]   ;;  %v12095_v29 = vmul.f32 %v17712_v10, %v17709_v36  ;;  %v11767_v49 = vrot.slane %v17715_v4, %v17474_v41  ;;  %v3242_v62 = vrot.slane %v13433_v9, %v13634_v5 }
 0x435   : > { %v6275_v54 = vsel %vm693_vm0, %v19312_v46, %v19121_v44  ;;  %19313 = vst [vmem:[#allocation12_spill] sm:$0xff] %v17731_v26  ;;  %v6603_v3 = vsel %vm19314_vm3, %v17219_v1, %v6602_v61  ;;  %v13432_v46 = vld [vmem:[#allocation2 + $0x45c] ss:$164 sps:$4 sm:$0xff]   ;;  %v19126_v1 = vrot.slane %v17737_v48, 4  ;;  %v12134_v16 = vadd.f32 %v12133_v43, %v12094_v38  ;;  %v17747_v61 = vpop.f32.mrb[9].mxu1 }
 0x436   : > { %v6276_v20 = vsel %vm19315_vm4, %v17221_v23, %v6275_v54  ;;  %6649 = vst [vmem:[#allocation2 + $0x63c] sm:$0xcc] %v6603_v3  ;;  %19316 = vst [vmem:[#allocation13_spill] sm:$0xff] %v17747_v61  ;;  %v11771_v54 = vrot.slane %v17715_v4, %v17485_v60  ;;  %2956 = vrot.lane.b32.xlu1 %v12591_v8, %s13568_s27  ;;  %2630 = vrot.lane.b32.xlu0 %v2589_v40, %s13567_s26  ;;  %v17755_v44 = vld [vmem:[%s13639_s19 + $0x54] ss:$0 sps:$4 sm:$0xff]   ;;  %v11006_v43 = vpop.f32.mrb[10].mxu1 }
 0x437   : > { %6322 = vst [vmem:[#allocation2 + $0x63c] sm:$0x33] %v6276_v20  ;;  %v12096_v3 = vmul.f32 %v17731_v26, %v17747_v61  ;;  %v17759_v20 = vpop.f32.mrb[12].mxu0  ;;  %v17762_v38 = vrot.slane %v11767_v49, %v17474_v41  ;;  %v19319_v23 = vrot.slane %v17643_v24, 4  ;;  %v19320_v40 = vrot.slane %v17739_v52, 4  ;;  %11425 = vmatprep.subr.bf16.mxu0 %v13432_v46  ;;  %v11007_v43 = vpop.f32.mrb[11].mxu1 }
 0x438   : > { %19317 = vst [vmem:[#allocation14_spill] sm:$0xff] %v17759_v20  ;;  %v19321_v9 = vrot.slane %v17645_v47, 4  ;;  %v17775_v26 = vld.sshfl [vmem:[%s13639_s19 + $0x54] sm:$0x33 pattern:$0x76325410]  ;;  %v12135_v61 = vadd.f32 %v12134_v16, %v12095_v29  ;;  %v17778_v49 = vrot.slane %v11771_v54, %v17474_v41  ;;  %v17786_v34 = vpop.permute.xlu0 %6215  ;;  %11426 = vmatpush1.bf16.msra.mxu0 %v13430_v33  ;;  %v3895_v46 = vrot.slane %v17728_v37, %v13634_v5 }
 0x439   : > { %19318 = vst [vmem:[#allocation15_spill] sm:$0xff] %v17762_v38  ;;  %v5951_v8 = vsel %vm693_vm0, %v19319_v23, %v19126_v1  ;;  %v17784_v1 = vpop.permute.xlu1 %6542  ;;  %v12097_v29 = vmul.f32 %v17762_v38, %v17759_v20  ;;  %v17795_v16 = vld [vmem:[%s19079_s2 + $0x10] sm:$0xff]  ;;  %v17799_v54 = vpop.f32.mrb[13].mxu0  ;;  %v11775_v37 = vrot.slane %v17715_v4, %v17493_v50  ;;  %v4548_v33 = vrot.slane %v17755_v44, %v13634_v5 }
 0x43a   : > { %v5624_v10 = vsel %vm693_vm0, %v19321_v9, %v19320_v40  ;;  %19322 = vst [vmem:[#allocation16_spill] sm:$0xff] %v17778_v49  ;;  %v5952_v36 = vsel %vm5919_vm2, %v17643_v24, %v5951_v8  ;;  %v19131_v24 = vrot.slane %v17784_v1, 4  ;;  %19323 = vst [vmem:[#allocation17_spill] sm:$0xff] %v17799_v54  ;;  %3609 = vrot.lane.b32.xlu1 %v17775_v26, %s13570_s29  ;;  %3283 = vrot.lane.b32.xlu0 %v3242_v62, %s13569_s28  ;;  %v17810_v8 = vpop.f32.mrb[12].mxu1  ;;  %v11047_v40 = vpop.f32.mrb[14].mxu0 }
 0x43b   : > { %v5625_v23 = vsel %vm5592_vm1, %v17645_v47, %v5624_v10  ;;  %5997 = vst [vmem:[#allocation2 + $0x5a0] sm:$0xcc] %v5952_v36  ;;  %v19133_v47 = vrot.slane %v17786_v34, 4  ;;  %v12136_v10 = vadd.f32 %v12135_v61, %v12096_v3  ;;  %v12098_v36 = vmul.f32 %v17778_v49, %v17799_v54  ;;  %19324 = vst [vmem:[#allocation18_spill] sm:$0xff] %v17810_v8 }
 0x43c   : > { %5670 = vst [vmem:[#allocation2 + $0x5a0] sm:$0x33] %v5625_v23  ;;  %v11779_v61 = vrot.slane %v17715_v4, %v17524_v6  ;;  %v17815_v3 = vunpack.c.l.bf16 %v17795_v16  ;;  %v19325_v9 = vrot.slane %v17686_v18, 4  ;;  %v19326_v44 = vrot.slane %v17688_v32, 4  ;;  %v11048_v4 = vpop.f32.mrb[15].mxu0 }
 0x43d   : > { %v12137_v23 = vadd.f32 %v12136_v10, %v12097_v29  ;;  %v17828_v40 = vrot.slane %v11775_v37, %v17474_v41  ;;  %v17834_v54 = vpop.permute.xlu1 %7193  ;;  %v19332_v4 = vrot.slane %v17275_v0, 4 }
 0x43e   : > { %v6604_v62 = vsel %vm693_vm0, %v19325_v9, %v19131_v24  ;;  %v6277_v43 = vsel %vm693_vm0, %v19326_v44, %v19133_v47  ;;  %v17836_v9 = vpop.permute.xlu0 %6866  ;;  %v13435_v24 = vld [vmem:[#allocation2 + $0x598] ss:$164 sps:$4 sm:$0xff]   ;;  %v17839_v44 = vrot.slane %v11779_v61, %v17474_v41  ;;  %v11783_v29 = vrot.slane %v17815_v3, %v17474_v41  ;;  %4262 = vrot.lane.b32.xlu1 %v17775_v26, %s13572_s4  ;;  %v13439_v61 = vld [vmem:[%s13639_s19 + $0x54] ss:$0 sps:$4 sm:$0xff]  }
 0x43f   : > { %19327 = vst [vmem:[#allocation19_spill] sm:$0xff] %v17828_v40  ;;  %v6605_v49 = vsel %vm19314_vm3, %v17686_v18, %v6604_v62  ;;  %v6278_v38 = vsel %vm19315_vm4, %v17688_v32, %v6277_v43  ;;  %v13437_v20 = vld [vmem:[#allocation2 + $0x59c] ss:$164 sps:$4 sm:$0xff]   ;;  %v19138_v18 = vrot.slane %v17834_v54, 4  ;;  %v19139_v10 = vrot.slane %v17836_v9, 4  ;;  %v17847_v62 = vpop.f32.mrb[13].mxu1  ;;  %3936 = vrot.lane.b32.xlu0 %v3895_v46, %s13571_s30 }
 0x440   : > { %19328 = vst [vmem:[#allocation20_spill] sm:$0xff] %v17839_v44  ;;  %6650 = vst [vmem:[#allocation2 + $0x644] sm:$0xcc] %v6605_v49  ;;  %v12138_v32 = vadd.f32 %v12137_v23, %v12098_v36  ;;  %v12099_v37 = vmul.f32 %v17828_v40, %v17810_v8  ;;  %v12100_v49 = vmul.f32 %v17839_v44, %v17847_v62  ;;  %v11088_v36 = vpop.f32.mrb[14].mxu1  ;;  %v19333_v46 = vrot.slane %v17277_v57, 4 }
 0x441   : > { %6323 = vst [vmem:[#allocation2 + $0x644] sm:$0x33] %v6278_v38  ;;  %19329 = vst [vmem:[#allocation21_spill] sm:$0xff] %v17847_v62  ;;  %v17855_v38 = vpop.f32.mrb[16].mxu0  ;;  %v17858_v43 = vrot.slane %v11783_v29, %v17474_v41  ;;  %v11787_v23 = vrot.slane %v17815_v3, %v17485_v60  ;;  %v7255_v47 = vsel %vm693_vm0, %v19332_v4, %v19138_v18  ;;  %11386 = vmatprep.subr.bf16.mxu1 %v13437_v20  ;;  %v11089_v29 = vpop.f32.mrb[15].mxu1  ;;  %vm19334_vm3 = vcmask 834560  }
 0x442   : > { %19330 = vst [vmem:[#allocation22_spill] sm:$0xff] %v17855_v38  ;;  %v6928_v44 = vsel %vm693_vm0, %v19333_v46, %v19139_v10  ;;  %v12139_v40 = vadd.f32 %v12138_v32, %v12099_v37  ;;  %v11791_v36 = vrot.slane %v17815_v3, %v17493_v50  ;;  %v7256_v62 = vsel %vm19334_vm3, %v17275_v0, %v7255_v47  ;;  %v17878_v4 = vpop.permute.xlu1 %7846  ;;  %v17880_v18 = vpop.permute.xlu0 %7519 }
 0x443   : > { %19331 = vst [vmem:[#allocation23_spill] sm:$0xff] %v17858_v43  ;;  %vm19335_vm4 = vcmask 965632   ;;  %11387 = vmatpush1.bf16.msra.mxu1 %v13435_v24  ;;  %v12101_v20 = vmul.f32 %v17858_v43, %v17855_v38  ;;  %v17885_v32 = vrot.slane %v11787_v23, %v17474_v41  ;;  %7302 = vst [vmem:[#allocation2 + $0x6e0] sm:$0xcc] %v7256_v62  ;;  %v19141_v37 = vrot.slane %v17878_v4, 4  ;;  %v17889_v46 = vpop.f32.mrb[17].mxu0  ;;  %4915 = vrot.lane.b32.xlu1 %v17775_v26, %s13574_s6 }
 0x444   : > { %v6929_v8 = vsel %vm19335_vm4, %v17277_v57, %v6928_v44  ;;  %v19144_v0 = vrot.slane %v17880_v18, 4  ;;  %v12140_v47 = vadd.f32 %v12139_v40, %v12100_v49  ;;  %19337 = vst [vmem:[#allocation25_spill] sm:$0xff] %v17889_v46  ;;  %4589 = vrot.lane.b32.xlu0 %v4548_v33, %s13573_s5  ;;  %v5201_v57 = vrot.slane %v13439_v61, %v13634_v5  ;;  %v13443_v24 = vld [vmem:[%s13639_s19 + $0x54] ss:$0 sps:$4 sm:$0xff]   ;;  %v11129_v62 = vpop.f32.mrb[18].mxu0 }
 0x445   : > { %19336 = vst [vmem:[#allocation24_spill] sm:$0xff] %v17885_v32  ;;  %6975 = vst [vmem:[#allocation2 + $0x6e0] sm:$0x33] %v6929_v8  ;;  %v12102_v44 = vmul.f32 %v17885_v32, %v17889_v46  ;;  %v11795_v8 = vrot.slane %v17815_v3, %v17524_v6  ;;  %v17901_v23 = vunpack.c.h.bf16 %v17795_v16  ;;  %v19338_v40 = vrot.slane %v17293_v13, 4  ;;  %v11130_v3 = vpop.f32.mrb[19].mxu0 }
 0x446   : > { %v19339_v33 = vrot.slane %v17295_v35, 4  ;;  %v12141_v29 = vadd.f32 %v12140_v47, %v12101_v20  ;;  %v17914_v62 = vrot.slane %v11791_v36, %v17474_v41  ;;  %vm19341_vm3 = vcmask 818176   ;;  %v17920_v32 = vpop.permute.xlu1 %7195 }
 0x447   : > { %v7908_v49 = vsel %vm693_vm0, %v19338_v40, %v19141_v37  ;;  %vm19342_vm4 = vcmask 826368   ;;  %v17922_v40 = vpop.permute.xlu0 %6868  ;;  %v11799_v36 = vrot.slane %v17901_v23, %v17474_v41  ;;  %v11803_v47 = vrot.slane %v17901_v23, %v17485_v60  ;;  %5568 = vrot.lane.b32.xlu1 %v17775_v26, %s13576_s8  ;;  %v17951_v26 = vld.sshfl [vmem:[%s13639_s19 + $0x5a] sm:$0x33 pattern:$0x76325410]  ;;  %s12958_s8 = smul.u32 328, %s19500_s12 }
 0x448   : > { %v7581_v61 = vsel %vm693_vm0, %v19339_v33, %v19144_v0  ;;  %19340 = vst [vmem:[#allocation26_spill] sm:$0xff] %v17914_v62  ;;  %v7909_v16 = vsel %vm19341_vm3, %v17293_v13, %v7908_v49  ;;  %v13440_v37 = vld [vmem:[#allocation2 + $0x5a0] ss:$164 sps:$4 sm:$0xff]   ;;  %v17925_v33 = vrot.slane %v11795_v8, %v17474_v41  ;;  %v19143_v13 = vrot.slane %v17920_v32, 4  ;;  %5242 = vrot.lane.b32.xlu0 %v5201_v57, %s13575_s7  ;;  %v13444_v49 = vld [vmem:[%s13639_s19 + $0x5a] ss:$0 sps:$4 sm:$0xff]  }
 0x449   : > { %v7582_v10 = vsel %vm19342_vm4, %v17295_v35, %v7581_v61  ;;  %v13442_v43 = vld [vmem:[#allocation2 + $0x5a4] ss:$164 sps:$4 sm:$0xff]   ;;  %7955 = vst [vmem:[#allocation2 + $0x784] sm:$0xcc] %v7909_v16  ;;  %v19145_v35 = vrot.slane %v17922_v40, 4  ;;  %v12142_v20 = vadd.f32 %v12141_v29, %v12102_v44  ;;  %v5854_v8 = vrot.slane %v13443_v24, %v13634_v5  ;;  %v17938_v61 = vpop.f32.mrb[16].mxu1 }
 0x44a   : > { %19343 = vst [vmem:[#allocation27_spill] sm:$0xff] %v17925_v33  ;;  %7628 = vst [vmem:[#allocation2 + $0x784] sm:$0x33] %v7582_v10  ;;  %v19345_v10 = vrot.slane %v17834_v54, 4  ;;  %v19346_v44 = vrot.slane %v17836_v9, 4  ;;  %11427 = vmatprep.subr.bf16.mxu0 %v13442_v43  ;;  %v12103_v57 = vmul.f32 %v17914_v62, %v17938_v61  ;;  %v17955_v24 = vpop.f32.mrb[17].mxu1  ;;  %v17958_v16 = vrot.slane %v11799_v36, %v17474_v41  ;;  %v17964_v0 = vpop.permute.xlu1 %7848 }
 0x44b   : > { %19344 = vst [vmem:[#allocation28_spill] sm:$0xff] %v17938_v61  ;;  %19347 = vst [vmem:[#allocation29_spill] sm:$0xff] %v17955_v24  ;;  %vm19349_vm3 = vcmask 834560   ;;  %vm19350_vm4 = vcmask 965632   ;;  %v17966_v43 = vpop.permute.xlu0 %7521  ;;  %11428 = vmatpush1.bf16.msra.mxu0 %v13440_v37  ;;  %v19148_v36 = vrot.slane %v17964_v0, 4  ;;  %v11170_v62 = vpop.f32.mrb[18].mxu1  ;;  %6221 = vrot.lane.b32.xlu1 %v17951_v26, %s13578_s10  ;;  %s18980_s10 = scalar_lea.vmem %s19080_s3, %s12958_s8 }
 0x44c   : > { %v7257_v3 = vsel %vm693_vm0, %v19345_v10, %v19143_v13  ;;  %v6930_v29 = vsel %vm693_vm0, %v19346_v44, %v19145_v35  ;;  %19348 = vst [vmem:[#allocation30_spill] sm:$0xff] %v17958_v16  ;;  %v12104_v44 = vmul.f32 %v17925_v33, %v17955_v24  ;;  %v17971_v35 = vrot.slane %v11803_v47, %v17474_v41  ;;  %v13448_v37 = vld [vmem:[%s13639_s19 + $0x5a] ss:$0 sps:$4 sm:$0xff]   ;;  %v11171_v47 = vpop.f32.mrb[19].mxu1 }
 0x44d   : > { %v7258_v10 = vsel %vm19349_vm3, %v17834_v54, %v7257_v3  ;;  %v6931_v13 = vsel %vm19350_vm4, %v17836_v9, %v6930_v29  ;;  %v19151_v54 = vrot.slane %v17966_v43, 4  ;;  %v12143_v3 = vadd.f32 %v12142_v20, %v12103_v57  ;;  %5895 = vrot.lane.b32.xlu0 %v5854_v8, %s13577_s9  ;;  %v17980_v29 = vpop.f32.mrb[20].mxu0 }
 0x44e   : > { %19351 = vst [vmem:[#allocation31_spill] sm:$0xff] %v17971_v35  ;;  %7303 = vst [vmem:[#allocation2 + $0x6e8] sm:$0xcc] %v7258_v10  ;;  %v6507_v9 = vrot.slane %v13444_v49, %v13634_v5  ;;  %v19354_v62 = vrot.slane %v17880_v18, 4  ;;  %v12105_v8 = vmul.f32 %v17958_v16, %v17980_v29  ;;  %v17994_v49 = vpop.f32.mrb[21].mxu0  ;;  %vm19356_vm3 = vcmask 818176  }
 0x44f   : > { %6976 = vst [vmem:[#allocation2 + $0x6e8] sm:$0x33] %v6931_v13  ;;  %19352 = vst [vmem:[#allocation32_spill] sm:$0xff] %v17980_v29  ;;  %v19353_v13 = vrot.slane %v17878_v4, 4  ;;  %v12144_v57 = vadd.f32 %v12143_v3, %v12104_v44  ;;  %vm19357_vm4 = vcmask 826368   ;;  %v11211_v16 = vpop.f32.mrb[22].mxu0  ;;  %6874 = vrot.lane.b32.xlu1 %v17951_v26, %s13580_s16 }
 0x450   : > { %v7583_v20 = vsel %vm693_vm0, %v19354_v62, %v19151_v54  ;;  %19355 = vst [vmem:[#allocation33_spill] sm:$0xff] %v17994_v49  ;;  %v12106_v62 = vmul.f32 %v17971_v35, %v17994_v49 }
 0x451   : > { %v7910_v10 = vsel %vm693_vm0, %v19353_v13, %v19148_v36  ;;  %v7584_v33 = vsel %vm19357_vm4, %v17880_v18, %v7583_v20  ;;  %v8500_v13 = vpop.permute.xlu1 %8499  ;;  %v8173_v36 = vpop.permute.xlu0 %8172  ;;  %v13445_v24 = vld [vmem:[#allocation2 + $0x6e0] ss:$164 sps:$4 sm:$0xff]   ;;  %v12145_v54 = vadd.f32 %v12144_v57, %v12105_v8  ;;  %6548 = vrot.lane.b32.xlu0 %v6507_v9, %s13579_s11  ;;  %v7160_v18 = vrot.slane %v13448_v37, %v13634_v5 }
 0x452   : > { %v7911_v47 = vsel %vm19356_vm3, %v17878_v4, %v7910_v10  ;;  %v13447_v61 = vld [vmem:[#allocation2 + $0x6e4] ss:$164 sps:$4 sm:$0xff]   ;;  %7629 = vst [vmem:[#allocation2 + $0x78c] sm:$0x33] %v7584_v33  ;;  %v8525_v44 = vrot.slane %v8500_v13, 4  ;;  %v8198_v3 = vrot.slane %v8173_v36, 4 }
 0x453   : > { %7956 = vst [vmem:[#allocation2 + $0x78c] sm:$0xcc] %v7911_v47  ;;  %v13449_v4 = vld [vmem:[%s13639_s19 + $0x5a] ss:$0 sps:$4 sm:$0xff]   ;;  %v11212_v10 = vpop.f32.mrb[23].mxu0  ;;  %v19358_v20 = vrot.slane %v17346_v14, 4  ;;  %11388 = vmatprep.subr.bf16.mxu1 %v13447_v61  ;;  %v18013_v16 = vadd.f32 %v12145_v54, %v12106_v62  ;;  %7527 = vrot.lane.b32.xlu1 %v17951_v26, %s13582_s18 }
 0x454   : > { %v19359_v47 = vrot.slane %v17325_v31, 4  ;;  %vm19360_vm3 = vcmask 687104   ;;  %11389 = vmatpush1.bf16.msra.mxu1 %v13445_v24  ;;  %v7813_v61 = vrot.slane %v13449_v4, %v13634_v5  ;;  %v19361_v54 = vrot.slane %v17344_v22, 4 }
 0x455   : > { %v8561_v29 = vsel %vm693_vm0, %v19358_v20, %v8525_v44  ;;  %v18019_v37 = vpop.permute.xlu1 %8174  ;;  %v8826_v8 = vpop.permute.xlu0 %8825  ;;  %7201 = vrot.lane.b32.xlu0 %v7160_v18, %s13581_s17  ;;  %vm19362_vm4 = vmmov %vm19360_vm3 }
 0x456   : > { %v8234_v33 = vsel %vm693_vm0, %v19359_v47, %v8198_v3  ;;  %v8562_v57 = vsel %vm8531_vm7, %v17346_v14, %v8561_v29  ;;  %v19156_v10 = vrot.slane %v18019_v37, 4  ;;  %v8851_v20 = vrot.slane %v8826_v8, 4  ;;  %v13453_v14 = vld [vmem:[%s13639_s19 + $0x5a] ss:$0 sps:$4 sm:$0xff]  }
 0x457   : > { %v8235_v9 = vsel %vm19360_vm3, %v17325_v31, %v8234_v33  ;;  %8608 = vst [vmem:[#allocation2 + $0x828] sm:$0xcc] %v8562_v57  ;;  %vm19363_vm3 = vcmask 670720   ;;  %8180 = vrot.lane.b32.xlu1 %v17951_v26, %s13584_s21 }
 0x458   : > { %8281 = vst [vmem:[#allocation2 + $0x828] sm:$0x33] %v8235_v9  ;;  %v8236_v31 = vsel %vm693_vm0, %v8198_v3, %v19156_v10  ;;  %v8887_v24 = vsel %vm693_vm0, %v19361_v54, %v8851_v20 }
 0x459   : > { %v8237_v29 = vsel %vm19362_vm4, %v8173_v36, %v8236_v31  ;;  %v8888_v62 = vsel %vm19363_vm3, %v17344_v22, %v8887_v24  ;;  %v18036_v47 = vpop.permute.xlu1 %8827  ;;  %v18038_v33 = vpop.permute.xlu0 %8501  ;;  %7854 = vrot.lane.b32.xlu0 %v7813_v61, %s13583_s20  ;;  %v8466_v36 = vrot.slane %v13453_v14, %v13634_v5  ;;  %vm19364_vm4 = vmmov %vm19363_vm3  ;;  %vm19366_vm3 = vcmask 744448  }
 0x45a   : > { %v13450_v18 = vld [vmem:[#allocation2 + $0x6e8] ss:$164 sps:$4 sm:$0xff]   ;;  %8282 = vst [vmem:[#allocation2 + $0x830] sm:$0x33] %v8237_v29  ;;  %8934 = vst [vmem:[#allocation2 + $0x8cc] sm:$0x33] %v8888_v62 }
 0x45b   : > { %v13452_v4 = vld [vmem:[#allocation2 + $0x6ec] ss:$164 sps:$4 sm:$0xff]   ;;  %v19155_v57 = vrot.slane %v18036_v47, 4  ;;  %v19157_v3 = vrot.slane %v18038_v33, 4  ;;  %8833 = vrot.lane.b32.xlu1 %v17951_v26, %s13586_s23 }
 0x45c   : > { %11429 = vmatprep.subr.bf16.mxu0 %v13452_v4 }
 0x45d   : > { %v8889_v22 = vsel %vm693_vm0, %v8851_v20, %v19155_v57  ;;  %v8563_v9 = vsel %vm693_vm0, %v8525_v44, %v19157_v3  ;;  %v18054_v24 = vpop.permute.xlu1 %2628  ;;  %v2627_v29 = vpop.permute.xlu0 %2626  ;;  %11430 = vmatpush1.bf16.msra.mxu0 %v13450_v18  ;;  %8507 = vrot.lane.b32.xlu0 %v8466_v36, %s13585_s22  ;;  %v19365_v44 = vrot.slane %v17364_v30, 4  ;;  %v19372_v3 = vmov 0  }
 0x45e   : > { %v8890_v31 = vsel %vm19364_vm4, %v8826_v8, %v8889_v22  ;;  %v8564_v54 = vsel %vm8531_vm7, %v8500_v13, %v8563_v9  ;;  %v19154_v5 = vrot.slane %v18054_v24, 4  ;;  %v2650_v61 = vrot.slane %v2627_v29, 4  ;;  %vm19367_vm4 = vmmov %vm19366_vm3 }
 0x45f   : > { %8935 = vst [vmem:[#allocation2 + $0x8d4] sm:$0x33] %v8890_v31  ;;  %8609 = vst [vmem:[#allocation2 + $0x830] sm:$0xcc] %v8564_v54  ;;  %v19368_v9 = vrot.slane %v17432_v19, 4  ;;  %v19369_v54 = vrot.slane %v17434_v21, 4 }
 0x460   : > { %v2688_v8 = vsel %vm693_vm0, %v19365_v44, %v2650_v61  ;;  %v2690_v13 = vsel %vm693_vm0, %v2650_v61, %v19154_v5  ;;  %v13459_v61 = vld [vmem:[#allocation2 + $0x8c] ss:$164 sps:$4 sm:$0xff]  }
 0x461   : > { %v2689_v20 = vsel %vm19366_vm3, %v17364_v30, %v2688_v8  ;;  %v2691_v14 = vsel %vm19367_vm4, %v2627_v29, %v2690_v13  ;;  %v3280_v62 = vpop.permute.xlu1 %3279  ;;  %v2953_v18 = vpop.permute.xlu0 %2952  ;;  %v13454_v4 = vld [vmem:[#allocation2 + $0x82c] ss:$164 sps:$4 sm:$0x3f]   ;;  %vm19381_vm3 = vcmask 973824   ;;  %vm19382_vm4 = vcmask 982016  }
 0x462   : > { %2733 = vst [vmem:[#allocation2 + $0x274] sm:$0xcc] %v2689_v20  ;;  %2734 = vst [vmem:[#allocation2 + $0x27c] sm:$0xcc] %v2691_v14  ;;  %v3303_v26 = vrot.slane %v3280_v62, 4  ;;  %v2976_v36 = vrot.slane %v2953_v18, 4  ;;  %12918 = vmatprep.subr.msk.bf16.mxu1 %vm10639_vm6, %v13454_v4 }
 0x463   : > { %v13456_v22 = vld [vmem:[#allocation2 + $0x828] ss:$164 sps:$4 sm:$0x3f]  }
 0x464   : > { %v3341_v31 = vsel %vm693_vm0, %v19368_v9, %v3303_v26  ;;  %v3014_v30 = vsel %vm693_vm0, %v19369_v54, %v2976_v36  ;;  %v10731_v29 = vsel %vm10639_vm6, %v13456_v22, 0  ;;  %v13457_v54 = vld [vmem:[#allocation2 + $0x88] ss:$164 sps:$4 sm:$0xff]   ;;  %v19370_v22 = vrot.slane %v17453_v12, 4 }
 0x465   : > { %v3342_v44 = vsel %vm3307_vm9, %v17432_v19, %v3341_v31  ;;  %v3015_v8 = vsel %vm2980_vm8, %v17434_v21, %v3014_v30  ;;  %v3933_v13 = vpop.permute.xlu1 %3932  ;;  %v3606_v20 = vpop.permute.xlu0 %3605  ;;  %11391 = vmatpush1.bf16.msra.mxu1 %v10731_v29  ;;  %v19371_v31 = vrot.slane %v17455_v25, 4  ;;  %v18091_v30 = vld [vmem:[%s19078_s1] sm:$0xf] }
 0x466   : > { %v13460_v14 = vld [vmem:[#allocation2 + $0x834] ss:$164 sps:$4 sm:$0x3f]   ;;  %3386 = vst [vmem:[#allocation2 + $0x318] sm:$0xcc] %v3342_v44  ;;  %v3956_v4 = vrot.slane %v3933_v13, 4  ;;  %11460 = vmatprep.subr.bf16.mxu1 %v13459_v61 }
 0x467   : > { %3059 = vst [vmem:[#allocation2 + $0x318] sm:$0x33] %v3015_v8  ;;  %v3629_v9 = vrot.slane %v3606_v20, 4  ;;  %v13462_v5 = vld [vmem:[#allocation2 + $0x830] ss:$164 sps:$4 sm:$0x3f]   ;;  %12920 = vmatprep.subr.msk.bf16.mxu0 %vm10639_vm6, %v13460_v14 }
 0x468   : > { %v3994_v19 = vsel %vm693_vm0, %v19370_v22, %v3956_v4  ;;  %12919 = vmatmul.mubr.msk.bf16.vlgmr.msra.gmra.mrb[28].mxu1 %vm2001_vm5, %v18091_v30  ;;  %v10737_v29 = vsel %vm10639_vm6, %v13462_v5, 0  ;;  %v13465_v61 = vld [vmem:[#allocation2 + $0x94] ss:$164 sps:$4 sm:$0xff]  }
 0x469   : > { %v3667_v21 = vsel %vm693_vm0, %v19371_v31, %v3629_v9  ;;  %v3995_v44 = vsel %vm3960_vm11, %v17453_v12, %v3994_v19  ;;  %v18100_v14 = vpop.permute.xlu1 %3281  ;;  %v18102_v22 = vpop.permute.xlu0 %2954  ;;  %11432 = vmatpush1.bf16.msra.mxu0 %v10737_v29  ;;  %11461 = vmatpush1.bf16.msra.mxu1 %v13457_v54  ;;  %v13466_v31 = vld [vmem:[#allocation2 + $0x1d0] ss:$164 sps:$4 sm:$0xff]   ;;  %v13471_v19 = vld [vmem:[#allocation2 + $0x1dc] ss:$164 sps:$4 sm:$0xff]  }
 0x46a   : > { %v3668_v8 = vsel %vm3633_vm10, %v17455_v25, %v3667_v21  ;;  %v13468_v57 = vld [vmem:[#allocation2 + $0x1d4] ss:$164 sps:$4 sm:$0xff]   ;;  %4039 = vst [vmem:[#allocation2 + $0x3bc] sm:$0xcc] %v3995_v44  ;;  %v19159_v10 = vrot.slane %v18100_v14, 4  ;;  %v19169_v5 = vrot.slane %v18102_v22, 4  ;;  %11501 = vmatprep.subr.bf16.mxu0 %v13465_v61  ;;  %11492 = vmatprep.mubr.bf16.mxu1 %v19372_v3 }
 0x46b   : > { %3712 = vst [vmem:[#allocation2 + $0x3bc] sm:$0x33] %v3668_v8  ;;  %v13463_v12 = vld [vmem:[#allocation2 + $0x90] ss:$164 sps:$4 sm:$0xff]   ;;  %11462 = vmatprep.subr.bf16.mxu1 %v13468_v57 }
 0x46c   : > { %v3343_v25 = vsel %vm693_vm0, %v3303_v26, %v19159_v10  ;;  %v3016_v54 = vsel %vm693_vm0, %v2976_v36, %v19169_v5  ;;  %12921 = vmatmul.mubr.msk.bf16.vlgmr.msra.gmra.mrb[32].mxu0 %vm2001_vm5, %v18091_v30  ;;  %v13469_v36 = vld [vmem:[#allocation2 + $0x1d8] ss:$164 sps:$4 sm:$0xff]   ;;  %v19376_v10 = vrot.slane %v17597_v15, 4  ;;  %v19388_v5 = vrot.slane %v17966_v43, 4 }
 0x46d   : > { %v3344_v21 = vsel %vm3307_vm9, %v3280_v62, %v3343_v25  ;;  %v3017_v29 = vsel %vm2980_vm8, %v2953_v18, %v3016_v54  ;;  %v18117_v61 = vpop.permute.xlu1 %3934  ;;  %v18119_v44 = vpop.permute.xlu0 %3607  ;;  %11463 = vmatpush1.bf16.msra.mxu1 %v13466_v31  ;;  %11502 = vmatpush1.bf16.msra.mxu0 %v13463_v12 }
 0x46e   : > { %3387 = vst [vmem:[#allocation2 + $0x320] sm:$0xcc] %v3344_v21  ;;  %3060 = vst [vmem:[#allocation2 + $0x320] sm:$0x33] %v3017_v29  ;;  %v19158_v57 = vrot.slane %v18117_v61, 4  ;;  %v19168_v26 = vrot.slane %v18119_v44, 4  ;;  %11503 = vmatprep.subr.bf16.mxu0 %v13471_v19  ;;  %11533 = vmatprep.mubr.bf16.mxu0 %v19372_v3 }
 0x470   : > { %v3996_v62 = vsel %vm693_vm0, %v3956_v4, %v19158_v57  ;;  %v3669_v18 = vsel %vm693_vm0, %v3629_v9, %v19168_v26  ;;  %v19373_v4 = vrot.slane %v17558_v11, 4  ;;  %v19374_v9 = vrot.slane %v17560_v2, 4 }
 0x471   : > { %v3997_v8 = vsel %vm3960_vm11, %v3933_v13, %v3996_v62  ;;  %v3670_v31 = vsel %vm3633_vm10, %v3606_v20, %v3669_v18  ;;  %v4586_v12 = vpop.permute.xlu1 %4585  ;;  %v4259_v25 = vpop.permute.xlu0 %4258  ;;  %11504 = vmatpush1.bf16.msra.mxu0 %v13469_v36 }
 0x472   : > { %v13472_v54 = vld [vmem:[#allocation2 + $0x318] ss:$164 sps:$4 sm:$0xff]   ;;  %4040 = vst [vmem:[#allocation2 + $0x3c4] sm:$0xcc] %v3997_v8  ;;  %3713 = vst [vmem:[#allocation2 + $0x3c4] sm:$0x33] %v3670_v31 }
 0x473   : > { %v13474_v19 = vld [vmem:[#allocation2 + $0x31c] ss:$164 sps:$4 sm:$0xff]   ;;  %v4609_v21 = vrot.slane %v4586_v12, 4  ;;  %v4282_v29 = vrot.slane %v4259_v25, 4 }
 0x474   : > { %11464 = vmatprep.subr.bf16.mxu1 %v13474_v19  ;;  %v19375_v19 = vrot.slane %v17595_v27, 4 }
 0x475   : > { %v4647_v57 = vsel %vm693_vm0, %v19373_v4, %v4609_v21  ;;  %v4320_v13 = vsel %vm693_vm0, %v19374_v9, %v4282_v29  ;;  %11465 = vmatpush1.bf16.msra.mxu1 %v13472_v54  ;;  %v5239_v62 = vpop.permute.xlu1 %5238  ;;  %v4912_v18 = vpop.permute.xlu0 %4911 }
 0x476   : > { %v4648_v20 = vsel %vm4613_vm13, %v17558_v11, %v4647_v57  ;;  %v4321_v36 = vsel %vm4286_vm12, %v17560_v2, %v4320_v13  ;;  %v5262_v8 = vrot.slane %v5239_v62, 4  ;;  %v4935_v31 = vrot.slane %v4912_v18, 4 }
 0x477   : > { %4692 = vst [vmem:[#allocation2 + $0x460] sm:$0xcc] %v4648_v20  ;;  %4365 = vst [vmem:[#allocation2 + $0x460] sm:$0x33] %v4321_v36 }
 0x478   : > { %v5300_v4 = vsel %vm693_vm0, %v19375_v19, %v5262_v8  ;;  %v4973_v54 = vsel %vm693_vm0, %v19376_v10, %v4935_v31 }
 0x479   : > { %v5301_v11 = vsel %vm5266_vm15, %v17595_v27, %v5300_v4  ;;  %v4974_v2 = vsel %vm4939_vm14, %v17597_v15, %v4973_v54  ;;  %v18152_v57 = vpop.permute.xlu1 %4587  ;;  %v18154_v9 = vpop.permute.xlu0 %4260  ;;  %v13475_v13 = vld [vmem:[#allocation2 + $0x320] ss:$164 sps:$4 sm:$0xff]  }
 0x47a   : > { %v13477_v20 = vld [vmem:[#allocation2 + $0x324] ss:$164 sps:$4 sm:$0xff]   ;;  %5345 = vst [vmem:[#allocation2 + $0x504] sm:$0xcc] %v5301_v11  ;;  %5018 = vst [vmem:[#allocation2 + $0x504] sm:$0x33] %v4974_v2 }
 0x47b   : > { %v19160_v36 = vrot.slane %v18152_v57, 4  ;;  %v19161_v19 = vrot.slane %v18154_v9, 4  ;;  %11505 = vmatprep.subr.bf16.mxu0 %v13477_v20 }
 0x47c   : > { %11506 = vmatpush1.bf16.msra.mxu0 %v13475_v13 }
 0x47d   : > { %v4649_v27 = vsel %vm693_vm0, %v4609_v21, %v19160_v36  ;;  %v4322_v15 = vsel %vm693_vm0, %v4282_v29, %v19161_v19  ;;  %v18166_v54 = vpop.permute.xlu1 %5240  ;;  %v18168_v11 = vpop.permute.xlu0 %4913  ;;  %v19377_v19 = vrot.slane %v17737_v48, 4 }
 0x47e   : > { %v4650_v10 = vsel %vm4613_vm13, %v4586_v12, %v4649_v27  ;;  %v4323_v4 = vsel %vm4286_vm12, %v4259_v25, %v4322_v15  ;;  %v19162_v2 = vrot.slane %v18166_v54, 4  ;;  %v19163_v20 = vrot.slane %v18168_v11, 4 }
 0x47f   : > { %4693 = vst [vmem:[#allocation2 + $0x468] sm:$0xcc] %v4650_v10  ;;  %4366 = vst [vmem:[#allocation2 + $0x468] sm:$0x33] %v4323_v4 }
 0x480   : > { %v5302_v21 = vsel %vm693_vm0, %v5262_v8, %v19162_v2  ;;  %v4975_v12 = vsel %vm693_vm0, %v4935_v31, %v19163_v20  ;;  %v19378_v2 = vrot.slane %v17739_v52, 4  ;;  %v19380_v20 = vrot.slane %v17786_v34, 4 }
 0x481   : > { %v5303_v25 = vsel %vm5266_vm15, %v5239_v62, %v5302_v21  ;;  %v4976_v29 = vsel %vm4939_vm14, %v4912_v18, %v4975_v12  ;;  %v5892_v13 = vpop.permute.xlu1 %5891  ;;  %v5565_v27 = vpop.permute.xlu0 %5564  ;;  %v13478_v15 = vld [vmem:[#allocation2 + $0x460] ss:$164 sps:$4 sm:$0xff]  }
 0x482   : > { %v13480_v10 = vld [vmem:[#allocation2 + $0x464] ss:$164 sps:$4 sm:$0xff]   ;;  %5346 = vst [vmem:[#allocation2 + $0x50c] sm:$0xcc] %v5303_v25  ;;  %5019 = vst [vmem:[#allocation2 + $0x50c] sm:$0x33] %v4976_v29 }
 0x483   : > { %v5915_v4 = vrot.slane %v5892_v13, 4  ;;  %v5588_v36 = vrot.slane %v5565_v27, 4  ;;  %11466 = vmatprep.subr.bf16.mxu1 %v13480_v10  ;;  %v19379_v10 = vrot.slane %v17784_v1, 4 }
 0x484   : > { %11467 = vmatpush1.bf16.msra.mxu1 %v13478_v15 }
 0x485   : > { %v5953_v8 = vsel %vm693_vm0, %v19377_v19, %v5915_v4  ;;  %v5626_v31 = vsel %vm693_vm0, %v19378_v2, %v5588_v36  ;;  %v6545_v21 = vpop.permute.xlu1 %6544  ;;  %v6218_v12 = vpop.permute.xlu0 %6217 }
 0x486   : > { %v5954_v62 = vsel %vm5919_vm2, %v17737_v48, %v5953_v8  ;;  %v5627_v18 = vsel %vm5592_vm1, %v17739_v52, %v5626_v31  ;;  %v6568_v25 = vrot.slane %v6545_v21, 4  ;;  %v6241_v29 = vrot.slane %v6218_v12, 4 }
 0x487   : > { %5998 = vst [vmem:[#allocation2 + $0x5a8] sm:$0xcc] %v5954_v62  ;;  %5671 = vst [vmem:[#allocation2 + $0x5a8] sm:$0x33] %v5627_v18 }
 0x488   : > { %v6606_v19 = vsel %vm693_vm0, %v19379_v10, %v6568_v25  ;;  %v6279_v2 = vsel %vm693_vm0, %v19380_v20, %v6241_v29 }
 0x489   : > { %v6607_v48 = vsel %vm19381_vm3, %v17784_v1, %v6606_v19  ;;  %v6280_v52 = vsel %vm19382_vm4, %v17786_v34, %v6279_v2  ;;  %v18200_v15 = vpop.permute.xlu1 %5893  ;;  %v18202_v8 = vpop.permute.xlu0 %5566  ;;  %v13481_v31 = vld [vmem:[#allocation2 + $0x468] ss:$164 sps:$4 sm:$0xff]  }
 0x48a   : > { %v13483_v62 = vld [vmem:[#allocation2 + $0x46c] ss:$164 sps:$4 sm:$0xff]   ;;  %6651 = vst [vmem:[#allocation2 + $0x64c] sm:$0xcc] %v6607_v48  ;;  %6324 = vst [vmem:[#allocation2 + $0x64c] sm:$0x33] %v6280_v52 }
 0x48b   : > { %v19165_v18 = vrot.slane %v18200_v15, 4  ;;  %v19167_v10 = vrot.slane %v18202_v8, 4  ;;  %11507 = vmatprep.subr.bf16.mxu0 %v13483_v62 }
 0x48c   : > { %11508 = vmatpush1.bf16.msra.mxu0 %v13481_v31 }
 0x48d   : > { %v5955_v1 = vsel %vm693_vm0, %v5915_v4, %v19165_v18  ;;  %v5628_v34 = vsel %vm693_vm0, %v5588_v36, %v19167_v10  ;;  %v18214_v2 = vpop.permute.xlu1 %6546  ;;  %v18216_v48 = vpop.permute.xlu0 %6219 }
 0x48e   : > { %v5956_v20 = vsel %vm5919_vm2, %v5892_v13, %v5955_v1  ;;  %v5629_v19 = vsel %vm5592_vm1, %v5565_v27, %v5628_v34  ;;  %v19164_v52 = vrot.slane %v18214_v2, 4  ;;  %v19166_v62 = vrot.slane %v18216_v48, 4  ;;  %v18229_v13 = vld [vmem:[%s19079_s2 + $0x18] sm:$0xff] }
 0x48f   : > { %5999 = vst [vmem:[#allocation2 + $0x5b0] sm:$0xcc] %v5956_v20  ;;  %5672 = vst [vmem:[#allocation2 + $0x5b0] sm:$0x33] %v5629_v19 }
 0x490   : > { %v6608_v4 = vsel %vm693_vm0, %v6568_v25, %v19164_v52  ;;  %v6281_v36 = vsel %vm693_vm0, %v6241_v29, %v19166_v62  ;;  %v19383_v29 = vrot.slane %v17920_v32, 4  ;;  %v19384_v62 = vrot.slane %v17922_v40, 4 }
 0x491   : > { %v6609_v27 = vsel %vm19381_vm3, %v6545_v21, %v6608_v4  ;;  %v6282_v31 = vsel %vm19382_vm4, %v6218_v12, %v6281_v36  ;;  %v7198_v1 = vpop.permute.xlu1 %7197  ;;  %v6871_v34 = vpop.permute.xlu0 %6870  ;;  %v13484_v20 = vld [vmem:[#allocation2 + $0x5a8] ss:$164 sps:$4 sm:$0xff]   ;;  %v11807_v21 = vrot.slane %v17901_v23, %v17493_v50  ;;  %v18242_v12 = vunpack.c.l.bf16 %v18229_v13 }
 0x492   : > { %v13486_v19 = vld [vmem:[#allocation2 + $0x5ac] ss:$164 sps:$4 sm:$0xff]   ;;  %6652 = vst [vmem:[#allocation2 + $0x654] sm:$0xcc] %v6609_v27  ;;  %6325 = vst [vmem:[#allocation2 + $0x654] sm:$0x33] %v6282_v31 }
 0x493   : > { %v7221_v25 = vrot.slane %v7198_v1, 4  ;;  %v6894_v52 = vrot.slane %v6871_v34, 4  ;;  %11468 = vmatprep.subr.bf16.mxu1 %v13486_v19  ;;  %vm19385_vm3 = vcmask 834560   ;;  %vm19386_vm4 = vcmask 965632  }
 0x494   : > { %11469 = vmatpush1.bf16.msra.mxu1 %v13484_v20  ;;  %v11811_v19 = vrot.slane %v17901_v23, %v17524_v6 }
 0x495   : > { %v7259_v18 = vsel %vm693_vm0, %v19383_v29, %v7221_v25  ;;  %v6932_v10 = vsel %vm693_vm0, %v19384_v62, %v6894_v52  ;;  %v7851_v27 = vpop.permute.xlu1 %7850  ;;  %v7524_v31 = vpop.permute.xlu0 %7523  ;;  %v19387_v29 = vrot.slane %v17964_v0, 4 }
 0x496   : > { %v7260_v4 = vsel %vm19385_vm3, %v17920_v32, %v7259_v18  ;;  %v6933_v36 = vsel %vm19386_vm4, %v17922_v40, %v6932_v10  ;;  %v7874_v62 = vrot.slane %v7851_v27, 4  ;;  %v7547_v20 = vrot.slane %v7524_v31, 4 }
 0x497   : > { %7304 = vst [vmem:[#allocation2 + $0x6f0] sm:$0xcc] %v7260_v4  ;;  %6977 = vst [vmem:[#allocation2 + $0x6f0] sm:$0x33] %v6933_v36  ;;  %v18257_v18 = vrot.slane %v11807_v21, %v17474_v41  ;;  %v11815_v40 = vrot.slane %v18242_v12, %v17474_v41  ;;  %vm19390_vm3 = vcmask 818176   ;;  %vm19391_vm4 = vcmask 826368  }
 0x498   : > { %v7912_v26 = vsel %vm693_vm0, %v19387_v29, %v7874_v62  ;;  %v7585_v32 = vsel %vm693_vm0, %v19388_v5, %v7547_v20  ;;  %v18270_v5 = vrot.slane %v11811_v19, %v17474_v41  ;;  %v11819_v21 = vrot.slane %v18242_v12, %v17485_v60 }
 0x499   : > { %19389 = vst [vmem:[#allocation34_spill] sm:$0xff] %v18257_v18  ;;  %v7913_v23 = vsel %vm19390_vm3, %v17964_v0, %v7912_v26  ;;  %v7586_v10 = vsel %vm19391_vm4, %v17966_v43, %v7585_v32  ;;  %v18265_v4 = vpop.permute.xlu1 %7199  ;;  %v18267_v36 = vpop.permute.xlu0 %6872  ;;  %v13487_v29 = vld [vmem:[#allocation2 + $0x5b0] ss:$164 sps:$4 sm:$0xff]   ;;  %vm19395_vm3 = vcmask 834560   ;;  %vm19396_vm4 = vcmask 965632  }
 0x49a   : > { %v13489_v35 = vld [vmem:[#allocation2 + $0x5b4] ss:$164 sps:$4 sm:$0xff]   ;;  %19392 = vst [vmem:[#allocation35_spill] sm:$0xff] %v18270_v5  ;;  %7957 = vst [vmem:[#allocation2 + $0x794] sm:$0xcc] %v7913_v23  ;;  %v19174_v49 = vrot.slane %v18265_v4, 4 }
 0x49b   : > { %7630 = vst [vmem:[#allocation2 + $0x794] sm:$0x33] %v7586_v10  ;;  %v19175_v0 = vrot.slane %v18267_v36, 4  ;;  %11509 = vmatprep.subr.bf16.mxu0 %v13489_v35  ;;  %v18276_v43 = vpop.f32.mrb[20].mxu1  ;;  %v18289_v10 = vrot.slane %v11815_v40, %v17474_v41 }
 0x49c   : > { %v7261_v26 = vsel %vm693_vm0, %v7221_v25, %v19174_v49  ;;  %11510 = vmatpush1.bf16.msra.mxu0 %v13487_v29  ;;  %v12107_v32 = vmul.f32 %v18257_v18, %v18276_v43  ;;  %v18286_v23 = vpop.f32.mrb[21].mxu1  ;;  %v18300_v29 = vrot.slane %v11819_v21, %v17474_v41 }
 0x49d   : > { %v6934_v19 = vsel %vm693_vm0, %v6894_v52, %v19175_v0  ;;  %19393 = vst [vmem:[#allocation36_spill] sm:$0xff] %v18286_v23  ;;  %19394 = vst [vmem:[#allocation37_spill] sm:$0xff] %v18289_v10  ;;  %v7262_v35 = vsel %vm19395_vm3, %v7198_v1, %v7261_v26  ;;  %v18293_v38 = vpop.permute.xlu1 %7852  ;;  %v18295_v25 = vpop.permute.xlu0 %7525  ;;  %v12108_v52 = vmul.f32 %v18270_v5, %v18286_v23  ;;  %vm19397_vm3 = vcmask 818176  }
 0x49e   : > { %v6935_v46 = vsel %vm19396_vm4, %v6871_v34, %v6934_v19  ;;  %7305 = vst [vmem:[#allocation2 + $0x6f8] sm:$0xcc] %v7262_v35  ;;  %v19179_v49 = vrot.slane %v18293_v38, 4  ;;  %v19180_v40 = vrot.slane %v18295_v25, 4  ;;  %v12147_v1 = vadd.f32 %v18013_v16, %v12107_v32  ;;  %v11252_v26 = vpop.f32.mrb[22].mxu1  ;;  %v18305_v34 = vpop.f32.mrb[24].mxu0 }
 0x49f   : > { %6978 = vst [vmem:[#allocation2 + $0x6f8] sm:$0x33] %v6935_v46  ;;  %v11253_v19 = vpop.f32.mrb[23].mxu1  ;;  %v12109_v46 = vmul.f32 %v18289_v10, %v18305_v34  ;;  %v18315_v5 = vpop.f32.mrb[25].mxu0  ;;  %vm19398_vm4 = vcmask 826368   ;;  %v19399_v10 = vrot.slane %v18038_v33, 4 }
 0x4a0   : > { %v7914_v0 = vsel %vm693_vm0, %v7874_v62, %v19179_v49  ;;  %v7587_v21 = vsel %vm693_vm0, %v7547_v20, %v19180_v40  ;;  %v12148_v35 = vadd.f32 %v12147_v1, %v12108_v52  ;;  %v12110_v62 = vmul.f32 %v18300_v29, %v18315_v5  ;;  %v11293_v1 = vpop.f32.mrb[26].mxu0 }
 0x4a1   : > { %v7915_v16 = vsel %vm19397_vm3, %v7851_v27, %v7914_v0  ;;  %v7588_v32 = vsel %vm19398_vm4, %v7524_v31, %v7587_v21  ;;  %v8504_v26 = vpop.permute.xlu1 %8503  ;;  %v8177_v19 = vpop.permute.xlu0 %8176  ;;  %v19400_v31 = vrot.slane %v18019_v37, 4  ;;  %vm19401_vm3 = vcmask 687104  }
 0x4a2   : > { %v13490_v18 = vld [vmem:[#allocation2 + $0x6f0] ss:$164 sps:$4 sm:$0xff]   ;;  %7958 = vst [vmem:[#allocation2 + $0x79c] sm:$0xcc] %v7915_v16  ;;  %7631 = vst [vmem:[#allocation2 + $0x79c] sm:$0x33] %v7588_v32  ;;  %v12149_v49 = vadd.f32 %v12148_v35, %v12109_v46 }
 0x4a3   : > { %v13492_v23 = vld [vmem:[#allocation2 + $0x6f4] ss:$164 sps:$4 sm:$0xff]   ;;  %v8527_v20 = vrot.slane %v8504_v26, 4  ;;  %v8200_v52 = vrot.slane %v8177_v19, 4  ;;  %v11294_v40 = vpop.f32.mrb[27].mxu0  ;;  %vm19403_vm4 = vmmov %vm19401_vm3 }
 0x4a4   : > { %11470 = vmatprep.subr.bf16.mxu1 %v13492_v23  ;;  %v18327_v21 = vadd.f32 %v12149_v49, %v12110_v62  ;;  %v19402_v49 = vrot.slane %v18036_v47, 4 }
 0x4a5   : > { %v8565_v27 = vsel %vm693_vm0, %v19399_v10, %v8527_v20  ;;  %v8238_v0 = vsel %vm693_vm0, %v19400_v31, %v8200_v52  ;;  %11471 = vmatpush1.bf16.msra.mxu1 %v13490_v18  ;;  %v18333_v35 = vpop.permute.xlu1 %8178  ;;  %v8830_v23 = vpop.permute.xlu0 %8829 }
 0x4a6   : > { %v8566_v16 = vsel %vm8531_vm7, %v18038_v33, %v8565_v27  ;;  %v8239_v32 = vsel %vm19401_vm3, %v18019_v37, %v8238_v0  ;;  %v8201_v10 = vrot.slane %v18333_v35, 4  ;;  %v8853_v40 = vrot.slane %v8830_v23, 4 }
 0x4a7   : > { %8610 = vst [vmem:[#allocation2 + $0x838] sm:$0xcc] %v8566_v16  ;;  %8283 = vst [vmem:[#allocation2 + $0x838] sm:$0x33] %v8239_v32  ;;  %vm19404_vm3 = vcmask 670720  }
 0x4a8   : > { %v8240_v18 = vsel %vm693_vm0, %v8200_v52, %v8201_v10  ;;  %v8891_v46 = vsel %vm693_vm0, %v19402_v49, %v8853_v40 }
 0x4a9   : > { %v8241_v33 = vsel %vm19403_vm4, %v8177_v19, %v8240_v18  ;;  %v8892_v37 = vsel %vm19404_vm3, %v18036_v47, %v8891_v46  ;;  %v18345_v62 = vpop.permute.xlu1 %8831  ;;  %v18347_v1 = vpop.permute.xlu0 %8505  ;;  %v13493_v27 = vld [vmem:[#allocation2 + $0x6f8] ss:$164 sps:$4 sm:$0xff]   ;;  %vm19405_vm4 = vmmov %vm19404_vm3  ;;  %vm19408_vm3 = vcmask 744448  }
 0x4aa   : > { %v13495_v31 = vld [vmem:[#allocation2 + $0x6fc] ss:$164 sps:$4 sm:$0xff]   ;;  %8284 = vst [vmem:[#allocation2 + $0x840] sm:$0x33] %v8241_v33  ;;  %8936 = vst [vmem:[#allocation2 + $0x8dc] sm:$0x33] %v8892_v37 }
 0x4ab   : > { %v19182_v0 = vrot.slane %v18345_v62, 4  ;;  %v8528_v52 = vrot.slane %v18347_v1, 4  ;;  %11511 = vmatprep.subr.bf16.mxu0 %v13495_v31  ;;  %v19406_v37 = vrot.slane %v18102_v22, 4 }
 0x4ac   : > { %11512 = vmatpush1.bf16.msra.mxu0 %v13493_v27 }
 0x4ad   : > { %v8893_v19 = vsel %vm693_vm0, %v8853_v40, %v19182_v0  ;;  %v8567_v47 = vsel %vm693_vm0, %v8527_v20, %v8528_v52  ;;  %v2957_v18 = vpop.permute.xlu1 %2956  ;;  %v2631_v49 = vpop.permute.xlu0 %2630  ;;  %v19407_v0 = vrot.slane %v18054_v24, 4 }
 0x4ae   : > { %v8894_v16 = vsel %vm19405_vm4, %v8830_v23, %v8893_v19  ;;  %v8568_v32 = vsel %vm8531_vm7, %v8504_v26, %v8567_v47  ;;  %v2978_v46 = vrot.slane %v2957_v18, 4  ;;  %v2652_v33 = vrot.slane %v2631_v49, 4  ;;  %vm19409_vm4 = vmmov %vm19408_vm3 }
 0x4af   : > { %8937 = vst [vmem:[#allocation2 + $0x8e4] sm:$0x33] %v8894_v16  ;;  %8611 = vst [vmem:[#allocation2 + $0x840] sm:$0xcc] %v8568_v32 }
 0x4b0   : > { %v3018_v31 = vsel %vm693_vm0, %v19406_v37, %v2978_v46  ;;  %v3020_v40 = vsel %vm2980_vm8, %v2957_v18, %v2978_v46  ;;  %v2692_v20 = vsel %vm693_vm0, %v19407_v0, %v2652_v33  ;;  %v2694_v23 = vsel %vm19408_vm3, %v2631_v49, %v2652_v33 }
 0x4b1   : > { %v3019_v26 = vsel %vm2980_vm8, %v18102_v22, %v3018_v31  ;;  %3062 = vst [vmem:[#allocation2 + $0x330] sm:$0x3] %v3020_v40  ;;  %v2693_v27 = vsel %vm19409_vm4, %v18054_v24, %v2692_v20  ;;  %2736 = vst [vmem:[#allocation2 + $0x28c] sm:$0xc] %v2694_v23  ;;  %v3610_v19 = vpop.permute.xlu1 %3609  ;;  %v3284_v47 = vpop.permute.xlu0 %3283  ;;  %v19410_v0 = vrot.slane %v18119_v44, 4  ;;  %v19411_v33 = vrot.slane %v18100_v14, 4 }
 0x4b2   : > { %v13496_v16 = vld [vmem:[#allocation2 + $0x83c] ss:$164 sps:$4 sm:$0x3f]   ;;  %3061 = vst [vmem:[#allocation2 + $0x328] sm:$0x33] %v3019_v26  ;;  %v3631_v32 = vrot.slane %v3610_v19, 4 }
 0x4b3   : > { %2735 = vst [vmem:[#allocation2 + $0x284] sm:$0xcc] %v2693_v27  ;;  %v3305_v18 = vrot.slane %v3284_v47, 4  ;;  %v13498_v46 = vld [vmem:[#allocation2 + $0x838] ss:$164 sps:$4 sm:$0x3f]   ;;  %12922 = vmatprep.subr.msk.bf16.mxu1 %vm10639_vm6, %v13496_v16 }
 0x4b4   : > { %v3671_v49 = vsel %vm693_vm0, %v19410_v0, %v3631_v32  ;;  %v3673_v22 = vsel %vm3633_vm10, %v3610_v19, %v3631_v32  ;;  %v10743_v26 = vsel %vm10639_vm6, %v13498_v46, 0  ;;  %v13501_v27 = vld [vmem:[#allocation2 + $0x9c] ss:$164 sps:$4 sm:$0xff]   ;;  %v19413_v0 = vrot.slane %v18117_v61, 4 }
 0x4b5   : > { %v3345_v24 = vsel %vm693_vm0, %v19411_v33, %v3305_v18  ;;  %v3347_v37 = vsel %vm3307_vm9, %v3284_v47, %v3305_v18  ;;  %v3672_v31 = vsel %vm3633_vm10, %v18119_v44, %v3671_v49  ;;  %3715 = vst [vmem:[#allocation2 + $0x3d4] sm:$0x3] %v3673_v22  ;;  %v4263_v20 = vpop.permute.xlu1 %4262  ;;  %v3937_v23 = vpop.permute.xlu0 %3936  ;;  %11473 = vmatpush1.bf16.msra.mxu1 %v10743_v26  ;;  %v19412_v44 = vrot.slane %v18154_v9, 4  ;;  %v13499_v22 = vld [vmem:[#allocation2 + $0x98] ss:$164 sps:$4 sm:$0xff]  }
 0x4b6   : > { %v3346_v40 = vsel %vm3307_vm9, %v18100_v14, %v3345_v24  ;;  %3389 = vst [vmem:[#allocation2 + $0x330] sm:$0xc] %v3347_v37  ;;  %3714 = vst [vmem:[#allocation2 + $0x3cc] sm:$0x33] %v3672_v31  ;;  %v4284_v19 = vrot.slane %v4263_v20, 4  ;;  %v3958_v16 = vrot.slane %v3937_v23, 4  ;;  %11542 = vmatprep.subr.bf16.mxu1 %v13501_v27 }
 0x4b7   : > { %3388 = vst [vmem:[#allocation2 + $0x328] sm:$0xcc] %v3346_v40  ;;  %v13502_v32 = vld [vmem:[#allocation2 + $0x844] ss:$164 sps:$4 sm:$0x3f]   ;;  %v13588_v27 = vmov 0.0  }
 0x4b8   : > { %v13504_v47 = vld [vmem:[#allocation2 + $0x840] ss:$164 sps:$4 sm:$0x3f]   ;;  %v4324_v18 = vsel %vm693_vm0, %v19412_v44, %v4284_v19  ;;  %v4326_v14 = vsel %vm4286_vm12, %v4263_v20, %v4284_v19  ;;  %v3998_v49 = vsel %vm693_vm0, %v19413_v0, %v3958_v16  ;;  %v4000_v46 = vsel %vm3960_vm11, %v3937_v23, %v3958_v16  ;;  %12924 = vmatprep.subr.msk.bf16.mxu0 %vm10639_vm6, %v13502_v32 }
 0x4b9   : > { %v4325_v33 = vsel %vm4286_vm12, %v18154_v9, %v4324_v18  ;;  %4368 = vst [vmem:[#allocation2 + $0x478] sm:$0x3] %v4326_v14  ;;  %v3999_v24 = vsel %vm3960_vm11, %v18117_v61, %v3998_v49  ;;  %4042 = vst [vmem:[#allocation2 + $0x3d4] sm:$0xc] %v4000_v46  ;;  %12923 = vmatmul.mubr.msk.bf16.vlgmr.msra.gmra.mrb[32].mxu1 %vm2001_vm5, %v18091_v30  ;;  %v4916_v37 = vpop.permute.xlu1 %4915  ;;  %v4590_v31 = vpop.permute.xlu0 %4589  ;;  %v10749_v40 = vsel %vm10639_vm6, %v13504_v47, 0  ;;  %v19414_v61 = vrot.slane %v18168_v11, 4 }
 0x4ba   : > { %v13507_v20 = vld [vmem:[#allocation2 + $0x1e4] ss:$164 sps:$4 sm:$0xff]   ;;  %4367 = vst [vmem:[#allocation2 + $0x470] sm:$0x33] %v4325_v33  ;;  %4041 = vst [vmem:[#allocation2 + $0x3cc] sm:$0xcc] %v3999_v24  ;;  %11514 = vmatpush1.bf16.msra.mxu0 %v10749_v40  ;;  %11543 = vmatpush1.bf16.msra.mxu1 %v13499_v22 }
 0x4bb   : > { %v4937_v23 = vrot.slane %v4916_v37, 4  ;;  %v4611_v26 = vrot.slane %v4590_v31, 4  ;;  %v13505_v9 = vld [vmem:[#allocation2 + $0x1e0] ss:$164 sps:$4 sm:$0xff]   ;;  %11544 = vmatprep.subr.bf16.mxu1 %v13507_v20  ;;  %12939 = vmatprep.subr.bf16.mxu0 %v13588_v27  ;;  %v19415_v32 = vrot.slane %v18152_v57, 4  ;;  %vm13589_vm8 = vmmov 0  }
 0x4bc   : > { %v13508_v18 = vld [vmem:[#allocation2 + $0xa0] ss:$164 sps:$4 sm:$0xff]   ;;  %11574 = vmatprep.mubr.bf16.mxu1 %v19372_v3  ;;  %v19416_v3 = vrot.slane %v18202_v8, 4  ;;  %v19417_v24 = vrot.slane %v18166_v54, 4  ;;  %v13509_v40 = vld [vmem:[#allocation2 + $0x1e8] ss:$164 sps:$4 sm:$0xff]  }
 0x4bd   : > { %v4977_v19 = vsel %vm693_vm0, %v19414_v61, %v4937_v23  ;;  %v4979_v16 = vsel %vm4939_vm14, %v4916_v37, %v4937_v23  ;;  %v4651_v47 = vsel %vm693_vm0, %v19415_v32, %v4611_v26  ;;  %v4653_v44 = vsel %vm4613_vm13, %v4590_v31, %v4611_v26  ;;  %12925 = vmatmul.mubr.msk.bf16.vlgmr.msra.gmra.mrb[36].mxu0 %vm2001_vm5, %v18091_v30  ;;  %v5569_v49 = vpop.permute.xlu1 %5568  ;;  %v5243_v46 = vpop.permute.xlu0 %5242 }
 0x4be   : > { %v4978_v14 = vsel %vm4939_vm14, %v18168_v11, %v4977_v19  ;;  %5021 = vst [vmem:[#allocation2 + $0x51c] sm:$0x3] %v4979_v16  ;;  %v4652_v0 = vsel %vm4613_vm13, %v18152_v57, %v4651_v47  ;;  %4695 = vst [vmem:[#allocation2 + $0x478] sm:$0xc] %v4653_v44  ;;  %v5590_v22 = vrot.slane %v5569_v49, 4  ;;  %v5264_v33 = vrot.slane %v5243_v46, 4  ;;  %11545 = vmatpush1.bf16.msra.mxu1 %v13505_v9 }
 0x4bf   : > { %5020 = vst [vmem:[#allocation2 + $0x514] sm:$0x33] %v4978_v14  ;;  %4694 = vst [vmem:[#allocation2 + $0x470] sm:$0xcc] %v4652_v0  ;;  %12940 = vmatpush3.bf16.msra.mxu0 %v13508_v18  ;;  %12953 = vmatprep.mubr.msk.bf16.mxu0 %vm13589_vm8, %v13588_v27  ;;  %v19418_v47 = vrot.slane %v18216_v48, 4  ;;  %vm19419_vm9 = vcmask 982016  }
 0x4c0   : > { %12941 = vmatprep.subr.bf16.mxu0 %v13588_v27  ;;  %v5630_v57 = vsel %vm693_vm0, %v19416_v3, %v5590_v22  ;;  %v5632_v11 = vsel %vm5592_vm1, %v5569_v49, %v5590_v22  ;;  %v5304_v37 = vsel %vm693_vm0, %v19417_v24, %v5264_v33  ;;  %v5306_v31 = vsel %vm5266_vm15, %v5243_v46, %v5264_v33  ;;  %v13513_v0 = vld [vmem:[#allocation2 + $0x330] ss:$164 sps:$4 sm:$0xff]   ;;  %vm19421_vm10 = vmmov %vm19419_vm9 }
 0x4c1   : > { %v5631_v20 = vsel %vm5592_vm1, %v18202_v8, %v5630_v57  ;;  %5674 = vst [vmem:[#allocation2 + $0x5c0] sm:$0x3] %v5632_v11  ;;  %v5305_v23 = vsel %vm5266_vm15, %v18166_v54, %v5304_v37  ;;  %5348 = vst [vmem:[#allocation2 + $0x51c] sm:$0xc] %v5306_v31  ;;  %v6222_v26 = vpop.permute.xlu1 %6221  ;;  %v5896_v9 = vpop.permute.xlu0 %5895  ;;  %v13510_v61 = vld [vmem:[#allocation2 + $0x328] ss:$164 sps:$4 sm:$0xff]  }
 0x4c2   : > { %v13512_v19 = vld [vmem:[#allocation2 + $0x32c] ss:$164 sps:$4 sm:$0xff]   ;;  %5673 = vst [vmem:[#allocation2 + $0x5b8] sm:$0x33] %v5631_v20  ;;  %5347 = vst [vmem:[#allocation2 + $0x514] sm:$0xcc] %v5305_v23 }
 0x4c3   : > { %v6243_v16 = vrot.slane %v6222_v26, 4  ;;  %v5917_v32 = vrot.slane %v5896_v9, 4  ;;  %12942 = vmatpush3.bf16.msra.mxu0 %v13509_v40  ;;  %11546 = vmatprep.subr.bf16.mxu1 %v13512_v19  ;;  %v19420_v54 = vrot.slane %v18200_v15, 4  ;;  %v19422_v11 = vrot.slane %v18267_v36, 4 }
 0x4c4   : > { %12943 = vmatprep.subr.bf16.mxu0 %v13588_v27  ;;  %11547 = vmatpush1.bf16.msra.mxu1 %v13510_v61  ;;  %vm19423_vm11 = vcmask 965632   ;;  %v19424_v37 = vrot.slane %v18214_v2, 4  ;;  %vm19425_vm12 = vcmask 973824   ;;  %vm19429_vm15 = vcmask 826368  }
 0x4c5   : > { %v6283_v8 = vsel %vm693_vm0, %v19418_v47, %v6243_v16  ;;  %v6285_v44 = vsel %vm19419_vm9, %v6222_v26, %v6243_v16  ;;  %v5957_v18 = vsel %vm693_vm0, %v19420_v54, %v5917_v32  ;;  %v5959_v14 = vsel %vm5919_vm2, %v5896_v9, %v5917_v32  ;;  %v6875_v22 = vpop.permute.xlu1 %6874  ;;  %v6549_v33 = vpop.permute.xlu0 %6548  ;;  %vm19426_vm13 = vmmov %vm19423_vm11 }
 0x4c6   : > { %v6284_v49 = vsel %vm19421_vm10, %v18216_v48, %v6283_v8  ;;  %6327 = vst [vmem:[#allocation2 + $0x664] sm:$0x3] %v6285_v44  ;;  %v5958_v46 = vsel %vm5919_vm2, %v18200_v15, %v5957_v18  ;;  %6001 = vst [vmem:[#allocation2 + $0x5c0] sm:$0xc] %v5959_v14  ;;  %v6896_v3 = vrot.slane %v6875_v22, 4  ;;  %v6570_v57 = vrot.slane %v6549_v33, 4 }
 0x4c7   : > { %6326 = vst [vmem:[#allocation2 + $0x65c] sm:$0x33] %v6284_v49  ;;  %6000 = vst [vmem:[#allocation2 + $0x5b8] sm:$0xcc] %v5958_v46  ;;  %12944 = vmatpush3.bf16.msra.mxu0 %v13513_v0  ;;  %v19428_v47 = vrot.slane %v18295_v25, 4  ;;  %vm19431_vm1 = vcmask 834560  }
 0x4c8   : > { %12945 = vmatprep.subr.bf16.mxu0 %v13588_v27  ;;  %v6936_v24 = vsel %vm693_vm0, %v19422_v11, %v6896_v3  ;;  %v6938_v48 = vsel %vm19423_vm11, %v6875_v22, %v6896_v3  ;;  %v6610_v15 = vsel %vm693_vm0, %v19424_v37, %v6570_v57  ;;  %v6612_v31 = vsel %vm19425_vm12, %v6549_v33, %v6570_v57  ;;  %v13514_v40 = vld [vmem:[#allocation2 + $0x478] ss:$164 sps:$4 sm:$0xff]   ;;  %vm19427_vm14 = vmmov %vm19425_vm12 }
 0x4c9   : > { %v6937_v20 = vsel %vm19426_vm13, %v18267_v36, %v6936_v24  ;;  %6980 = vst [vmem:[#allocation2 + $0x708] sm:$0x3] %v6938_v48  ;;  %v6611_v23 = vsel %vm19427_vm14, %v18214_v2, %v6610_v15  ;;  %6654 = vst [vmem:[#allocation2 + $0x664] sm:$0xc] %v6612_v31  ;;  %v7528_v26 = vpop.permute.xlu1 %7527  ;;  %v7202_v9 = vpop.permute.xlu0 %7201  ;;  %v13515_v61 = vld [vmem:[#allocation2 + $0x470] ss:$164 sps:$4 sm:$0xff]  }
 0x4ca   : > { %v13517_v19 = vld [vmem:[#allocation2 + $0x474] ss:$164 sps:$4 sm:$0xff]   ;;  %6979 = vst [vmem:[#allocation2 + $0x700] sm:$0x33] %v6937_v20  ;;  %6653 = vst [vmem:[#allocation2 + $0x65c] sm:$0xcc] %v6611_v23 }
 0x4cb   : > { %v7549_v16 = vrot.slane %v7528_v26, 4  ;;  %v7223_v32 = vrot.slane %v7202_v9, 4  ;;  %12946 = vmatpush3.bf16.msra.mxu0 %v13514_v40  ;;  %11548 = vmatprep.subr.bf16.mxu1 %v13517_v19  ;;  %v19430_v2 = vrot.slane %v18265_v4, 4  ;;  %vm19432_vm2 = vmmov %vm19429_vm15  ;;  %vm19434_vm4 = vcmask 687104  }
 0x4cc   : > { %12947 = vmatprep.subr.bf16.mxu0 %v13588_v27  ;;  %11549 = vmatpush1.bf16.msra.mxu1 %v13515_v61  ;;  %vm19433_vm3 = vmmov %vm19431_vm1  ;;  %v19435_v57 = vrot.slane %v18293_v38, 4  ;;  %vm19436_vm8 = vcmask 818176   ;;  %v19439_v23 = vrot.slane %v18345_v62, 4  ;;  %vm19440_vm11 = vcmask 670720  }
 0x4cd   : > { %v7589_v36 = vsel %vm693_vm0, %v19428_v47, %v7549_v16  ;;  %v7591_v8 = vsel %vm19429_vm15, %v7528_v26, %v7549_v16  ;;  %v7263_v44 = vsel %vm693_vm0, %v19430_v2, %v7223_v32  ;;  %v7265_v54 = vsel %vm19431_vm1, %v7202_v9, %v7223_v32  ;;  %v8181_v0 = vpop.permute.xlu1 %8180  ;;  %v7855_v49 = vpop.permute.xlu0 %7854  ;;  %vm19437_vm9 = vmmov %vm19434_vm4 }
 0x4ce   : > { %v7590_v18 = vsel %vm19432_vm2, %v18295_v25, %v7589_v36  ;;  %7633 = vst [vmem:[#allocation2 + $0x7ac] sm:$0x3] %v7591_v8  ;;  %v7264_v14 = vsel %vm19433_vm3, %v18265_v4, %v7263_v44  ;;  %7307 = vst [vmem:[#allocation2 + $0x708] sm:$0xc] %v7265_v54  ;;  %v8202_v46 = vrot.slane %v8181_v0, 4  ;;  %v7876_v22 = vrot.slane %v7855_v49, 4 }
 0x4cf   : > { %7632 = vst [vmem:[#allocation2 + $0x7a4] sm:$0x33] %v7590_v18  ;;  %7306 = vst [vmem:[#allocation2 + $0x700] sm:$0xcc] %v7264_v14  ;;  %v11823_v2 = vrot.slane %v18242_v12, %v17493_v50  ;;  %v11827_v44 = vrot.slane %v18242_v12, %v17524_v6 }
 0x4d0   : > { %v8242_v33 = vsel %vm693_vm0, %v8201_v10, %v8202_v46  ;;  %v8244_v3 = vsel %vm19434_vm4, %v8181_v0, %v8202_v46  ;;  %v7916_v25 = vsel %vm693_vm0, %v19435_v57, %v7876_v22  ;;  %v7918_v11 = vsel %vm19436_vm8, %v7855_v49, %v7876_v22  ;;  %v13518_v4 = vld [vmem:[#allocation2 + $0x5c0] ss:$164 sps:$4 sm:$0xff]   ;;  %vm19438_vm10 = vmmov %vm19436_vm8 }
 0x4d1   : > { %v8243_v24 = vsel %vm19437_vm9, %v18333_v35, %v8242_v33  ;;  %8286 = vst [vmem:[#allocation2 + $0x850] sm:$0x3] %v8244_v3  ;;  %v7917_v48 = vsel %vm19438_vm10, %v18293_v38, %v7916_v25  ;;  %7960 = vst [vmem:[#allocation2 + $0x7ac] sm:$0xc] %v7918_v11  ;;  %v8834_v37 = vpop.permute.xlu1 %8833  ;;  %v8508_v15 = vpop.permute.xlu0 %8507  ;;  %v13519_v10 = vld [vmem:[#allocation2 + $0x5b8] ss:$164 sps:$4 sm:$0xff]   ;;  %12948 = vmatpush3.bf16.msra.mxu0 %v13518_v4  ;;  %v18510_v18 = vrot.slane %v11823_v2, %v17474_v41 }
 0x4d2   : > { %v13521_v31 = vld [vmem:[#allocation2 + $0x5bc] ss:$164 sps:$4 sm:$0xff]   ;;  %8285 = vst [vmem:[#allocation2 + $0x848] sm:$0x33] %v8243_v24  ;;  %7959 = vst [vmem:[#allocation2 + $0x7a4] sm:$0xcc] %v7917_v48  ;;  %12949 = vmatprep.subr.bf16.mxu0 %v13588_v27  ;;  %v18514_v0 = vrot.slane %v11827_v44, %v17474_v41 }
 0x4d3   : > { %v8855_v40 = vrot.slane %v8834_v37, 4  ;;  %v8529_v20 = vrot.slane %v8508_v15, 4  ;;  %11550 = vmatprep.subr.bf16.mxu1 %v13521_v31  ;;  %vm19441_vm12 = vmmov %vm19440_vm11 }
 0x4d4   : > { %11551 = vmatpush1.bf16.msra.mxu1 %v13519_v10 }
 0x4d5   : > { %v8895_v35 = vsel %vm693_vm0, %v19439_v23, %v8855_v40  ;;  %v8897_v26 = vsel %vm19440_vm11, %v8834_v37, %v8855_v40  ;;  %v8569_v38 = vsel %vm693_vm0, %v8528_v52, %v8529_v20  ;;  %v8571_v9 = vsel %vm8531_vm7, %v8508_v15, %v8529_v20  ;;  %v216_v40 = vld [vmem:[%s19079_s2 + $0x20] sm:$0xff] }
 0x4d6   : > { %v8896_v61 = vsel %vm19441_vm12, %v18345_v62, %v8895_v35  ;;  %8939 = vst [vmem:[#allocation2 + $0x8f4] sm:$0x3] %v8897_v26  ;;  %v8570_v19 = vsel %vm8531_vm7, %v18347_v1, %v8569_v38  ;;  %8613 = vst [vmem:[#allocation2 + $0x850] sm:$0xc] %v8571_v9 }
 0x4d7   : > { %8938 = vst [vmem:[#allocation2 + $0x8ec] sm:$0x33] %v8896_v61  ;;  %8612 = vst [vmem:[#allocation2 + $0x848] sm:$0xcc] %v8570_v19 }
 0x4d8   : > { %v13522_v16 = vld [vmem:[#allocation2 + $0x708] ss:$164 sps:$4 sm:$0xff]  }
 0x4d9   : > { %v13523_v32 = vld [vmem:[#allocation2 + $0x700] ss:$164 sps:$4 sm:$0xff]   ;;  %12950 = vmatpush3.bf16.msra.mxu0 %v13522_v16 }
 0x4da   : > { %v13525_v47 = vld [vmem:[#allocation2 + $0x704] ss:$164 sps:$4 sm:$0xff]   ;;  %12951 = vmatprep.subr.bf16.mxu0 %v13588_v27  ;;  %v225_v27 = vunpack.c.h.bf16 %v18229_v13 }
 0x4db   : > { %11552 = vmatprep.subr.bf16.mxu1 %v13525_v47 }
 0x4dc   : > { %11553 = vmatpush1.bf16.msra.mxu1 %v13523_v32  ;;  %v11831_v54 = vrot.slane %v225_v27, %v17474_v41  ;;  %v11835_v14 = vrot.slane %v225_v27, %v17485_v60  ;;  %v11839_v20 = vrot.slane %v225_v27, %v17493_v50  ;;  %v11843_v23 = vrot.slane %v225_v27, %v17524_v6 }
 0x4dd   : > { %v13528_v36 = vld [vmem:[#allocation2 + $0x850] ss:$164 sps:$4 sm:$0x3f]  }
 0x4de   : > { %v13526_v52 = vld [vmem:[#allocation2 + $0x84c] ss:$164 sps:$4 sm:$0x3f]   ;;  %v10761_v62 = vsel %vm10639_vm6, %v13528_v36, 0  ;;  %v18521_v13 = vrot.slane %v11831_v54, %v17474_v41  ;;  %v18526_v22 = vrot.slane %v11835_v14, %v17474_v41  ;;  %v18546_v26 = vrot.slane %v11839_v20, %v17474_v41 }
 0x4df   : > { %v13529_v8 = vld [vmem:[#allocation2 + $0x848] ss:$164 sps:$4 sm:$0x3f]   ;;  %12926 = vmatprep.subr.msk.bf16.mxu1 %vm10639_vm6, %v13526_v52  ;;  %12952 = vmatpush3.bf16.msra.mxu0 %v10761_v62  ;;  %v18550_v9 = vrot.slane %v11843_v23, %v17474_v41 }
 0x4e0   : > { %v10755_v1 = vsel %vm10639_vm6, %v13529_v8, 0 }
 0x4e1   : > { %11555 = vmatpush1.bf16.msra.mxu1 %v10755_v1 }
 0x4e2   : > { %12954 = vmatmul.mubr.msk.bf16.vlgmr.msra.gmra.mrb[40].mxu0 %vm2001_vm5, %v18091_v30 }
 0x4e4   : > { %12927 = vmatmul.mubr.msk.bf16.vlgmr.msra.gmra.mrb[36].mxu1 %vm2001_vm5, %v18091_v30 }
 0x4e6   : > { %v18516_v49 = vpop.f32.mrb[24].mxu1 }
 0x4e7   : > { %v18518_v30 = vpop.f32.mrb[25].mxu1  ;;  %v12111_v12 = vmul.f32 %v18510_v18, %v18516_v49 }
 0x4e8   : > { %v11334_v46 = vpop.f32.mrb[26].mxu1  ;;  %v12112_v33 = vmul.f32 %v18514_v0, %v18518_v30 }
 0x4e9   : > { %v11335_v3 = vpop.f32.mrb[27].mxu1  ;;  %v12151_v57 = vadd.f32 %v18327_v21, %v12111_v12  ;;  %v226_v21 = vunpack.c.l.bf16 %v216_v40 }
 0x4ea   : > { %v18531_v25 = vpop.f32.mrb[28].mxu0  ;;  %v227_v3 = vunpack.c.h.bf16 %v216_v40 }
 0x4eb   : > { %v18533_v11 = vpop.f32.mrb[29].mxu0  ;;  %v12113_v4 = vmul.f32 %v18521_v13, %v18531_v25  ;;  %v12152_v24 = vadd.f32 %v12151_v57, %v12112_v33  ;;  %v11847_v35 = vrot.slane %v226_v21, %v17474_v41  ;;  %v11851_v38 = vrot.slane %v226_v21, %v17485_v60 }
 0x4ec   : > { %v11375_v48 = vpop.f32.mrb[30].mxu0  ;;  %v12114_v37 = vmul.f32 %v18526_v22, %v18533_v11  ;;  %v11855_v57 = vrot.slane %v226_v21, %v17493_v50 }
 0x4ed   : > { %v11376_v15 = vpop.f32.mrb[31].mxu0  ;;  %v12153_v10 = vadd.f32 %v12152_v24, %v12113_v4  ;;  %v18557_v16 = vrot.slane %v11847_v35, %v17474_v41  ;;  %v18562_v52 = vrot.slane %v11851_v38, %v17474_v41  ;;  %v11859_v4 = vrot.slane %v226_v21, %v17524_v6 }
 0x4ee   : > { %v11863_v24 = vrot.slane %v227_v3, %v17474_v41  ;;  %v18575_v48 = vrot.slane %v11855_v57, %v17474_v41  ;;  %v11871_v57 = vrot.slane %v227_v3, %v17493_v50 }
 0x4ef   : > { %v12154_v31 = vadd.f32 %v12153_v10, %v12114_v37  ;;  %v11867_v37 = vrot.slane %v227_v3, %v17485_v60  ;;  %v18579_v15 = vrot.slane %v11859_v4, %v17474_v41 }
 0x4f0   : > { %v18582_v20 = vrot.slane %v11863_v24, %v17474_v41  ;;  %v18598_v24 = vrot.slane %v11871_v57, %v17474_v41 }
 0x4f1   : > { %v18586_v21 = vrot.slane %v11867_v37, %v17474_v41 }
 0x53b   : > { %v18552_v61 = vpop.f32.mrb[28].mxu1 }
 0x53c   : > { %v18554_v19 = vpop.f32.mrb[29].mxu1  ;;  %v12115_v32 = vmul.f32 %v18546_v26, %v18552_v61 }
 0x53d   : > { %v11416_v47 = vpop.f32.mrb[30].mxu1  ;;  %v12116_v36 = vmul.f32 %v18550_v9, %v18554_v19 }
 0x53e   : > { %v11417_v8 = vpop.f32.mrb[31].mxu1  ;;  %v12155_v62 = vadd.f32 %v12154_v31, %v12115_v32 }
 0x53f   : > { %v18566_v1 = vpop.f32.mrb[32].mxu0 }
 0x540   : > { %v11455_v27 = vpop.f32.mrb[33].mxu0  ;;  %v12117_v2 = vmul.f32 %v18557_v16, %v18566_v1  ;;  %v12156_v44 = vadd.f32 %v12155_v62, %v12116_v36 }
 0x541   : > { %v11457_v54 = vpop.f32.mrb[34].mxu0  ;;  %v12118_v14 = vmul.f32 %v18562_v52, %v11455_v27 }
 0x542   : > { %v11458_v12 = vpop.f32.mrb[35].mxu0  ;;  %v12157_v46 = vadd.f32 %v12156_v44, %v12117_v2 }
 0x543   : > { %v217_v12 = vld [vmem:[%s19079_s2 + $0x28] sm:$0x1] }
 0x544   : > { %v12158_v33 = vadd.f32 %v12157_v46, %v12118_v14  ;;  %v228_v46 = vunpack.c.l.bf16 %v217_v12 }
 0x546   : > { %v11879_v4 = vrot.slane %v228_v46, %v17474_v41 }
 0x58c   : > { %v11494_v10 = vpop.f32.mrb[32].mxu1 }
 0x58d   : > { %v11496_v31 = vpop.f32.mrb[33].mxu1  ;;  %v12119_v40 = vmul.f32 %v18575_v48, %v11494_v10 }
 0x58e   : > { %v11498_v23 = vpop.f32.mrb[34].mxu1  ;;  %v12120_v35 = vmul.f32 %v18579_v15, %v11496_v31 }
 0x58f   : > { %v11499_v38 = vpop.f32.mrb[35].mxu1  ;;  %v12159_v32 = vadd.f32 %v12158_v33, %v12119_v40  ;;  %v11875_v33 = vrot.slane %v227_v3, %v17524_v6  ;;  %v18604_v40 = vrot.slane %v11879_v4, %v17474_v41 }
 0x590   : > { %v11535_v47 = vpop.f32.mrb[36].mxu0 }
 0x591   : > { %v11537_v60 = vpop.f32.mrb[37].mxu0  ;;  %v12121_v36 = vmul.f32 %v18582_v20, %v11535_v47  ;;  %v12160_v8 = vadd.f32 %v12159_v32, %v12120_v35  ;;  %v18601_v37 = vrot.slane %v11875_v33, %v17474_v41 }
 0x592   : > { %v11539_v62 = vpop.f32.mrb[38].mxu0  ;;  %v12122_v2 = vmul.f32 %v18586_v21, %v11537_v60 }
 0x593   : > { %v11540_v44 = vpop.f32.mrb[39].mxu0  ;;  %v12161_v54 = vadd.f32 %v12160_v8, %v12121_v36 }
 0x595   : > { %v12162_v14 = vadd.f32 %v12161_v54, %v12122_v2 }
 0x5b5   : > { %v11617_v35 = vpop.f32.mrb[40].mxu0 }
 0x5b6   : > { %v12955_v32 = vpop.f32.mrb[41].mxu0  ;;  %v12125_v2 = vmul.f32 %v18604_v40, %v11617_v35 }
 0x5b7   : > { %v11576_v23 = vpop.f32.mrb[36].mxu1  ;;  %v11620_v8 = vpop.f32.mrb[42].mxu0 }
 0x5b8   : > { %v11578_v38 = vpop.f32.mrb[37].mxu1  ;;  %v12123_v36 = vmul.f32 %v18598_v24, %v11576_v23  ;;  %v12956_v62 = vpop.f32.mrb[43].mxu0 }
 0x5b9   : > { %v11580_v50 = vpop.f32.mrb[38].mxu1  ;;  %v12124_v6 = vmul.f32 %v18601_v37, %v11578_v38 }
 0x5ba   : > { %v11581_v3 = vpop.f32.mrb[39].mxu1  ;;  %v12163_v44 = vadd.f32 %v12162_v14, %v12123_v36 }
 0x5bb   : > { %v19443_v3 = vld [vmem:[#allocation3_spill] sm:$0xff] }
 0x5bc   : > { %v12164_v54 = vadd.f32 %v12163_v44, %v12124_v6  ;;  %v19446_v44 = vld [vmem:[#allocation4_spill] sm:$0xff] }
 0x5be   : > { %v12165_v12 = vadd.f32 %v12164_v54, %v12125_v2  ;;  %v19444_v2 = vld [vmem:[#allocation6_spill] sm:$0xff] }
 0x5c0   : > { %12166 = vadd.xlane.f32.xlu0 %v12165_v12 }
 0x64d   : > { %v12167_v41 = vpop.xlane.xlu0 %12166 }
 0x64e   : > { %v18609_v46 = vmul.f32 0.00024414063, %v12167_v41  ;;  %v19447_v41 = vld [vmem:[#allocation9_spill] sm:$0xff] }
 0x650   : > { %v18612_v57 = vsub.f32 %v11455_v27, %v18609_v46  ;;  %v18615_v33 = vsub.f32 %v11494_v10, %v18609_v46  ;;  %v18618_v4 = vsub.f32 %v11496_v31, %v18609_v46  ;;  %v18621_v32 = vsub.f32 %v11535_v47, %v18609_v46 }
 0x651   : > { %v18624_v14 = vsub.f32 %v11537_v60, %v18609_v46  ;;  %v18627_v36 = vsub.f32 %v11576_v23, %v18609_v46  ;;  %v18630_v50 = vsub.f32 %v11578_v38, %v18609_v46  ;;  %v18633_v27 = vsub.f32 %v11617_v35, %v18609_v46 }
 0x652   : > { %v18637_v10 = vsub.f32 %v17489_v55, %v18609_v46  ;;  %v18641_v31 = vsub.f32 %v17499_v56, %v18609_v46  ;;  %v18645_v47 = vsub.f32 %v17539_v58, %v18609_v46  ;;  %v18653_v35 = vsub.f32 %v17567_v51, %v18609_v46 }
 0x653   : > { %v18657_v55 = vsub.f32 %v17577_v53, %v18609_v46  ;;  %v18671_v51 = vsub.f32 %v17618_v17, %v18609_v46  ;;  %v18678_v6 = vsub.f32 %v17653_v39, %v18609_v46  ;;  %v18685_v17 = vsub.f32 %v19444_v2, %v18609_v46  ;;  %v19455_v2 = vld [vmem:[#allocation8_spill] sm:$0xff] }
 0x654   : > { %v12210_v60 = vmul.f32 %v18637_v10, %v17509_v28  ;;  %v12211_v23 = vmul.f32 %v18641_v31, %v17521_v63  ;;  %v12212_v56 = vmul.f32 %v18645_v47, %v17531_v45  ;;  %v18665_v28 = vsub.f32 %v17609_v7, %v18609_v46 }
 0x655   : > { %v12213_v63 = vmul.f32 %v18653_v35, %v17563_v42  ;;  %v12214_v53 = vmul.f32 %v18657_v55, %v17586_v59  ;;  %19442 = vst [vmem:[#allocation38_spill] sm:$0xff] %v18678_v6  ;;  %19445 = vst [vmem:[#allocation3_spill] sm:$0xff] %v18685_v17  ;;  %v12216_v59 = vmul.f32 %v18671_v51, %v19446_v44 }
 0x656   : > { %v12251_v58 = vmul.f32 %v12210_v60, %v18637_v10  ;;  %v12252_v38 = vmul.f32 %v12211_v23, %v18641_v31  ;;  %v12253_v45 = vmul.f32 %v12212_v56, %v18645_v47  ;;  %v12215_v7 = vmul.f32 %v18665_v28, %v19443_v3  ;;  %v19449_v60 = vld [vmem:[#allocation5_spill] sm:$0xff] }
 0x657   : > { %v12254_v62 = vmul.f32 %v12213_v63, %v18653_v35  ;;  %v12255_v54 = vmul.f32 %v12214_v53, %v18657_v55  ;;  %v18692_v39 = vsub.f32 %v19447_v41, %v18609_v46  ;;  %v12217_v23 = vmul.f32 %v18678_v6, %v19449_v60  ;;  %v19458_v60 = vld [vmem:[#allocation11_spill] sm:$0xff] }
 0x658   : > { %v12292_v8 = vadd.f32 %v12252_v38, %v12251_v58  ;;  %v12256_v56 = vmul.f32 %v12215_v7, %v18665_v28  ;;  %v19450_v38 = vld [vmem:[#allocation10_spill] sm:$0xff]  ;;  %v12257_v53 = vmul.f32 %v12216_v59, %v18671_v51 }
 0x659   : > { %19448 = vst [vmem:[#allocation6_spill] sm:$0xff] %v18692_v39  ;;  %v18699_v63 = vsub.f32 %v19450_v38, %v18609_v46  ;;  %v12219_v44 = vmul.f32 %v18692_v39, %v19455_v2  ;;  %v12258_v7 = vmul.f32 %v12217_v23, %v18678_v6  ;;  %v19464_v6 = vld [vmem:[#allocation15_spill] sm:$0xff] }
 0x65a   : > { %v12293_v42 = vadd.f32 %v12292_v8, %v12253_v45  ;;  %v19452_v45 = vld [vmem:[#allocation7_spill] sm:$0xff] }
 0x65b   : > { %19451 = vst [vmem:[#allocation4_spill] sm:$0xff] %v18699_v63  ;;  %v12218_v8 = vmul.f32 %v18685_v17, %v19452_v45  ;;  %v12220_v38 = vmul.f32 %v18699_v63, %v19458_v60  ;;  %v12260_v23 = vmul.f32 %v12219_v44, %v18692_v39  ;;  %v19469_v39 = vld [vmem:[#allocation19_spill] sm:$0xff] }
 0x65c   : > { %v12294_v12 = vadd.f32 %v12293_v42, %v12254_v62  ;;  %v19453_v62 = vld [vmem:[#allocation13_spill] sm:$0xff] }
 0x65d   : > { %v18706_v42 = vsub.f32 %v19453_v62, %v18609_v46  ;;  %v12259_v59 = vmul.f32 %v12218_v8, %v18685_v17  ;;  %v19461_v62 = vld [vmem:[#allocation12_spill] sm:$0xff]  ;;  %v12261_v8 = vmul.f32 %v12220_v38, %v18699_v63 }
 0x65e   : > { %v12295_v58 = vadd.f32 %v12294_v12, %v12255_v54  ;;  %v19456_v12 = vld [vmem:[#allocation14_spill] sm:$0xff]  ;;  %v19466_v17 = vld [vmem:[#allocation16_spill] sm:$0xff] }
 0x65f   : > { %19454 = vst [vmem:[#allocation9_spill] sm:$0xff] %v18706_v42  ;;  %v18713_v41 = vsub.f32 %v19456_v12, %v18609_v46  ;;  %v12221_v2 = vmul.f32 %v18706_v42, %v19461_v62  ;;  %v19471_v63 = vld [vmem:[#allocation20_spill] sm:$0xff] }
 0x660   : > { %v12296_v3 = vadd.f32 %v12295_v58, %v12256_v56  ;;  %v19459_v58 = vld [vmem:[#allocation17_spill] sm:$0xff] }
 0x661   : > { %19457 = vst [vmem:[#allocation5_spill] sm:$0xff] %v18713_v41  ;;  %v18720_v45 = vsub.f32 %v19459_v58, %v18609_v46  ;;  %v12222_v60 = vmul.f32 %v18713_v41, %v19464_v6  ;;  %v12262_v44 = vmul.f32 %v12221_v2, %v18706_v42  ;;  %v19473_v42 = vld [vmem:[#allocation23_spill] sm:$0xff] }
 0x662   : > { %v12297_v54 = vadd.f32 %v12296_v3, %v12257_v53  ;;  %v19462_v3 = vld [vmem:[#allocation18_spill] sm:$0xff] }
 0x663   : > { %19460 = vst [vmem:[#allocation10_spill] sm:$0xff] %v18720_v45  ;;  %v18727_v12 = vsub.f32 %v19462_v3, %v18609_v46  ;;  %v12223_v62 = vmul.f32 %v18720_v45, %v19466_v17  ;;  %v12263_v38 = vmul.f32 %v12222_v60, %v18713_v41  ;;  %v19475_v41 = vld [vmem:[#allocation24_spill] sm:$0xff] }
 0x664   : > { %v12298_v56 = vadd.f32 %v12297_v54, %v12258_v7  ;;  %v19465_v54 = vld [vmem:[#allocation21_spill] sm:$0xff] }
 0x665   : > { %19463 = vst [vmem:[#allocation7_spill] sm:$0xff] %v18727_v12  ;;  %v18734_v58 = vsub.f32 %v19465_v54, %v18609_v46  ;;  %v12224_v6 = vmul.f32 %v18727_v12, %v19469_v39  ;;  %v12264_v2 = vmul.f32 %v12223_v62, %v18720_v45  ;;  %v19477_v45 = vld [vmem:[#allocation26_spill] sm:$0xff] }
 0x666   : > { %v12299_v53 = vadd.f32 %v12298_v56, %v12259_v59  ;;  %v19467_v56 = vld [vmem:[#allocation22_spill] sm:$0xff] }
 0x667   : > { %v18741_v3 = vsub.f32 %v19467_v56, %v18609_v46  ;;  %v12225_v17 = vmul.f32 %v18734_v58, %v19471_v63  ;;  %v12265_v60 = vmul.f32 %v12224_v6, %v18727_v12  ;;  %v19479_v12 = vld [vmem:[#allocation27_spill] sm:$0xff] }
 0x668   : > { %v12300_v7 = vadd.f32 %v12299_v53, %v12260_v23  ;;  %v19470_v53 = vld [vmem:[#allocation25_spill] sm:$0xff] }
 0x669   : > { %19468 = vst [vmem:[#allocation13_spill] sm:$0xff] %v18741_v3  ;;  %v18748_v54 = vsub.f32 %v19470_v53, %v18609_v46  ;;  %v12226_v39 = vmul.f32 %v18741_v3, %v19473_v42  ;;  %v12266_v62 = vmul.f32 %v12225_v17, %v18734_v58 }
 0x66a   : > { %v12301_v59 = vadd.f32 %v12300_v7, %v12261_v8  ;;  %v19472_v7 = vld [vmem:[#allocation28_spill] sm:$0xff] }
 0x66b   : > { %v18755_v56 = vsub.f32 %v19472_v7, %v18609_v46  ;;  %v12227_v63 = vmul.f32 %v18748_v54, %v19475_v41  ;;  %v12267_v6 = vmul.f32 %v12226_v39, %v18741_v3  ;;  %v19482_v3 = vld [vmem:[#allocation31_spill] sm:$0xff] }
 0x66c   : > { %v12302_v23 = vadd.f32 %v12301_v59, %v12262_v44  ;;  %v19474_v59 = vld [vmem:[#allocation29_spill] sm:$0xff] }
 0x66d   : > { %v18762_v53 = vsub.f32 %v19474_v59, %v18609_v46  ;;  %v12228_v42 = vmul.f32 %v18755_v56, %v19477_v45  ;;  %v12268_v17 = vmul.f32 %v12227_v63, %v18748_v54 }
 0x66e   : > { %v12303_v8 = vadd.f32 %v12302_v23, %v12263_v38  ;;  %v19476_v23 = vld [vmem:[#allocation32_spill] sm:$0xff] }
 0x66f   : > { %v18769_v7 = vsub.f32 %v19476_v23, %v18609_v46  ;;  %v12229_v41 = vmul.f32 %v18762_v53, %v19479_v12  ;;  %v19480_v23 = vld [vmem:[#allocation30_spill] sm:$0xff]  ;;  %v12269_v39 = vmul.f32 %v12228_v42, %v18755_v56 }
 0x670   : > { %v12304_v44 = vadd.f32 %v12303_v8, %v12264_v2  ;;  %v19478_v8 = vld [vmem:[#allocation33_spill] sm:$0xff] }
 0x671   : > { %v18776_v59 = vsub.f32 %v19478_v8, %v18609_v46  ;;  %v12230_v45 = vmul.f32 %v18769_v7, %v19480_v23  ;;  %v12270_v63 = vmul.f32 %v12229_v41, %v18762_v53 }
 0x672   : > { %v12305_v38 = vadd.f32 %v12304_v44, %v12265_v60  ;;  %v18783_v44 = vsub.f32 %v18276_v43, %v18609_v46  ;;  %v18797_v43 = vsub.f32 %v18305_v34, %v18609_v46  ;;  %v18811_v34 = vsub.f32 %v18516_v49, %v18609_v46 }
 0x673   : > { %v12231_v12 = vmul.f32 %v18776_v59, %v19482_v3  ;;  %v12271_v42 = vmul.f32 %v12230_v45, %v18769_v7  ;;  %v18825_v49 = vsub.f32 %v18531_v25, %v18609_v46  ;;  %v18839_v25 = vsub.f32 %v18552_v61, %v18609_v46 }
 0x674   : > { %v12306_v2 = vadd.f32 %v12305_v38, %v12266_v62  ;;  %v19481_v38 = vld [vmem:[#allocation36_spill] sm:$0xff]  ;;  %v18853_v61 = vsub.f32 %v18566_v1, %v18609_v46  ;;  %v12243_v1 = vmul.f32 %v18612_v57, %v18562_v52 }
 0x675   : > { %v18790_v8 = vsub.f32 %v19481_v38, %v18609_v46  ;;  %v19484_v38 = vld [vmem:[#allocation35_spill] sm:$0xff]  ;;  %v12272_v41 = vmul.f32 %v12231_v12, %v18776_v59 }
 0x676   : > { %v12307_v60 = vadd.f32 %v12306_v2, %v12267_v6  ;;  %v19483_v2 = vld [vmem:[#allocation34_spill] sm:$0xff] }
 0x677   : > { %v12232_v23 = vmul.f32 %v18783_v44, %v19483_v2  ;;  %v12233_v3 = vmul.f32 %v18790_v8, %v19484_v38 }
 0x678   : > { %v12308_v62 = vadd.f32 %v12307_v60, %v12268_v17  ;;  %v18804_v60 = vsub.f32 %v18315_v5, %v18609_v46  ;;  %v18818_v5 = vsub.f32 %v18518_v30, %v18609_v46  ;;  %v18832_v30 = vsub.f32 %v18533_v11, %v18609_v46 }
 0x679   : > { %v12273_v45 = vmul.f32 %v12232_v23, %v18783_v44  ;;  %v12274_v12 = vmul.f32 %v12233_v3, %v18790_v8  ;;  %v18846_v11 = vsub.f32 %v18554_v19, %v18609_v46 }
 0x67a   : > { %v12309_v6 = vadd.f32 %v12308_v62, %v12269_v39  ;;  %v19485_v62 = vld [vmem:[#allocation37_spill] sm:$0xff] }
 0x67b   : > { %v12234_v2 = vmul.f32 %v18797_v43, %v19485_v62  ;;  %v12241_v19 = vmul.f32 %v18846_v11, %v18550_v9 }
 0x67c   : > { %v12310_v17 = vadd.f32 %v12309_v6, %v12270_v63  ;;  %v12235_v6 = vmul.f32 %v18804_v60, %v18300_v29  ;;  %v12237_v29 = vmul.f32 %v18818_v5, %v18514_v0  ;;  %v12239_v0 = vmul.f32 %v18832_v30, %v18526_v22 }
 0x67d   : > { %v12275_v23 = vmul.f32 %v12234_v2, %v18797_v43  ;;  %v12242_v22 = vmul.f32 %v18853_v61, %v18557_v16  ;;  %v12284_v16 = vmul.f32 %v12243_v1, %v18612_v57 }
 0x67e   : > { %v12311_v39 = vadd.f32 %v12310_v17, %v12271_v42  ;;  %v12236_v17 = vmul.f32 %v18811_v34, %v18510_v18  ;;  %v12276_v3 = vmul.f32 %v12235_v6, %v18804_v60  ;;  %v12238_v18 = vmul.f32 %v18825_v49, %v18521_v13 }
 0x67f   : > { %v12278_v2 = vmul.f32 %v12237_v29, %v18818_v5  ;;  %v12240_v13 = vmul.f32 %v18839_v25, %v18546_v26  ;;  %v12282_v26 = vmul.f32 %v12241_v19, %v18846_v11  ;;  %v12283_v9 = vmul.f32 %v12242_v22, %v18853_v61 }
 0x680   : > { %v12312_v63 = vadd.f32 %v12311_v39, %v12272_v41  ;;  %v12277_v39 = vmul.f32 %v12236_v17, %v18811_v34 }
 0x681   : > { %v12281_v17 = vmul.f32 %v12240_v13, %v18839_v25  ;;  %v12249_v13 = vmul.f32 %v18630_v50, %v18601_v37 }
 0x682   : > { %v12313_v42 = vadd.f32 %v12312_v63, %v12273_v45  ;;  %v12279_v63 = vmul.f32 %v12238_v18, %v18825_v49  ;;  %v12246_v18 = vmul.f32 %v18621_v32, %v18582_v20 }
 0x684   : > { %v12314_v38 = vadd.f32 %v12313_v42, %v12274_v12  ;;  %v12280_v12 = vmul.f32 %v12239_v0, %v18832_v30 }
 0x686   : > { %v12315_v41 = vadd.f32 %v12314_v38, %v12275_v23  ;;  %v12244_v38 = vmul.f32 %v18615_v33, %v18575_v48 }
 0x688   : > { %v12316_v62 = vadd.f32 %v12315_v41, %v12276_v3  ;;  %v12245_v3 = vmul.f32 %v18618_v4, %v18579_v15  ;;  %v12285_v52 = vmul.f32 %v12244_v38, %v18615_v33  ;;  %v12287_v15 = vmul.f32 %v12246_v18, %v18621_v32 }
 0x68a   : > { %v12317_v45 = vadd.f32 %v12316_v62, %v12277_v39  ;;  %v12247_v62 = vmul.f32 %v18624_v14, %v18586_v21  ;;  %v12286_v48 = vmul.f32 %v12245_v3, %v18618_v4 }
 0x68c   : > { %v12318_v6 = vadd.f32 %v12317_v45, %v12278_v2  ;;  %v12248_v2 = vmul.f32 %v18627_v36, %v18598_v24  ;;  %v12288_v20 = vmul.f32 %v12247_v62, %v18624_v14  ;;  %v19488_v62 = vld [vmem:[#allocation6_spill] sm:$0xff] }
 0x68e   : > { %v12319_v42 = vadd.f32 %v12318_v6, %v12279_v63  ;;  %v12250_v6 = vmul.f32 %v18633_v27, %v18604_v40  ;;  %v12289_v21 = vmul.f32 %v12248_v2, %v18627_v36 }
 0x690   : > { %v12320_v23 = vadd.f32 %v12319_v42, %v12280_v12  ;;  %v12290_v12 = vmul.f32 %v12249_v13, %v18630_v50  ;;  %v12291_v24 = vmul.f32 %v12250_v6, %v18633_v27  ;;  %v19494_v13 = vld [vmem:[#allocation13_spill] sm:$0xff] }
 0x692   : > { %v12321_v46 = vadd.f32 %v12320_v23, %v12281_v17 }
 0x694   : > { %v12322_v29 = vadd.f32 %v12321_v46, %v12282_v26 }
 0x696   : > { %v12323_v41 = vadd.f32 %v12322_v29, %v12283_v9 }
 0x698   : > { %v12324_v39 = vadd.f32 %v12323_v41, %v12284_v16  ;;  %v19486_v41 = vld [vmem:[#allocation38_spill] sm:$0xff] }
 0x69a   : > { %v12325_v0 = vadd.f32 %v12324_v39, %v12285_v52  ;;  %v19487_v52 = vld [vmem:[#allocation3_spill] sm:$0xff] }
 0x69c   : > { %v12326_v45 = vadd.f32 %v12325_v0, %v12286_v48 }
 0x69e   : > { %v12327_v63 = vadd.f32 %v12326_v45, %v12287_v15 }
 0x6a0   : > { %v12328_v19 = vadd.f32 %v12327_v63, %v12288_v20 }
 0x6a2   : > { %v12329_v42 = vadd.f32 %v12328_v19, %v12289_v21 }
 0x6a4   : > { %v12330_v22 = vadd.f32 %v12329_v42, %v12290_v12 }
 0x6a6   : > { %v12331_v17 = vadd.f32 %v12330_v22, %v12291_v24 }
 0x6a8   : > { %12332 = vadd.xlane.f32.xlu1 %v12331_v17 }
 0x735   : > { %v12333_v23 = vpop.xlane.xlu1 %12332 }
 0x736   : > { %v12334_v1 = vmul.f32 0.00024414063, %v12333_v23 }
 0x738   : > { %v12335_v37 = vadd.f32 1e-05, %v12334_v1 }
 0x73a   : > { %13530 = vrsqrt.f32 %v12335_v37 }
 0x744   : > { %v13531_v26 = vpop.eup %13530 }
 0x745   : > { %v12337_v46 = vmul.f32 %v13531_v26, %v18637_v10  ;;  %v12338_v40 = vmul.f32 %v13531_v26, %v18641_v31  ;;  %v12339_v38 = vmul.f32 %v13531_v26, %v18645_v47  ;;  %v12340_v9 = vmul.f32 %v13531_v26, %v18653_v35  ;;  %v19489_v10 = vld [vmem:[#allocation4_spill] sm:$0xff]  ;;  %v19490_v31 = vld [vmem:[#allocation9_spill] sm:$0xff] }
 0x746   : > { %v12341_v29 = vmul.f32 %v13531_v26, %v18657_v55  ;;  %v12342_v3 = vmul.f32 %v13531_v26, %v18665_v28  ;;  %v12343_v16 = vmul.f32 %v13531_v26, %v18671_v51  ;;  %v12344_v18 = vmul.f32 %v13531_v26, %v19486_v41  ;;  %v19491_v47 = vld [vmem:[#allocation5_spill] sm:$0xff]  ;;  %v19492_v55 = vld [vmem:[#allocation10_spill] sm:$0xff]  ;;  %v19493_v28 = vld [vmem:[#allocation7_spill] sm:$0xff] }
 0x747   : > { %v12345_v39 = vmul.f32 %v13531_v26, %v19487_v52  ;;  %v12346_v48 = vmul.f32 %v13531_v26, %v19488_v62  ;;  %v12347_v0 = vmul.f32 %v13531_v26, %v19489_v10  ;;  %v18902_v2 = vmul.f32 %v13531_v26, %v19490_v31 }
 0x748   : > { %v18905_v35 = vmul.f32 %v13531_v26, %v19491_v47  ;;  %v18908_v15 = vmul.f32 %v13531_v26, %v19492_v55  ;;  %v18911_v45 = vmul.f32 %v13531_v26, %v19493_v28  ;;  %v18914_v51 = vmul.f32 %v13531_v26, %v18734_v58 }
 0x749   : > { %v18917_v20 = vmul.f32 %v13531_v26, %v19494_v13  ;;  %v18920_v63 = vmul.f32 %v13531_v26, %v18748_v54  ;;  %v18923_v6 = vmul.f32 %v13531_v26, %v18755_v56  ;;  %v18926_v21 = vmul.f32 %v13531_v26, %v18762_v53 }
 0x74a   : > { %v18930_v19 = vmul.f32 %v13531_v26, %v18769_v7  ;;  %v18933_v12 = vmul.f32 %v13531_v26, %v18776_v59  ;;  %v18936_v58 = vmul.f32 %v13531_v26, %v18783_v44  ;;  %v18939_v42 = vmul.f32 %v13531_v26, %v18790_v8 }
 0x74b   : > { %v18942_v54 = vmul.f32 %v13531_v26, %v18797_v43  ;;  %v18945_v56 = vmul.f32 %v13531_v26, %v18804_v60  ;;  %v18948_v53 = vmul.f32 %v13531_v26, %v18811_v34  ;;  %v18951_v7 = vmul.f32 %v13531_v26, %v18818_v5 }
 0x74c   : > { %v18954_v59 = vmul.f32 %v13531_v26, %v18825_v49  ;;  %v18957_v44 = vmul.f32 %v13531_v26, %v18832_v30  ;;  %v18960_v8 = vmul.f32 %v13531_v26, %v18839_v25  ;;  %v18963_v43 = vmul.f32 %v13531_v26, %v18846_v11 }
 0x74d   : > { %v18966_v60 = vmul.f32 %v13531_v26, %v18853_v61  ;;  %v18969_v34 = vmul.f32 %v13531_v26, %v18612_v57  ;;  %v18972_v5 = vmul.f32 %v13531_v26, %v18615_v33  ;;  %v18975_v49 = vmul.f32 %v13531_v26, %v18618_v4 }
 0x74e   : > { %v18983_v30 = vmul.f32 %v13531_v26, %v18621_v32  ;;  %v18986_v25 = vmul.f32 %v13531_v26, %v18624_v14  ;;  %v18989_v57 = vmul.f32 %v13531_v26, %v18627_v36  ;;  %v18992_v33 = vmul.f32 %v13531_v26, %v18630_v50 }
 0x74f   : > { %v18995_v4 = vmul.f32 %v13531_v26, %v18633_v27  ;;  %v12378_v11 = vmax.f32 %v12337_v46, 0.0  ;;  %v12379_v61 = vmax.f32 %v12338_v40, 0.0  ;;  %v12380_v24 = vmax.f32 %v12339_v38, 0.0 }
 0x750   : > { %v12381_v32 = vmax.f32 %v12340_v9, 0.0  ;;  %v12382_v22 = vmax.f32 %v12341_v29, 0.0  ;;  %v12383_v14 = vmax.f32 %v12342_v3, 0.0  ;;  %v12384_v17 = vmax.f32 %v12343_v16, 0.0 }
 0x751   : > { %v12385_v36 = vmax.f32 %v12344_v18, 0.0  ;;  %v12386_v23 = vmax.f32 %v12345_v39, 0.0  ;;  %v12387_v1 = vmax.f32 %v12346_v48, 0.0  ;;  %v12388_v37 = vmax.f32 %v12347_v0, 0.0  ;;  %12419 = vst [vmem:[%s18980_s10] sm:$0xff] %v12378_v11  ;;  %12420 = vst [vmem:[%s18980_s10 + $0x8] sm:$0xff] %v12379_v61 }
 0x752   : > { %12421 = vst [vmem:[%s18980_s10 + $0x10] sm:$0xff] %v12380_v24  ;;  %v12389_v50 = vmax.f32 %v18902_v2, 0.0  ;;  %v12390_v27 = vmax.f32 %v18905_v35, 0.0  ;;  %v12391_v26 = vmax.f32 %v18908_v15, 0.0  ;;  %v12392_v46 = vmax.f32 %v18911_v45, 0.0  ;;  %12422 = vst [vmem:[%s18980_s10 + $0x18] sm:$0xff] %v12381_v32 }
 0x753   : > { %12423 = vst [vmem:[%s18980_s10 + $0x20] sm:$0xff] %v12382_v22  ;;  %12424 = vst [vmem:[%s18980_s10 + $0x28] sm:$0xff] %v12383_v14  ;;  %v12393_v40 = vmax.f32 %v18914_v51, 0.0  ;;  %v12394_v38 = vmax.f32 %v18917_v20, 0.0  ;;  %v12395_v9 = vmax.f32 %v18920_v63, 0.0  ;;  %v12396_v29 = vmax.f32 %v18923_v6, 0.0 }
 0x754   : > { %12425 = vst [vmem:[%s18980_s10 + $0x30] sm:$0xff] %v12384_v17  ;;  %12426 = vst [vmem:[%s18980_s10 + $0x38] sm:$0xff] %v12385_v36  ;;  %v12397_v3 = vmax.f32 %v18926_v21, 0.0  ;;  %v12398_v16 = vmax.f32 %v18930_v19, 0.0  ;;  %v12399_v41 = vmax.f32 %v18933_v12, 0.0  ;;  %v12400_v18 = vmax.f32 %v18936_v58, 0.0 }
 0x755   : > { %12427 = vst [vmem:[%s18980_s10 + $0x40] sm:$0xff] %v12386_v23  ;;  %12428 = vst [vmem:[%s18980_s10 + $0x48] sm:$0xff] %v12387_v1  ;;  %v12401_v52 = vmax.f32 %v18939_v42, 0.0  ;;  %v12402_v39 = vmax.f32 %v18942_v54, 0.0  ;;  %v12403_v62 = vmax.f32 %v18945_v56, 0.0  ;;  %v12404_v48 = vmax.f32 %v18948_v53, 0.0 }
 0x756   : > { %12429 = vst [vmem:[%s18980_s10 + $0x50] sm:$0xff] %v12388_v37  ;;  %12430 = vst [vmem:[%s18980_s10 + $0x58] sm:$0xff] %v12389_v50  ;;  %v12405_v10 = vmax.f32 %v18951_v7, 0.0  ;;  %v12406_v0 = vmax.f32 %v18954_v59, 0.0  ;;  %v12407_v31 = vmax.f32 %v18957_v44, 0.0  ;;  %v12408_v2 = vmax.f32 %v18960_v8, 0.0 }
 0x757   : > { %12431 = vst [vmem:[%s18980_s10 + $0x60] sm:$0xff] %v12390_v27  ;;  %12432 = vst [vmem:[%s18980_s10 + $0x68] sm:$0xff] %v12391_v26  ;;  %v12409_v47 = vmax.f32 %v18963_v43, 0.0  ;;  %v12410_v35 = vmax.f32 %v18966_v60, 0.0  ;;  %v12411_v55 = vmax.f32 %v18969_v34, 0.0  ;;  %v12412_v15 = vmax.f32 %v18972_v5, 0.0 }
 0x758   : > { %12433 = vst [vmem:[%s18980_s10 + $0x70] sm:$0xff] %v12392_v46  ;;  %12434 = vst [vmem:[%s18980_s10 + $0x78] sm:$0xff] %v12393_v40  ;;  %v12413_v28 = vmax.f32 %v18975_v49, 0.0  ;;  %v12414_v45 = vmax.f32 %v18983_v30, 0.0  ;;  %v12415_v51 = vmax.f32 %v18986_v25, 0.0  ;;  %v12416_v13 = vmax.f32 %v18989_v57, 0.0 }
 0x759   : > { %12435 = vst [vmem:[%s18980_s10 + $0x80] sm:$0xff] %v12394_v38  ;;  %12436 = vst [vmem:[%s18980_s10 + $0x88] sm:$0xff] %v12395_v9  ;;  %v12417_v20 = vmax.f32 %v18992_v33, 0.0  ;;  %v12418_v63 = vmax.f32 %v18995_v4, 0.0 }
 0x75a   : > { %12437 = vst [vmem:[%s18980_s10 + $0x90] sm:$0xff] %v12396_v29  ;;  %12438 = vst [vmem:[%s18980_s10 + $0x98] sm:$0xff] %v12397_v3 }
 0x75b   : > { %12439 = vst [vmem:[%s18980_s10 + $0xa0] sm:$0xff] %v12398_v16  ;;  %12440 = vst [vmem:[%s18980_s10 + $0xa8] sm:$0xff] %v12399_v41 }
 0x75c   : > { %12441 = vst [vmem:[%s18980_s10 + $0xb0] sm:$0xff] %v12400_v18  ;;  %12442 = vst [vmem:[%s18980_s10 + $0xb8] sm:$0xff] %v12401_v52 }
 0x75d   : > { %12443 = vst [vmem:[%s18980_s10 + $0xc0] sm:$0xff] %v12402_v39  ;;  %12444 = vst [vmem:[%s18980_s10 + $0xc8] sm:$0xff] %v12403_v62 }
 0x75e   : > { %12445 = vst [vmem:[%s18980_s10 + $0xd0] sm:$0xff] %v12404_v48  ;;  %12446 = vst [vmem:[%s18980_s10 + $0xd8] sm:$0xff] %v12405_v10 }
 0x75f   : > { %12447 = vst [vmem:[%s18980_s10 + $0xe0] sm:$0xff] %v12406_v0  ;;  %12448 = vst [vmem:[%s18980_s10 + $0xe8] sm:$0xff] %v12407_v31 }
 0x760   : > { %12449 = vst [vmem:[%s18980_s10 + $0xf0] sm:$0xff] %v12408_v2  ;;  %12450 = vst [vmem:[%s18980_s10 + $0xf8] sm:$0xff] %v12409_v47 }
 0x761   : > { %12451 = vst [vmem:[%s18980_s10 + $0x100] sm:$0xff] %v12410_v35  ;;  %12452 = vst [vmem:[%s18980_s10 + $0x108] sm:$0xff] %v12411_v55 }
 0x762   : > { %12453 = vst [vmem:[%s18980_s10 + $0x110] sm:$0xff] %v12412_v15  ;;  %12454 = vst [vmem:[%s18980_s10 + $0x118] sm:$0xff] %v12413_v28 }
 0x763   : > { %12455 = vst [vmem:[%s18980_s10 + $0x120] sm:$0xff] %v12414_v45  ;;  %12456 = vst [vmem:[%s18980_s10 + $0x128] sm:$0xff] %v12415_v51 }
 0x764   : > { %12457 = vst [vmem:[%s18980_s10 + $0x130] sm:$0xff] %v12416_v13  ;;  %12458 = vst [vmem:[%s18980_s10 + $0x138] sm:$0xff] %v12417_v20 }
 0x765   : > { %12459 = vst [vmem:[%s18980_s10 + $0x140] sm:$0xff] %v12418_v63 }
 0x766 PF: > { %s13_s14 = sadd.s32 1, %s13558_s14   ;;  %s19495_s12 = smov %s13554_s13 }
 0x767   : > { %p10_p5 = scmp.ge.s32.totalorder %s13_s14, 4   ;;  %s19496_s13 = smov %s19498_s15 }
 0x769   :  { %12 = sbr.rel (!%p10_p5) target bundleno = 2 (0x2), region = 65 }

</bundles_post_ra>
